<compile_context>
chip_gen: v7x
topology: tpu7x:2x2x1
jax: 0.10.0
libtpu: 0.0.40
codegen_flags: <defaults>
</compile_context>

<pallas_src>
import jax
import jax.numpy as jnp
from jax.experimental import pallas as pl
from jax.experimental.pallas import tpu as pltpu


# ----------------------------------------------------------------------------
# Small helpers
# ----------------------------------------------------------------------------
def _tile(dim, candidates):
    for c in candidates:
        if dim % c == 0:
            return c
    return dim


def _vmem_limit(need_bytes):
    """Generation-aware scoped-VMEM request (3/4 of physical capacity cap)."""
    try:
        cap = int(pltpu.get_tpu_info().vmem_capacity_bytes)
    except Exception:
        cap = 64 << 20                       # conservative (v7x per-core VMEM)
    hi = max(int(cap) * 3 // 4, 32 << 20)
    return int(min(max(int(need_bytes) + (4 << 20), 16 << 20), hi))


# ----------------------------------------------------------------------------
# Fused bidirectional LSTM layer
#   grid = (2 directions ["parallel"], nb time blocks ["arbitrary"])
#   per grid step: in-kernel input projection (MXU) + TT recurrent steps.
# ----------------------------------------------------------------------------
def _lstm_cell(gates, c_prev):
    H = c_prev.shape[-1]
    i_g = jax.nn.sigmoid(gates[:, 0 * H:1 * H])
    f_g = jax.nn.sigmoid(gates[:, 1 * H:2 * H])
    g_g = jnp.tanh(gates[:, 2 * H:3 * H])
    o_g = jax.nn.sigmoid(gates[:, 3 * H:4 * H])
    c = f_g * c_prev + i_g * g_g
    h = o_g * jnp.tanh(c)
    return h, c


def _project_and_recur(x_ref, wih_ref, whh_ref, b_ref, gx_ref, h_ref, c_ref, emit):
    """Input projection for the whole block + TT recurrent steps for one direction."""
    d = pl.program_id(0)                     # 0 = forward, 1 = backward
    TT, B, Din = x_ref.shape
    H = h_ref.shape[-1]

    # Hoisted input projection: one wide bf16 MXU matmul per block, bias folded
    # in, result kept in VMEM scratch (gx never touches HBM).
    x2d = x_ref[...].reshape(TT * B, Din)
    gx = jnp.dot(x2d, wih_ref[0], preferred_element_type=jnp.float32) + b_ref[0]
    gx_ref[...] = gx.reshape(TT, B, 4 * H)

    whh = whh_ref[0]                         # (H, 4H) bf16, stationary over the loop
    for s in range(TT):
        # forward direction walks t = s; backward direction walks t = TT-1-s
        t = s + d * (TT - 1 - 2 * s)
        gates = gx_ref[t] + jnp.dot(h_ref[...], whh,
                                    preferred_element_type=jnp.float32)
        h, c = _lstm_cell(gates, c_ref[...])
        h_ref[...] = h.astype(h_ref.dtype)   # bf16 state -> feeds next step's MXU
        c_ref[...] = c
        emit(t, h)


def _bilstm_seq_kernel(x_ref, wih_ref, whh_ref, b_ref, y_ref, gx_ref, h_ref, c_ref):
    @pl.when(pl.program_id(1) == 0)
    def _():
        h_ref[...] = jnp.zeros_like(h_ref)
        c_ref[...] = jnp.zeros_like(c_ref)

    def emit(t, h):
        y_ref[t] = h.astype(y_ref.dtype)

    _project_and_recur(x_ref, wih_ref, whh_ref, b_ref, gx_ref, h_ref, c_ref, emit)


def _bilstm_pool_kernel(x_ref, wih_ref, whh_ref, b_ref, pooled_ref,
                        gx_ref, h_ref, c_ref):
    i = pl.program_id(1)

    @pl.when(i == 0)
    def _():
        h_ref[...] = jnp.zeros_like(h_ref)
        c_ref[...] = jnp.zeros_like(c_ref)
        pooled_ref[...] = jnp.zeros_like(pooled_ref)

    # accumulate the block's time-sum in vregs; single output RMW per block
    psum = [jnp.zeros(pooled_ref.shape, jnp.float32)]

    def emit(t, h):
        psum[0] = psum[0] + h

    _project_and_recur(x_ref, wih_ref, whh_ref, b_ref, gx_ref, h_ref, c_ref, emit)
    pooled_ref[...] += psum[0]


def bilstm_layer(x, wih, whh, bias, *, pooled):
    """Fused bidirectional LSTM layer (projection + recurrence in one kernel).

    x:    (T, B, Din) bf16 time-major activations.
    wih:  (2, Din, 4H) bf16   (dir-stacked, transposed W_ih)
    whh:  (2, H,   4H) bf16   (dir-stacked, transposed W_hh)
    bias: (2, 1,   4H) f32    (b_ih + b_hh per direction)
    Returns (T, B, 2H) bf16 ([:, :, :H]=fwd, [:, :, H:]=bwd), or the (B, 2H)
    f32 sum over time of [h_fwd, h_bwd] when pooled=True.
    """
    T, B, Din = x.shape
    H = whh.shape[1]
    G = 4 * H
    assert B % 8 == 0 and Din % 128 == 0 and H % 128 == 0, (B, Din, H)
    TT = _tile(T, (16, 8, 4, 2, 1))
    nb = T // TT

    def blk(d, i):
        # forward direction visits blocks 0..nb-1; backward visits nb-1..0
        return (1 - d) * i + d * (nb - 1 - i)

    in_specs = [
        pl.BlockSpec((TT, B, Din), lambda d, i: (blk(d, i), 0, 0)),
        pl.BlockSpec((1, Din, G), lambda d, i: (d, 0, 0)),
        pl.BlockSpec((1, H, G), lambda d, i: (d, 0, 0)),
        pl.BlockSpec((1, 1, G), lambda d, i: (d, 0, 0)),
    ]
    scratch = [pltpu.VMEM((TT, B, G), jnp.float32),   # gx (projection result)
               pltpu.VMEM((B, H), jnp.bfloat16),      # h state
               pltpu.VMEM((B, H), jnp.float32)]       # c state

    if pooled:
        kernel = _bilstm_pool_kernel
        out_shape = jax.ShapeDtypeStruct((B, 2 * H), jnp.float32)
        out_specs = pl.BlockSpec((B, H), lambda d, i: (0, d))
        out_bytes = 2 * B * H * 4
    else:
        kernel = _bilstm_seq_kernel
        out_shape = jax.ShapeDtypeStruct((T, B, 2 * H), jnp.bfloat16)
        out_specs = pl.BlockSpec((TT, B, H), lambda d, i: (blk(d, i), 0, d))
        out_bytes = 2 * TT * B * H * 2

    need = (2 * TT * B * Din * 2              # double-buffered x block (bf16)
            + 2 * (Din * G + H * G + G) * 2 * 2   # weights / bias, 2 buffers
            + TT * B * G * 4                  # gx scratch
            + out_bytes
            + 4 * B * H)                      # h + c state
    return pl.pallas_call(
        kernel,
        out_shape=out_shape,
        grid_spec=pltpu.PrefetchScalarGridSpec(
            num_scalar_prefetch=0,
            grid=(2, nb),
            in_specs=in_specs,
            out_specs=out_specs,
            scratch_shapes=scratch),
        compiler_params=pltpu.CompilerParams(
            dimension_semantics=("parallel", "arbitrary"),
            vmem_limit_bytes=_vmem_limit(need)),
    )(x, wih, whh, bias)


# ----------------------------------------------------------------------------
# Head: Linear(2H -> num_labels) on the fused time-mean
# ----------------------------------------------------------------------------
def _head_kernel(p_ref, w_ref, b_ref, o_ref):
    o_ref[...] = (jnp.dot(p_ref[...], w_ref[...],
                          preferred_element_type=jnp.float32)
                  + b_ref[...]).astype(o_ref.dtype)


def head(pooled_sum, w_out, b_out, t_total):
    """Linear on the time-mean; the 1/T of the mean is folded into the weight."""
    B = pooled_sum.shape[0]
    L = w_out.shape[0]
    w = (jnp.transpose(w_out) * (1.0 / t_total)).astype(jnp.float32)   # (2H, L)
    return pl.pallas_call(
        _head_kernel,
        out_shape=jax.ShapeDtypeStruct((B, L), jnp.float32),
    )(pooled_sum, w, b_out.reshape(1, L))


# ----------------------------------------------------------------------------
# Forward pass
# ----------------------------------------------------------------------------
def _prep_dir(p):
    w_ih, w_hh, b_ih, b_hh = p
    return (jnp.transpose(w_ih).astype(jnp.bfloat16),           # (Din, 4H)
            jnp.transpose(w_hh).astype(jnp.bfloat16),           # (H,   4H)
            (b_ih + b_hh).reshape(1, -1).astype(jnp.float32))   # (1,   4H)


def _stack_dirs(pf, pb):
    wih_f, whh_f, b_f = _prep_dir(pf)
    wih_b, whh_b, b_b = _prep_dir(pb)
    return (jnp.stack([wih_f, wih_b]),     # (2, Din, 4H) bf16
            jnp.stack([whh_f, whh_b]),     # (2, H,   4H) bf16
            jnp.stack([b_f, b_b]))         # (2, 1,   4H) f32


def plm_lstm_regressor_forward(params, input_ids, attention_mask):
    # TODO(synk): stand-in for the pretrained PLM encoder (AutoModel).
    emb = params["embed"][input_ids] * attention_mask[..., None].astype(jnp.float32)
    x = jnp.transpose(emb, (1, 0, 2)).astype(jnp.bfloat16)      # (T, B, D) time-major
    T = x.shape[0]

    wih0, whh0, b0 = _stack_dirs(params["l0_f"], params["l0_b"])
    wih1, whh1, b1 = _stack_dirs(params["l1_f"], params["l1_b"])

    # layer 0: fused projection + bidirectional recurrence -> (T, B, 2H) bf16
    y = bilstm_layer(x, wih0, whh0, b0, pooled=False)
    # layer 1: same fused kernel; time-mean pooling accumulated in VMEM,
    # the (T, B, 2H) layer-1 activations never hit HBM
    pooled_sum = bilstm_layer(y, wih1, whh1, b1, pooled=True)

    # dropout: identity (eval mode)
    return head(pooled_sum, params["w_out"], params["b_out"], T)


# ----------------------------------------------------------------------------
# Pure-JAX reference (mirrors the kernels' bf16 weight / activation policy)
# ----------------------------------------------------------------------------
def _lstm_dir_ref(x_tbd_bf16, prep):
    wih_t, whh_t, bias = prep
    T, B, Din = x_tbd_bf16.shape
    H = whh_t.shape[0]
    gx = (jnp.dot(x_tbd_bf16.reshape(T * B, Din), wih_t,
                  preferred_element_type=jnp.float32)
          + bias).reshape(T, B, 4 * H)

    def step(carry, g_t):
        h, c = carry
        gates = g_t + jnp.dot(h, whh_t, preferred_element_type=jnp.float32)
        i, f, g, o = jnp.split(gates, 4, axis=-1)
        c = jax.nn.sigmoid(f) * c + jax.nn.sigmoid(i) * jnp.tanh(g)
        hf = jax.nn.sigmoid(o) * jnp.tanh(c)
        return (hf.astype(jnp.bfloat16), c), hf

    init = (jnp.zeros((B, H), jnp.bfloat16), jnp.zeros((B, H), jnp.float32))
    _, hs = jax.lax.scan(step, init, gx)
    return hs                                              # (T, B, H) f32


def _forward_ref(params, input_ids, attention_mask):
    emb = params["embed"][input_ids] * attention_mask[..., None].astype(jnp.float32)
    x = jnp.transpose(emb, (1, 0, 2)).astype(jnp.bfloat16)
    preps = {k: _prep_dir(params[k]) for k in ("l0_f", "l0_b", "l1_f", "l1_b")}

    hf0 = _lstm_dir_ref(x, preps["l0_f"])
    hb0 = _lstm_dir_ref(x[::-1], preps["l0_b"])[::-1]
    y = jnp.concatenate([hf0, hb0], axis=-1).astype(jnp.bfloat16)

    hf1 = _lstm_dir_ref(y, preps["l1_f"])
    hb1 = _lstm_dir_ref(y[::-1], preps["l1_b"])[::-1]
    pooled = jnp.mean(jnp.concatenate([hf1, hb1], axis=-1), axis=0)
    return pooled @ jnp.transpose(params["w_out"]) + params["b_out"]


# ----------------------------------------------------------------------------
# Parameter construction
# ----------------------------------------------------------------------------
def init_params(key, vocab_size, d_plm, h_lstm, num_labels):
    keys = jax.random.split(key, 32)
    kit = iter(keys)
    k = 1.0 / jnp.sqrt(h_lstm)

    def uni(shape):
        return jax.random.uniform(next(kit), shape, jnp.float32, -k, k)

    def lstm_dir(d_in):
        return (uni((4 * h_lstm, d_in)),    # w_ih
                uni((4 * h_lstm, h_lstm)),  # w_hh
                uni((4 * h_lstm,)),         # b_ih
                uni((4 * h_lstm,)))         # b_hh

    params = {
        "embed": jax.random.normal(next(kit), (vocab_size, d_plm), jnp.float32) * 0.02,
        "l0_f": lstm_dir(d_plm),
        "l0_b": lstm_dir(d_plm),
        "l1_f": lstm_dir(2 * h_lstm),
        "l1_b": lstm_dir(2 * h_lstm),
        "w_out": uni((num_labels, 2 * h_lstm)),
        "b_out": uni((num_labels,)),
    }
    return params


# ----------------------------------------------------------------------------
if __name__ == "__main__":
    # Lane/sublane-friendly small shapes: B multiple of 8, H/D multiples of 128.
    B, T, D_PLM, H_LSTM, NUM_LABELS, VOCAB = 8, 32, 128, 128, 1, 64

    key = jax.random.PRNGKey(0)
    k_param, k_ids = jax.random.split(key)
    params = init_params(k_param, VOCAB, D_PLM, H_LSTM, NUM_LABELS)

    input_ids = jax.random.randint(k_ids, (B, T), 0, VOCAB, dtype=jnp.int32)
    attention_mask = jnp.ones((B, T), dtype=jnp.int32)

    fwd = jax.jit(plm_lstm_regressor_forward)
    out = jax.block_until_ready(fwd(params, input_ids, attention_mask))

    ref = jax.block_until_ready(_forward_ref(params, input_ids, attention_mask))
    assert out.shape == (B, NUM_LABELS)
    assert jnp.allclose(out, ref, rtol=5e-3, atol=5e-3), (out, ref)

    print("KERNEL_OK")
</pallas_src>

<mosaic_0001>
module attributes {stable_mosaic.version = 11 : i64} {
  func.func @_bilstm_seq_kernel(%arg0: i32, %arg1: i32, %arg2: memref<16x8x128xbf16, #tpu.memory_space<vmem>>, %arg3: memref<1x128x512xbf16, #tpu.memory_space<vmem>>, %arg4: memref<1x128x512xbf16, #tpu.memory_space<vmem>>, %arg5: memref<1x1x512xf32, #tpu.memory_space<vmem>>, %arg6: memref<16x8x128xbf16, #tpu.memory_space<vmem>>, %arg7: memref<16x8x512xf32, #tpu.memory_space<vmem>>, %arg8: memref<8x128xbf16, #tpu.memory_space<vmem>>, %arg9: memref<8x128xf32, #tpu.memory_space<vmem>>) attributes {dimension_semantics = [#tpu.dimension_semantics<parallel>, #tpu.dimension_semantics<arbitrary>], iteration_bounds = array<i64: 2, 2>, scalar_prefetch = 0 : i64, scratch_operands = 3 : i64, tpu.core_type = #tpu.core_type<tc>, window_params = [{transform_indices = @transform_0, window_bounds = array<i64: 16, 8, 128>}, {transform_indices = @transform_1, window_bounds = array<i64: 1, 128, 512>}, {transform_indices = @transform_2, window_bounds = array<i64: 1, 128, 512>}, {transform_indices = @transform_3, window_bounds = array<i64: 1, 1, 512>}, {transform_indices = @transform_4, window_bounds = array<i64: 16, 8, 128>}]} {
    %c0_i32 = arith.constant 0 : i32
    %0 = arith.cmpi eq, %arg1, %c0_i32 : i32
    %1 = arith.extui %0 : i1 to i32
    %c0_i32_0 = arith.constant 0 : i32
    %2 = arith.cmpi ne, %1, %c0_i32_0 : i32
    scf.if %2 {
      %cst_280 = arith.constant 0.000000e+00 : bf16
      %688 = vector.broadcast %cst_280 : bf16 to vector<8x128xbf16>
      %c0_281 = arith.constant 0 : index
      %c0_282 = arith.constant 0 : index
      %689 = vector.load %arg8[%c0_281, %c0_282] : memref<8x128xbf16, #tpu.memory_space<vmem>>, vector<8x128xbf16>
      tpu.vector_store %arg8[%c0_281, %c0_282], %688 {strides = array<i32>} : memref<8x128xbf16, #tpu.memory_space<vmem>>, vector<8x128xbf16>,
      %cst_283 = arith.constant 0.000000e+00 : f32
      %690 = vector.broadcast %cst_283 : f32 to vector<8x128xf32>
      %c0_284 = arith.constant 0 : index
      %c0_285 = arith.constant 0 : index
      %691 = vector.load %arg9[%c0_284, %c0_285] : memref<8x128xf32, #tpu.memory_space<vmem>>, vector<8x128xf32>
      tpu.vector_store %arg9[%c0_284, %c0_285], %690 {strides = array<i32>} : memref<8x128xf32, #tpu.memory_space<vmem>>, vector<8x128xf32>,
    } else {
    }
    %c0 = arith.constant 0 : index
    %c0_1 = arith.constant 0 : index
    %c0_2 = arith.constant 0 : index
    %3 = vector.load %arg2[%c0, %c0_1, %c0_2] : memref<16x8x128xbf16, #tpu.memory_space<vmem>>, vector<16x8x128xbf16>
    %4 = vector.shape_cast %3 : vector<16x8x128xbf16> to vector<128x128xbf16>
    %c0_3 = arith.constant 0 : index
    %c0_4 = arith.constant 0 : index
    %c0_5 = arith.constant 0 : index
    %5 = vector.load %arg3[%c0_3, %c0_4, %c0_5] : memref<1x128x512xbf16, #tpu.memory_space<vmem>>, vector<1x128x512xbf16>
    %6 = vector.shape_cast %5 : vector<1x128x512xbf16> to vector<128x512xbf16>
    %cst = arith.constant dense<0.000000e+00> : vector<128x512xf32>
    %7 = tpu.matmul %4, %6, %cst {dimension_numbers = #tpu.dot_dimension_numbers<[1], [0], [0], [1], [0, 0, 1, 1], [], []>} : vector<128x128xbf16>, vector<128x512xbf16>, vector<128x512xf32> -> vector<128x512xf32>
    %c0_6 = arith.constant 0 : index
    %c0_7 = arith.constant 0 : index
    %c0_8 = arith.constant 0 : index
    %8 = vector.load %arg5[%c0_6, %c0_7, %c0_8] : memref<1x1x512xf32, #tpu.memory_space<vmem>>, vector<1x1x512xf32>
    %9 = vector.shape_cast %8 : vector<1x1x512xf32> to vector<1x512xf32>
    %10 = vector.broadcast %9 : vector<1x512xf32> to vector<128x512xf32>
    %11 = arith.addf %7, %10 : vector<128x512xf32>
    %12 = vector.shape_cast %11 : vector<128x512xf32> to vector<16x8x512xf32>
    %c0_9 = arith.constant 0 : index
    %c0_10 = arith.constant 0 : index
    %c0_11 = arith.constant 0 : index
    %13 = vector.load %arg7[%c0_9, %c0_10, %c0_11] : memref<16x8x512xf32, #tpu.memory_space<vmem>>, vector<16x8x512xf32>
    tpu.vector_store %arg7[%c0_9, %c0_10, %c0_11], %12 {strides = array<i32>} : memref<16x8x512xf32, #tpu.memory_space<vmem>>, vector<16x8x512xf32>,
    %c0_12 = arith.constant 0 : index
    %c0_13 = arith.constant 0 : index
    %c0_14 = arith.constant 0 : index
    %14 = vector.load %arg4[%c0_12, %c0_13, %c0_14] : memref<1x128x512xbf16, #tpu.memory_space<vmem>>, vector<1x128x512xbf16>
    %15 = vector.shape_cast %14 : vector<1x128x512xbf16> to vector<128x512xbf16>
    %c15_i32 = arith.constant 15 : i32
    %16 = arith.muli %arg0, %c15_i32 : i32
    %c0_i32_15 = arith.constant 0 : i32
    %17 = arith.addi %c0_i32_15, %16 : i32
    %18 = arith.index_cast %17 : i32 to index
    %c0_16 = arith.constant 0 : index
    %c0_17 = arith.constant 0 : index
    %19 = vector.load %arg7[%18, %c0_16, %c0_17] : memref<16x8x512xf32, #tpu.memory_space<vmem>>, vector<1x8x512xf32>
    %20 = vector.shape_cast %19 : vector<1x8x512xf32> to vector<8x512xf32>
    %c0_18 = arith.constant 0 : index
    %c0_19 = arith.constant 0 : index
    %21 = vector.load %arg8[%c0_18, %c0_19] : memref<8x128xbf16, #tpu.memory_space<vmem>>, vector<8x128xbf16>
    %cst_20 = arith.constant dense<0.000000e+00> : vector<8x512xf32>
    %22 = tpu.matmul %21, %15, %cst_20 {dimension_numbers = #tpu.dot_dimension_numbers<[1], [0], [0], [1], [0, 0, 1, 1], [], []>} : vector<8x128xbf16>, vector<128x512xbf16>, vector<8x512xf32> -> vector<8x512xf32>
    %23 = arith.addf %20, %22 : vector<8x512xf32>
    %c0_21 = arith.constant 0 : index
    %c0_22 = arith.constant 0 : index
    %24 = vector.load %arg9[%c0_21, %c0_22] : memref<8x128xf32, #tpu.memory_space<vmem>>, vector<8x128xf32>
    %25 = vector.extract_strided_slice %23 {offsets = [0, 0], sizes = [8, 128], strides = [1, 1]} : vector<8x512xf32> to vector<8x128xf32>
    %26 = arith.negf %25 : vector<8x128xf32>
    %27 = math.exp %26 : vector<8x128xf32>
    %cst_23 = arith.constant 1.000000e+00 : f32
    %28 = vector.broadcast %cst_23 : f32 to vector<8x128xf32>
    %29 = arith.addf %28, %27 : vector<8x128xf32>
    %30 = arith.divf %28, %29 : vector<8x128xf32>
    %31 = vector.extract_strided_slice %23 {offsets = [0, 128], sizes = [8, 128], strides = [1, 1]} : vector<8x512xf32> to vector<8x128xf32>
    %32 = arith.negf %31 : vector<8x128xf32>
    %33 = math.exp %32 : vector<8x128xf32>
    %cst_24 = arith.constant 1.000000e+00 : f32
    %34 = vector.broadcast %cst_24 : f32 to vector<8x128xf32>
    %35 = arith.addf %34, %33 : vector<8x128xf32>
    %36 = arith.divf %34, %35 : vector<8x128xf32>
    %37 = vector.extract_strided_slice %23 {offsets = [0, 256], sizes = [8, 128], strides = [1, 1]} : vector<8x512xf32> to vector<8x128xf32>
    %38 = math.tanh %37 : vector<8x128xf32>
    %39 = vector.extract_strided_slice %23 {offsets = [0, 384], sizes = [8, 128], strides = [1, 1]} : vector<8x512xf32> to vector<8x128xf32>
    %40 = arith.negf %39 : vector<8x128xf32>
    %41 = math.exp %40 : vector<8x128xf32>
    %cst_25 = arith.constant 1.000000e+00 : f32
    %42 = vector.broadcast %cst_25 : f32 to vector<8x128xf32>
    %43 = arith.addf %42, %41 : vector<8x128xf32>
    %44 = arith.divf %42, %43 : vector<8x128xf32>
    %45 = arith.mulf %36, %24 : vector<8x128xf32>
    %46 = arith.mulf %30, %38 : vector<8x128xf32>
    %47 = arith.addf %45, %46 : vector<8x128xf32>
    %48 = math.tanh %47 : vector<8x128xf32>
    %49 = arith.mulf %44, %48 : vector<8x128xf32>
    %50 = arith.truncf %49 : vector<8x128xf32> to vector<8x128xbf16>
    %c0_26 = arith.constant 0 : index
    %c0_27 = arith.constant 0 : index
    %51 = vector.load %arg8[%c0_26, %c0_27] : memref<8x128xbf16, #tpu.memory_space<vmem>>, vector<8x128xbf16>
    tpu.vector_store %arg8[%c0_26, %c0_27], %50 {strides = array<i32>} : memref<8x128xbf16, #tpu.memory_space<vmem>>, vector<8x128xbf16>,
    %c0_28 = arith.constant 0 : index
    %c0_29 = arith.constant 0 : index
    %52 = vector.load %arg9[%c0_28, %c0_29] : memref<8x128xf32, #tpu.memory_space<vmem>>, vector<8x128xf32>
    tpu.vector_store %arg9[%c0_28, %c0_29], %47 {strides = array<i32>} : memref<8x128xf32, #tpu.memory_space<vmem>>, vector<8x128xf32>,
    %53 = arith.truncf %49 : vector<8x128xf32> to vector<8x128xbf16>
    %54 = arith.index_cast %17 : i32 to index
    %c0_30 = arith.constant 0 : index
    %c0_31 = arith.constant 0 : index
    %55 = vector.load %arg6[%54, %c0_30, %c0_31] : memref<16x8x128xbf16, #tpu.memory_space<vmem>>, vector<1x8x128xbf16>
    %56 = vector.shape_cast %55 : vector<1x8x128xbf16> to vector<8x128xbf16>
    %57 = vector.shape_cast %53 : vector<8x128xbf16> to vector<1x8x128xbf16>
    tpu.vector_store %arg6[%54, %c0_30, %c0_31], %57 {strides = array<i32>} : memref<16x8x128xbf16, #tpu.memory_space<vmem>>, vector<1x8x128xbf16>,
    %c13_i32 = arith.constant 13 : i32
    %58 = arith.muli %arg0, %c13_i32 : i32
    %c1_i32 = arith.constant 1 : i32
    %59 = arith.addi %c1_i32, %58 : i32
    %60 = arith.index_cast %59 : i32 to index
    %c0_32 = arith.constant 0 : index
    %c0_33 = arith.constant 0 : index
    %61 = vector.load %arg7[%60, %c0_32, %c0_33] : memref<16x8x512xf32, #tpu.memory_space<vmem>>, vector<1x8x512xf32>
    %62 = vector.shape_cast %61 : vector<1x8x512xf32> to vector<8x512xf32>
    %c0_34 = arith.constant 0 : index
    %c0_35 = arith.constant 0 : index
    %63 = vector.load %arg8[%c0_34, %c0_35] : memref<8x128xbf16, #tpu.memory_space<vmem>>, vector<8x128xbf16>
    %cst_36 = arith.constant dense<0.000000e+00> : vector<8x512xf32>
    %64 = tpu.matmul %63, %15, %cst_36 {dimension_numbers = #tpu.dot_dimension_numbers<[1], [0], [0], [1], [0, 0, 1, 1], [], []>} : vector<8x128xbf16>, vector<128x512xbf16>, vector<8x512xf32> -> vector<8x512xf32>
    %65 = arith.addf %62, %64 : vector<8x512xf32>
    %c0_37 = arith.constant 0 : index
    %c0_38 = arith.constant 0 : index
    %66 = vector.load %arg9[%c0_37, %c0_38] : memref<8x128xf32, #tpu.memory_space<vmem>>, vector<8x128xf32>
    %67 = vector.extract_strided_slice %65 {offsets = [0, 0], sizes = [8, 128], strides = [1, 1]} : vector<8x512xf32> to vector<8x128xf32>
    %68 = arith.negf %67 : vector<8x128xf32>
    %69 = math.exp %68 : vector<8x128xf32>
    %cst_39 = arith.constant 1.000000e+00 : f32
    %70 = vector.broadcast %cst_39 : f32 to vector<8x128xf32>
    %71 = arith.addf %70, %69 : vector<8x128xf32>
    %72 = arith.divf %70, %71 : vector<8x128xf32>
    %73 = vector.extract_strided_slice %65 {offsets = [0, 128], sizes = [8, 128], strides = [1, 1]} : vector<8x512xf32> to vector<8x128xf32>
    %74 = arith.negf %73 : vector<8x128xf32>
    %75 = math.exp %74 : vector<8x128xf32>
    %cst_40 = arith.constant 1.000000e+00 : f32
    %76 = vector.broadcast %cst_40 : f32 to vector<8x128xf32>
    %77 = arith.addf %76, %75 : vector<8x128xf32>
    %78 = arith.divf %76, %77 : vector<8x128xf32>
    %79 = vector.extract_strided_slice %65 {offsets = [0, 256], sizes = [8, 128], strides = [1, 1]} : vector<8x512xf32> to vector<8x128xf32>
    %80 = math.tanh %79 : vector<8x128xf32>
    %81 = vector.extract_strided_slice %65 {offsets = [0, 384], sizes = [8, 128], strides = [1, 1]} : vector<8x512xf32> to vector<8x128xf32>
    %82 = arith.negf %81 : vector<8x128xf32>
    %83 = math.exp %82 : vector<8x128xf32>
    %cst_41 = arith.constant 1.000000e+00 : f32
    %84 = vector.broadcast %cst_41 : f32 to vector<8x128xf32>
    %85 = arith.addf %84, %83 : vector<8x128xf32>
    %86 = arith.divf %84, %85 : vector<8x128xf32>
    %87 = arith.mulf %78, %66 : vector<8x128xf32>
    %88 = arith.mulf %72, %80 : vector<8x128xf32>
    %89 = arith.addf %87, %88 : vector<8x128xf32>
    %90 = math.tanh %89 : vector<8x128xf32>
    %91 = arith.mulf %86, %90 : vector<8x128xf32>
    %92 = arith.truncf %91 : vector<8x128xf32> to vector<8x128xbf16>
    %c0_42 = arith.constant 0 : index
    %c0_43 = arith.constant 0 : index
    %93 = vector.load %arg8[%c0_42, %c0_43] : memref<8x128xbf16, #tpu.memory_space<vmem>>, vector<8x128xbf16>
    tpu.vector_store %arg8[%c0_42, %c0_43], %92 {strides = array<i32>} : memref<8x128xbf16, #tpu.memory_space<vmem>>, vector<8x128xbf16>,
    %c0_44 = arith.constant 0 : index
    %c0_45 = arith.constant 0 : index
    %94 = vector.load %arg9[%c0_44, %c0_45] : memref<8x128xf32, #tpu.memory_space<vmem>>, vector<8x128xf32>
    tpu.vector_store %arg9[%c0_44, %c0_45], %89 {strides = array<i32>} : memref<8x128xf32, #tpu.memory_space<vmem>>, vector<8x128xf32>,
    %95 = arith.truncf %91 : vector<8x128xf32> to vector<8x128xbf16>
    %96 = arith.index_cast %59 : i32 to index
    %c0_46 = arith.constant 0 : index
    %c0_47 = arith.constant 0 : index
    %97 = vector.load %arg6[%96, %c0_46, %c0_47] : memref<16x8x128xbf16, #tpu.memory_space<vmem>>, vector<1x8x128xbf16>
    %98 = vector.shape_cast %97 : vector<1x8x128xbf16> to vector<8x128xbf16>
    %99 = vector.shape_cast %95 : vector<8x128xbf16> to vector<1x8x128xbf16>
    tpu.vector_store %arg6[%96, %c0_46, %c0_47], %99 {strides = array<i32>} : memref<16x8x128xbf16, #tpu.memory_space<vmem>>, vector<1x8x128xbf16>,
    %c11_i32 = arith.constant 11 : i32
    %100 = arith.muli %arg0, %c11_i32 : i32
    %c2_i32 = arith.constant 2 : i32
    %101 = arith.addi %c2_i32, %100 : i32
    %102 = arith.index_cast %101 : i32 to index
    %c0_48 = arith.constant 0 : index
    %c0_49 = arith.constant 0 : index
    %103 = vector.load %arg7[%102, %c0_48, %c0_49] : memref<16x8x512xf32, #tpu.memory_space<vmem>>, vector<1x8x512xf32>
    %104 = vector.shape_cast %103 : vector<1x8x512xf32> to vector<8x512xf32>
    %c0_50 = arith.constant 0 : index
    %c0_51 = arith.constant 0 : index
    %105 = vector.load %arg8[%c0_50, %c0_51] : memref<8x128xbf16, #tpu.memory_space<vmem>>, vector<8x128xbf16>
    %cst_52 = arith.constant dense<0.000000e+00> : vector<8x512xf32>
    %106 = tpu.matmul %105, %15, %cst_52 {dimension_numbers = #tpu.dot_dimension_numbers<[1], [0], [0], [1], [0, 0, 1, 1], [], []>} : vector<8x128xbf16>, vector<128x512xbf16>, vector<8x512xf32> -> vector<8x512xf32>
    %107 = arith.addf %104, %106 : vector<8x512xf32>
    %c0_53 = arith.constant 0 : index
    %c0_54 = arith.constant 0 : index
    %108 = vector.load %arg9[%c0_53, %c0_54] : memref<8x128xf32, #tpu.memory_space<vmem>>, vector<8x128xf32>
    %109 = vector.extract_strided_slice %107 {offsets = [0, 0], sizes = [8, 128], strides = [1, 1]} : vector<8x512xf32> to vector<8x128xf32>
    %110 = arith.negf %109 : vector<8x128xf32>
    %111 = math.exp %110 : vector<8x128xf32>
    %cst_55 = arith.constant 1.000000e+00 : f32
    %112 = vector.broadcast %cst_55 : f32 to vector<8x128xf32>
    %113 = arith.addf %112, %111 : vector<8x128xf32>
    %114 = arith.divf %112, %113 : vector<8x128xf32>
    %115 = vector.extract_strided_slice %107 {offsets = [0, 128], sizes = [8, 128], strides = [1, 1]} : vector<8x512xf32> to vector<8x128xf32>
    %116 = arith.negf %115 : vector<8x128xf32>
    %117 = math.exp %116 : vector<8x128xf32>
    %cst_56 = arith.constant 1.000000e+00 : f32
    %118 = vector.broadcast %cst_56 : f32 to vector<8x128xf32>
    %119 = arith.addf %118, %117 : vector<8x128xf32>
    %120 = arith.divf %118, %119 : vector<8x128xf32>
    %121 = vector.extract_strided_slice %107 {offsets = [0, 256], sizes = [8, 128], strides = [1, 1]} : vector<8x512xf32> to vector<8x128xf32>
    %122 = math.tanh %121 : vector<8x128xf32>
    %123 = vector.extract_strided_slice %107 {offsets = [0, 384], sizes = [8, 128], strides = [1, 1]} : vector<8x512xf32> to vector<8x128xf32>
    %124 = arith.negf %123 : vector<8x128xf32>
    %125 = math.exp %124 : vector<8x128xf32>
    %cst_57 = arith.constant 1.000000e+00 : f32
    %126 = vector.broadcast %cst_57 : f32 to vector<8x128xf32>
    %127 = arith.addf %126, %125 : vector<8x128xf32>
    %128 = arith.divf %126, %127 : vector<8x128xf32>
    %129 = arith.mulf %120, %108 : vector<8x128xf32>
    %130 = arith.mulf %114, %122 : vector<8x128xf32>
    %131 = arith.addf %129, %130 : vector<8x128xf32>
    %132 = math.tanh %131 : vector<8x128xf32>
    %133 = arith.mulf %128, %132 : vector<8x128xf32>
    %134 = arith.truncf %133 : vector<8x128xf32> to vector<8x128xbf16>
    %c0_58 = arith.constant 0 : index
    %c0_59 = arith.constant 0 : index
    %135 = vector.load %arg8[%c0_58, %c0_59] : memref<8x128xbf16, #tpu.memory_space<vmem>>, vector<8x128xbf16>
    tpu.vector_store %arg8[%c0_58, %c0_59], %134 {strides = array<i32>} : memref<8x128xbf16, #tpu.memory_space<vmem>>, vector<8x128xbf16>,
    %c0_60 = arith.constant 0 : index
    %c0_61 = arith.constant 0 : index
    %136 = vector.load %arg9[%c0_60, %c0_61] : memref<8x128xf32, #tpu.memory_space<vmem>>, vector<8x128xf32>
    tpu.vector_store %arg9[%c0_60, %c0_61], %131 {strides = array<i32>} : memref<8x128xf32, #tpu.memory_space<vmem>>, vector<8x128xf32>,
    %137 = arith.truncf %133 : vector<8x128xf32> to vector<8x128xbf16>
    %138 = arith.index_cast %101 : i32 to index
    %c0_62 = arith.constant 0 : index
    %c0_63 = arith.constant 0 : index
    %139 = vector.load %arg6[%138, %c0_62, %c0_63] : memref<16x8x128xbf16, #tpu.memory_space<vmem>>, vector<1x8x128xbf16>
    %140 = vector.shape_cast %139 : vector<1x8x128xbf16> to vector<8x128xbf16>
    %141 = vector.shape_cast %137 : vector<8x128xbf16> to vector<1x8x128xbf16>
    tpu.vector_store %arg6[%138, %c0_62, %c0_63], %141 {strides = array<i32>} : memref<16x8x128xbf16, #tpu.memory_space<vmem>>, vector<1x8x128xbf16>,
    %c9_i32 = arith.constant 9 : i32
    %142 = arith.muli %arg0, %c9_i32 : i32
    %c3_i32 = arith.constant 3 : i32
    %143 = arith.addi %c3_i32, %142 : i32
    %144 = arith.index_cast %143 : i32 to index
    %c0_64 = arith.constant 0 : index
    %c0_65 = arith.constant 0 : index
    %145 = vector.load %arg7[%144, %c0_64, %c0_65] : memref<16x8x512xf32, #tpu.memory_space<vmem>>, vector<1x8x512xf32>
    %146 = vector.shape_cast %145 : vector<1x8x512xf32> to vector<8x512xf32>
    %c0_66 = arith.constant 0 : index
    %c0_67 = arith.constant 0 : index
    %147 = vector.load %arg8[%c0_66, %c0_67] : memref<8x128xbf16, #tpu.memory_space<vmem>>, vector<8x128xbf16>
    %cst_68 = arith.constant dense<0.000000e+00> : vector<8x512xf32>
    %148 = tpu.matmul %147, %15, %cst_68 {dimension_numbers = #tpu.dot_dimension_numbers<[1], [0], [0], [1], [0, 0, 1, 1], [], []>} : vector<8x128xbf16>, vector<128x512xbf16>, vector<8x512xf32> -> vector<8x512xf32>
    %149 = arith.addf %146, %148 : vector<8x512xf32>
    %c0_69 = arith.constant 0 : index
    %c0_70 = arith.constant 0 : index
    %150 = vector.load %arg9[%c0_69, %c0_70] : memref<8x128xf32, #tpu.memory_space<vmem>>, vector<8x128xf32>
    %151 = vector.extract_strided_slice %149 {offsets = [0, 0], sizes = [8, 128], strides = [1, 1]} : vector<8x512xf32> to vector<8x128xf32>
    %152 = arith.negf %151 : vector<8x128xf32>
    %153 = math.exp %152 : vector<8x128xf32>
    %cst_71 = arith.constant 1.000000e+00 : f32
    %154 = vector.broadcast %cst_71 : f32 to vector<8x128xf32>
    %155 = arith.addf %154, %153 : vector<8x128xf32>
    %156 = arith.divf %154, %155 : vector<8x128xf32>
    %157 = vector.extract_strided_slice %149 {offsets = [0, 128], sizes = [8, 128], strides = [1, 1]} : vector<8x512xf32> to vector<8x128xf32>
    %158 = arith.negf %157 : vector<8x128xf32>
    %159 = math.exp %158 : vector<8x128xf32>
    %cst_72 = arith.constant 1.000000e+00 : f32
    %160 = vector.broadcast %cst_72 : f32 to vector<8x128xf32>
    %161 = arith.addf %160, %159 : vector<8x128xf32>
    %162 = arith.divf %160, %161 : vector<8x128xf32>
    %163 = vector.extract_strided_slice %149 {offsets = [0, 256], sizes = [8, 128], strides = [1, 1]} : vector<8x512xf32> to vector<8x128xf32>
    %164 = math.tanh %163 : vector<8x128xf32>
    %165 = vector.extract_strided_slice %149 {offsets = [0, 384], sizes = [8, 128], strides = [1, 1]} : vector<8x512xf32> to vector<8x128xf32>
    %166 = arith.negf %165 : vector<8x128xf32>
    %167 = math.exp %166 : vector<8x128xf32>
    %cst_73 = arith.constant 1.000000e+00 : f32
    %168 = vector.broadcast %cst_73 : f32 to vector<8x128xf32>
    %169 = arith.addf %168, %167 : vector<8x128xf32>
    %170 = arith.divf %168, %169 : vector<8x128xf32>
    %171 = arith.mulf %162, %150 : vector<8x128xf32>
    %172 = arith.mulf %156, %164 : vector<8x128xf32>
    %173 = arith.addf %171, %172 : vector<8x128xf32>
    %174 = math.tanh %173 : vector<8x128xf32>
    %175 = arith.mulf %170, %174 : vector<8x128xf32>
    %176 = arith.truncf %175 : vector<8x128xf32> to vector<8x128xbf16>
    %c0_74 = arith.constant 0 : index
    %c0_75 = arith.constant 0 : index
    %177 = vector.load %arg8[%c0_74, %c0_75] : memref<8x128xbf16, #tpu.memory_space<vmem>>, vector<8x128xbf16>
    tpu.vector_store %arg8[%c0_74, %c0_75], %176 {strides = array<i32>} : memref<8x128xbf16, #tpu.memory_space<vmem>>, vector<8x128xbf16>,
    %c0_76 = arith.constant 0 : index
    %c0_77 = arith.constant 0 : index
    %178 = vector.load %arg9[%c0_76, %c0_77] : memref<8x128xf32, #tpu.memory_space<vmem>>, vector<8x128xf32>
    tpu.vector_store %arg9[%c0_76, %c0_77], %173 {strides = array<i32>} : memref<8x128xf32, #tpu.memory_space<vmem>>, vector<8x128xf32>,
    %179 = arith.truncf %175 : vector<8x128xf32> to vector<8x128xbf16>
    %180 = arith.index_cast %143 : i32 to index
    %c0_78 = arith.constant 0 : index
    %c0_79 = arith.constant 0 : index
    %181 = vector.load %arg6[%180, %c0_78, %c0_79] : memref<16x8x128xbf16, #tpu.memory_space<vmem>>, vector<1x8x128xbf16>
    %182 = vector.shape_cast %181 : vector<1x8x128xbf16> to vector<8x128xbf16>
    %183 = vector.shape_cast %179 : vector<8x128xbf16> to vector<1x8x128xbf16>
    tpu.vector_store %arg6[%180, %c0_78, %c0_79], %183 {strides = array<i32>} : memref<16x8x128xbf16, #tpu.memory_space<vmem>>, vector<1x8x128xbf16>,
    %c7_i32 = arith.constant 7 : i32
    %184 = arith.muli %arg0, %c7_i32 : i32
    %c4_i32 = arith.constant 4 : i32
    %185 = arith.addi %c4_i32, %184 : i32
    %186 = arith.index_cast %185 : i32 to index
    %c0_80 = arith.constant 0 : index
    %c0_81 = arith.constant 0 : index
    %187 = vector.load %arg7[%186, %c0_80, %c0_81] : memref<16x8x512xf32, #tpu.memory_space<vmem>>, vector<1x8x512xf32>
    %188 = vector.shape_cast %187 : vector<1x8x512xf32> to vector<8x512xf32>
    %c0_82 = arith.constant 0 : index
    %c0_83 = arith.constant 0 : index
    %189 = vector.load %arg8[%c0_82, %c0_83] : memref<8x128xbf16, #tpu.memory_space<vmem>>, vector<8x128xbf16>
    %cst_84 = arith.constant dense<0.000000e+00> : vector<8x512xf32>
    %190 = tpu.matmul %189, %15, %cst_84 {dimension_numbers = #tpu.dot_dimension_numbers<[1], [0], [0], [1], [0, 0, 1, 1], [], []>} : vector<8x128xbf16>, vector<128x512xbf16>, vector<8x512xf32> -> vector<8x512xf32>
    %191 = arith.addf %188, %190 : vector<8x512xf32>
    %c0_85 = arith.constant 0 : index
    %c0_86 = arith.constant 0 : index
    %192 = vector.load %arg9[%c0_85, %c0_86] : memref<8x128xf32, #tpu.memory_space<vmem>>, vector<8x128xf32>
    %193 = vector.extract_strided_slice %191 {offsets = [0, 0], sizes = [8, 128], strides = [1, 1]} : vector<8x512xf32> to vector<8x128xf32>
    %194 = arith.negf %193 : vector<8x128xf32>
    %195 = math.exp %194 : vector<8x128xf32>
    %cst_87 = arith.constant 1.000000e+00 : f32
    %196 = vector.broadcast %cst_87 : f32 to vector<8x128xf32>
    %197 = arith.addf %196, %195 : vector<8x128xf32>
    %198 = arith.divf %196, %197 : vector<8x128xf32>
    %199 = vector.extract_strided_slice %191 {offsets = [0, 128], sizes = [8, 128], strides = [1, 1]} : vector<8x512xf32> to vector<8x128xf32>
    %200 = arith.negf %199 : vector<8x128xf32>
    %201 = math.exp %200 : vector<8x128xf32>
    %cst_88 = arith.constant 1.000000e+00 : f32
    %202 = vector.broadcast %cst_88 : f32 to vector<8x128xf32>
    %203 = arith.addf %202, %201 : vector<8x128xf32>
    %204 = arith.divf %202, %203 : vector<8x128xf32>
    %205 = vector.extract_strided_slice %191 {offsets = [0, 256], sizes = [8, 128], strides = [1, 1]} : vector<8x512xf32> to vector<8x128xf32>
    %206 = math.tanh %205 : vector<8x128xf32>
    %207 = vector.extract_strided_slice %191 {offsets = [0, 384], sizes = [8, 128], strides = [1, 1]} : vector<8x512xf32> to vector<8x128xf32>
    %208 = arith.negf %207 : vector<8x128xf32>
    %209 = math.exp %208 : vector<8x128xf32>
    %cst_89 = arith.constant 1.000000e+00 : f32
    %210 = vector.broadcast %cst_89 : f32 to vector<8x128xf32>
    %211 = arith.addf %210, %209 : vector<8x128xf32>
    %212 = arith.divf %210, %211 : vector<8x128xf32>
    %213 = arith.mulf %204, %192 : vector<8x128xf32>
    %214 = arith.mulf %198, %206 : vector<8x128xf32>
    %215 = arith.addf %213, %214 : vector<8x128xf32>
    %216 = math.tanh %215 : vector<8x128xf32>
    %217 = arith.mulf %212, %216 : vector<8x128xf32>
    %218 = arith.truncf %217 : vector<8x128xf32> to vector<8x128xbf16>
    %c0_90 = arith.constant 0 : index
    %c0_91 = arith.constant 0 : index
    %219 = vector.load %arg8[%c0_90, %c0_91] : memref<8x128xbf16, #tpu.memory_space<vmem>>, vector<8x128xbf16>
    tpu.vector_store %arg8[%c0_90, %c0_91], %218 {strides = array<i32>} : memref<8x128xbf16, #tpu.memory_space<vmem>>, vector<8x128xbf16>,
    %c0_92 = arith.constant 0 : index
    %c0_93 = arith.constant 0 : index
    %220 = vector.load %arg9[%c0_92, %c0_93] : memref<8x128xf32, #tpu.memory_space<vmem>>, vector<8x128xf32>
    tpu.vector_store %arg9[%c0_92, %c0_93], %215 {strides = array<i32>} : memref<8x128xf32, #tpu.memory_space<vmem>>, vector<8x128xf32>,
    %221 = arith.truncf %217 : vector<8x128xf32> to vector<8x128xbf16>
    %222 = arith.index_cast %185 : i32 to index
    %c0_94 = arith.constant 0 : index
    %c0_95 = arith.constant 0 : index
    %223 = vector.load %arg6[%222, %c0_94, %c0_95] : memref<16x8x128xbf16, #tpu.memory_space<vmem>>, vector<1x8x128xbf16>
    %224 = vector.shape_cast %223 : vector<1x8x128xbf16> to vector<8x128xbf16>
    %225 = vector.shape_cast %221 : vector<8x128xbf16> to vector<1x8x128xbf16>
    tpu.vector_store %arg6[%222, %c0_94, %c0_95], %225 {strides = array<i32>} : memref<16x8x128xbf16, #tpu.memory_space<vmem>>, vector<1x8x128xbf16>,
    %c5_i32 = arith.constant 5 : i32
    %226 = arith.muli %arg0, %c5_i32 : i32
    %c5_i32_96 = arith.constant 5 : i32
    %227 = arith.addi %c5_i32_96, %226 : i32
    %228 = arith.index_cast %227 : i32 to index
    %c0_97 = arith.constant 0 : index
    %c0_98 = arith.constant 0 : index
    %229 = vector.load %arg7[%228, %c0_97, %c0_98] : memref<16x8x512xf32, #tpu.memory_space<vmem>>, vector<1x8x512xf32>
    %230 = vector.shape_cast %229 : vector<1x8x512xf32> to vector<8x512xf32>
    %c0_99 = arith.constant 0 : index
    %c0_100 = arith.constant 0 : index
    %231 = vector.load %arg8[%c0_99, %c0_100] : memref<8x128xbf16, #tpu.memory_space<vmem>>, vector<8x128xbf16>
    %cst_101 = arith.constant dense<0.000000e+00> : vector<8x512xf32>
    %232 = tpu.matmul %231, %15, %cst_101 {dimension_numbers = #tpu.dot_dimension_numbers<[1], [0], [0], [1], [0, 0, 1, 1], [], []>} : vector<8x128xbf16>, vector<128x512xbf16>, vector<8x512xf32> -> vector<8x512xf32>
    %233 = arith.addf %230, %232 : vector<8x512xf32>
    %c0_102 = arith.constant 0 : index
    %c0_103 = arith.constant 0 : index
    %234 = vector.load %arg9[%c0_102, %c0_103] : memref<8x128xf32, #tpu.memory_space<vmem>>, vector<8x128xf32>
    %235 = vector.extract_strided_slice %233 {offsets = [0, 0], sizes = [8, 128], strides = [1, 1]} : vector<8x512xf32> to vector<8x128xf32>
    %236 = arith.negf %235 : vector<8x128xf32>
    %237 = math.exp %236 : vector<8x128xf32>
    %cst_104 = arith.constant 1.000000e+00 : f32
    %238 = vector.broadcast %cst_104 : f32 to vector<8x128xf32>
    %239 = arith.addf %238, %237 : vector<8x128xf32>
    %240 = arith.divf %238, %239 : vector<8x128xf32>
    %241 = vector.extract_strided_slice %233 {offsets = [0, 128], sizes = [8, 128], strides = [1, 1]} : vector<8x512xf32> to vector<8x128xf32>
    %242 = arith.negf %241 : vector<8x128xf32>
    %243 = math.exp %242 : vector<8x128xf32>
    %cst_105 = arith.constant 1.000000e+00 : f32
    %244 = vector.broadcast %cst_105 : f32 to vector<8x128xf32>
    %245 = arith.addf %244, %243 : vector<8x128xf32>
    %246 = arith.divf %244, %245 : vector<8x128xf32>
    %247 = vector.extract_strided_slice %233 {offsets = [0, 256], sizes = [8, 128], strides = [1, 1]} : vector<8x512xf32> to vector<8x128xf32>
    %248 = math.tanh %247 : vector<8x128xf32>
    %249 = vector.extract_strided_slice %233 {offsets = [0, 384], sizes = [8, 128], strides = [1, 1]} : vector<8x512xf32> to vector<8x128xf32>
    %250 = arith.negf %249 : vector<8x128xf32>
    %251 = math.exp %250 : vector<8x128xf32>
    %cst_106 = arith.constant 1.000000e+00 : f32
    %252 = vector.broadcast %cst_106 : f32 to vector<8x128xf32>
    %253 = arith.addf %252, %251 : vector<8x128xf32>
    %254 = arith.divf %252, %253 : vector<8x128xf32>
    %255 = arith.mulf %246, %234 : vector<8x128xf32>
    %256 = arith.mulf %240, %248 : vector<8x128xf32>
    %257 = arith.addf %255, %256 : vector<8x128xf32>
    %258 = math.tanh %257 : vector<8x128xf32>
    %259 = arith.mulf %254, %258 : vector<8x128xf32>
    %260 = arith.truncf %259 : vector<8x128xf32> to vector<8x128xbf16>
    %c0_107 = arith.constant 0 : index
    %c0_108 = arith.constant 0 : index
    %261 = vector.load %arg8[%c0_107, %c0_108] : memref<8x128xbf16, #tpu.memory_space<vmem>>, vector<8x128xbf16>
    tpu.vector_store %arg8[%c0_107, %c0_108], %260 {strides = array<i32>} : memref<8x128xbf16, #tpu.memory_space<vmem>>, vector<8x128xbf16>,
    %c0_109 = arith.constant 0 : index
    %c0_110 = arith.constant 0 : index
    %262 = vector.load %arg9[%c0_109, %c0_110] : memref<8x128xf32, #tpu.memory_space<vmem>>, vector<8x128xf32>
    tpu.vector_store %arg9[%c0_109, %c0_110], %257 {strides = array<i32>} : memref<8x128xf32, #tpu.memory_space<vmem>>, vector<8x128xf32>,
    %263 = arith.truncf %259 : vector<8x128xf32> to vector<8x128xbf16>
    %264 = arith.index_cast %227 : i32 to index
    %c0_111 = arith.constant 0 : index
    %c0_112 = arith.constant 0 : index
    %265 = vector.load %arg6[%264, %c0_111, %c0_112] : memref<16x8x128xbf16, #tpu.memory_space<vmem>>, vector<1x8x128xbf16>
    %266 = vector.shape_cast %265 : vector<1x8x128xbf16> to vector<8x128xbf16>
    %267 = vector.shape_cast %263 : vector<8x128xbf16> to vector<1x8x128xbf16>
    tpu.vector_store %arg6[%264, %c0_111, %c0_112], %267 {strides = array<i32>} : memref<16x8x128xbf16, #tpu.memory_space<vmem>>, vector<1x8x128xbf16>,
    %c3_i32_113 = arith.constant 3 : i32
    %268 = arith.muli %arg0, %c3_i32_113 : i32
    %c6_i32 = arith.constant 6 : i32
    %269 = arith.addi %c6_i32, %268 : i32
    %270 = arith.index_cast %269 : i32 to index
    %c0_114 = arith.constant 0 : index
    %c0_115 = arith.constant 0 : index
    %271 = vector.load %arg7[%270, %c0_114, %c0_115] : memref<16x8x512xf32, #tpu.memory_space<vmem>>, vector<1x8x512xf32>
    %272 = vector.shape_cast %271 : vector<1x8x512xf32> to vector<8x512xf32>
    %c0_116 = arith.constant 0 : index
    %c0_117 = arith.constant 0 : index
    %273 = vector.load %arg8[%c0_116, %c0_117] : memref<8x128xbf16, #tpu.memory_space<vmem>>, vector<8x128xbf16>
    %cst_118 = arith.constant dense<0.000000e+00> : vector<8x512xf32>
    %274 = tpu.matmul %273, %15, %cst_118 {dimension_numbers = #tpu.dot_dimension_numbers<[1], [0], [0], [1], [0, 0, 1, 1], [], []>} : vector<8x128xbf16>, vector<128x512xbf16>, vector<8x512xf32> -> vector<8x512xf32>
    %275 = arith.addf %272, %274 : vector<8x512xf32>
    %c0_119 = arith.constant 0 : index
    %c0_120 = arith.constant 0 : index
    %276 = vector.load %arg9[%c0_119, %c0_120] : memref<8x128xf32, #tpu.memory_space<vmem>>, vector<8x128xf32>
    %277 = vector.extract_strided_slice %275 {offsets = [0, 0], sizes = [8, 128], strides = [1, 1]} : vector<8x512xf32> to vector<8x128xf32>
    %278 = arith.negf %277 : vector<8x128xf32>
    %279 = math.exp %278 : vector<8x128xf32>
    %cst_121 = arith.constant 1.000000e+00 : f32
    %280 = vector.broadcast %cst_121 : f32 to vector<8x128xf32>
    %281 = arith.addf %280, %279 : vector<8x128xf32>
    %282 = arith.divf %280, %281 : vector<8x128xf32>
    %283 = vector.extract_strided_slice %275 {offsets = [0, 128], sizes = [8, 128], strides = [1, 1]} : vector<8x512xf32> to vector<8x128xf32>
    %284 = arith.negf %283 : vector<8x128xf32>
    %285 = math.exp %284 : vector<8x128xf32>
    %cst_122 = arith.constant 1.000000e+00 : f32
    %286 = vector.broadcast %cst_122 : f32 to vector<8x128xf32>
    %287 = arith.addf %286, %285 : vector<8x128xf32>
    %288 = arith.divf %286, %287 : vector<8x128xf32>
    %289 = vector.extract_strided_slice %275 {offsets = [0, 256], sizes = [8, 128], strides = [1, 1]} : vector<8x512xf32> to vector<8x128xf32>
    %290 = math.tanh %289 : vector<8x128xf32>
    %291 = vector.extract_strided_slice %275 {offsets = [0, 384], sizes = [8, 128], strides = [1, 1]} : vector<8x512xf32> to vector<8x128xf32>
    %292 = arith.negf %291 : vector<8x128xf32>
    %293 = math.exp %292 : vector<8x128xf32>
    %cst_123 = arith.constant 1.000000e+00 : f32
    %294 = vector.broadcast %cst_123 : f32 to vector<8x128xf32>
    %295 = arith.addf %294, %293 : vector<8x128xf32>
    %296 = arith.divf %294, %295 : vector<8x128xf32>
    %297 = arith.mulf %288, %276 : vector<8x128xf32>
    %298 = arith.mulf %282, %290 : vector<8x128xf32>
    %299 = arith.addf %297, %298 : vector<8x128xf32>
    %300 = math.tanh %299 : vector<8x128xf32>
    %301 = arith.mulf %296, %300 : vector<8x128xf32>
    %302 = arith.truncf %301 : vector<8x128xf32> to vector<8x128xbf16>
    %c0_124 = arith.constant 0 : index
    %c0_125 = arith.constant 0 : index
    %303 = vector.load %arg8[%c0_124, %c0_125] : memref<8x128xbf16, #tpu.memory_space<vmem>>, vector<8x128xbf16>
    tpu.vector_store %arg8[%c0_124, %c0_125], %302 {strides = array<i32>} : memref<8x128xbf16, #tpu.memory_space<vmem>>, vector<8x128xbf16>,
    %c0_126 = arith.constant 0 : index
    %c0_127 = arith.constant 0 : index
    %304 = vector.load %arg9[%c0_126, %c0_127] : memref<8x128xf32, #tpu.memory_space<vmem>>, vector<8x128xf32>
    tpu.vector_store %arg9[%c0_126, %c0_127], %299 {strides = array<i32>} : memref<8x128xf32, #tpu.memory_space<vmem>>, vector<8x128xf32>,
    %305 = arith.truncf %301 : vector<8x128xf32> to vector<8x128xbf16>
    %306 = arith.index_cast %269 : i32 to index
    %c0_128 = arith.constant 0 : index
    %c0_129 = arith.constant 0 : index
    %307 = vector.load %arg6[%306, %c0_128, %c0_129] : memref<16x8x128xbf16, #tpu.memory_space<vmem>>, vector<1x8x128xbf16>
    %308 = vector.shape_cast %307 : vector<1x8x128xbf16> to vector<8x128xbf16>
    %309 = vector.shape_cast %305 : vector<8x128xbf16> to vector<1x8x128xbf16>
    tpu.vector_store %arg6[%306, %c0_128, %c0_129], %309 {strides = array<i32>} : memref<16x8x128xbf16, #tpu.memory_space<vmem>>, vector<1x8x128xbf16>,
    %c1_i32_130 = arith.constant 1 : i32
    %310 = arith.muli %arg0, %c1_i32_130 : i32
    %c7_i32_131 = arith.constant 7 : i32
    %311 = arith.addi %c7_i32_131, %310 : i32
    %312 = arith.index_cast %311 : i32 to index
    %c0_132 = arith.constant 0 : index
    %c0_133 = arith.constant 0 : index
    %313 = vector.load %arg7[%312, %c0_132, %c0_133] : memref<16x8x512xf32, #tpu.memory_space<vmem>>, vector<1x8x512xf32>
    %314 = vector.shape_cast %313 : vector<1x8x512xf32> to vector<8x512xf32>
    %c0_134 = arith.constant 0 : index
    %c0_135 = arith.constant 0 : index
    %315 = vector.load %arg8[%c0_134, %c0_135] : memref<8x128xbf16, #tpu.memory_space<vmem>>, vector<8x128xbf16>
    %cst_136 = arith.constant dense<0.000000e+00> : vector<8x512xf32>
    %316 = tpu.matmul %315, %15, %cst_136 {dimension_numbers = #tpu.dot_dimension_numbers<[1], [0], [0], [1], [0, 0, 1, 1], [], []>} : vector<8x128xbf16>, vector<128x512xbf16>, vector<8x512xf32> -> vector<8x512xf32>
    %317 = arith.addf %314, %316 : vector<8x512xf32>
    %c0_137 = arith.constant 0 : index
    %c0_138 = arith.constant 0 : index
    %318 = vector.load %arg9[%c0_137, %c0_138] : memref<8x128xf32, #tpu.memory_space<vmem>>, vector<8x128xf32>
    %319 = vector.extract_strided_slice %317 {offsets = [0, 0], sizes = [8, 128], strides = [1, 1]} : vector<8x512xf32> to vector<8x128xf32>
    %320 = arith.negf %319 : vector<8x128xf32>
    %321 = math.exp %320 : vector<8x128xf32>
    %cst_139 = arith.constant 1.000000e+00 : f32
    %322 = vector.broadcast %cst_139 : f32 to vector<8x128xf32>
    %323 = arith.addf %322, %321 : vector<8x128xf32>
    %324 = arith.divf %322, %323 : vector<8x128xf32>
    %325 = vector.extract_strided_slice %317 {offsets = [0, 128], sizes = [8, 128], strides = [1, 1]} : vector<8x512xf32> to vector<8x128xf32>
    %326 = arith.negf %325 : vector<8x128xf32>
    %327 = math.exp %326 : vector<8x128xf32>
    %cst_140 = arith.constant 1.000000e+00 : f32
    %328 = vector.broadcast %cst_140 : f32 to vector<8x128xf32>
    %329 = arith.addf %328, %327 : vector<8x128xf32>
    %330 = arith.divf %328, %329 : vector<8x128xf32>
    %331 = vector.extract_strided_slice %317 {offsets = [0, 256], sizes = [8, 128], strides = [1, 1]} : vector<8x512xf32> to vector<8x128xf32>
    %332 = math.tanh %331 : vector<8x128xf32>
    %333 = vector.extract_strided_slice %317 {offsets = [0, 384], sizes = [8, 128], strides = [1, 1]} : vector<8x512xf32> to vector<8x128xf32>
    %334 = arith.negf %333 : vector<8x128xf32>
    %335 = math.exp %334 : vector<8x128xf32>
    %cst_141 = arith.constant 1.000000e+00 : f32
    %336 = vector.broadcast %cst_141 : f32 to vector<8x128xf32>
    %337 = arith.addf %336, %335 : vector<8x128xf32>
    %338 = arith.divf %336, %337 : vector<8x128xf32>
    %339 = arith.mulf %330, %318 : vector<8x128xf32>
    %340 = arith.mulf %324, %332 : vector<8x128xf32>
    %341 = arith.addf %339, %340 : vector<8x128xf32>
    %342 = math.tanh %341 : vector<8x128xf32>
    %343 = arith.mulf %338, %342 : vector<8x128xf32>
    %344 = arith.truncf %343 : vector<8x128xf32> to vector<8x128xbf16>
    %c0_142 = arith.constant 0 : index
    %c0_143 = arith.constant 0 : index
    %345 = vector.load %arg8[%c0_142, %c0_143] : memref<8x128xbf16, #tpu.memory_space<vmem>>, vector<8x128xbf16>
    tpu.vector_store %arg8[%c0_142, %c0_143], %344 {strides = array<i32>} : memref<8x128xbf16, #tpu.memory_space<vmem>>, vector<8x128xbf16>,
    %c0_144 = arith.constant 0 : index
    %c0_145 = arith.constant 0 : index
    %346 = vector.load %arg9[%c0_144, %c0_145] : memref<8x128xf32, #tpu.memory_space<vmem>>, vector<8x128xf32>
    tpu.vector_store %arg9[%c0_144, %c0_145], %341 {strides = array<i32>} : memref<8x128xf32, #tpu.memory_space<vmem>>, vector<8x128xf32>,
    %347 = arith.truncf %343 : vector<8x128xf32> to vector<8x128xbf16>
    %348 = arith.index_cast %311 : i32 to index
    %c0_146 = arith.constant 0 : index
    %c0_147 = arith.constant 0 : index
    %349 = vector.load %arg6[%348, %c0_146, %c0_147] : memref<16x8x128xbf16, #tpu.memory_space<vmem>>, vector<1x8x128xbf16>
    %350 = vector.shape_cast %349 : vector<1x8x128xbf16> to vector<8x128xbf16>
    %351 = vector.shape_cast %347 : vector<8x128xbf16> to vector<1x8x128xbf16>
    tpu.vector_store %arg6[%348, %c0_146, %c0_147], %351 {strides = array<i32>} : memref<16x8x128xbf16, #tpu.memory_space<vmem>>, vector<1x8x128xbf16>,
    %c-1_i32 = arith.constant -1 : i32
    %352 = arith.muli %arg0, %c-1_i32 : i32
    %c8_i32 = arith.constant 8 : i32
    %353 = arith.addi %c8_i32, %352 : i32
    %354 = arith.index_cast %353 : i32 to index
    %c0_148 = arith.constant 0 : index
    %c0_149 = arith.constant 0 : index
    %355 = vector.load %arg7[%354, %c0_148, %c0_149] : memref<16x8x512xf32, #tpu.memory_space<vmem>>, vector<1x8x512xf32>
    %356 = vector.shape_cast %355 : vector<1x8x512xf32> to vector<8x512xf32>
    %c0_150 = arith.constant 0 : index
    %c0_151 = arith.constant 0 : index
    %357 = vector.load %arg8[%c0_150, %c0_151] : memref<8x128xbf16, #tpu.memory_space<vmem>>, vector<8x128xbf16>
    %cst_152 = arith.constant dense<0.000000e+00> : vector<8x512xf32>
    %358 = tpu.matmul %357, %15, %cst_152 {dimension_numbers = #tpu.dot_dimension_numbers<[1], [0], [0], [1], [0, 0, 1, 1], [], []>} : vector<8x128xbf16>, vector<128x512xbf16>, vector<8x512xf32> -> vector<8x512xf32>
    %359 = arith.addf %356, %358 : vector<8x512xf32>
    %c0_153 = arith.constant 0 : index
    %c0_154 = arith.constant 0 : index
    %360 = vector.load %arg9[%c0_153, %c0_154] : memref<8x128xf32, #tpu.memory_space<vmem>>, vector<8x128xf32>
    %361 = vector.extract_strided_slice %359 {offsets = [0, 0], sizes = [8, 128], strides = [1, 1]} : vector<8x512xf32> to vector<8x128xf32>
    %362 = arith.negf %361 : vector<8x128xf32>
    %363 = math.exp %362 : vector<8x128xf32>
    %cst_155 = arith.constant 1.000000e+00 : f32
    %364 = vector.broadcast %cst_155 : f32 to vector<8x128xf32>
    %365 = arith.addf %364, %363 : vector<8x128xf32>
    %366 = arith.divf %364, %365 : vector<8x128xf32>
    %367 = vector.extract_strided_slice %359 {offsets = [0, 128], sizes = [8, 128], strides = [1, 1]} : vector<8x512xf32> to vector<8x128xf32>
    %368 = arith.negf %367 : vector<8x128xf32>
    %369 = math.exp %368 : vector<8x128xf32>
    %cst_156 = arith.constant 1.000000e+00 : f32
    %370 = vector.broadcast %cst_156 : f32 to vector<8x128xf32>
    %371 = arith.addf %370, %369 : vector<8x128xf32>
    %372 = arith.divf %370, %371 : vector<8x128xf32>
    %373 = vector.extract_strided_slice %359 {offsets = [0, 256], sizes = [8, 128], strides = [1, 1]} : vector<8x512xf32> to vector<8x128xf32>
    %374 = math.tanh %373 : vector<8x128xf32>
    %375 = vector.extract_strided_slice %359 {offsets = [0, 384], sizes = [8, 128], strides = [1, 1]} : vector<8x512xf32> to vector<8x128xf32>
    %376 = arith.negf %375 : vector<8x128xf32>
    %377 = math.exp %376 : vector<8x128xf32>
    %cst_157 = arith.constant 1.000000e+00 : f32
    %378 = vector.broadcast %cst_157 : f32 to vector<8x128xf32>
    %379 = arith.addf %378, %377 : vector<8x128xf32>
    %380 = arith.divf %378, %379 : vector<8x128xf32>
    %381 = arith.mulf %372, %360 : vector<8x128xf32>
    %382 = arith.mulf %366, %374 : vector<8x128xf32>
    %383 = arith.addf %381, %382 : vector<8x128xf32>
    %384 = math.tanh %383 : vector<8x128xf32>
    %385 = arith.mulf %380, %384 : vector<8x128xf32>
    %386 = arith.truncf %385 : vector<8x128xf32> to vector<8x128xbf16>
    %c0_158 = arith.constant 0 : index
    %c0_159 = arith.constant 0 : index
    %387 = vector.load %arg8[%c0_158, %c0_159] : memref<8x128xbf16, #tpu.memory_space<vmem>>, vector<8x128xbf16>
    tpu.vector_store %arg8[%c0_158, %c0_159], %386 {strides = array<i32>} : memref<8x128xbf16, #tpu.memory_space<vmem>>, vector<8x128xbf16>,
    %c0_160 = arith.constant 0 : index
    %c0_161 = arith.constant 0 : index
    %388 = vector.load %arg9[%c0_160, %c0_161] : memref<8x128xf32, #tpu.memory_space<vmem>>, vector<8x128xf32>
    tpu.vector_store %arg9[%c0_160, %c0_161], %383 {strides = array<i32>} : memref<8x128xf32, #tpu.memory_space<vmem>>, vector<8x128xf32>,
    %389 = arith.truncf %385 : vector<8x128xf32> to vector<8x128xbf16>
    %390 = arith.index_cast %353 : i32 to index
    %c0_162 = arith.constant 0 : index
    %c0_163 = arith.constant 0 : index
    %391 = vector.load %arg6[%390, %c0_162, %c0_163] : memref<16x8x128xbf16, #tpu.memory_space<vmem>>, vector<1x8x128xbf16>
    %392 = vector.shape_cast %391 : vector<1x8x128xbf16> to vector<8x128xbf16>
    %393 = vector.shape_cast %389 : vector<8x128xbf16> to vector<1x8x128xbf16>
    tpu.vector_store %arg6[%390, %c0_162, %c0_163], %393 {strides = array<i32>} : memref<16x8x128xbf16, #tpu.memory_space<vmem>>, vector<1x8x128xbf16>,
    %c-3_i32 = arith.constant -3 : i32
    %394 = arith.muli %arg0, %c-3_i32 : i32
    %c9_i32_164 = arith.constant 9 : i32
    %395 = arith.addi %c9_i32_164, %394 : i32
    %396 = arith.index_cast %395 : i32 to index
    %c0_165 = arith.constant 0 : index
    %c0_166 = arith.constant 0 : index
    %397 = vector.load %arg7[%396, %c0_165, %c0_166] : memref<16x8x512xf32, #tpu.memory_space<vmem>>, vector<1x8x512xf32>
    %398 = vector.shape_cast %397 : vector<1x8x512xf32> to vector<8x512xf32>
    %c0_167 = arith.constant 0 : index
    %c0_168 = arith.constant 0 : index
    %399 = vector.load %arg8[%c0_167, %c0_168] : memref<8x128xbf16, #tpu.memory_space<vmem>>, vector<8x128xbf16>
    %cst_169 = arith.constant dense<0.000000e+00> : vector<8x512xf32>
    %400 = tpu.matmul %399, %15, %cst_169 {dimension_numbers = #tpu.dot_dimension_numbers<[1], [0], [0], [1], [0, 0, 1, 1], [], []>} : vector<8x128xbf16>, vector<128x512xbf16>, vector<8x512xf32> -> vector<8x512xf32>
    %401 = arith.addf %398, %400 : vector<8x512xf32>
    %c0_170 = arith.constant 0 : index
    %c0_171 = arith.constant 0 : index
    %402 = vector.load %arg9[%c0_170, %c0_171] : memref<8x128xf32, #tpu.memory_space<vmem>>, vector<8x128xf32>
    %403 = vector.extract_strided_slice %401 {offsets = [0, 0], sizes = [8, 128], strides = [1, 1]} : vector<8x512xf32> to vector<8x128xf32>
    %404 = arith.negf %403 : vector<8x128xf32>
    %405 = math.exp %404 : vector<8x128xf32>
    %cst_172 = arith.constant 1.000000e+00 : f32
    %406 = vector.broadcast %cst_172 : f32 to vector<8x128xf32>
    %407 = arith.addf %406, %405 : vector<8x128xf32>
    %408 = arith.divf %406, %407 : vector<8x128xf32>
    %409 = vector.extract_strided_slice %401 {offsets = [0, 128], sizes = [8, 128], strides = [1, 1]} : vector<8x512xf32> to vector<8x128xf32>
    %410 = arith.negf %409 : vector<8x128xf32>
    %411 = math.exp %410 : vector<8x128xf32>
    %cst_173 = arith.constant 1.000000e+00 : f32
    %412 = vector.broadcast %cst_173 : f32 to vector<8x128xf32>
    %413 = arith.addf %412, %411 : vector<8x128xf32>
    %414 = arith.divf %412, %413 : vector<8x128xf32>
    %415 = vector.extract_strided_slice %401 {offsets = [0, 256], sizes = [8, 128], strides = [1, 1]} : vector<8x512xf32> to vector<8x128xf32>
    %416 = math.tanh %415 : vector<8x128xf32>
    %417 = vector.extract_strided_slice %401 {offsets = [0, 384], sizes = [8, 128], strides = [1, 1]} : vector<8x512xf32> to vector<8x128xf32>
    %418 = arith.negf %417 : vector<8x128xf32>
    %419 = math.exp %418 : vector<8x128xf32>
    %cst_174 = arith.constant 1.000000e+00 : f32
    %420 = vector.broadcast %cst_174 : f32 to vector<8x128xf32>
    %421 = arith.addf %420, %419 : vector<8x128xf32>
    %422 = arith.divf %420, %421 : vector<8x128xf32>
    %423 = arith.mulf %414, %402 : vector<8x128xf32>
    %424 = arith.mulf %408, %416 : vector<8x128xf32>
    %425 = arith.addf %423, %424 : vector<8x128xf32>
    %426 = math.tanh %425 : vector<8x128xf32>
    %427 = arith.mulf %422, %426 : vector<8x128xf32>
    %428 = arith.truncf %427 : vector<8x128xf32> to vector<8x128xbf16>
    %c0_175 = arith.constant 0 : index
    %c0_176 = arith.constant 0 : index
    %429 = vector.load %arg8[%c0_175, %c0_176] : memref<8x128xbf16, #tpu.memory_space<vmem>>, vector<8x128xbf16>
    tpu.vector_store %arg8[%c0_175, %c0_176], %428 {strides = array<i32>} : memref<8x128xbf16, #tpu.memory_space<vmem>>, vector<8x128xbf16>,
    %c0_177 = arith.constant 0 : index
    %c0_178 = arith.constant 0 : index
    %430 = vector.load %arg9[%c0_177, %c0_178] : memref<8x128xf32, #tpu.memory_space<vmem>>, vector<8x128xf32>
    tpu.vector_store %arg9[%c0_177, %c0_178], %425 {strides = array<i32>} : memref<8x128xf32, #tpu.memory_space<vmem>>, vector<8x128xf32>,
    %431 = arith.truncf %427 : vector<8x128xf32> to vector<8x128xbf16>
    %432 = arith.index_cast %395 : i32 to index
    %c0_179 = arith.constant 0 : index
    %c0_180 = arith.constant 0 : index
    %433 = vector.load %arg6[%432, %c0_179, %c0_180] : memref<16x8x128xbf16, #tpu.memory_space<vmem>>, vector<1x8x128xbf16>
    %434 = vector.shape_cast %433 : vector<1x8x128xbf16> to vector<8x128xbf16>
    %435 = vector.shape_cast %431 : vector<8x128xbf16> to vector<1x8x128xbf16>
    tpu.vector_store %arg6[%432, %c0_179, %c0_180], %435 {strides = array<i32>} : memref<16x8x128xbf16, #tpu.memory_space<vmem>>, vector<1x8x128xbf16>,
    %c-5_i32 = arith.constant -5 : i32
    %436 = arith.muli %arg0, %c-5_i32 : i32
    %c10_i32 = arith.constant 10 : i32
    %437 = arith.addi %c10_i32, %436 : i32
    %438 = arith.index_cast %437 : i32 to index
    %c0_181 = arith.constant 0 : index
    %c0_182 = arith.constant 0 : index
    %439 = vector.load %arg7[%438, %c0_181, %c0_182] : memref<16x8x512xf32, #tpu.memory_space<vmem>>, vector<1x8x512xf32>
    %440 = vector.shape_cast %439 : vector<1x8x512xf32> to vector<8x512xf32>
    %c0_183 = arith.constant 0 : index
    %c0_184 = arith.constant 0 : index
    %441 = vector.load %arg8[%c0_183, %c0_184] : memref<8x128xbf16, #tpu.memory_space<vmem>>, vector<8x128xbf16>
    %cst_185 = arith.constant dense<0.000000e+00> : vector<8x512xf32>
    %442 = tpu.matmul %441, %15, %cst_185 {dimension_numbers = #tpu.dot_dimension_numbers<[1], [0], [0], [1], [0, 0, 1, 1], [], []>} : vector<8x128xbf16>, vector<128x512xbf16>, vector<8x512xf32> -> vector<8x512xf32>
    %443 = arith.addf %440, %442 : vector<8x512xf32>
    %c0_186 = arith.constant 0 : index
    %c0_187 = arith.constant 0 : index
    %444 = vector.load %arg9[%c0_186, %c0_187] : memref<8x128xf32, #tpu.memory_space<vmem>>, vector<8x128xf32>
    %445 = vector.extract_strided_slice %443 {offsets = [0, 0], sizes = [8, 128], strides = [1, 1]} : vector<8x512xf32> to vector<8x128xf32>
    %446 = arith.negf %445 : vector<8x128xf32>
    %447 = math.exp %446 : vector<8x128xf32>
    %cst_188 = arith.constant 1.000000e+00 : f32
    %448 = vector.broadcast %cst_188 : f32 to vector<8x128xf32>
    %449 = arith.addf %448, %447 : vector<8x128xf32>
    %450 = arith.divf %448, %449 : vector<8x128xf32>
    %451 = vector.extract_strided_slice %443 {offsets = [0, 128], sizes = [8, 128], strides = [1, 1]} : vector<8x512xf32> to vector<8x128xf32>
    %452 = arith.negf %451 : vector<8x128xf32>
    %453 = math.exp %452 : vector<8x128xf32>
    %cst_189 = arith.constant 1.000000e+00 : f32
    %454 = vector.broadcast %cst_189 : f32 to vector<8x128xf32>
    %455 = arith.addf %454, %453 : vector<8x128xf32>
    %456 = arith.divf %454, %455 : vector<8x128xf32>
    %457 = vector.extract_strided_slice %443 {offsets = [0, 256], sizes = [8, 128], strides = [1, 1]} : vector<8x512xf32> to vector<8x128xf32>
    %458 = math.tanh %457 : vector<8x128xf32>
    %459 = vector.extract_strided_slice %443 {offsets = [0, 384], sizes = [8, 128], strides = [1, 1]} : vector<8x512xf32> to vector<8x128xf32>
    %460 = arith.negf %459 : vector<8x128xf32>
    %461 = math.exp %460 : vector<8x128xf32>
    %cst_190 = arith.constant 1.000000e+00 : f32
    %462 = vector.broadcast %cst_190 : f32 to vector<8x128xf32>
    %463 = arith.addf %462, %461 : vector<8x128xf32>
    %464 = arith.divf %462, %463 : vector<8x128xf32>
    %465 = arith.mulf %456, %444 : vector<8x128xf32>
    %466 = arith.mulf %450, %458 : vector<8x128xf32>
    %467 = arith.addf %465, %466 : vector<8x128xf32>
    %468 = math.tanh %467 : vector<8x128xf32>
    %469 = arith.mulf %464, %468 : vector<8x128xf32>
    %470 = arith.truncf %469 : vector<8x128xf32> to vector<8x128xbf16>
    %c0_191 = arith.constant 0 : index
    %c0_192 = arith.constant 0 : index
    %471 = vector.load %arg8[%c0_191, %c0_192] : memref<8x128xbf16, #tpu.memory_space<vmem>>, vector<8x128xbf16>
    tpu.vector_store %arg8[%c0_191, %c0_192], %470 {strides = array<i32>} : memref<8x128xbf16, #tpu.memory_space<vmem>>, vector<8x128xbf16>,
    %c0_193 = arith.constant 0 : index
    %c0_194 = arith.constant 0 : index
    %472 = vector.load %arg9[%c0_193, %c0_194] : memref<8x128xf32, #tpu.memory_space<vmem>>, vector<8x128xf32>
    tpu.vector_store %arg9[%c0_193, %c0_194], %467 {strides = array<i32>} : memref<8x128xf32, #tpu.memory_space<vmem>>, vector<8x128xf32>,
    %473 = arith.truncf %469 : vector<8x128xf32> to vector<8x128xbf16>
    %474 = arith.index_cast %437 : i32 to index
    %c0_195 = arith.constant 0 : index
    %c0_196 = arith.constant 0 : index
    %475 = vector.load %arg6[%474, %c0_195, %c0_196] : memref<16x8x128xbf16, #tpu.memory_space<vmem>>, vector<1x8x128xbf16>
    %476 = vector.shape_cast %475 : vector<1x8x128xbf16> to vector<8x128xbf16>
    %477 = vector.shape_cast %473 : vector<8x128xbf16> to vector<1x8x128xbf16>
    tpu.vector_store %arg6[%474, %c0_195, %c0_196], %477 {strides = array<i32>} : memref<16x8x128xbf16, #tpu.memory_space<vmem>>, vector<1x8x128xbf16>,
    %c-7_i32 = arith.constant -7 : i32
    %478 = arith.muli %arg0, %c-7_i32 : i32
    %c11_i32_197 = arith.constant 11 : i32
    %479 = arith.addi %c11_i32_197, %478 : i32
    %480 = arith.index_cast %479 : i32 to index
    %c0_198 = arith.constant 0 : index
    %c0_199 = arith.constant 0 : index
    %481 = vector.load %arg7[%480, %c0_198, %c0_199] : memref<16x8x512xf32, #tpu.memory_space<vmem>>, vector<1x8x512xf32>
    %482 = vector.shape_cast %481 : vector<1x8x512xf32> to vector<8x512xf32>
    %c0_200 = arith.constant 0 : index
    %c0_201 = arith.constant 0 : index
    %483 = vector.load %arg8[%c0_200, %c0_201] : memref<8x128xbf16, #tpu.memory_space<vmem>>, vector<8x128xbf16>
    %cst_202 = arith.constant dense<0.000000e+00> : vector<8x512xf32>
    %484 = tpu.matmul %483, %15, %cst_202 {dimension_numbers = #tpu.dot_dimension_numbers<[1], [0], [0], [1], [0, 0, 1, 1], [], []>} : vector<8x128xbf16>, vector<128x512xbf16>, vector<8x512xf32> -> vector<8x512xf32>
    %485 = arith.addf %482, %484 : vector<8x512xf32>
    %c0_203 = arith.constant 0 : index
    %c0_204 = arith.constant 0 : index
    %486 = vector.load %arg9[%c0_203, %c0_204] : memref<8x128xf32, #tpu.memory_space<vmem>>, vector<8x128xf32>
    %487 = vector.extract_strided_slice %485 {offsets = [0, 0], sizes = [8, 128], strides = [1, 1]} : vector<8x512xf32> to vector<8x128xf32>
    %488 = arith.negf %487 : vector<8x128xf32>
    %489 = math.exp %488 : vector<8x128xf32>
    %cst_205 = arith.constant 1.000000e+00 : f32
    %490 = vector.broadcast %cst_205 : f32 to vector<8x128xf32>
    %491 = arith.addf %490, %489 : vector<8x128xf32>
    %492 = arith.divf %490, %491 : vector<8x128xf32>
    %493 = vector.extract_strided_slice %485 {offsets = [0, 128], sizes = [8, 128], strides = [1, 1]} : vector<8x512xf32> to vector<8x128xf32>
    %494 = arith.negf %493 : vector<8x128xf32>
    %495 = math.exp %494 : vector<8x128xf32>
    %cst_206 = arith.constant 1.000000e+00 : f32
    %496 = vector.broadcast %cst_206 : f32 to vector<8x128xf32>
    %497 = arith.addf %496, %495 : vector<8x128xf32>
    %498 = arith.divf %496, %497 : vector<8x128xf32>
    %499 = vector.extract_strided_slice %485 {offsets = [0, 256], sizes = [8, 128], strides = [1, 1]} : vector<8x512xf32> to vector<8x128xf32>
    %500 = math.tanh %499 : vector<8x128xf32>
    %501 = vector.extract_strided_slice %485 {offsets = [0, 384], sizes = [8, 128], strides = [1, 1]} : vector<8x512xf32> to vector<8x128xf32>
    %502 = arith.negf %501 : vector<8x128xf32>
    %503 = math.exp %502 : vector<8x128xf32>
    %cst_207 = arith.constant 1.000000e+00 : f32
    %504 = vector.broadcast %cst_207 : f32 to vector<8x128xf32>
    %505 = arith.addf %504, %503 : vector<8x128xf32>
    %506 = arith.divf %504, %505 : vector<8x128xf32>
    %507 = arith.mulf %498, %486 : vector<8x128xf32>
    %508 = arith.mulf %492, %500 : vector<8x128xf32>
    %509 = arith.addf %507, %508 : vector<8x128xf32>
    %510 = math.tanh %509 : vector<8x128xf32>
    %511 = arith.mulf %506, %510 : vector<8x128xf32>
    %512 = arith.truncf %511 : vector<8x128xf32> to vector<8x128xbf16>
    %c0_208 = arith.constant 0 : index
    %c0_209 = arith.constant 0 : index
    %513 = vector.load %arg8[%c0_208, %c0_209] : memref<8x128xbf16, #tpu.memory_space<vmem>>, vector<8x128xbf16>
    tpu.vector_store %arg8[%c0_208, %c0_209], %512 {strides = array<i32>} : memref<8x128xbf16, #tpu.memory_space<vmem>>, vector<8x128xbf16>,
    %c0_210 = arith.constant 0 : index
    %c0_211 = arith.constant 0 : index
    %514 = vector.load %arg9[%c0_210, %c0_211] : memref<8x128xf32, #tpu.memory_space<vmem>>, vector<8x128xf32>
    tpu.vector_store %arg9[%c0_210, %c0_211], %509 {strides = array<i32>} : memref<8x128xf32, #tpu.memory_space<vmem>>, vector<8x128xf32>,
    %515 = arith.truncf %511 : vector<8x128xf32> to vector<8x128xbf16>
    %516 = arith.index_cast %479 : i32 to index
    %c0_212 = arith.constant 0 : index
    %c0_213 = arith.constant 0 : index
    %517 = vector.load %arg6[%516, %c0_212, %c0_213] : memref<16x8x128xbf16, #tpu.memory_space<vmem>>, vector<1x8x128xbf16>
    %518 = vector.shape_cast %517 : vector<1x8x128xbf16> to vector<8x128xbf16>
    %519 = vector.shape_cast %515 : vector<8x128xbf16> to vector<1x8x128xbf16>
    tpu.vector_store %arg6[%516, %c0_212, %c0_213], %519 {strides = array<i32>} : memref<16x8x128xbf16, #tpu.memory_space<vmem>>, vector<1x8x128xbf16>,
    %c-9_i32 = arith.constant -9 : i32
    %520 = arith.muli %arg0, %c-9_i32 : i32
    %c12_i32 = arith.constant 12 : i32
    %521 = arith.addi %c12_i32, %520 : i32
    %522 = arith.index_cast %521 : i32 to index
    %c0_214 = arith.constant 0 : index
    %c0_215 = arith.constant 0 : index
    %523 = vector.load %arg7[%522, %c0_214, %c0_215] : memref<16x8x512xf32, #tpu.memory_space<vmem>>, vector<1x8x512xf32>
    %524 = vector.shape_cast %523 : vector<1x8x512xf32> to vector<8x512xf32>
    %c0_216 = arith.constant 0 : index
    %c0_217 = arith.constant 0 : index
    %525 = vector.load %arg8[%c0_216, %c0_217] : memref<8x128xbf16, #tpu.memory_space<vmem>>, vector<8x128xbf16>
    %cst_218 = arith.constant dense<0.000000e+00> : vector<8x512xf32>
    %526 = tpu.matmul %525, %15, %cst_218 {dimension_numbers = #tpu.dot_dimension_numbers<[1], [0], [0], [1], [0, 0, 1, 1], [], []>} : vector<8x128xbf16>, vector<128x512xbf16>, vector<8x512xf32> -> vector<8x512xf32>
    %527 = arith.addf %524, %526 : vector<8x512xf32>
    %c0_219 = arith.constant 0 : index
    %c0_220 = arith.constant 0 : index
    %528 = vector.load %arg9[%c0_219, %c0_220] : memref<8x128xf32, #tpu.memory_space<vmem>>, vector<8x128xf32>
    %529 = vector.extract_strided_slice %527 {offsets = [0, 0], sizes = [8, 128], strides = [1, 1]} : vector<8x512xf32> to vector<8x128xf32>
    %530 = arith.negf %529 : vector<8x128xf32>
    %531 = math.exp %530 : vector<8x128xf32>
    %cst_221 = arith.constant 1.000000e+00 : f32
    %532 = vector.broadcast %cst_221 : f32 to vector<8x128xf32>
    %533 = arith.addf %532, %531 : vector<8x128xf32>
    %534 = arith.divf %532, %533 : vector<8x128xf32>
    %535 = vector.extract_strided_slice %527 {offsets = [0, 128], sizes = [8, 128], strides = [1, 1]} : vector<8x512xf32> to vector<8x128xf32>
    %536 = arith.negf %535 : vector<8x128xf32>
    %537 = math.exp %536 : vector<8x128xf32>
    %cst_222 = arith.constant 1.000000e+00 : f32
    %538 = vector.broadcast %cst_222 : f32 to vector<8x128xf32>
    %539 = arith.addf %538, %537 : vector<8x128xf32>
    %540 = arith.divf %538, %539 : vector<8x128xf32>
    %541 = vector.extract_strided_slice %527 {offsets = [0, 256], sizes = [8, 128], strides = [1, 1]} : vector<8x512xf32> to vector<8x128xf32>
    %542 = math.tanh %541 : vector<8x128xf32>
    %543 = vector.extract_strided_slice %527 {offsets = [0, 384], sizes = [8, 128], strides = [1, 1]} : vector<8x512xf32> to vector<8x128xf32>
    %544 = arith.negf %543 : vector<8x128xf32>
    %545 = math.exp %544 : vector<8x128xf32>
    %cst_223 = arith.constant 1.000000e+00 : f32
    %546 = vector.broadcast %cst_223 : f32 to vector<8x128xf32>
    %547 = arith.addf %546, %545 : vector<8x128xf32>
    %548 = arith.divf %546, %547 : vector<8x128xf32>
    %549 = arith.mulf %540, %528 : vector<8x128xf32>
    %550 = arith.mulf %534, %542 : vector<8x128xf32>
    %551 = arith.addf %549, %550 : vector<8x128xf32>
    %552 = math.tanh %551 : vector<8x128xf32>
    %553 = arith.mulf %548, %552 : vector<8x128xf32>
    %554 = arith.truncf %553 : vector<8x128xf32> to vector<8x128xbf16>
    %c0_224 = arith.constant 0 : index
    %c0_225 = arith.constant 0 : index
    %555 = vector.load %arg8[%c0_224, %c0_225] : memref<8x128xbf16, #tpu.memory_space<vmem>>, vector<8x128xbf16>
    tpu.vector_store %arg8[%c0_224, %c0_225], %554 {strides = array<i32>} : memref<8x128xbf16, #tpu.memory_space<vmem>>, vector<8x128xbf16>,
    %c0_226 = arith.constant 0 : index
    %c0_227 = arith.constant 0 : index
    %556 = vector.load %arg9[%c0_226, %c0_227] : memref<8x128xf32, #tpu.memory_space<vmem>>, vector<8x128xf32>
    tpu.vector_store %arg9[%c0_226, %c0_227], %551 {strides = array<i32>} : memref<8x128xf32, #tpu.memory_space<vmem>>, vector<8x128xf32>,
    %557 = arith.truncf %553 : vector<8x128xf32> to vector<8x128xbf16>
    %558 = arith.index_cast %521 : i32 to index
    %c0_228 = arith.constant 0 : index
    %c0_229 = arith.constant 0 : index
    %559 = vector.load %arg6[%558, %c0_228, %c0_229] : memref<16x8x128xbf16, #tpu.memory_space<vmem>>, vector<1x8x128xbf16>
    %560 = vector.shape_cast %559 : vector<1x8x128xbf16> to vector<8x128xbf16>
    %561 = vector.shape_cast %557 : vector<8x128xbf16> to vector<1x8x128xbf16>
    tpu.vector_store %arg6[%558, %c0_228, %c0_229], %561 {strides = array<i32>} : memref<16x8x128xbf16, #tpu.memory_space<vmem>>, vector<1x8x128xbf16>,
    %c-11_i32 = arith.constant -11 : i32
    %562 = arith.muli %arg0, %c-11_i32 : i32
    %c13_i32_230 = arith.constant 13 : i32
    %563 = arith.addi %c13_i32_230, %562 : i32
    %564 = arith.index_cast %563 : i32 to index
    %c0_231 = arith.constant 0 : index
    %c0_232 = arith.constant 0 : index
    %565 = vector.load %arg7[%564, %c0_231, %c0_232] : memref<16x8x512xf32, #tpu.memory_space<vmem>>, vector<1x8x512xf32>
    %566 = vector.shape_cast %565 : vector<1x8x512xf32> to vector<8x512xf32>
    %c0_233 = arith.constant 0 : index
    %c0_234 = arith.constant 0 : index
    %567 = vector.load %arg8[%c0_233, %c0_234] : memref<8x128xbf16, #tpu.memory_space<vmem>>, vector<8x128xbf16>
    %cst_235 = arith.constant dense<0.000000e+00> : vector<8x512xf32>
    %568 = tpu.matmul %567, %15, %cst_235 {dimension_numbers = #tpu.dot_dimension_numbers<[1], [0], [0], [1], [0, 0, 1, 1], [], []>} : vector<8x128xbf16>, vector<128x512xbf16>, vector<8x512xf32> -> vector<8x512xf32>
    %569 = arith.addf %566, %568 : vector<8x512xf32>
    %c0_236 = arith.constant 0 : index
    %c0_237 = arith.constant 0 : index
    %570 = vector.load %arg9[%c0_236, %c0_237] : memref<8x128xf32, #tpu.memory_space<vmem>>, vector<8x128xf32>
    %571 = vector.extract_strided_slice %569 {offsets = [0, 0], sizes = [8, 128], strides = [1, 1]} : vector<8x512xf32> to vector<8x128xf32>
    %572 = arith.negf %571 : vector<8x128xf32>
    %573 = math.exp %572 : vector<8x128xf32>
    %cst_238 = arith.constant 1.000000e+00 : f32
    %574 = vector.broadcast %cst_238 : f32 to vector<8x128xf32>
    %575 = arith.addf %574, %573 : vector<8x128xf32>
    %576 = arith.divf %574, %575 : vector<8x128xf32>
    %577 = vector.extract_strided_slice %569 {offsets = [0, 128], sizes = [8, 128], strides = [1, 1]} : vector<8x512xf32> to vector<8x128xf32>
    %578 = arith.negf %577 : vector<8x128xf32>
    %579 = math.exp %578 : vector<8x128xf32>
    %cst_239 = arith.constant 1.000000e+00 : f32
    %580 = vector.broadcast %cst_239 : f32 to vector<8x128xf32>
    %581 = arith.addf %580, %579 : vector<8x128xf32>
    %582 = arith.divf %580, %581 : vector<8x128xf32>
    %583 = vector.extract_strided_slice %569 {offsets = [0, 256], sizes = [8, 128], strides = [1, 1]} : vector<8x512xf32> to vector<8x128xf32>
    %584 = math.tanh %583 : vector<8x128xf32>
    %585 = vector.extract_strided_slice %569 {offsets = [0, 384], sizes = [8, 128], strides = [1, 1]} : vector<8x512xf32> to vector<8x128xf32>
    %586 = arith.negf %585 : vector<8x128xf32>
    %587 = math.exp %586 : vector<8x128xf32>
    %cst_240 = arith.constant 1.000000e+00 : f32
    %588 = vector.broadcast %cst_240 : f32 to vector<8x128xf32>
    %589 = arith.addf %588, %587 : vector<8x128xf32>
    %590 = arith.divf %588, %589 : vector<8x128xf32>
    %591 = arith.mulf %582, %570 : vector<8x128xf32>
    %592 = arith.mulf %576, %584 : vector<8x128xf32>
    %593 = arith.addf %591, %592 : vector<8x128xf32>
    %594 = math.tanh %593 : vector<8x128xf32>
    %595 = arith.mulf %590, %594 : vector<8x128xf32>
    %596 = arith.truncf %595 : vector<8x128xf32> to vector<8x128xbf16>
    %c0_241 = arith.constant 0 : index
    %c0_242 = arith.constant 0 : index
    %597 = vector.load %arg8[%c0_241, %c0_242] : memref<8x128xbf16, #tpu.memory_space<vmem>>, vector<8x128xbf16>
    tpu.vector_store %arg8[%c0_241, %c0_242], %596 {strides = array<i32>} : memref<8x128xbf16, #tpu.memory_space<vmem>>, vector<8x128xbf16>,
    %c0_243 = arith.constant 0 : index
    %c0_244 = arith.constant 0 : index
    %598 = vector.load %arg9[%c0_243, %c0_244] : memref<8x128xf32, #tpu.memory_space<vmem>>, vector<8x128xf32>
    tpu.vector_store %arg9[%c0_243, %c0_244], %593 {strides = array<i32>} : memref<8x128xf32, #tpu.memory_space<vmem>>, vector<8x128xf32>,
    %599 = arith.truncf %595 : vector<8x128xf32> to vector<8x128xbf16>
    %600 = arith.index_cast %563 : i32 to index
    %c0_245 = arith.constant 0 : index
    %c0_246 = arith.constant 0 : index
    %601 = vector.load %arg6[%600, %c0_245, %c0_246] : memref<16x8x128xbf16, #tpu.memory_space<vmem>>, vector<1x8x128xbf16>
    %602 = vector.shape_cast %601 : vector<1x8x128xbf16> to vector<8x128xbf16>
    %603 = vector.shape_cast %599 : vector<8x128xbf16> to vector<1x8x128xbf16>
    tpu.vector_store %arg6[%600, %c0_245, %c0_246], %603 {strides = array<i32>} : memref<16x8x128xbf16, #tpu.memory_space<vmem>>, vector<1x8x128xbf16>,
    %c-13_i32 = arith.constant -13 : i32
    %604 = arith.muli %arg0, %c-13_i32 : i32
    %c14_i32 = arith.constant 14 : i32
    %605 = arith.addi %c14_i32, %604 : i32
    %606 = arith.index_cast %605 : i32 to index
    %c0_247 = arith.constant 0 : index
    %c0_248 = arith.constant 0 : index
    %607 = vector.load %arg7[%606, %c0_247, %c0_248] : memref<16x8x512xf32, #tpu.memory_space<vmem>>, vector<1x8x512xf32>
    %608 = vector.shape_cast %607 : vector<1x8x512xf32> to vector<8x512xf32>
    %c0_249 = arith.constant 0 : index
    %c0_250 = arith.constant 0 : index
    %609 = vector.load %arg8[%c0_249, %c0_250] : memref<8x128xbf16, #tpu.memory_space<vmem>>, vector<8x128xbf16>
    %cst_251 = arith.constant dense<0.000000e+00> : vector<8x512xf32>
    %610 = tpu.matmul %609, %15, %cst_251 {dimension_numbers = #tpu.dot_dimension_numbers<[1], [0], [0], [1], [0, 0, 1, 1], [], []>} : vector<8x128xbf16>, vector<128x512xbf16>, vector<8x512xf32> -> vector<8x512xf32>
    %611 = arith.addf %608, %610 : vector<8x512xf32>
    %c0_252 = arith.constant 0 : index
    %c0_253 = arith.constant 0 : index
    %612 = vector.load %arg9[%c0_252, %c0_253] : memref<8x128xf32, #tpu.memory_space<vmem>>, vector<8x128xf32>
    %613 = vector.extract_strided_slice %611 {offsets = [0, 0], sizes = [8, 128], strides = [1, 1]} : vector<8x512xf32> to vector<8x128xf32>
    %614 = arith.negf %613 : vector<8x128xf32>
    %615 = math.exp %614 : vector<8x128xf32>
    %cst_254 = arith.constant 1.000000e+00 : f32
    %616 = vector.broadcast %cst_254 : f32 to vector<8x128xf32>
    %617 = arith.addf %616, %615 : vector<8x128xf32>
    %618 = arith.divf %616, %617 : vector<8x128xf32>
    %619 = vector.extract_strided_slice %611 {offsets = [0, 128], sizes = [8, 128], strides = [1, 1]} : vector<8x512xf32> to vector<8x128xf32>
    %620 = arith.negf %619 : vector<8x128xf32>
    %621 = math.exp %620 : vector<8x128xf32>
    %cst_255 = arith.constant 1.000000e+00 : f32
    %622 = vector.broadcast %cst_255 : f32 to vector<8x128xf32>
    %623 = arith.addf %622, %621 : vector<8x128xf32>
    %624 = arith.divf %622, %623 : vector<8x128xf32>
    %625 = vector.extract_strided_slice %611 {offsets = [0, 256], sizes = [8, 128], strides = [1, 1]} : vector<8x512xf32> to vector<8x128xf32>
    %626 = math.tanh %625 : vector<8x128xf32>
    %627 = vector.extract_strided_slice %611 {offsets = [0, 384], sizes = [8, 128], strides = [1, 1]} : vector<8x512xf32> to vector<8x128xf32>
    %628 = arith.negf %627 : vector<8x128xf32>
    %629 = math.exp %628 : vector<8x128xf32>
    %cst_256 = arith.constant 1.000000e+00 : f32
    %630 = vector.broadcast %cst_256 : f32 to vector<8x128xf32>
    %631 = arith.addf %630, %629 : vector<8x128xf32>
    %632 = arith.divf %630, %631 : vector<8x128xf32>
    %633 = arith.mulf %624, %612 : vector<8x128xf32>
    %634 = arith.mulf %618, %626 : vector<8x128xf32>
    %635 = arith.addf %633, %634 : vector<8x128xf32>
    %636 = math.tanh %635 : vector<8x128xf32>
    %637 = arith.mulf %632, %636 : vector<8x128xf32>
    %638 = arith.truncf %637 : vector<8x128xf32> to vector<8x128xbf16>
    %c0_257 = arith.constant 0 : index
    %c0_258 = arith.constant 0 : index
    %639 = vector.load %arg8[%c0_257, %c0_258] : memref<8x128xbf16, #tpu.memory_space<vmem>>, vector<8x128xbf16>
    tpu.vector_store %arg8[%c0_257, %c0_258], %638 {strides = array<i32>} : memref<8x128xbf16, #tpu.memory_space<vmem>>, vector<8x128xbf16>,
    %c0_259 = arith.constant 0 : index
    %c0_260 = arith.constant 0 : index
    %640 = vector.load %arg9[%c0_259, %c0_260] : memref<8x128xf32, #tpu.memory_space<vmem>>, vector<8x128xf32>
    tpu.vector_store %arg9[%c0_259, %c0_260], %635 {strides = array<i32>} : memref<8x128xf32, #tpu.memory_space<vmem>>, vector<8x128xf32>,
    %641 = arith.truncf %637 : vector<8x128xf32> to vector<8x128xbf16>
    %642 = arith.index_cast %605 : i32 to index
    %c0_261 = arith.constant 0 : index
    %c0_262 = arith.constant 0 : index
    %643 = vector.load %arg6[%642, %c0_261, %c0_262] : memref<16x8x128xbf16, #tpu.memory_space<vmem>>, vector<1x8x128xbf16>
    %644 = vector.shape_cast %643 : vector<1x8x128xbf16> to vector<8x128xbf16>
    %645 = vector.shape_cast %641 : vector<8x128xbf16> to vector<1x8x128xbf16>
    tpu.vector_store %arg6[%642, %c0_261, %c0_262], %645 {strides = array<i32>} : memref<16x8x128xbf16, #tpu.memory_space<vmem>>, vector<1x8x128xbf16>,
    %c-15_i32 = arith.constant -15 : i32
    %646 = arith.muli %arg0, %c-15_i32 : i32
    %c15_i32_263 = arith.constant 15 : i32
    %647 = arith.addi %c15_i32_263, %646 : i32
    %648 = arith.index_cast %647 : i32 to index
    %c0_264 = arith.constant 0 : index
    %c0_265 = arith.constant 0 : index
    %649 = vector.load %arg7[%648, %c0_264, %c0_265] : memref<16x8x512xf32, #tpu.memory_space<vmem>>, vector<1x8x512xf32>
    %650 = vector.shape_cast %649 : vector<1x8x512xf32> to vector<8x512xf32>
    %c0_266 = arith.constant 0 : index
    %c0_267 = arith.constant 0 : index
    %651 = vector.load %arg8[%c0_266, %c0_267] : memref<8x128xbf16, #tpu.memory_space<vmem>>, vector<8x128xbf16>
    %cst_268 = arith.constant dense<0.000000e+00> : vector<8x512xf32>
    %652 = tpu.matmul %651, %15, %cst_268 {dimension_numbers = #tpu.dot_dimension_numbers<[1], [0], [0], [1], [0, 0, 1, 1], [], []>} : vector<8x128xbf16>, vector<128x512xbf16>, vector<8x512xf32> -> vector<8x512xf32>
    %653 = arith.addf %650, %652 : vector<8x512xf32>
    %c0_269 = arith.constant 0 : index
    %c0_270 = arith.constant 0 : index
    %654 = vector.load %arg9[%c0_269, %c0_270] : memref<8x128xf32, #tpu.memory_space<vmem>>, vector<8x128xf32>
    %655 = vector.extract_strided_slice %653 {offsets = [0, 0], sizes = [8, 128], strides = [1, 1]} : vector<8x512xf32> to vector<8x128xf32>
    %656 = arith.negf %655 : vector<8x128xf32>
    %657 = math.exp %656 : vector<8x128xf32>
    %cst_271 = arith.constant 1.000000e+00 : f32
    %658 = vector.broadcast %cst_271 : f32 to vector<8x128xf32>
    %659 = arith.addf %658, %657 : vector<8x128xf32>
    %660 = arith.divf %658, %659 : vector<8x128xf32>
    %661 = vector.extract_strided_slice %653 {offsets = [0, 128], sizes = [8, 128], strides = [1, 1]} : vector<8x512xf32> to vector<8x128xf32>
    %662 = arith.negf %661 : vector<8x128xf32>
    %663 = math.exp %662 : vector<8x128xf32>
    %cst_272 = arith.constant 1.000000e+00 : f32
    %664 = vector.broadcast %cst_272 : f32 to vector<8x128xf32>
    %665 = arith.addf %664, %663 : vector<8x128xf32>
    %666 = arith.divf %664, %665 : vector<8x128xf32>
    %667 = vector.extract_strided_slice %653 {offsets = [0, 256], sizes = [8, 128], strides = [1, 1]} : vector<8x512xf32> to vector<8x128xf32>
    %668 = math.tanh %667 : vector<8x128xf32>
    %669 = vector.extract_strided_slice %653 {offsets = [0, 384], sizes = [8, 128], strides = [1, 1]} : vector<8x512xf32> to vector<8x128xf32>
    %670 = arith.negf %669 : vector<8x128xf32>
    %671 = math.exp %670 : vector<8x128xf32>
    %cst_273 = arith.constant 1.000000e+00 : f32
    %672 = vector.broadcast %cst_273 : f32 to vector<8x128xf32>
    %673 = arith.addf %672, %671 : vector<8x128xf32>
    %674 = arith.divf %672, %673 : vector<8x128xf32>
    %675 = arith.mulf %666, %654 : vector<8x128xf32>
    %676 = arith.mulf %660, %668 : vector<8x128xf32>
    %677 = arith.addf %675, %676 : vector<8x128xf32>
    %678 = math.tanh %677 : vector<8x128xf32>
    %679 = arith.mulf %674, %678 : vector<8x128xf32>
    %680 = arith.truncf %679 : vector<8x128xf32> to vector<8x128xbf16>
    %c0_274 = arith.constant 0 : index
    %c0_275 = arith.constant 0 : index
    %681 = vector.load %arg8[%c0_274, %c0_275] : memref<8x128xbf16, #tpu.memory_space<vmem>>, vector<8x128xbf16>
    tpu.vector_store %arg8[%c0_274, %c0_275], %680 {strides = array<i32>} : memref<8x128xbf16, #tpu.memory_space<vmem>>, vector<8x128xbf16>,
    %c0_276 = arith.constant 0 : index
    %c0_277 = arith.constant 0 : index
    %682 = vector.load %arg9[%c0_276, %c0_277] : memref<8x128xf32, #tpu.memory_space<vmem>>, vector<8x128xf32>
    tpu.vector_store %arg9[%c0_276, %c0_277], %677 {strides = array<i32>} : memref<8x128xf32, #tpu.memory_space<vmem>>, vector<8x128xf32>,
    %683 = arith.truncf %679 : vector<8x128xf32> to vector<8x128xbf16>
    %684 = arith.index_cast %647 : i32 to index
    %c0_278 = arith.constant 0 : index
    %c0_279 = arith.constant 0 : index
    %685 = vector.load %arg6[%684, %c0_278, %c0_279] : memref<16x8x128xbf16, #tpu.memory_space<vmem>>, vector<1x8x128xbf16>
    %686 = vector.shape_cast %685 : vector<1x8x128xbf16> to vector<8x128xbf16>
    %687 = vector.shape_cast %683 : vector<8x128xbf16> to vector<1x8x128xbf16>
    tpu.vector_store %arg6[%684, %c0_278, %c0_279], %687 {strides = array<i32>} : memref<16x8x128xbf16, #tpu.memory_space<vmem>>, vector<1x8x128xbf16>,
    return
  }
  func.func @transform_0(%arg0: i32, %arg1: i32) -> (i32, i32, i32) {
    %c1_i32 = arith.constant 1 : i32
    %0 = arith.subi %c1_i32, %arg0 : i32
    %1 = arith.muli %0, %arg1 : i32
    %c1_i32_0 = arith.constant 1 : i32
    %2 = arith.subi %c1_i32_0, %arg1 : i32
    %3 = arith.muli %arg0, %2 : i32
    %4 = arith.addi %1, %3 : i32
    %c0_i32 = arith.constant 0 : i32
    %c0_i32_1 = arith.constant 0 : i32
    %c0_i32_2 = arith.constant 0 : i32
    return %4, %c0_i32, %c0_i32_1 : i32, i32, i32
  }
  func.func @transform_1(%arg0: i32, %arg1: i32) -> (i32, i32, i32) {
    %c0_i32 = arith.constant 0 : i32
    %c0_i32_0 = arith.constant 0 : i32
    %c0_i32_1 = arith.constant 0 : i32
    return %arg0, %c0_i32, %c0_i32_0 : i32, i32, i32
  }
  func.func @transform_2(%arg0: i32, %arg1: i32) -> (i32, i32, i32) {
    %c0_i32 = arith.constant 0 : i32
    %c0_i32_0 = arith.constant 0 : i32
    %c0_i32_1 = arith.constant 0 : i32
    return %arg0, %c0_i32, %c0_i32_0 : i32, i32, i32
  }
  func.func @transform_3(%arg0: i32, %arg1: i32) -> (i32, i32, i32) {
    %c0_i32 = arith.constant 0 : i32
    %c0_i32_0 = arith.constant 0 : i32
    %c0_i32_1 = arith.constant 0 : i32
    return %arg0, %c0_i32, %c0_i32_0 : i32, i32, i32
  }
  func.func @transform_4(%arg0: i32, %arg1: i32) -> (i32, i32, i32) {
    %c1_i32 = arith.constant 1 : i32
    %0 = arith.subi %c1_i32, %arg0 : i32
    %1 = arith.muli %0, %arg1 : i32
    %c1_i32_0 = arith.constant 1 : i32
    %2 = arith.subi %c1_i32_0, %arg1 : i32
    %3 = arith.muli %arg0, %2 : i32
    %4 = arith.addi %1, %3 : i32
    %c0_i32 = arith.constant 0 : i32
    %c0_i32_1 = arith.constant 0 : i32
    return %4, %c0_i32, %arg0 : i32, i32, i32
  }
}

module attributes {stable_mosaic.version = 11 : i64} {
  func.func @_head_kernel(%arg0: memref<8x256xf32, #tpu.memory_space<vmem>>, %arg1: memref<256x1xf32, #tpu.memory_space<vmem>>, %arg2: memref<1x1xf32, #tpu.memory_space<vmem>>, %arg3: memref<8x1xf32, #tpu.memory_space<vmem>>) attributes {dimension_semantics = [], scalar_prefetch = 0 : i64, scratch_operands = 0 : i64, tpu.core_type = #tpu.core_type<tc>} {
    %c0 = arith.constant 0 : index
    %c0_0 = arith.constant 0 : index
    %0 = vector.load %arg0[%c0, %c0_0] : memref<8x256xf32, #tpu.memory_space<vmem>>, vector<8x256xf32>
    %c0_1 = arith.constant 0 : index
    %c0_2 = arith.constant 0 : index
    %1 = vector.load %arg1[%c0_1, %c0_2] : memref<256x1xf32, #tpu.memory_space<vmem>>, vector<256x1xf32>
    %cst = arith.constant dense<0.000000e+00> : vector<8x1xf32>
    %2 = tpu.matmul %0, %1, %cst {dimension_numbers = #tpu.dot_dimension_numbers<[1], [0], [0], [1], [0, 0, 1, 1], [], []>} : vector<8x256xf32>, vector<256x1xf32>, vector<8x1xf32> -> vector<8x1xf32>
    %c0_3 = arith.constant 0 : index
    %c0_4 = arith.constant 0 : index
    %3 = vector.load %arg2[%c0_3, %c0_4] : memref<1x1xf32, #tpu.memory_space<vmem>>, vector<1x1xf32>
    %4 = vector.broadcast %3 : vector<1x1xf32> to vector<8x1xf32>
    %5 = arith.addf %2, %4 : vector<8x1xf32>
    %c0_5 = arith.constant 0 : index
    %c0_6 = arith.constant 0 : index
    %6 = vector.load %arg3[%c0_5, %c0_6] : memref<8x1xf32, #tpu.memory_space<vmem>>, vector<8x1xf32>
    tpu.vector_store %arg3[%c0_5, %c0_6], %5 {strides = array<i32>} : memref<8x1xf32, #tpu.memory_space<vmem>>, vector<8x1xf32>,
    return
  }
}

module attributes {stable_mosaic.version = 11 : i64} {
  func.func @_bilstm_pool_kernel(%arg0: i32, %arg1: i32, %arg2: memref<16x8x256xbf16, #tpu.memory_space<vmem>>, %arg3: memref<1x256x512xbf16, #tpu.memory_space<vmem>>, %arg4: memref<1x128x512xbf16, #tpu.memory_space<vmem>>, %arg5: memref<1x1x512xf32, #tpu.memory_space<vmem>>, %arg6: memref<8x128xf32, #tpu.memory_space<vmem>>, %arg7: memref<16x8x512xf32, #tpu.memory_space<vmem>>, %arg8: memref<8x128xbf16, #tpu.memory_space<vmem>>, %arg9: memref<8x128xf32, #tpu.memory_space<vmem>>) attributes {dimension_semantics = [#tpu.dimension_semantics<parallel>, #tpu.dimension_semantics<arbitrary>], iteration_bounds = array<i64: 2, 2>, scalar_prefetch = 0 : i64, scratch_operands = 3 : i64, tpu.core_type = #tpu.core_type<tc>, window_params = [{transform_indices = @transform_0, window_bounds = array<i64: 16, 8, 256>}, {transform_indices = @transform_1, window_bounds = array<i64: 1, 256, 512>}, {transform_indices = @transform_2, window_bounds = array<i64: 1, 128, 512>}, {transform_indices = @transform_3, window_bounds = array<i64: 1, 1, 512>}, {transform_indices = @transform_4, window_bounds = array<i64: 8, 128>}]} {
    %c0_i32 = arith.constant 0 : i32
    %0 = arith.cmpi eq, %arg1, %c0_i32 : i32
    %1 = arith.extui %0 : i1 to i32
    %c0_i32_0 = arith.constant 0 : i32
    %2 = arith.cmpi ne, %1, %c0_i32_0 : i32
    scf.if %2 {
      %cst_253 = arith.constant 0.000000e+00 : bf16
      %628 = vector.broadcast %cst_253 : bf16 to vector<8x128xbf16>
      %c0_254 = arith.constant 0 : index
      %c0_255 = arith.constant 0 : index
      %629 = vector.load %arg8[%c0_254, %c0_255] : memref<8x128xbf16, #tpu.memory_space<vmem>>, vector<8x128xbf16>
      tpu.vector_store %arg8[%c0_254, %c0_255], %628 {strides = array<i32>} : memref<8x128xbf16, #tpu.memory_space<vmem>>, vector<8x128xbf16>,
      %cst_256 = arith.constant 0.000000e+00 : f32
      %630 = vector.broadcast %cst_256 : f32 to vector<8x128xf32>
      %c0_257 = arith.constant 0 : index
      %c0_258 = arith.constant 0 : index
      %631 = vector.load %arg9[%c0_257, %c0_258] : memref<8x128xf32, #tpu.memory_space<vmem>>, vector<8x128xf32>
      tpu.vector_store %arg9[%c0_257, %c0_258], %630 {strides = array<i32>} : memref<8x128xf32, #tpu.memory_space<vmem>>, vector<8x128xf32>,
      %cst_259 = arith.constant 0.000000e+00 : f32
      %632 = vector.broadcast %cst_259 : f32 to vector<8x128xf32>
      %c0_260 = arith.constant 0 : index
      %c0_261 = arith.constant 0 : index
      %633 = vector.load %arg6[%c0_260, %c0_261] : memref<8x128xf32, #tpu.memory_space<vmem>>, vector<8x128xf32>
      tpu.vector_store %arg6[%c0_260, %c0_261], %632 {strides = array<i32>} : memref<8x128xf32, #tpu.memory_space<vmem>>, vector<8x128xf32>,
    } else {
    }
    %cst = arith.constant 0.000000e+00 : f32
    %3 = vector.broadcast %cst : f32 to vector<8x128xf32>
    %c0 = arith.constant 0 : index
    %c0_1 = arith.constant 0 : index
    %c0_2 = arith.constant 0 : index
    %4 = vector.load %arg2[%c0, %c0_1, %c0_2] : memref<16x8x256xbf16, #tpu.memory_space<vmem>>, vector<16x8x256xbf16>
    %5 = vector.shape_cast %4 : vector<16x8x256xbf16> to vector<128x256xbf16>
    %c0_3 = arith.constant 0 : index
    %c0_4 = arith.constant 0 : index
    %c0_5 = arith.constant 0 : index
    %6 = vector.load %arg3[%c0_3, %c0_4, %c0_5] : memref<1x256x512xbf16, #tpu.memory_space<vmem>>, vector<1x256x512xbf16>
    %7 = vector.shape_cast %6 : vector<1x256x512xbf16> to vector<256x512xbf16>
    %cst_6 = arith.constant dense<0.000000e+00> : vector<128x512xf32>
    %8 = tpu.matmul %5, %7, %cst_6 {dimension_numbers = #tpu.dot_dimension_numbers<[1], [0], [0], [1], [0, 0, 1, 1], [], []>} : vector<128x256xbf16>, vector<256x512xbf16>, vector<128x512xf32> -> vector<128x512xf32>
    %c0_7 = arith.constant 0 : index
    %c0_8 = arith.constant 0 : index
    %c0_9 = arith.constant 0 : index
    %9 = vector.load %arg5[%c0_7, %c0_8, %c0_9] : memref<1x1x512xf32, #tpu.memory_space<vmem>>, vector<1x1x512xf32>
    %10 = vector.shape_cast %9 : vector<1x1x512xf32> to vector<1x512xf32>
    %11 = vector.broadcast %10 : vector<1x512xf32> to vector<128x512xf32>
    %12 = arith.addf %8, %11 : vector<128x512xf32>
    %13 = vector.shape_cast %12 : vector<128x512xf32> to vector<16x8x512xf32>
    %c0_10 = arith.constant 0 : index
    %c0_11 = arith.constant 0 : index
    %c0_12 = arith.constant 0 : index
    %14 = vector.load %arg7[%c0_10, %c0_11, %c0_12] : memref<16x8x512xf32, #tpu.memory_space<vmem>>, vector<16x8x512xf32>
    tpu.vector_store %arg7[%c0_10, %c0_11, %c0_12], %13 {strides = array<i32>} : memref<16x8x512xf32, #tpu.memory_space<vmem>>, vector<16x8x512xf32>,
    %c0_13 = arith.constant 0 : index
    %c0_14 = arith.constant 0 : index
    %c0_15 = arith.constant 0 : index
    %15 = vector.load %arg4[%c0_13, %c0_14, %c0_15] : memref<1x128x512xbf16, #tpu.memory_space<vmem>>, vector<1x128x512xbf16>
    %16 = vector.shape_cast %15 : vector<1x128x512xbf16> to vector<128x512xbf16>
    %c15_i32 = arith.constant 15 : i32
    %17 = arith.muli %arg0, %c15_i32 : i32
    %c0_i32_16 = arith.constant 0 : i32
    %18 = arith.addi %c0_i32_16, %17 : i32
    %19 = arith.index_cast %18 : i32 to index
    %c0_17 = arith.constant 0 : index
    %c0_18 = arith.constant 0 : index
    %20 = vector.load %arg7[%19, %c0_17, %c0_18] : memref<16x8x512xf32, #tpu.memory_space<vmem>>, vector<1x8x512xf32>
    %21 = vector.shape_cast %20 : vector<1x8x512xf32> to vector<8x512xf32>
    %c0_19 = arith.constant 0 : index
    %c0_20 = arith.constant 0 : index
    %22 = vector.load %arg8[%c0_19, %c0_20] : memref<8x128xbf16, #tpu.memory_space<vmem>>, vector<8x128xbf16>
    %cst_21 = arith.constant dense<0.000000e+00> : vector<8x512xf32>
    %23 = tpu.matmul %22, %16, %cst_21 {dimension_numbers = #tpu.dot_dimension_numbers<[1], [0], [0], [1], [0, 0, 1, 1], [], []>} : vector<8x128xbf16>, vector<128x512xbf16>, vector<8x512xf32> -> vector<8x512xf32>
    %24 = arith.addf %21, %23 : vector<8x512xf32>
    %c0_22 = arith.constant 0 : index
    %c0_23 = arith.constant 0 : index
    %25 = vector.load %arg9[%c0_22, %c0_23] : memref<8x128xf32, #tpu.memory_space<vmem>>, vector<8x128xf32>
    %26 = vector.extract_strided_slice %24 {offsets = [0, 0], sizes = [8, 128], strides = [1, 1]} : vector<8x512xf32> to vector<8x128xf32>
    %27 = arith.negf %26 : vector<8x128xf32>
    %28 = math.exp %27 : vector<8x128xf32>
    %cst_24 = arith.constant 1.000000e+00 : f32
    %29 = vector.broadcast %cst_24 : f32 to vector<8x128xf32>
    %30 = arith.addf %29, %28 : vector<8x128xf32>
    %31 = arith.divf %29, %30 : vector<8x128xf32>
    %32 = vector.extract_strided_slice %24 {offsets = [0, 128], sizes = [8, 128], strides = [1, 1]} : vector<8x512xf32> to vector<8x128xf32>
    %33 = arith.negf %32 : vector<8x128xf32>
    %34 = math.exp %33 : vector<8x128xf32>
    %cst_25 = arith.constant 1.000000e+00 : f32
    %35 = vector.broadcast %cst_25 : f32 to vector<8x128xf32>
    %36 = arith.addf %35, %34 : vector<8x128xf32>
    %37 = arith.divf %35, %36 : vector<8x128xf32>
    %38 = vector.extract_strided_slice %24 {offsets = [0, 256], sizes = [8, 128], strides = [1, 1]} : vector<8x512xf32> to vector<8x128xf32>
    %39 = math.tanh %38 : vector<8x128xf32>
    %40 = vector.extract_strided_slice %24 {offsets = [0, 384], sizes = [8, 128], strides = [1, 1]} : vector<8x512xf32> to vector<8x128xf32>
    %41 = arith.negf %40 : vector<8x128xf32>
    %42 = math.exp %41 : vector<8x128xf32>
    %cst_26 = arith.constant 1.000000e+00 : f32
    %43 = vector.broadcast %cst_26 : f32 to vector<8x128xf32>
    %44 = arith.addf %43, %42 : vector<8x128xf32>
    %45 = arith.divf %43, %44 : vector<8x128xf32>
    %46 = arith.mulf %37, %25 : vector<8x128xf32>
    %47 = arith.mulf %31, %39 : vector<8x128xf32>
    %48 = arith.addf %46, %47 : vector<8x128xf32>
    %49 = math.tanh %48 : vector<8x128xf32>
    %50 = arith.mulf %45, %49 : vector<8x128xf32>
    %51 = arith.truncf %50 : vector<8x128xf32> to vector<8x128xbf16>
    %c0_27 = arith.constant 0 : index
    %c0_28 = arith.constant 0 : index
    %52 = vector.load %arg8[%c0_27, %c0_28] : memref<8x128xbf16, #tpu.memory_space<vmem>>, vector<8x128xbf16>
    tpu.vector_store %arg8[%c0_27, %c0_28], %51 {strides = array<i32>} : memref<8x128xbf16, #tpu.memory_space<vmem>>, vector<8x128xbf16>,
    %c0_29 = arith.constant 0 : index
    %c0_30 = arith.constant 0 : index
    %53 = vector.load %arg9[%c0_29, %c0_30] : memref<8x128xf32, #tpu.memory_space<vmem>>, vector<8x128xf32>
    tpu.vector_store %arg9[%c0_29, %c0_30], %48 {strides = array<i32>} : memref<8x128xf32, #tpu.memory_space<vmem>>, vector<8x128xf32>,
    %54 = arith.addf %3, %50 : vector<8x128xf32>
    %c13_i32 = arith.constant 13 : i32
    %55 = arith.muli %arg0, %c13_i32 : i32
    %c1_i32 = arith.constant 1 : i32
    %56 = arith.addi %c1_i32, %55 : i32
    %57 = arith.index_cast %56 : i32 to index
    %c0_31 = arith.constant 0 : index
    %c0_32 = arith.constant 0 : index
    %58 = vector.load %arg7[%57, %c0_31, %c0_32] : memref<16x8x512xf32, #tpu.memory_space<vmem>>, vector<1x8x512xf32>
    %59 = vector.shape_cast %58 : vector<1x8x512xf32> to vector<8x512xf32>
    %c0_33 = arith.constant 0 : index
    %c0_34 = arith.constant 0 : index
    %60 = vector.load %arg8[%c0_33, %c0_34] : memref<8x128xbf16, #tpu.memory_space<vmem>>, vector<8x128xbf16>
    %cst_35 = arith.constant dense<0.000000e+00> : vector<8x512xf32>
    %61 = tpu.matmul %60, %16, %cst_35 {dimension_numbers = #tpu.dot_dimension_numbers<[1], [0], [0], [1], [0, 0, 1, 1], [], []>} : vector<8x128xbf16>, vector<128x512xbf16>, vector<8x512xf32> -> vector<8x512xf32>
    %62 = arith.addf %59, %61 : vector<8x512xf32>
    %c0_36 = arith.constant 0 : index
    %c0_37 = arith.constant 0 : index
    %63 = vector.load %arg9[%c0_36, %c0_37] : memref<8x128xf32, #tpu.memory_space<vmem>>, vector<8x128xf32>
    %64 = vector.extract_strided_slice %62 {offsets = [0, 0], sizes = [8, 128], strides = [1, 1]} : vector<8x512xf32> to vector<8x128xf32>
    %65 = arith.negf %64 : vector<8x128xf32>
    %66 = math.exp %65 : vector<8x128xf32>
    %cst_38 = arith.constant 1.000000e+00 : f32
    %67 = vector.broadcast %cst_38 : f32 to vector<8x128xf32>
    %68 = arith.addf %67, %66 : vector<8x128xf32>
    %69 = arith.divf %67, %68 : vector<8x128xf32>
    %70 = vector.extract_strided_slice %62 {offsets = [0, 128], sizes = [8, 128], strides = [1, 1]} : vector<8x512xf32> to vector<8x128xf32>
    %71 = arith.negf %70 : vector<8x128xf32>
    %72 = math.exp %71 : vector<8x128xf32>
    %cst_39 = arith.constant 1.000000e+00 : f32
    %73 = vector.broadcast %cst_39 : f32 to vector<8x128xf32>
    %74 = arith.addf %73, %72 : vector<8x128xf32>
    %75 = arith.divf %73, %74 : vector<8x128xf32>
    %76 = vector.extract_strided_slice %62 {offsets = [0, 256], sizes = [8, 128], strides = [1, 1]} : vector<8x512xf32> to vector<8x128xf32>
    %77 = math.tanh %76 : vector<8x128xf32>
    %78 = vector.extract_strided_slice %62 {offsets = [0, 384], sizes = [8, 128], strides = [1, 1]} : vector<8x512xf32> to vector<8x128xf32>
    %79 = arith.negf %78 : vector<8x128xf32>
    %80 = math.exp %79 : vector<8x128xf32>
    %cst_40 = arith.constant 1.000000e+00 : f32
    %81 = vector.broadcast %cst_40 : f32 to vector<8x128xf32>
    %82 = arith.addf %81, %80 : vector<8x128xf32>
    %83 = arith.divf %81, %82 : vector<8x128xf32>
    %84 = arith.mulf %75, %63 : vector<8x128xf32>
    %85 = arith.mulf %69, %77 : vector<8x128xf32>
    %86 = arith.addf %84, %85 : vector<8x128xf32>
    %87 = math.tanh %86 : vector<8x128xf32>
    %88 = arith.mulf %83, %87 : vector<8x128xf32>
    %89 = arith.truncf %88 : vector<8x128xf32> to vector<8x128xbf16>
    %c0_41 = arith.constant 0 : index
    %c0_42 = arith.constant 0 : index
    %90 = vector.load %arg8[%c0_41, %c0_42] : memref<8x128xbf16, #tpu.memory_space<vmem>>, vector<8x128xbf16>
    tpu.vector_store %arg8[%c0_41, %c0_42], %89 {strides = array<i32>} : memref<8x128xbf16, #tpu.memory_space<vmem>>, vector<8x128xbf16>,
    %c0_43 = arith.constant 0 : index
    %c0_44 = arith.constant 0 : index
    %91 = vector.load %arg9[%c0_43, %c0_44] : memref<8x128xf32, #tpu.memory_space<vmem>>, vector<8x128xf32>
    tpu.vector_store %arg9[%c0_43, %c0_44], %86 {strides = array<i32>} : memref<8x128xf32, #tpu.memory_space<vmem>>, vector<8x128xf32>,
    %92 = arith.addf %54, %88 : vector<8x128xf32>
    %c11_i32 = arith.constant 11 : i32
    %93 = arith.muli %arg0, %c11_i32 : i32
    %c2_i32 = arith.constant 2 : i32
    %94 = arith.addi %c2_i32, %93 : i32
    %95 = arith.index_cast %94 : i32 to index
    %c0_45 = arith.constant 0 : index
    %c0_46 = arith.constant 0 : index
    %96 = vector.load %arg7[%95, %c0_45, %c0_46] : memref<16x8x512xf32, #tpu.memory_space<vmem>>, vector<1x8x512xf32>
    %97 = vector.shape_cast %96 : vector<1x8x512xf32> to vector<8x512xf32>
    %c0_47 = arith.constant 0 : index
    %c0_48 = arith.constant 0 : index
    %98 = vector.load %arg8[%c0_47, %c0_48] : memref<8x128xbf16, #tpu.memory_space<vmem>>, vector<8x128xbf16>
    %cst_49 = arith.constant dense<0.000000e+00> : vector<8x512xf32>
    %99 = tpu.matmul %98, %16, %cst_49 {dimension_numbers = #tpu.dot_dimension_numbers<[1], [0], [0], [1], [0, 0, 1, 1], [], []>} : vector<8x128xbf16>, vector<128x512xbf16>, vector<8x512xf32> -> vector<8x512xf32>
    %100 = arith.addf %97, %99 : vector<8x512xf32>
    %c0_50 = arith.constant 0 : index
    %c0_51 = arith.constant 0 : index
    %101 = vector.load %arg9[%c0_50, %c0_51] : memref<8x128xf32, #tpu.memory_space<vmem>>, vector<8x128xf32>
    %102 = vector.extract_strided_slice %100 {offsets = [0, 0], sizes = [8, 128], strides = [1, 1]} : vector<8x512xf32> to vector<8x128xf32>
    %103 = arith.negf %102 : vector<8x128xf32>
    %104 = math.exp %103 : vector<8x128xf32>
    %cst_52 = arith.constant 1.000000e+00 : f32
    %105 = vector.broadcast %cst_52 : f32 to vector<8x128xf32>
    %106 = arith.addf %105, %104 : vector<8x128xf32>
    %107 = arith.divf %105, %106 : vector<8x128xf32>
    %108 = vector.extract_strided_slice %100 {offsets = [0, 128], sizes = [8, 128], strides = [1, 1]} : vector<8x512xf32> to vector<8x128xf32>
    %109 = arith.negf %108 : vector<8x128xf32>
    %110 = math.exp %109 : vector<8x128xf32>
    %cst_53 = arith.constant 1.000000e+00 : f32
    %111 = vector.broadcast %cst_53 : f32 to vector<8x128xf32>
    %112 = arith.addf %111, %110 : vector<8x128xf32>
    %113 = arith.divf %111, %112 : vector<8x128xf32>
    %114 = vector.extract_strided_slice %100 {offsets = [0, 256], sizes = [8, 128], strides = [1, 1]} : vector<8x512xf32> to vector<8x128xf32>
    %115 = math.tanh %114 : vector<8x128xf32>
    %116 = vector.extract_strided_slice %100 {offsets = [0, 384], sizes = [8, 128], strides = [1, 1]} : vector<8x512xf32> to vector<8x128xf32>
    %117 = arith.negf %116 : vector<8x128xf32>
    %118 = math.exp %117 : vector<8x128xf32>
    %cst_54 = arith.constant 1.000000e+00 : f32
    %119 = vector.broadcast %cst_54 : f32 to vector<8x128xf32>
    %120 = arith.addf %119, %118 : vector<8x128xf32>
    %121 = arith.divf %119, %120 : vector<8x128xf32>
    %122 = arith.mulf %113, %101 : vector<8x128xf32>
    %123 = arith.mulf %107, %115 : vector<8x128xf32>
    %124 = arith.addf %122, %123 : vector<8x128xf32>
    %125 = math.tanh %124 : vector<8x128xf32>
    %126 = arith.mulf %121, %125 : vector<8x128xf32>
    %127 = arith.truncf %126 : vector<8x128xf32> to vector<8x128xbf16>
    %c0_55 = arith.constant 0 : index
    %c0_56 = arith.constant 0 : index
    %128 = vector.load %arg8[%c0_55, %c0_56] : memref<8x128xbf16, #tpu.memory_space<vmem>>, vector<8x128xbf16>
    tpu.vector_store %arg8[%c0_55, %c0_56], %127 {strides = array<i32>} : memref<8x128xbf16, #tpu.memory_space<vmem>>, vector<8x128xbf16>,
    %c0_57 = arith.constant 0 : index
    %c0_58 = arith.constant 0 : index
    %129 = vector.load %arg9[%c0_57, %c0_58] : memref<8x128xf32, #tpu.memory_space<vmem>>, vector<8x128xf32>
    tpu.vector_store %arg9[%c0_57, %c0_58], %124 {strides = array<i32>} : memref<8x128xf32, #tpu.memory_space<vmem>>, vector<8x128xf32>,
    %130 = arith.addf %92, %126 : vector<8x128xf32>
    %c9_i32 = arith.constant 9 : i32
    %131 = arith.muli %arg0, %c9_i32 : i32
    %c3_i32 = arith.constant 3 : i32
    %132 = arith.addi %c3_i32, %131 : i32
    %133 = arith.index_cast %132 : i32 to index
    %c0_59 = arith.constant 0 : index
    %c0_60 = arith.constant 0 : index
    %134 = vector.load %arg7[%133, %c0_59, %c0_60] : memref<16x8x512xf32, #tpu.memory_space<vmem>>, vector<1x8x512xf32>
    %135 = vector.shape_cast %134 : vector<1x8x512xf32> to vector<8x512xf32>
    %c0_61 = arith.constant 0 : index
    %c0_62 = arith.constant 0 : index
    %136 = vector.load %arg8[%c0_61, %c0_62] : memref<8x128xbf16, #tpu.memory_space<vmem>>, vector<8x128xbf16>
    %cst_63 = arith.constant dense<0.000000e+00> : vector<8x512xf32>
    %137 = tpu.matmul %136, %16, %cst_63 {dimension_numbers = #tpu.dot_dimension_numbers<[1], [0], [0], [1], [0, 0, 1, 1], [], []>} : vector<8x128xbf16>, vector<128x512xbf16>, vector<8x512xf32> -> vector<8x512xf32>
    %138 = arith.addf %135, %137 : vector<8x512xf32>
    %c0_64 = arith.constant 0 : index
    %c0_65 = arith.constant 0 : index
    %139 = vector.load %arg9[%c0_64, %c0_65] : memref<8x128xf32, #tpu.memory_space<vmem>>, vector<8x128xf32>
    %140 = vector.extract_strided_slice %138 {offsets = [0, 0], sizes = [8, 128], strides = [1, 1]} : vector<8x512xf32> to vector<8x128xf32>
    %141 = arith.negf %140 : vector<8x128xf32>
    %142 = math.exp %141 : vector<8x128xf32>
    %cst_66 = arith.constant 1.000000e+00 : f32
    %143 = vector.broadcast %cst_66 : f32 to vector<8x128xf32>
    %144 = arith.addf %143, %142 : vector<8x128xf32>
    %145 = arith.divf %143, %144 : vector<8x128xf32>
    %146 = vector.extract_strided_slice %138 {offsets = [0, 128], sizes = [8, 128], strides = [1, 1]} : vector<8x512xf32> to vector<8x128xf32>
    %147 = arith.negf %146 : vector<8x128xf32>
    %148 = math.exp %147 : vector<8x128xf32>
    %cst_67 = arith.constant 1.000000e+00 : f32
    %149 = vector.broadcast %cst_67 : f32 to vector<8x128xf32>
    %150 = arith.addf %149, %148 : vector<8x128xf32>
    %151 = arith.divf %149, %150 : vector<8x128xf32>
    %152 = vector.extract_strided_slice %138 {offsets = [0, 256], sizes = [8, 128], strides = [1, 1]} : vector<8x512xf32> to vector<8x128xf32>
    %153 = math.tanh %152 : vector<8x128xf32>
    %154 = vector.extract_strided_slice %138 {offsets = [0, 384], sizes = [8, 128], strides = [1, 1]} : vector<8x512xf32> to vector<8x128xf32>
    %155 = arith.negf %154 : vector<8x128xf32>
    %156 = math.exp %155 : vector<8x128xf32>
    %cst_68 = arith.constant 1.000000e+00 : f32
    %157 = vector.broadcast %cst_68 : f32 to vector<8x128xf32>
    %158 = arith.addf %157, %156 : vector<8x128xf32>
    %159 = arith.divf %157, %158 : vector<8x128xf32>
    %160 = arith.mulf %151, %139 : vector<8x128xf32>
    %161 = arith.mulf %145, %153 : vector<8x128xf32>
    %162 = arith.addf %160, %161 : vector<8x128xf32>
    %163 = math.tanh %162 : vector<8x128xf32>
    %164 = arith.mulf %159, %163 : vector<8x128xf32>
    %165 = arith.truncf %164 : vector<8x128xf32> to vector<8x128xbf16>
    %c0_69 = arith.constant 0 : index
    %c0_70 = arith.constant 0 : index
    %166 = vector.load %arg8[%c0_69, %c0_70] : memref<8x128xbf16, #tpu.memory_space<vmem>>, vector<8x128xbf16>
    tpu.vector_store %arg8[%c0_69, %c0_70], %165 {strides = array<i32>} : memref<8x128xbf16, #tpu.memory_space<vmem>>, vector<8x128xbf16>,
    %c0_71 = arith.constant 0 : index
    %c0_72 = arith.constant 0 : index
    %167 = vector.load %arg9[%c0_71, %c0_72] : memref<8x128xf32, #tpu.memory_space<vmem>>, vector<8x128xf32>
    tpu.vector_store %arg9[%c0_71, %c0_72], %162 {strides = array<i32>} : memref<8x128xf32, #tpu.memory_space<vmem>>, vector<8x128xf32>,
    %168 = arith.addf %130, %164 : vector<8x128xf32>
    %c7_i32 = arith.constant 7 : i32
    %169 = arith.muli %arg0, %c7_i32 : i32
    %c4_i32 = arith.constant 4 : i32
    %170 = arith.addi %c4_i32, %169 : i32
    %171 = arith.index_cast %170 : i32 to index
    %c0_73 = arith.constant 0 : index
    %c0_74 = arith.constant 0 : index
    %172 = vector.load %arg7[%171, %c0_73, %c0_74] : memref<16x8x512xf32, #tpu.memory_space<vmem>>, vector<1x8x512xf32>
    %173 = vector.shape_cast %172 : vector<1x8x512xf32> to vector<8x512xf32>
    %c0_75 = arith.constant 0 : index
    %c0_76 = arith.constant 0 : index
    %174 = vector.load %arg8[%c0_75, %c0_76] : memref<8x128xbf16, #tpu.memory_space<vmem>>, vector<8x128xbf16>
    %cst_77 = arith.constant dense<0.000000e+00> : vector<8x512xf32>
    %175 = tpu.matmul %174, %16, %cst_77 {dimension_numbers = #tpu.dot_dimension_numbers<[1], [0], [0], [1], [0, 0, 1, 1], [], []>} : vector<8x128xbf16>, vector<128x512xbf16>, vector<8x512xf32> -> vector<8x512xf32>
    %176 = arith.addf %173, %175 : vector<8x512xf32>
    %c0_78 = arith.constant 0 : index
    %c0_79 = arith.constant 0 : index
    %177 = vector.load %arg9[%c0_78, %c0_79] : memref<8x128xf32, #tpu.memory_space<vmem>>, vector<8x128xf32>
    %178 = vector.extract_strided_slice %176 {offsets = [0, 0], sizes = [8, 128], strides = [1, 1]} : vector<8x512xf32> to vector<8x128xf32>
    %179 = arith.negf %178 : vector<8x128xf32>
    %180 = math.exp %179 : vector<8x128xf32>
    %cst_80 = arith.constant 1.000000e+00 : f32
    %181 = vector.broadcast %cst_80 : f32 to vector<8x128xf32>
    %182 = arith.addf %181, %180 : vector<8x128xf32>
    %183 = arith.divf %181, %182 : vector<8x128xf32>
    %184 = vector.extract_strided_slice %176 {offsets = [0, 128], sizes = [8, 128], strides = [1, 1]} : vector<8x512xf32> to vector<8x128xf32>
    %185 = arith.negf %184 : vector<8x128xf32>
    %186 = math.exp %185 : vector<8x128xf32>
    %cst_81 = arith.constant 1.000000e+00 : f32
    %187 = vector.broadcast %cst_81 : f32 to vector<8x128xf32>
    %188 = arith.addf %187, %186 : vector<8x128xf32>
    %189 = arith.divf %187, %188 : vector<8x128xf32>
    %190 = vector.extract_strided_slice %176 {offsets = [0, 256], sizes = [8, 128], strides = [1, 1]} : vector<8x512xf32> to vector<8x128xf32>
    %191 = math.tanh %190 : vector<8x128xf32>
    %192 = vector.extract_strided_slice %176 {offsets = [0, 384], sizes = [8, 128], strides = [1, 1]} : vector<8x512xf32> to vector<8x128xf32>
    %193 = arith.negf %192 : vector<8x128xf32>
    %194 = math.exp %193 : vector<8x128xf32>
    %cst_82 = arith.constant 1.000000e+00 : f32
    %195 = vector.broadcast %cst_82 : f32 to vector<8x128xf32>
    %196 = arith.addf %195, %194 : vector<8x128xf32>
    %197 = arith.divf %195, %196 : vector<8x128xf32>
    %198 = arith.mulf %189, %177 : vector<8x128xf32>
    %199 = arith.mulf %183, %191 : vector<8x128xf32>
    %200 = arith.addf %198, %199 : vector<8x128xf32>
    %201 = math.tanh %200 : vector<8x128xf32>
    %202 = arith.mulf %197, %201 : vector<8x128xf32>
    %203 = arith.truncf %202 : vector<8x128xf32> to vector<8x128xbf16>
    %c0_83 = arith.constant 0 : index
    %c0_84 = arith.constant 0 : index
    %204 = vector.load %arg8[%c0_83, %c0_84] : memref<8x128xbf16, #tpu.memory_space<vmem>>, vector<8x128xbf16>
    tpu.vector_store %arg8[%c0_83, %c0_84], %203 {strides = array<i32>} : memref<8x128xbf16, #tpu.memory_space<vmem>>, vector<8x128xbf16>,
    %c0_85 = arith.constant 0 : index
    %c0_86 = arith.constant 0 : index
    %205 = vector.load %arg9[%c0_85, %c0_86] : memref<8x128xf32, #tpu.memory_space<vmem>>, vector<8x128xf32>
    tpu.vector_store %arg9[%c0_85, %c0_86], %200 {strides = array<i32>} : memref<8x128xf32, #tpu.memory_space<vmem>>, vector<8x128xf32>,
    %206 = arith.addf %168, %202 : vector<8x128xf32>
    %c5_i32 = arith.constant 5 : i32
    %207 = arith.muli %arg0, %c5_i32 : i32
    %c5_i32_87 = arith.constant 5 : i32
    %208 = arith.addi %c5_i32_87, %207 : i32
    %209 = arith.index_cast %208 : i32 to index
    %c0_88 = arith.constant 0 : index
    %c0_89 = arith.constant 0 : index
    %210 = vector.load %arg7[%209, %c0_88, %c0_89] : memref<16x8x512xf32, #tpu.memory_space<vmem>>, vector<1x8x512xf32>
    %211 = vector.shape_cast %210 : vector<1x8x512xf32> to vector<8x512xf32>
    %c0_90 = arith.constant 0 : index
    %c0_91 = arith.constant 0 : index
    %212 = vector.load %arg8[%c0_90, %c0_91] : memref<8x128xbf16, #tpu.memory_space<vmem>>, vector<8x128xbf16>
    %cst_92 = arith.constant dense<0.000000e+00> : vector<8x512xf32>
    %213 = tpu.matmul %212, %16, %cst_92 {dimension_numbers = #tpu.dot_dimension_numbers<[1], [0], [0], [1], [0, 0, 1, 1], [], []>} : vector<8x128xbf16>, vector<128x512xbf16>, vector<8x512xf32> -> vector<8x512xf32>
    %214 = arith.addf %211, %213 : vector<8x512xf32>
    %c0_93 = arith.constant 0 : index
    %c0_94 = arith.constant 0 : index
    %215 = vector.load %arg9[%c0_93, %c0_94] : memref<8x128xf32, #tpu.memory_space<vmem>>, vector<8x128xf32>
    %216 = vector.extract_strided_slice %214 {offsets = [0, 0], sizes = [8, 128], strides = [1, 1]} : vector<8x512xf32> to vector<8x128xf32>
    %217 = arith.negf %216 : vector<8x128xf32>
    %218 = math.exp %217 : vector<8x128xf32>
    %cst_95 = arith.constant 1.000000e+00 : f32
    %219 = vector.broadcast %cst_95 : f32 to vector<8x128xf32>
    %220 = arith.addf %219, %218 : vector<8x128xf32>
    %221 = arith.divf %219, %220 : vector<8x128xf32>
    %222 = vector.extract_strided_slice %214 {offsets = [0, 128], sizes = [8, 128], strides = [1, 1]} : vector<8x512xf32> to vector<8x128xf32>
    %223 = arith.negf %222 : vector<8x128xf32>
    %224 = math.exp %223 : vector<8x128xf32>
    %cst_96 = arith.constant 1.000000e+00 : f32
    %225 = vector.broadcast %cst_96 : f32 to vector<8x128xf32>
    %226 = arith.addf %225, %224 : vector<8x128xf32>
    %227 = arith.divf %225, %226 : vector<8x128xf32>
    %228 = vector.extract_strided_slice %214 {offsets = [0, 256], sizes = [8, 128], strides = [1, 1]} : vector<8x512xf32> to vector<8x128xf32>
    %229 = math.tanh %228 : vector<8x128xf32>
    %230 = vector.extract_strided_slice %214 {offsets = [0, 384], sizes = [8, 128], strides = [1, 1]} : vector<8x512xf32> to vector<8x128xf32>
    %231 = arith.negf %230 : vector<8x128xf32>
    %232 = math.exp %231 : vector<8x128xf32>
    %cst_97 = arith.constant 1.000000e+00 : f32
    %233 = vector.broadcast %cst_97 : f32 to vector<8x128xf32>
    %234 = arith.addf %233, %232 : vector<8x128xf32>
    %235 = arith.divf %233, %234 : vector<8x128xf32>
    %236 = arith.mulf %227, %215 : vector<8x128xf32>
    %237 = arith.mulf %221, %229 : vector<8x128xf32>
    %238 = arith.addf %236, %237 : vector<8x128xf32>
    %239 = math.tanh %238 : vector<8x128xf32>
    %240 = arith.mulf %235, %239 : vector<8x128xf32>
    %241 = arith.truncf %240 : vector<8x128xf32> to vector<8x128xbf16>
    %c0_98 = arith.constant 0 : index
    %c0_99 = arith.constant 0 : index
    %242 = vector.load %arg8[%c0_98, %c0_99] : memref<8x128xbf16, #tpu.memory_space<vmem>>, vector<8x128xbf16>
    tpu.vector_store %arg8[%c0_98, %c0_99], %241 {strides = array<i32>} : memref<8x128xbf16, #tpu.memory_space<vmem>>, vector<8x128xbf16>,
    %c0_100 = arith.constant 0 : index
    %c0_101 = arith.constant 0 : index
    %243 = vector.load %arg9[%c0_100, %c0_101] : memref<8x128xf32, #tpu.memory_space<vmem>>, vector<8x128xf32>
    tpu.vector_store %arg9[%c0_100, %c0_101], %238 {strides = array<i32>} : memref<8x128xf32, #tpu.memory_space<vmem>>, vector<8x128xf32>,
    %244 = arith.addf %206, %240 : vector<8x128xf32>
    %c3_i32_102 = arith.constant 3 : i32
    %245 = arith.muli %arg0, %c3_i32_102 : i32
    %c6_i32 = arith.constant 6 : i32
    %246 = arith.addi %c6_i32, %245 : i32
    %247 = arith.index_cast %246 : i32 to index
    %c0_103 = arith.constant 0 : index
    %c0_104 = arith.constant 0 : index
    %248 = vector.load %arg7[%247, %c0_103, %c0_104] : memref<16x8x512xf32, #tpu.memory_space<vmem>>, vector<1x8x512xf32>
    %249 = vector.shape_cast %248 : vector<1x8x512xf32> to vector<8x512xf32>
    %c0_105 = arith.constant 0 : index
    %c0_106 = arith.constant 0 : index
    %250 = vector.load %arg8[%c0_105, %c0_106] : memref<8x128xbf16, #tpu.memory_space<vmem>>, vector<8x128xbf16>
    %cst_107 = arith.constant dense<0.000000e+00> : vector<8x512xf32>
    %251 = tpu.matmul %250, %16, %cst_107 {dimension_numbers = #tpu.dot_dimension_numbers<[1], [0], [0], [1], [0, 0, 1, 1], [], []>} : vector<8x128xbf16>, vector<128x512xbf16>, vector<8x512xf32> -> vector<8x512xf32>
    %252 = arith.addf %249, %251 : vector<8x512xf32>
    %c0_108 = arith.constant 0 : index
    %c0_109 = arith.constant 0 : index
    %253 = vector.load %arg9[%c0_108, %c0_109] : memref<8x128xf32, #tpu.memory_space<vmem>>, vector<8x128xf32>
    %254 = vector.extract_strided_slice %252 {offsets = [0, 0], sizes = [8, 128], strides = [1, 1]} : vector<8x512xf32> to vector<8x128xf32>
    %255 = arith.negf %254 : vector<8x128xf32>
    %256 = math.exp %255 : vector<8x128xf32>
    %cst_110 = arith.constant 1.000000e+00 : f32
    %257 = vector.broadcast %cst_110 : f32 to vector<8x128xf32>
    %258 = arith.addf %257, %256 : vector<8x128xf32>
    %259 = arith.divf %257, %258 : vector<8x128xf32>
    %260 = vector.extract_strided_slice %252 {offsets = [0, 128], sizes = [8, 128], strides = [1, 1]} : vector<8x512xf32> to vector<8x128xf32>
    %261 = arith.negf %260 : vector<8x128xf32>
    %262 = math.exp %261 : vector<8x128xf32>
    %cst_111 = arith.constant 1.000000e+00 : f32
    %263 = vector.broadcast %cst_111 : f32 to vector<8x128xf32>
    %264 = arith.addf %263, %262 : vector<8x128xf32>
    %265 = arith.divf %263, %264 : vector<8x128xf32>
    %266 = vector.extract_strided_slice %252 {offsets = [0, 256], sizes = [8, 128], strides = [1, 1]} : vector<8x512xf32> to vector<8x128xf32>
    %267 = math.tanh %266 : vector<8x128xf32>
    %268 = vector.extract_strided_slice %252 {offsets = [0, 384], sizes = [8, 128], strides = [1, 1]} : vector<8x512xf32> to vector<8x128xf32>
    %269 = arith.negf %268 : vector<8x128xf32>
    %270 = math.exp %269 : vector<8x128xf32>
    %cst_112 = arith.constant 1.000000e+00 : f32
    %271 = vector.broadcast %cst_112 : f32 to vector<8x128xf32>
    %272 = arith.addf %271, %270 : vector<8x128xf32>
    %273 = arith.divf %271, %272 : vector<8x128xf32>
    %274 = arith.mulf %265, %253 : vector<8x128xf32>
    %275 = arith.mulf %259, %267 : vector<8x128xf32>
    %276 = arith.addf %274, %275 : vector<8x128xf32>
    %277 = math.tanh %276 : vector<8x128xf32>
    %278 = arith.mulf %273, %277 : vector<8x128xf32>
    %279 = arith.truncf %278 : vector<8x128xf32> to vector<8x128xbf16>
    %c0_113 = arith.constant 0 : index
    %c0_114 = arith.constant 0 : index
    %280 = vector.load %arg8[%c0_113, %c0_114] : memref<8x128xbf16, #tpu.memory_space<vmem>>, vector<8x128xbf16>
    tpu.vector_store %arg8[%c0_113, %c0_114], %279 {strides = array<i32>} : memref<8x128xbf16, #tpu.memory_space<vmem>>, vector<8x128xbf16>,
    %c0_115 = arith.constant 0 : index
    %c0_116 = arith.constant 0 : index
    %281 = vector.load %arg9[%c0_115, %c0_116] : memref<8x128xf32, #tpu.memory_space<vmem>>, vector<8x128xf32>
    tpu.vector_store %arg9[%c0_115, %c0_116], %276 {strides = array<i32>} : memref<8x128xf32, #tpu.memory_space<vmem>>, vector<8x128xf32>,
    %282 = arith.addf %244, %278 : vector<8x128xf32>
    %c1_i32_117 = arith.constant 1 : i32
    %283 = arith.muli %arg0, %c1_i32_117 : i32
    %c7_i32_118 = arith.constant 7 : i32
    %284 = arith.addi %c7_i32_118, %283 : i32
    %285 = arith.index_cast %284 : i32 to index
    %c0_119 = arith.constant 0 : index
    %c0_120 = arith.constant 0 : index
    %286 = vector.load %arg7[%285, %c0_119, %c0_120] : memref<16x8x512xf32, #tpu.memory_space<vmem>>, vector<1x8x512xf32>
    %287 = vector.shape_cast %286 : vector<1x8x512xf32> to vector<8x512xf32>
    %c0_121 = arith.constant 0 : index
    %c0_122 = arith.constant 0 : index
    %288 = vector.load %arg8[%c0_121, %c0_122] : memref<8x128xbf16, #tpu.memory_space<vmem>>, vector<8x128xbf16>
    %cst_123 = arith.constant dense<0.000000e+00> : vector<8x512xf32>
    %289 = tpu.matmul %288, %16, %cst_123 {dimension_numbers = #tpu.dot_dimension_numbers<[1], [0], [0], [1], [0, 0, 1, 1], [], []>} : vector<8x128xbf16>, vector<128x512xbf16>, vector<8x512xf32> -> vector<8x512xf32>
    %290 = arith.addf %287, %289 : vector<8x512xf32>
    %c0_124 = arith.constant 0 : index
    %c0_125 = arith.constant 0 : index
    %291 = vector.load %arg9[%c0_124, %c0_125] : memref<8x128xf32, #tpu.memory_space<vmem>>, vector<8x128xf32>
    %292 = vector.extract_strided_slice %290 {offsets = [0, 0], sizes = [8, 128], strides = [1, 1]} : vector<8x512xf32> to vector<8x128xf32>
    %293 = arith.negf %292 : vector<8x128xf32>
    %294 = math.exp %293 : vector<8x128xf32>
    %cst_126 = arith.constant 1.000000e+00 : f32
    %295 = vector.broadcast %cst_126 : f32 to vector<8x128xf32>
    %296 = arith.addf %295, %294 : vector<8x128xf32>
    %297 = arith.divf %295, %296 : vector<8x128xf32>
    %298 = vector.extract_strided_slice %290 {offsets = [0, 128], sizes = [8, 128], strides = [1, 1]} : vector<8x512xf32> to vector<8x128xf32>
    %299 = arith.negf %298 : vector<8x128xf32>
    %300 = math.exp %299 : vector<8x128xf32>
    %cst_127 = arith.constant 1.000000e+00 : f32
    %301 = vector.broadcast %cst_127 : f32 to vector<8x128xf32>
    %302 = arith.addf %301, %300 : vector<8x128xf32>
    %303 = arith.divf %301, %302 : vector<8x128xf32>
    %304 = vector.extract_strided_slice %290 {offsets = [0, 256], sizes = [8, 128], strides = [1, 1]} : vector<8x512xf32> to vector<8x128xf32>
    %305 = math.tanh %304 : vector<8x128xf32>
    %306 = vector.extract_strided_slice %290 {offsets = [0, 384], sizes = [8, 128], strides = [1, 1]} : vector<8x512xf32> to vector<8x128xf32>
    %307 = arith.negf %306 : vector<8x128xf32>
    %308 = math.exp %307 : vector<8x128xf32>
    %cst_128 = arith.constant 1.000000e+00 : f32
    %309 = vector.broadcast %cst_128 : f32 to vector<8x128xf32>
    %310 = arith.addf %309, %308 : vector<8x128xf32>
    %311 = arith.divf %309, %310 : vector<8x128xf32>
    %312 = arith.mulf %303, %291 : vector<8x128xf32>
    %313 = arith.mulf %297, %305 : vector<8x128xf32>
    %314 = arith.addf %312, %313 : vector<8x128xf32>
    %315 = math.tanh %314 : vector<8x128xf32>
    %316 = arith.mulf %311, %315 : vector<8x128xf32>
    %317 = arith.truncf %316 : vector<8x128xf32> to vector<8x128xbf16>
    %c0_129 = arith.constant 0 : index
    %c0_130 = arith.constant 0 : index
    %318 = vector.load %arg8[%c0_129, %c0_130] : memref<8x128xbf16, #tpu.memory_space<vmem>>, vector<8x128xbf16>
    tpu.vector_store %arg8[%c0_129, %c0_130], %317 {strides = array<i32>} : memref<8x128xbf16, #tpu.memory_space<vmem>>, vector<8x128xbf16>,
    %c0_131 = arith.constant 0 : index
    %c0_132 = arith.constant 0 : index
    %319 = vector.load %arg9[%c0_131, %c0_132] : memref<8x128xf32, #tpu.memory_space<vmem>>, vector<8x128xf32>
    tpu.vector_store %arg9[%c0_131, %c0_132], %314 {strides = array<i32>} : memref<8x128xf32, #tpu.memory_space<vmem>>, vector<8x128xf32>,
    %320 = arith.addf %282, %316 : vector<8x128xf32>
    %c-1_i32 = arith.constant -1 : i32
    %321 = arith.muli %arg0, %c-1_i32 : i32
    %c8_i32 = arith.constant 8 : i32
    %322 = arith.addi %c8_i32, %321 : i32
    %323 = arith.index_cast %322 : i32 to index
    %c0_133 = arith.constant 0 : index
    %c0_134 = arith.constant 0 : index
    %324 = vector.load %arg7[%323, %c0_133, %c0_134] : memref<16x8x512xf32, #tpu.memory_space<vmem>>, vector<1x8x512xf32>
    %325 = vector.shape_cast %324 : vector<1x8x512xf32> to vector<8x512xf32>
    %c0_135 = arith.constant 0 : index
    %c0_136 = arith.constant 0 : index
    %326 = vector.load %arg8[%c0_135, %c0_136] : memref<8x128xbf16, #tpu.memory_space<vmem>>, vector<8x128xbf16>
    %cst_137 = arith.constant dense<0.000000e+00> : vector<8x512xf32>
    %327 = tpu.matmul %326, %16, %cst_137 {dimension_numbers = #tpu.dot_dimension_numbers<[1], [0], [0], [1], [0, 0, 1, 1], [], []>} : vector<8x128xbf16>, vector<128x512xbf16>, vector<8x512xf32> -> vector<8x512xf32>
    %328 = arith.addf %325, %327 : vector<8x512xf32>
    %c0_138 = arith.constant 0 : index
    %c0_139 = arith.constant 0 : index
    %329 = vector.load %arg9[%c0_138, %c0_139] : memref<8x128xf32, #tpu.memory_space<vmem>>, vector<8x128xf32>
    %330 = vector.extract_strided_slice %328 {offsets = [0, 0], sizes = [8, 128], strides = [1, 1]} : vector<8x512xf32> to vector<8x128xf32>
    %331 = arith.negf %330 : vector<8x128xf32>
    %332 = math.exp %331 : vector<8x128xf32>
    %cst_140 = arith.constant 1.000000e+00 : f32
    %333 = vector.broadcast %cst_140 : f32 to vector<8x128xf32>
    %334 = arith.addf %333, %332 : vector<8x128xf32>
    %335 = arith.divf %333, %334 : vector<8x128xf32>
    %336 = vector.extract_strided_slice %328 {offsets = [0, 128], sizes = [8, 128], strides = [1, 1]} : vector<8x512xf32> to vector<8x128xf32>
    %337 = arith.negf %336 : vector<8x128xf32>
    %338 = math.exp %337 : vector<8x128xf32>
    %cst_141 = arith.constant 1.000000e+00 : f32
    %339 = vector.broadcast %cst_141 : f32 to vector<8x128xf32>
    %340 = arith.addf %339, %338 : vector<8x128xf32>
    %341 = arith.divf %339, %340 : vector<8x128xf32>
    %342 = vector.extract_strided_slice %328 {offsets = [0, 256], sizes = [8, 128], strides = [1, 1]} : vector<8x512xf32> to vector<8x128xf32>
    %343 = math.tanh %342 : vector<8x128xf32>
    %344 = vector.extract_strided_slice %328 {offsets = [0, 384], sizes = [8, 128], strides = [1, 1]} : vector<8x512xf32> to vector<8x128xf32>
    %345 = arith.negf %344 : vector<8x128xf32>
    %346 = math.exp %345 : vector<8x128xf32>
    %cst_142 = arith.constant 1.000000e+00 : f32
    %347 = vector.broadcast %cst_142 : f32 to vector<8x128xf32>
    %348 = arith.addf %347, %346 : vector<8x128xf32>
    %349 = arith.divf %347, %348 : vector<8x128xf32>
    %350 = arith.mulf %341, %329 : vector<8x128xf32>
    %351 = arith.mulf %335, %343 : vector<8x128xf32>
    %352 = arith.addf %350, %351 : vector<8x128xf32>
    %353 = math.tanh %352 : vector<8x128xf32>
    %354 = arith.mulf %349, %353 : vector<8x128xf32>
    %355 = arith.truncf %354 : vector<8x128xf32> to vector<8x128xbf16>
    %c0_143 = arith.constant 0 : index
    %c0_144 = arith.constant 0 : index
    %356 = vector.load %arg8[%c0_143, %c0_144] : memref<8x128xbf16, #tpu.memory_space<vmem>>, vector<8x128xbf16>
    tpu.vector_store %arg8[%c0_143, %c0_144], %355 {strides = array<i32>} : memref<8x128xbf16, #tpu.memory_space<vmem>>, vector<8x128xbf16>,
    %c0_145 = arith.constant 0 : index
    %c0_146 = arith.constant 0 : index
    %357 = vector.load %arg9[%c0_145, %c0_146] : memref<8x128xf32, #tpu.memory_space<vmem>>, vector<8x128xf32>
    tpu.vector_store %arg9[%c0_145, %c0_146], %352 {strides = array<i32>} : memref<8x128xf32, #tpu.memory_space<vmem>>, vector<8x128xf32>,
    %358 = arith.addf %320, %354 : vector<8x128xf32>
    %c-3_i32 = arith.constant -3 : i32
    %359 = arith.muli %arg0, %c-3_i32 : i32
    %c9_i32_147 = arith.constant 9 : i32
    %360 = arith.addi %c9_i32_147, %359 : i32
    %361 = arith.index_cast %360 : i32 to index
    %c0_148 = arith.constant 0 : index
    %c0_149 = arith.constant 0 : index
    %362 = vector.load %arg7[%361, %c0_148, %c0_149] : memref<16x8x512xf32, #tpu.memory_space<vmem>>, vector<1x8x512xf32>
    %363 = vector.shape_cast %362 : vector<1x8x512xf32> to vector<8x512xf32>
    %c0_150 = arith.constant 0 : index
    %c0_151 = arith.constant 0 : index
    %364 = vector.load %arg8[%c0_150, %c0_151] : memref<8x128xbf16, #tpu.memory_space<vmem>>, vector<8x128xbf16>
    %cst_152 = arith.constant dense<0.000000e+00> : vector<8x512xf32>
    %365 = tpu.matmul %364, %16, %cst_152 {dimension_numbers = #tpu.dot_dimension_numbers<[1], [0], [0], [1], [0, 0, 1, 1], [], []>} : vector<8x128xbf16>, vector<128x512xbf16>, vector<8x512xf32> -> vector<8x512xf32>
    %366 = arith.addf %363, %365 : vector<8x512xf32>
    %c0_153 = arith.constant 0 : index
    %c0_154 = arith.constant 0 : index
    %367 = vector.load %arg9[%c0_153, %c0_154] : memref<8x128xf32, #tpu.memory_space<vmem>>, vector<8x128xf32>
    %368 = vector.extract_strided_slice %366 {offsets = [0, 0], sizes = [8, 128], strides = [1, 1]} : vector<8x512xf32> to vector<8x128xf32>
    %369 = arith.negf %368 : vector<8x128xf32>
    %370 = math.exp %369 : vector<8x128xf32>
    %cst_155 = arith.constant 1.000000e+00 : f32
    %371 = vector.broadcast %cst_155 : f32 to vector<8x128xf32>
    %372 = arith.addf %371, %370 : vector<8x128xf32>
    %373 = arith.divf %371, %372 : vector<8x128xf32>
    %374 = vector.extract_strided_slice %366 {offsets = [0, 128], sizes = [8, 128], strides = [1, 1]} : vector<8x512xf32> to vector<8x128xf32>
    %375 = arith.negf %374 : vector<8x128xf32>
    %376 = math.exp %375 : vector<8x128xf32>
    %cst_156 = arith.constant 1.000000e+00 : f32
    %377 = vector.broadcast %cst_156 : f32 to vector<8x128xf32>
    %378 = arith.addf %377, %376 : vector<8x128xf32>
    %379 = arith.divf %377, %378 : vector<8x128xf32>
    %380 = vector.extract_strided_slice %366 {offsets = [0, 256], sizes = [8, 128], strides = [1, 1]} : vector<8x512xf32> to vector<8x128xf32>
    %381 = math.tanh %380 : vector<8x128xf32>
    %382 = vector.extract_strided_slice %366 {offsets = [0, 384], sizes = [8, 128], strides = [1, 1]} : vector<8x512xf32> to vector<8x128xf32>
    %383 = arith.negf %382 : vector<8x128xf32>
    %384 = math.exp %383 : vector<8x128xf32>
    %cst_157 = arith.constant 1.000000e+00 : f32
    %385 = vector.broadcast %cst_157 : f32 to vector<8x128xf32>
    %386 = arith.addf %385, %384 : vector<8x128xf32>
    %387 = arith.divf %385, %386 : vector<8x128xf32>
    %388 = arith.mulf %379, %367 : vector<8x128xf32>
    %389 = arith.mulf %373, %381 : vector<8x128xf32>
    %390 = arith.addf %388, %389 : vector<8x128xf32>
    %391 = math.tanh %390 : vector<8x128xf32>
    %392 = arith.mulf %387, %391 : vector<8x128xf32>
    %393 = arith.truncf %392 : vector<8x128xf32> to vector<8x128xbf16>
    %c0_158 = arith.constant 0 : index
    %c0_159 = arith.constant 0 : index
    %394 = vector.load %arg8[%c0_158, %c0_159] : memref<8x128xbf16, #tpu.memory_space<vmem>>, vector<8x128xbf16>
    tpu.vector_store %arg8[%c0_158, %c0_159], %393 {strides = array<i32>} : memref<8x128xbf16, #tpu.memory_space<vmem>>, vector<8x128xbf16>,
    %c0_160 = arith.constant 0 : index
    %c0_161 = arith.constant 0 : index
    %395 = vector.load %arg9[%c0_160, %c0_161] : memref<8x128xf32, #tpu.memory_space<vmem>>, vector<8x128xf32>
    tpu.vector_store %arg9[%c0_160, %c0_161], %390 {strides = array<i32>} : memref<8x128xf32, #tpu.memory_space<vmem>>, vector<8x128xf32>,
    %396 = arith.addf %358, %392 : vector<8x128xf32>
    %c-5_i32 = arith.constant -5 : i32
    %397 = arith.muli %arg0, %c-5_i32 : i32
    %c10_i32 = arith.constant 10 : i32
    %398 = arith.addi %c10_i32, %397 : i32
    %399 = arith.index_cast %398 : i32 to index
    %c0_162 = arith.constant 0 : index
    %c0_163 = arith.constant 0 : index
    %400 = vector.load %arg7[%399, %c0_162, %c0_163] : memref<16x8x512xf32, #tpu.memory_space<vmem>>, vector<1x8x512xf32>
    %401 = vector.shape_cast %400 : vector<1x8x512xf32> to vector<8x512xf32>
    %c0_164 = arith.constant 0 : index
    %c0_165 = arith.constant 0 : index
    %402 = vector.load %arg8[%c0_164, %c0_165] : memref<8x128xbf16, #tpu.memory_space<vmem>>, vector<8x128xbf16>
    %cst_166 = arith.constant dense<0.000000e+00> : vector<8x512xf32>
    %403 = tpu.matmul %402, %16, %cst_166 {dimension_numbers = #tpu.dot_dimension_numbers<[1], [0], [0], [1], [0, 0, 1, 1], [], []>} : vector<8x128xbf16>, vector<128x512xbf16>, vector<8x512xf32> -> vector<8x512xf32>
    %404 = arith.addf %401, %403 : vector<8x512xf32>
    %c0_167 = arith.constant 0 : index
    %c0_168 = arith.constant 0 : index
    %405 = vector.load %arg9[%c0_167, %c0_168] : memref<8x128xf32, #tpu.memory_space<vmem>>, vector<8x128xf32>
    %406 = vector.extract_strided_slice %404 {offsets = [0, 0], sizes = [8, 128], strides = [1, 1]} : vector<8x512xf32> to vector<8x128xf32>
    %407 = arith.negf %406 : vector<8x128xf32>
    %408 = math.exp %407 : vector<8x128xf32>
    %cst_169 = arith.constant 1.000000e+00 : f32
    %409 = vector.broadcast %cst_169 : f32 to vector<8x128xf32>
    %410 = arith.addf %409, %408 : vector<8x128xf32>
    %411 = arith.divf %409, %410 : vector<8x128xf32>
    %412 = vector.extract_strided_slice %404 {offsets = [0, 128], sizes = [8, 128], strides = [1, 1]} : vector<8x512xf32> to vector<8x128xf32>
    %413 = arith.negf %412 : vector<8x128xf32>
    %414 = math.exp %413 : vector<8x128xf32>
    %cst_170 = arith.constant 1.000000e+00 : f32
    %415 = vector.broadcast %cst_170 : f32 to vector<8x128xf32>
    %416 = arith.addf %415, %414 : vector<8x128xf32>
    %417 = arith.divf %415, %416 : vector<8x128xf32>
    %418 = vector.extract_strided_slice %404 {offsets = [0, 256], sizes = [8, 128], strides = [1, 1]} : vector<8x512xf32> to vector<8x128xf32>
    %419 = math.tanh %418 : vector<8x128xf32>
    %420 = vector.extract_strided_slice %404 {offsets = [0, 384], sizes = [8, 128], strides = [1, 1]} : vector<8x512xf32> to vector<8x128xf32>
    %421 = arith.negf %420 : vector<8x128xf32>
    %422 = math.exp %421 : vector<8x128xf32>
    %cst_171 = arith.constant 1.000000e+00 : f32
    %423 = vector.broadcast %cst_171 : f32 to vector<8x128xf32>
    %424 = arith.addf %423, %422 : vector<8x128xf32>
    %425 = arith.divf %423, %424 : vector<8x128xf32>
    %426 = arith.mulf %417, %405 : vector<8x128xf32>
    %427 = arith.mulf %411, %419 : vector<8x128xf32>
    %428 = arith.addf %426, %427 : vector<8x128xf32>
    %429 = math.tanh %428 : vector<8x128xf32>
    %430 = arith.mulf %425, %429 : vector<8x128xf32>
    %431 = arith.truncf %430 : vector<8x128xf32> to vector<8x128xbf16>
    %c0_172 = arith.constant 0 : index
    %c0_173 = arith.constant 0 : index
    %432 = vector.load %arg8[%c0_172, %c0_173] : memref<8x128xbf16, #tpu.memory_space<vmem>>, vector<8x128xbf16>
    tpu.vector_store %arg8[%c0_172, %c0_173], %431 {strides = array<i32>} : memref<8x128xbf16, #tpu.memory_space<vmem>>, vector<8x128xbf16>,
    %c0_174 = arith.constant 0 : index
    %c0_175 = arith.constant 0 : index
    %433 = vector.load %arg9[%c0_174, %c0_175] : memref<8x128xf32, #tpu.memory_space<vmem>>, vector<8x128xf32>
    tpu.vector_store %arg9[%c0_174, %c0_175], %428 {strides = array<i32>} : memref<8x128xf32, #tpu.memory_space<vmem>>, vector<8x128xf32>,
    %434 = arith.addf %396, %430 : vector<8x128xf32>
    %c-7_i32 = arith.constant -7 : i32
    %435 = arith.muli %arg0, %c-7_i32 : i32
    %c11_i32_176 = arith.constant 11 : i32
    %436 = arith.addi %c11_i32_176, %435 : i32
    %437 = arith.index_cast %436 : i32 to index
    %c0_177 = arith.constant 0 : index
    %c0_178 = arith.constant 0 : index
    %438 = vector.load %arg7[%437, %c0_177, %c0_178] : memref<16x8x512xf32, #tpu.memory_space<vmem>>, vector<1x8x512xf32>
    %439 = vector.shape_cast %438 : vector<1x8x512xf32> to vector<8x512xf32>
    %c0_179 = arith.constant 0 : index
    %c0_180 = arith.constant 0 : index
    %440 = vector.load %arg8[%c0_179, %c0_180] : memref<8x128xbf16, #tpu.memory_space<vmem>>, vector<8x128xbf16>
    %cst_181 = arith.constant dense<0.000000e+00> : vector<8x512xf32>
    %441 = tpu.matmul %440, %16, %cst_181 {dimension_numbers = #tpu.dot_dimension_numbers<[1], [0], [0], [1], [0, 0, 1, 1], [], []>} : vector<8x128xbf16>, vector<128x512xbf16>, vector<8x512xf32> -> vector<8x512xf32>
    %442 = arith.addf %439, %441 : vector<8x512xf32>
    %c0_182 = arith.constant 0 : index
    %c0_183 = arith.constant 0 : index
    %443 = vector.load %arg9[%c0_182, %c0_183] : memref<8x128xf32, #tpu.memory_space<vmem>>, vector<8x128xf32>
    %444 = vector.extract_strided_slice %442 {offsets = [0, 0], sizes = [8, 128], strides = [1, 1]} : vector<8x512xf32> to vector<8x128xf32>
    %445 = arith.negf %444 : vector<8x128xf32>
    %446 = math.exp %445 : vector<8x128xf32>
    %cst_184 = arith.constant 1.000000e+00 : f32
    %447 = vector.broadcast %cst_184 : f32 to vector<8x128xf32>
    %448 = arith.addf %447, %446 : vector<8x128xf32>
    %449 = arith.divf %447, %448 : vector<8x128xf32>
    %450 = vector.extract_strided_slice %442 {offsets = [0, 128], sizes = [8, 128], strides = [1, 1]} : vector<8x512xf32> to vector<8x128xf32>
    %451 = arith.negf %450 : vector<8x128xf32>
    %452 = math.exp %451 : vector<8x128xf32>
    %cst_185 = arith.constant 1.000000e+00 : f32
    %453 = vector.broadcast %cst_185 : f32 to vector<8x128xf32>
    %454 = arith.addf %453, %452 : vector<8x128xf32>
    %455 = arith.divf %453, %454 : vector<8x128xf32>
    %456 = vector.extract_strided_slice %442 {offsets = [0, 256], sizes = [8, 128], strides = [1, 1]} : vector<8x512xf32> to vector<8x128xf32>
    %457 = math.tanh %456 : vector<8x128xf32>
    %458 = vector.extract_strided_slice %442 {offsets = [0, 384], sizes = [8, 128], strides = [1, 1]} : vector<8x512xf32> to vector<8x128xf32>
    %459 = arith.negf %458 : vector<8x128xf32>
    %460 = math.exp %459 : vector<8x128xf32>
    %cst_186 = arith.constant 1.000000e+00 : f32
    %461 = vector.broadcast %cst_186 : f32 to vector<8x128xf32>
    %462 = arith.addf %461, %460 : vector<8x128xf32>
    %463 = arith.divf %461, %462 : vector<8x128xf32>
    %464 = arith.mulf %455, %443 : vector<8x128xf32>
    %465 = arith.mulf %449, %457 : vector<8x128xf32>
    %466 = arith.addf %464, %465 : vector<8x128xf32>
    %467 = math.tanh %466 : vector<8x128xf32>
    %468 = arith.mulf %463, %467 : vector<8x128xf32>
    %469 = arith.truncf %468 : vector<8x128xf32> to vector<8x128xbf16>
    %c0_187 = arith.constant 0 : index
    %c0_188 = arith.constant 0 : index
    %470 = vector.load %arg8[%c0_187, %c0_188] : memref<8x128xbf16, #tpu.memory_space<vmem>>, vector<8x128xbf16>
    tpu.vector_store %arg8[%c0_187, %c0_188], %469 {strides = array<i32>} : memref<8x128xbf16, #tpu.memory_space<vmem>>, vector<8x128xbf16>,
    %c0_189 = arith.constant 0 : index
    %c0_190 = arith.constant 0 : index
    %471 = vector.load %arg9[%c0_189, %c0_190] : memref<8x128xf32, #tpu.memory_space<vmem>>, vector<8x128xf32>
    tpu.vector_store %arg9[%c0_189, %c0_190], %466 {strides = array<i32>} : memref<8x128xf32, #tpu.memory_space<vmem>>, vector<8x128xf32>,
    %472 = arith.addf %434, %468 : vector<8x128xf32>
    %c-9_i32 = arith.constant -9 : i32
    %473 = arith.muli %arg0, %c-9_i32 : i32
    %c12_i32 = arith.constant 12 : i32
    %474 = arith.addi %c12_i32, %473 : i32
    %475 = arith.index_cast %474 : i32 to index
    %c0_191 = arith.constant 0 : index
    %c0_192 = arith.constant 0 : index
    %476 = vector.load %arg7[%475, %c0_191, %c0_192] : memref<16x8x512xf32, #tpu.memory_space<vmem>>, vector<1x8x512xf32>
    %477 = vector.shape_cast %476 : vector<1x8x512xf32> to vector<8x512xf32>
    %c0_193 = arith.constant 0 : index
    %c0_194 = arith.constant 0 : index
    %478 = vector.load %arg8[%c0_193, %c0_194] : memref<8x128xbf16, #tpu.memory_space<vmem>>, vector<8x128xbf16>
    %cst_195 = arith.constant dense<0.000000e+00> : vector<8x512xf32>
    %479 = tpu.matmul %478, %16, %cst_195 {dimension_numbers = #tpu.dot_dimension_numbers<[1], [0], [0], [1], [0, 0, 1, 1], [], []>} : vector<8x128xbf16>, vector<128x512xbf16>, vector<8x512xf32> -> vector<8x512xf32>
    %480 = arith.addf %477, %479 : vector<8x512xf32>
    %c0_196 = arith.constant 0 : index
    %c0_197 = arith.constant 0 : index
    %481 = vector.load %arg9[%c0_196, %c0_197] : memref<8x128xf32, #tpu.memory_space<vmem>>, vector<8x128xf32>
    %482 = vector.extract_strided_slice %480 {offsets = [0, 0], sizes = [8, 128], strides = [1, 1]} : vector<8x512xf32> to vector<8x128xf32>
    %483 = arith.negf %482 : vector<8x128xf32>
    %484 = math.exp %483 : vector<8x128xf32>
    %cst_198 = arith.constant 1.000000e+00 : f32
    %485 = vector.broadcast %cst_198 : f32 to vector<8x128xf32>
    %486 = arith.addf %485, %484 : vector<8x128xf32>
    %487 = arith.divf %485, %486 : vector<8x128xf32>
    %488 = vector.extract_strided_slice %480 {offsets = [0, 128], sizes = [8, 128], strides = [1, 1]} : vector<8x512xf32> to vector<8x128xf32>
    %489 = arith.negf %488 : vector<8x128xf32>
    %490 = math.exp %489 : vector<8x128xf32>
    %cst_199 = arith.constant 1.000000e+00 : f32
    %491 = vector.broadcast %cst_199 : f32 to vector<8x128xf32>
    %492 = arith.addf %491, %490 : vector<8x128xf32>
    %493 = arith.divf %491, %492 : vector<8x128xf32>
    %494 = vector.extract_strided_slice %480 {offsets = [0, 256], sizes = [8, 128], strides = [1, 1]} : vector<8x512xf32> to vector<8x128xf32>
    %495 = math.tanh %494 : vector<8x128xf32>
    %496 = vector.extract_strided_slice %480 {offsets = [0, 384], sizes = [8, 128], strides = [1, 1]} : vector<8x512xf32> to vector<8x128xf32>
    %497 = arith.negf %496 : vector<8x128xf32>
    %498 = math.exp %497 : vector<8x128xf32>
    %cst_200 = arith.constant 1.000000e+00 : f32
    %499 = vector.broadcast %cst_200 : f32 to vector<8x128xf32>
    %500 = arith.addf %499, %498 : vector<8x128xf32>
    %501 = arith.divf %499, %500 : vector<8x128xf32>
    %502 = arith.mulf %493, %481 : vector<8x128xf32>
    %503 = arith.mulf %487, %495 : vector<8x128xf32>
    %504 = arith.addf %502, %503 : vector<8x128xf32>
    %505 = math.tanh %504 : vector<8x128xf32>
    %506 = arith.mulf %501, %505 : vector<8x128xf32>
    %507 = arith.truncf %506 : vector<8x128xf32> to vector<8x128xbf16>
    %c0_201 = arith.constant 0 : index
    %c0_202 = arith.constant 0 : index
    %508 = vector.load %arg8[%c0_201, %c0_202] : memref<8x128xbf16, #tpu.memory_space<vmem>>, vector<8x128xbf16>
    tpu.vector_store %arg8[%c0_201, %c0_202], %507 {strides = array<i32>} : memref<8x128xbf16, #tpu.memory_space<vmem>>, vector<8x128xbf16>,
    %c0_203 = arith.constant 0 : index
    %c0_204 = arith.constant 0 : index
    %509 = vector.load %arg9[%c0_203, %c0_204] : memref<8x128xf32, #tpu.memory_space<vmem>>, vector<8x128xf32>
    tpu.vector_store %arg9[%c0_203, %c0_204], %504 {strides = array<i32>} : memref<8x128xf32, #tpu.memory_space<vmem>>, vector<8x128xf32>,
    %510 = arith.addf %472, %506 : vector<8x128xf32>
    %c-11_i32 = arith.constant -11 : i32
    %511 = arith.muli %arg0, %c-11_i32 : i32
    %c13_i32_205 = arith.constant 13 : i32
    %512 = arith.addi %c13_i32_205, %511 : i32
    %513 = arith.index_cast %512 : i32 to index
    %c0_206 = arith.constant 0 : index
    %c0_207 = arith.constant 0 : index
    %514 = vector.load %arg7[%513, %c0_206, %c0_207] : memref<16x8x512xf32, #tpu.memory_space<vmem>>, vector<1x8x512xf32>
    %515 = vector.shape_cast %514 : vector<1x8x512xf32> to vector<8x512xf32>
    %c0_208 = arith.constant 0 : index
    %c0_209 = arith.constant 0 : index
    %516 = vector.load %arg8[%c0_208, %c0_209] : memref<8x128xbf16, #tpu.memory_space<vmem>>, vector<8x128xbf16>
    %cst_210 = arith.constant dense<0.000000e+00> : vector<8x512xf32>
    %517 = tpu.matmul %516, %16, %cst_210 {dimension_numbers = #tpu.dot_dimension_numbers<[1], [0], [0], [1], [0, 0, 1, 1], [], []>} : vector<8x128xbf16>, vector<128x512xbf16>, vector<8x512xf32> -> vector<8x512xf32>
    %518 = arith.addf %515, %517 : vector<8x512xf32>
    %c0_211 = arith.constant 0 : index
    %c0_212 = arith.constant 0 : index
    %519 = vector.load %arg9[%c0_211, %c0_212] : memref<8x128xf32, #tpu.memory_space<vmem>>, vector<8x128xf32>
    %520 = vector.extract_strided_slice %518 {offsets = [0, 0], sizes = [8, 128], strides = [1, 1]} : vector<8x512xf32> to vector<8x128xf32>
    %521 = arith.negf %520 : vector<8x128xf32>
    %522 = math.exp %521 : vector<8x128xf32>
    %cst_213 = arith.constant 1.000000e+00 : f32
    %523 = vector.broadcast %cst_213 : f32 to vector<8x128xf32>
    %524 = arith.addf %523, %522 : vector<8x128xf32>
    %525 = arith.divf %523, %524 : vector<8x128xf32>
    %526 = vector.extract_strided_slice %518 {offsets = [0, 128], sizes = [8, 128], strides = [1, 1]} : vector<8x512xf32> to vector<8x128xf32>
    %527 = arith.negf %526 : vector<8x128xf32>
    %528 = math.exp %527 : vector<8x128xf32>
    %cst_214 = arith.constant 1.000000e+00 : f32
    %529 = vector.broadcast %cst_214 : f32 to vector<8x128xf32>
    %530 = arith.addf %529, %528 : vector<8x128xf32>
    %531 = arith.divf %529, %530 : vector<8x128xf32>
    %532 = vector.extract_strided_slice %518 {offsets = [0, 256], sizes = [8, 128], strides = [1, 1]} : vector<8x512xf32> to vector<8x128xf32>
    %533 = math.tanh %532 : vector<8x128xf32>
    %534 = vector.extract_strided_slice %518 {offsets = [0, 384], sizes = [8, 128], strides = [1, 1]} : vector<8x512xf32> to vector<8x128xf32>
    %535 = arith.negf %534 : vector<8x128xf32>
    %536 = math.exp %535 : vector<8x128xf32>
    %cst_215 = arith.constant 1.000000e+00 : f32
    %537 = vector.broadcast %cst_215 : f32 to vector<8x128xf32>
    %538 = arith.addf %537, %536 : vector<8x128xf32>
    %539 = arith.divf %537, %538 : vector<8x128xf32>
    %540 = arith.mulf %531, %519 : vector<8x128xf32>
    %541 = arith.mulf %525, %533 : vector<8x128xf32>
    %542 = arith.addf %540, %541 : vector<8x128xf32>
    %543 = math.tanh %542 : vector<8x128xf32>
    %544 = arith.mulf %539, %543 : vector<8x128xf32>
    %545 = arith.truncf %544 : vector<8x128xf32> to vector<8x128xbf16>
    %c0_216 = arith.constant 0 : index
    %c0_217 = arith.constant 0 : index
    %546 = vector.load %arg8[%c0_216, %c0_217] : memref<8x128xbf16, #tpu.memory_space<vmem>>, vector<8x128xbf16>
    tpu.vector_store %arg8[%c0_216, %c0_217], %545 {strides = array<i32>} : memref<8x128xbf16, #tpu.memory_space<vmem>>, vector<8x128xbf16>,
    %c0_218 = arith.constant 0 : index
    %c0_219 = arith.constant 0 : index
    %547 = vector.load %arg9[%c0_218, %c0_219] : memref<8x128xf32, #tpu.memory_space<vmem>>, vector<8x128xf32>
    tpu.vector_store %arg9[%c0_218, %c0_219], %542 {strides = array<i32>} : memref<8x128xf32, #tpu.memory_space<vmem>>, vector<8x128xf32>,
    %548 = arith.addf %510, %544 : vector<8x128xf32>
    %c-13_i32 = arith.constant -13 : i32
    %549 = arith.muli %arg0, %c-13_i32 : i32
    %c14_i32 = arith.constant 14 : i32
    %550 = arith.addi %c14_i32, %549 : i32
    %551 = arith.index_cast %550 : i32 to index
    %c0_220 = arith.constant 0 : index
    %c0_221 = arith.constant 0 : index
    %552 = vector.load %arg7[%551, %c0_220, %c0_221] : memref<16x8x512xf32, #tpu.memory_space<vmem>>, vector<1x8x512xf32>
    %553 = vector.shape_cast %552 : vector<1x8x512xf32> to vector<8x512xf32>
    %c0_222 = arith.constant 0 : index
    %c0_223 = arith.constant 0 : index
    %554 = vector.load %arg8[%c0_222, %c0_223] : memref<8x128xbf16, #tpu.memory_space<vmem>>, vector<8x128xbf16>
    %cst_224 = arith.constant dense<0.000000e+00> : vector<8x512xf32>
    %555 = tpu.matmul %554, %16, %cst_224 {dimension_numbers = #tpu.dot_dimension_numbers<[1], [0], [0], [1], [0, 0, 1, 1], [], []>} : vector<8x128xbf16>, vector<128x512xbf16>, vector<8x512xf32> -> vector<8x512xf32>
    %556 = arith.addf %553, %555 : vector<8x512xf32>
    %c0_225 = arith.constant 0 : index
    %c0_226 = arith.constant 0 : index
    %557 = vector.load %arg9[%c0_225, %c0_226] : memref<8x128xf32, #tpu.memory_space<vmem>>, vector<8x128xf32>
    %558 = vector.extract_strided_slice %556 {offsets = [0, 0], sizes = [8, 128], strides = [1, 1]} : vector<8x512xf32> to vector<8x128xf32>
    %559 = arith.negf %558 : vector<8x128xf32>
    %560 = math.exp %559 : vector<8x128xf32>
    %cst_227 = arith.constant 1.000000e+00 : f32
    %561 = vector.broadcast %cst_227 : f32 to vector<8x128xf32>
    %562 = arith.addf %561, %560 : vector<8x128xf32>
    %563 = arith.divf %561, %562 : vector<8x128xf32>
    %564 = vector.extract_strided_slice %556 {offsets = [0, 128], sizes = [8, 128], strides = [1, 1]} : vector<8x512xf32> to vector<8x128xf32>
    %565 = arith.negf %564 : vector<8x128xf32>
    %566 = math.exp %565 : vector<8x128xf32>
    %cst_228 = arith.constant 1.000000e+00 : f32
    %567 = vector.broadcast %cst_228 : f32 to vector<8x128xf32>
    %568 = arith.addf %567, %566 : vector<8x128xf32>
    %569 = arith.divf %567, %568 : vector<8x128xf32>
    %570 = vector.extract_strided_slice %556 {offsets = [0, 256], sizes = [8, 128], strides = [1, 1]} : vector<8x512xf32> to vector<8x128xf32>
    %571 = math.tanh %570 : vector<8x128xf32>
    %572 = vector.extract_strided_slice %556 {offsets = [0, 384], sizes = [8, 128], strides = [1, 1]} : vector<8x512xf32> to vector<8x128xf32>
    %573 = arith.negf %572 : vector<8x128xf32>
    %574 = math.exp %573 : vector<8x128xf32>
    %cst_229 = arith.constant 1.000000e+00 : f32
    %575 = vector.broadcast %cst_229 : f32 to vector<8x128xf32>
    %576 = arith.addf %575, %574 : vector<8x128xf32>
    %577 = arith.divf %575, %576 : vector<8x128xf32>
    %578 = arith.mulf %569, %557 : vector<8x128xf32>
    %579 = arith.mulf %563, %571 : vector<8x128xf32>
    %580 = arith.addf %578, %579 : vector<8x128xf32>
    %581 = math.tanh %580 : vector<8x128xf32>
    %582 = arith.mulf %577, %581 : vector<8x128xf32>
    %583 = arith.truncf %582 : vector<8x128xf32> to vector<8x128xbf16>
    %c0_230 = arith.constant 0 : index
    %c0_231 = arith.constant 0 : index
    %584 = vector.load %arg8[%c0_230, %c0_231] : memref<8x128xbf16, #tpu.memory_space<vmem>>, vector<8x128xbf16>
    tpu.vector_store %arg8[%c0_230, %c0_231], %583 {strides = array<i32>} : memref<8x128xbf16, #tpu.memory_space<vmem>>, vector<8x128xbf16>,
    %c0_232 = arith.constant 0 : index
    %c0_233 = arith.constant 0 : index
    %585 = vector.load %arg9[%c0_232, %c0_233] : memref<8x128xf32, #tpu.memory_space<vmem>>, vector<8x128xf32>
    tpu.vector_store %arg9[%c0_232, %c0_233], %580 {strides = array<i32>} : memref<8x128xf32, #tpu.memory_space<vmem>>, vector<8x128xf32>,
    %586 = arith.addf %548, %582 : vector<8x128xf32>
    %c-15_i32 = arith.constant -15 : i32
    %587 = arith.muli %arg0, %c-15_i32 : i32
    %c15_i32_234 = arith.constant 15 : i32
    %588 = arith.addi %c15_i32_234, %587 : i32
    %589 = arith.index_cast %588 : i32 to index
    %c0_235 = arith.constant 0 : index
    %c0_236 = arith.constant 0 : index
    %590 = vector.load %arg7[%589, %c0_235, %c0_236] : memref<16x8x512xf32, #tpu.memory_space<vmem>>, vector<1x8x512xf32>
    %591 = vector.shape_cast %590 : vector<1x8x512xf32> to vector<8x512xf32>
    %c0_237 = arith.constant 0 : index
    %c0_238 = arith.constant 0 : index
    %592 = vector.load %arg8[%c0_237, %c0_238] : memref<8x128xbf16, #tpu.memory_space<vmem>>, vector<8x128xbf16>
    %cst_239 = arith.constant dense<0.000000e+00> : vector<8x512xf32>
    %593 = tpu.matmul %592, %16, %cst_239 {dimension_numbers = #tpu.dot_dimension_numbers<[1], [0], [0], [1], [0, 0, 1, 1], [], []>} : vector<8x128xbf16>, vector<128x512xbf16>, vector<8x512xf32> -> vector<8x512xf32>
    %594 = arith.addf %591, %593 : vector<8x512xf32>
    %c0_240 = arith.constant 0 : index
    %c0_241 = arith.constant 0 : index
    %595 = vector.load %arg9[%c0_240, %c0_241] : memref<8x128xf32, #tpu.memory_space<vmem>>, vector<8x128xf32>
    %596 = vector.extract_strided_slice %594 {offsets = [0, 0], sizes = [8, 128], strides = [1, 1]} : vector<8x512xf32> to vector<8x128xf32>
    %597 = arith.negf %596 : vector<8x128xf32>
    %598 = math.exp %597 : vector<8x128xf32>
    %cst_242 = arith.constant 1.000000e+00 : f32
    %599 = vector.broadcast %cst_242 : f32 to vector<8x128xf32>
    %600 = arith.addf %599, %598 : vector<8x128xf32>
    %601 = arith.divf %599, %600 : vector<8x128xf32>
    %602 = vector.extract_strided_slice %594 {offsets = [0, 128], sizes = [8, 128], strides = [1, 1]} : vector<8x512xf32> to vector<8x128xf32>
    %603 = arith.negf %602 : vector<8x128xf32>
    %604 = math.exp %603 : vector<8x128xf32>
    %cst_243 = arith.constant 1.000000e+00 : f32
    %605 = vector.broadcast %cst_243 : f32 to vector<8x128xf32>
    %606 = arith.addf %605, %604 : vector<8x128xf32>
    %607 = arith.divf %605, %606 : vector<8x128xf32>
    %608 = vector.extract_strided_slice %594 {offsets = [0, 256], sizes = [8, 128], strides = [1, 1]} : vector<8x512xf32> to vector<8x128xf32>
    %609 = math.tanh %608 : vector<8x128xf32>
    %610 = vector.extract_strided_slice %594 {offsets = [0, 384], sizes = [8, 128], strides = [1, 1]} : vector<8x512xf32> to vector<8x128xf32>
    %611 = arith.negf %610 : vector<8x128xf32>
    %612 = math.exp %611 : vector<8x128xf32>
    %cst_244 = arith.constant 1.000000e+00 : f32
    %613 = vector.broadcast %cst_244 : f32 to vector<8x128xf32>
    %614 = arith.addf %613, %612 : vector<8x128xf32>
    %615 = arith.divf %613, %614 : vector<8x128xf32>
    %616 = arith.mulf %607, %595 : vector<8x128xf32>
    %617 = arith.mulf %601, %609 : vector<8x128xf32>
    %618 = arith.addf %616, %617 : vector<8x128xf32>
    %619 = math.tanh %618 : vector<8x128xf32>
    %620 = arith.mulf %615, %619 : vector<8x128xf32>
    %621 = arith.truncf %620 : vector<8x128xf32> to vector<8x128xbf16>
    %c0_245 = arith.constant 0 : index
    %c0_246 = arith.constant 0 : index
    %622 = vector.load %arg8[%c0_245, %c0_246] : memref<8x128xbf16, #tpu.memory_space<vmem>>, vector<8x128xbf16>
    tpu.vector_store %arg8[%c0_245, %c0_246], %621 {strides = array<i32>} : memref<8x128xbf16, #tpu.memory_space<vmem>>, vector<8x128xbf16>,
    %c0_247 = arith.constant 0 : index
    %c0_248 = arith.constant 0 : index
    %623 = vector.load %arg9[%c0_247, %c0_248] : memref<8x128xf32, #tpu.memory_space<vmem>>, vector<8x128xf32>
    tpu.vector_store %arg9[%c0_247, %c0_248], %618 {strides = array<i32>} : memref<8x128xf32, #tpu.memory_space<vmem>>, vector<8x128xf32>,
    %624 = arith.addf %586, %620 : vector<8x128xf32>
    %c0_249 = arith.constant 0 : index
    %c0_250 = arith.constant 0 : index
    %625 = vector.load %arg6[%c0_249, %c0_250] : memref<8x128xf32, #tpu.memory_space<vmem>>, vector<8x128xf32>
    %626 = arith.addf %625, %624 : vector<8x128xf32>
    %c0_251 = arith.constant 0 : index
    %c0_252 = arith.constant 0 : index
    %627 = vector.load %arg6[%c0_251, %c0_252] : memref<8x128xf32, #tpu.memory_space<vmem>>, vector<8x128xf32>
    tpu.vector_store %arg6[%c0_251, %c0_252], %626 {strides = array<i32>} : memref<8x128xf32, #tpu.memory_space<vmem>>, vector<8x128xf32>,
    return
  }
  func.func @transform_0(%arg0: i32, %arg1: i32) -> (i32, i32, i32) {
    %c1_i32 = arith.constant 1 : i32
    %0 = arith.subi %c1_i32, %arg0 : i32
    %1 = arith.muli %0, %arg1 : i32
    %c1_i32_0 = arith.constant 1 : i32
    %2 = arith.subi %c1_i32_0, %arg1 : i32
    %3 = arith.muli %arg0, %2 : i32
    %4 = arith.addi %1, %3 : i32
    %c0_i32 = arith.constant 0 : i32
    %c0_i32_1 = arith.constant 0 : i32
    %c0_i32_2 = arith.constant 0 : i32
    return %4, %c0_i32, %c0_i32_1 : i32, i32, i32
  }
  func.func @transform_1(%arg0: i32, %arg1: i32) -> (i32, i32, i32) {
    %c0_i32 = arith.constant 0 : i32
    %c0_i32_0 = arith.constant 0 : i32
    %c0_i32_1 = arith.constant 0 : i32
    return %arg0, %c0_i32, %c0_i32_0 : i32, i32, i32
  }
  func.func @transform_2(%arg0: i32, %arg1: i32) -> (i32, i32, i32) {
    %c0_i32 = arith.constant 0 : i32
    %c0_i32_0 = arith.constant 0 : i32
    %c0_i32_1 = arith.constant 0 : i32
    return %arg0, %c0_i32, %c0_i32_0 : i32, i32, i32
  }
  func.func @transform_3(%arg0: i32, %arg1: i32) -> (i32, i32, i32) {
    %c0_i32 = arith.constant 0 : i32
    %c0_i32_0 = arith.constant 0 : i32
    %c0_i32_1 = arith.constant 0 : i32
    return %arg0, %c0_i32, %c0_i32_0 : i32, i32, i32
  }
  func.func @transform_4(%arg0: i32, %arg1: i32) -> (i32, i32) {
    %c0_i32 = arith.constant 0 : i32
    %c0_i32_0 = arith.constant 0 : i32
    return %c0_i32, %arg0 : i32, i32
  }
}

</mosaic_0001>

<bundles_post_ra>
// kernel: plm_lstm_regressor_forward.5
= control target key start
LH: loop header
LB: loop body
LE: loop exit
PB: predicated region body
PF: predicated region fallthrough
CT: control target
= control target key end

     0   :  { %vm127_vm0 = vcmask 7168   ;;  %s329_s1 = inlined_call_operand.vmem [shape: f32[256,1], index: 1, kind: input, shape index: {}]   ;;  %s330_s0 = inlined_call_operand.vmem [shape: f32[8,256], index: 0, kind: input, shape index: {}]   ;;  %s331_s2 = inlined_call_operand.<no memory space> [shape: f32[1,1], index: 2, kind: input, shape index: {}]   ;;  %s332_s3 = inlined_call_operand.vmem [shape: f32[8,1], index: 3, kind: output, shape index: {}]  }
   0x1   :  { %v34_v0 = vld [vmem:[%s329_s1 + $0x80] sm:$0xff]  ;;  %v35_v1 = vld [vmem:[%s329_s1 + $0x88] sm:$0xff]  ;;  %v36_v5 = vld [vmem:[%s329_s1 + $0x90] sm:$0xff]  ;;  %v8_v50 = vstv %s331_s2 }
   0x2   :  { %v18_v2 = vld [vmem:[%s329_s1] sm:$0xff]  ;;  %v169_v3 = vpack.c.bf16 %v35_v1, %v34_v0  ;;  %v19_v4 = vld [vmem:[%s329_s1 + $0x8] sm:$0xff]  ;;  %v37_v6 = vld [vmem:[%s329_s1 + $0x98] sm:$0xff]  ;;  %9 = vst [vmem:[#allocation2] sm:$0x1] %v8_v50 }
   0x3   :  { %v171_v7 = vpack.c.bf16 %v19_v4, %v18_v2  ;;  %v173_v8 = vpack.c.bf16 %v37_v6, %v36_v5  ;;  %v20_v9 = vld [vmem:[%s329_s1 + $0x10] sm:$0xff]  ;;  %v21_v10 = vld [vmem:[%s329_s1 + $0x18] sm:$0xff]  ;;  %v38_v11 = vld [vmem:[%s329_s1 + $0xa0] sm:$0xff] }
   0x4   :  { %170 = vmatprep.subr.bf16.mxu0 %v169_v3  ;;  %v39_v12 = vld [vmem:[%s329_s1 + $0xa8] sm:$0xff]  ;;  %v175_v13 = vpack.c.bf16 %v21_v10, %v20_v9  ;;  %v22_v15 = vld [vmem:[%s329_s1 + $0x20] sm:$0xff]  ;;  %v40_v17 = vld [vmem:[%s329_s1 + $0xb0] sm:$0xff] }
   0x5   :  { %172 = vmatpush3.bf16.msra.mxu0 %v171_v7  ;;  %v177_v14 = vpack.c.bf16 %v39_v12, %v38_v11  ;;  %v23_v16 = vld [vmem:[%s329_s1 + $0x28] sm:$0xff]  ;;  %v41_v18 = vld [vmem:[%s329_s1 + $0xb8] sm:$0xff]  ;;  %v24_v21 = vld [vmem:[%s329_s1 + $0x30] sm:$0xff] }
   0x6   :  { %174 = vmatprep.subr.bf16.mxu0 %v173_v8  ;;  %v179_v19 = vpack.c.bf16 %v23_v16, %v22_v15  ;;  %v181_v20 = vpack.c.bf16 %v41_v18, %v40_v17  ;;  %v25_v22 = vld [vmem:[%s329_s1 + $0x38] sm:$0xff]  ;;  %v42_v23 = vld [vmem:[%s329_s1 + $0xc0] sm:$0xff]  ;;  %v43_v24 = vld [vmem:[%s329_s1 + $0xc8] sm:$0xff] }
   0x7   :  { %v17_v25 = vld [vmem:[%s330_s0 + $0x8] sm:$0xff]  ;;  %v183_v26 = vpack.c.bf16 %v25_v22, %v24_v21  ;;  %v185_v27 = vpack.c.bf16 %v43_v24, %v42_v23  ;;  %v26_v28 = vld [vmem:[%s329_s1 + $0x40] sm:$0xff]  ;;  %v44_v30 = vld [vmem:[%s329_s1 + $0xd0] sm:$0xff] }
   0x8   :  { %121 = vmatprep.mubr.f32.mxu0 %v17_v25  ;;  %v27_v29 = vld [vmem:[%s329_s1 + $0x48] sm:$0xff]  ;;  %v45_v31 = vld [vmem:[%s329_s1 + $0xd8] sm:$0xff]  ;;  %v28_v34 = vld [vmem:[%s329_s1 + $0x50] sm:$0xff] }
   0x9   :  { %176 = vmatpush3.bf16.msra.mxu0 %v175_v13  ;;  %v187_v32 = vpack.c.bf16 %v27_v29, %v26_v28  ;;  %v189_v33 = vpack.c.bf16 %v45_v31, %v44_v30  ;;  %v29_v35 = vld [vmem:[%s329_s1 + $0x58] sm:$0xff]  ;;  %v46_v36 = vld [vmem:[%s329_s1 + $0xe0] sm:$0xff]  ;;  %v47_v37 = vld [vmem:[%s329_s1 + $0xe8] sm:$0xff] }
   0xa   :  { %178 = vmatprep.subr.bf16.mxu0 %v177_v14  ;;  %v191_v38 = vpack.c.bf16 %v29_v35, %v28_v34  ;;  %v193_v39 = vpack.c.bf16 %v47_v37, %v46_v36  ;;  %v30_v40 = vld [vmem:[%s329_s1 + $0x60] sm:$0xff]  ;;  %v31_v41 = vld [vmem:[%s329_s1 + $0x68] sm:$0xff]  ;;  %v48_v42 = vld [vmem:[%s329_s1 + $0xf0] sm:$0xff] }
   0xb   :  { %v49_v43 = vld [vmem:[%s329_s1 + $0xf8] sm:$0xff]  ;;  %v195_v44 = vpack.c.bf16 %v31_v41, %v30_v40  ;;  %v32_v46 = vld [vmem:[%s329_s1 + $0x70] sm:$0xff]  ;;  %v16_v49 = vld [vmem:[%s330_s0] sm:$0xff] }
   0xc   :  { %v197_v45 = vpack.c.bf16 %v49_v43, %v48_v42  ;;  %v33_v47 = vld [vmem:[%s329_s1 + $0x78] sm:$0xff]  ;;  %v133_v52 = vld [vmem:[#allocation2] ss:$0 sm:$0xff] }
   0xd   :  { %180 = vmatpush3.bf16.msra.mxu0 %v179_v19  ;;  %v199_v48 = vpack.c.bf16 %v33_v47, %v32_v46 }
   0xe   :  { %182 = vmatprep.subr.bf16.mxu0 %v181_v20 }
  0x11   :  { %184 = vmatpush3.bf16.msra.mxu0 %v183_v26 }
  0x12   :  { %186 = vmatprep.subr.bf16.mxu0 %v185_v27 }
  0x15   :  { %188 = vmatpush3.bf16.msra.mxu0 %v187_v32 }
  0x16   :  { %190 = vmatprep.subr.bf16.mxu0 %v189_v33 }
  0x19   :  { %192 = vmatpush3.bf16.msra.mxu0 %v191_v38 }
  0x1a   :  { %194 = vmatprep.subr.bf16.mxu0 %v193_v39 }
  0x1d   :  { %196 = vmatpush3.bf16.msra.mxu0 %v195_v44 }
  0x1e   :  { %198 = vmatprep.subr.bf16.mxu0 %v197_v45 }
  0x21   :  { %200 = vmatpush3.bf16.msra.mxu0 %v199_v48 }
  0x24   :  { %122 = vmatmul.mubr.f32.vlgmr.msra.gmra.mrb[0].mxu0 %v16_v49 }
  0xf7   :  { %v166_v51 = vpop.f32.mrb[0].mxu0 }
  0xf8   :  { %v167_v53 = vpop.f32.mrb[1].mxu0 }
  0xf9   :  { %v168_v54 = vadd.f32 %v167_v53, %v166_v51 }
  0xfb   :  { %v124_v55 = vadd.f32 %v168_v54, %v133_v52 }
  0xfd   :  { %128 = vst.msk [vmem:[%s332_s3] sm:$0xff] %vm127_vm0, %v124_v55 }

// kernel: plm_lstm_regressor_forward.4
= control target key start
LH: loop header
LB: loop body
LE: loop exit
PB: predicated region body
PF: predicated region fallthrough
CT: control target
= control target key end

     0   :  { %s4311_s15 = smov 0   ;;  %s4313_s16 = smov 0   ;;  %s5498_s0 = inlined_call_operand.vmem [shape: bf16[32,8,256], index: 0, kind: input, shape index: {}]   ;;  %s5499_s1 = inlined_call_operand.vmem [shape: bf16[2,256,512], index: 1, kind: input, shape index: {}]   ;;  %s5500_s2 = inlined_call_operand.vmem [shape: bf16[2,128,512], index: 2, kind: input, shape index: {}]   ;;  %s5501_s3 = inlined_call_operand.vmem [shape: f32[2,1,512], index: 3, kind: input, shape index: {}]   ;;  %s5502_s4 = inlined_call_operand.vmem [shape: f32[8,256], index: 4, kind: output, shape index: {}]  }
   0x1   :  { %s4315_s17 = smov 0   ;;  %s4317_s18 = smov 0  }
   0x2   :  { %s4319_s19 = smov 0  }
   0x3 LB: > { %s23_s20 = sadd.s32 1, %s4273_s17  ;;  %s26_s21 = sadd.s32 1, %s4277_s18  ;;  %s4281_s19 = sphi %s4319_s19, %s14_s19   ;;  %s4277_s18 = sphi %s4317_s18, %s5506_s18   ;;  %s4273_s17 = sphi %s4315_s17, %s5505_s17   ;;  %s4269_s16 = sphi %s4313_s16, %s5504_s16   ;;  %s4265_s15 = sphi %s4311_s15, %s5503_s15  }
   0x4   : > { %p24_p0 = scmp.ge.s32.totalorder %s23_s20, 2  ;;  %p3460_p1 = scmp.ge.s32.totalorder %s4281_s19, 1 }
   0x5   : > { %p225_p2 = scmp.lt.s32.totalorder %s4281_s19, 5 }
   0x6   : > { %s5508_s20 = smov (%p24_p0, %s23_s20), 0  ;;  %s5510_s21 = smov (!%p24_p0, %s26_s21), %s4277_s18 }
   0x7   : > { %p226_p3 = pnand %p3460_p1, %p225_p2  ;;  %p28_p4 = scmp.ge.s32.totalorder %s5510_s21, 2 }
   0x8   : > { %s270_s22 = ssub.s32 (!%p226_p3), 1, %s4269_s16  ;;  %s272_s23 = ssub.s32 (!%p226_p3), 1, %s4265_s15 }
   0x9   : > { %s5512_s21 = smov (%p28_p4, %s5510_s21), 0  ;;  %229 = sbr.rel (%p226_p3) target bundleno = 4441 (0x1159), region = 36 }
   0xa   : > { %s271_s24 = smul.u32 (!%p226_p3), %s4265_s15, %s270_s22  ;;  %p287_p5 = scmp.lt.s32.totalorder (!%p226_p3), %s4269_s16, 1 }
   0xb   : > { %s273_s25 = smul.u32 (!%p226_p3), %s4269_s16, %s272_s23  ;;  %p3470_p7 = scmp.ne.s32.totalorder (!%p226_p3), %s4265_s15, 0 }
   0xd   : > { %s274_s27 = sadd.s32 (!%p226_p3), %s273_s25, %s271_s24 }
   0xe   : > { %s3461_s28 = sshll.u32 (!%p226_p3), %s274_s27, 4 }
   0xf   : > { %p276_p6 = scmp.lt.s32.totalorder (!%p226_p3), %s3461_s28, 31 }
  0x10   : > { %s288_s26 = scalar_select %p287_p5, %s4269_s16, 1 }
  0x11   : > { %s5514_s28 = smov (!%p276_p6, %s3461_s28), 31  ;;  %309 = sbr.rel (%p3470_p7) target bundleno = 24 (0x18), region = 40 }
  0x12   : > { %s3708_s29 = sshll.u32 %s288_s26, 9  ;;  %s3709_s7 = sshll.u32 %s288_s26, 8  ;;  %v4283_v0 = vmov (!%p3470_p7), 0   ;;  %v4284_v1 = vmov (!%p3470_p7), 0.0  }
  0x13   : > { %s4354_s6 = scalar_lea.vmem %s5499_s1, %s3708_s29  ;;  %s3468_s8 = sshll.u32 %s288_s26, 2  ;;  %310 = vst [vmem:[#allocation3] sm:$0xf] (!%p3470_p7), %v4283_v0  ;;  %311 = vst [vmem:[#allocation4] sm:$0xff] (!%p3470_p7), %v4284_v1 }
  0x14   : > { %s4359_s11 = scalar_lea.vmem %s5500_s2, %s3709_s7  ;;  %s4364_s14 = scalar_lea.vmem %s5501_s3, %s3468_s8 }
  0x15   : > { %s3707_s22 = sshll.u32 %s5514_s28, 3  ;;  %s3469_s23 = sshll.u32 %s288_s26, 3 }
  0x16   : > { %s4369_s27 = scalar_lea.vmem %s5498_s0, %s3707_s22  ;;  %s4374_s5 = scalar_lea.vmem %s5502_s4, %s3469_s23 }
  0x17   : > { %312 = vst [vmem:[%s4374_s5] sm:$0xff] (!%p3470_p7), %v4284_v1 }
  0x18 PF: > { %v3755_v2 = vld [vmem:[%s4354_s6 + $0x4] ss:$16 sps:$4 sm:$0xff]   ;;  %v3757_v3 = vld [vmem:[%s4354_s6 + $0xc] ss:$16 sps:$4 sm:$0xff]   ;;  %v3759_v4 = vld [vmem:[%s4354_s6] ss:$16 sps:$4 sm:$0xff]  }
  0x19   : > { %815 = vmatprep.subr.bf16.mxu0 %v3755_v2  ;;  %v3760_v5 = vld [vmem:[%s4354_s6 + $0x8] ss:$16 sps:$4 sm:$0xff]   ;;  %928 = vmatprep.subr.bf16.mxu1 %v3757_v3  ;;  %v3761_v6 = vld [vmem:[%s4354_s6 + $0x24] ss:$16 sps:$4 sm:$0xff]   ;;  %v3763_v7 = vld [vmem:[%s4354_s6 + $0x2c] ss:$16 sps:$4 sm:$0xff]  }
  0x1a   : > { %816 = vmatpush1.bf16.msra.mxu0 %v3759_v4  ;;  %929 = vmatpush1.bf16.msra.mxu1 %v3760_v5  ;;  %v3765_v8 = vld [vmem:[%s4354_s6 + $0x20] ss:$16 sps:$4 sm:$0xff]   ;;  %v3766_v9 = vld [vmem:[%s4354_s6 + $0x28] ss:$16 sps:$4 sm:$0xff]   ;;  %v3767_v10 = vld [vmem:[%s4354_s6 + $0x44] ss:$16 sps:$4 sm:$0xff]  }
  0x1b   : > { %817 = vmatprep.subr.bf16.mxu0 %v3761_v6  ;;  %930 = vmatprep.subr.bf16.mxu1 %v3763_v7  ;;  %v3769_v11 = vld [vmem:[%s4354_s6 + $0x4c] ss:$16 sps:$4 sm:$0xff]   ;;  %v3771_v12 = vld [vmem:[%s4354_s6 + $0x40] ss:$16 sps:$4 sm:$0xff]   ;;  %v3772_v13 = vld [vmem:[%s4354_s6 + $0x48] ss:$16 sps:$4 sm:$0xff]  }
  0x1c   : > { %v3773_v14 = vld [vmem:[%s4354_s6 + $0x64] ss:$16 sps:$4 sm:$0xff]   ;;  %v3775_v15 = vld [vmem:[%s4354_s6 + $0x6c] ss:$16 sps:$4 sm:$0xff]   ;;  %v3777_v16 = vld [vmem:[%s4354_s6 + $0x60] ss:$16 sps:$4 sm:$0xff]  }
  0x1d   : > { %v3778_v17 = vld [vmem:[%s4354_s6 + $0x68] ss:$16 sps:$4 sm:$0xff]   ;;  %v3779_v18 = vld [vmem:[%s4354_s6 + $0x84] ss:$16 sps:$4 sm:$0xff]   ;;  %v3781_v19 = vld [vmem:[%s4354_s6 + $0x8c] ss:$16 sps:$4 sm:$0xff]  }
  0x1e   : > { %818 = vmatpush1.bf16.msra.mxu0 %v3765_v8  ;;  %931 = vmatpush1.bf16.msra.mxu1 %v3766_v9  ;;  %v3783_v20 = vld [vmem:[%s4354_s6 + $0x80] ss:$16 sps:$4 sm:$0xff]   ;;  %v3784_v21 = vld [vmem:[%s4354_s6 + $0x88] ss:$16 sps:$4 sm:$0xff]   ;;  %v3785_v22 = vld [vmem:[%s4354_s6 + $0xa4] ss:$16 sps:$4 sm:$0xff]  }
  0x1f   : > { %819 = vmatprep.subr.bf16.mxu0 %v3767_v10  ;;  %932 = vmatprep.subr.bf16.mxu1 %v3769_v11  ;;  %v3787_v23 = vld [vmem:[%s4354_s6 + $0xac] ss:$16 sps:$4 sm:$0xff]   ;;  %v3789_v24 = vld [vmem:[%s4354_s6 + $0xa0] ss:$16 sps:$4 sm:$0xff]   ;;  %v3790_v25 = vld [vmem:[%s4354_s6 + $0xa8] ss:$16 sps:$4 sm:$0xff]  }
  0x20   : > { %v3791_v26 = vld [vmem:[%s4354_s6 + $0xc4] ss:$16 sps:$4 sm:$0xff]   ;;  %v3793_v27 = vld [vmem:[%s4354_s6 + $0xcc] ss:$16 sps:$4 sm:$0xff]   ;;  %v3795_v28 = vld [vmem:[%s4354_s6 + $0xc0] ss:$16 sps:$4 sm:$0xff]  }
  0x21   : > { %v3796_v29 = vld [vmem:[%s4354_s6 + $0xc8] ss:$16 sps:$4 sm:$0xff]   ;;  %v3797_v30 = vld [vmem:[%s4354_s6 + $0xe4] ss:$16 sps:$4 sm:$0xff]   ;;  %v3799_v31 = vld [vmem:[%s4354_s6 + $0xec] ss:$16 sps:$4 sm:$0xff]  }
  0x22   : > { %820 = vmatpush1.bf16.msra.mxu0 %v3771_v12  ;;  %933 = vmatpush1.bf16.msra.mxu1 %v3772_v13  ;;  %v3801_v32 = vld [vmem:[%s4354_s6 + $0xe0] ss:$16 sps:$4 sm:$0xff]   ;;  %v3802_v33 = vld [vmem:[%s4354_s6 + $0xe8] ss:$16 sps:$4 sm:$0xff]   ;;  %v3803_v34 = vld [vmem:[%s4354_s6 + $0x104] ss:$16 sps:$4 sm:$0xff]  }
  0x23   : > { %821 = vmatprep.subr.bf16.mxu0 %v3773_v14  ;;  %934 = vmatprep.subr.bf16.mxu1 %v3775_v15  ;;  %v3805_v35 = vld [vmem:[%s4354_s6 + $0x10c] ss:$16 sps:$4 sm:$0xff]   ;;  %v3807_v36 = vld [vmem:[%s4354_s6 + $0x100] ss:$16 sps:$4 sm:$0xff]   ;;  %v3808_v37 = vld [vmem:[%s4354_s6 + $0x108] ss:$16 sps:$4 sm:$0xff]  }
  0x24   : > { %v3809_v38 = vld [vmem:[%s4354_s6 + $0x124] ss:$16 sps:$4 sm:$0xff]   ;;  %v3811_v39 = vld [vmem:[%s4354_s6 + $0x12c] ss:$16 sps:$4 sm:$0xff]   ;;  %v3813_v40 = vld [vmem:[%s4354_s6 + $0x120] ss:$16 sps:$4 sm:$0xff]  }
  0x25   : > { %v3814_v41 = vld [vmem:[%s4354_s6 + $0x128] ss:$16 sps:$4 sm:$0xff]   ;;  %v3815_v42 = vld [vmem:[%s4354_s6 + $0x144] ss:$16 sps:$4 sm:$0xff]   ;;  %v3817_v43 = vld [vmem:[%s4354_s6 + $0x14c] ss:$16 sps:$4 sm:$0xff]  }
  0x26   : > { %822 = vmatpush1.bf16.msra.mxu0 %v3777_v16  ;;  %935 = vmatpush1.bf16.msra.mxu1 %v3778_v17  ;;  %v3819_v44 = vld [vmem:[%s4354_s6 + $0x140] ss:$16 sps:$4 sm:$0xff]   ;;  %v3820_v45 = vld [vmem:[%s4354_s6 + $0x148] ss:$16 sps:$4 sm:$0xff]   ;;  %v3821_v46 = vld [vmem:[%s4354_s6 + $0x164] ss:$16 sps:$4 sm:$0xff]  }
  0x27   : > { %823 = vmatprep.subr.bf16.mxu0 %v3779_v18  ;;  %936 = vmatprep.subr.bf16.mxu1 %v3781_v19  ;;  %v3823_v47 = vld [vmem:[%s4354_s6 + $0x16c] ss:$16 sps:$4 sm:$0xff]   ;;  %v3825_v48 = vld [vmem:[%s4354_s6 + $0x160] ss:$16 sps:$4 sm:$0xff]   ;;  %v3826_v49 = vld [vmem:[%s4354_s6 + $0x168] ss:$16 sps:$4 sm:$0xff]  }
  0x28   : > { %v3853_v50 = vld [vmem:[%s4369_s27 + $0x4] ss:$8 sps:$4 sm:$0xff]   ;;  %v3831_v53 = vld [vmem:[%s4354_s6 + $0x180] ss:$16 sps:$4 sm:$0xff]   ;;  %v3832_v54 = vld [vmem:[%s4354_s6 + $0x188] ss:$16 sps:$4 sm:$0xff]  }
  0x29   : > { %v3827_v51 = vld [vmem:[%s4354_s6 + $0x184] ss:$16 sps:$4 sm:$0xff]   ;;  %v3829_v52 = vld [vmem:[%s4354_s6 + $0x18c] ss:$16 sps:$4 sm:$0xff]   ;;  %847 = vmatprep.mubr.bf16.mxu0 %v3853_v50  ;;  %960 = vmatprep.mubr.bf16.mxu1 %v3853_v50  ;;  %v3837_v57 = vld [vmem:[%s4354_s6 + $0x1a0] ss:$16 sps:$4 sm:$0xff]  }
  0x2a   : > { %824 = vmatpush1.bf16.msra.mxu0 %v3783_v20  ;;  %937 = vmatpush1.bf16.msra.mxu1 %v3784_v21  ;;  %v3833_v55 = vld [vmem:[%s4354_s6 + $0x1a4] ss:$16 sps:$4 sm:$0xff]   ;;  %v3835_v56 = vld [vmem:[%s4354_s6 + $0x1ac] ss:$16 sps:$4 sm:$0xff]   ;;  %v3838_v58 = vld [vmem:[%s4354_s6 + $0x1a8] ss:$16 sps:$4 sm:$0xff]  }
  0x2b   : > { %825 = vmatprep.subr.bf16.mxu0 %v3785_v22  ;;  %938 = vmatprep.subr.bf16.mxu1 %v3787_v23  ;;  %v3839_v59 = vld [vmem:[%s4354_s6 + $0x1c4] ss:$16 sps:$4 sm:$0xff]   ;;  %v3841_v60 = vld [vmem:[%s4354_s6 + $0x1cc] ss:$16 sps:$4 sm:$0xff]   ;;  %v3843_v61 = vld [vmem:[%s4354_s6 + $0x1c0] ss:$16 sps:$4 sm:$0xff]  }
  0x2c   : > { %v3844_v62 = vld [vmem:[%s4354_s6 + $0x1c8] ss:$16 sps:$4 sm:$0xff]   ;;  %v3845_v63 = vld [vmem:[%s4354_s6 + $0x1e4] ss:$16 sps:$4 sm:$0xff]   ;;  %v3847_v0 = vld [vmem:[%s4354_s6 + $0x1ec] ss:$16 sps:$4 sm:$0xff]  }
  0x2d   : > { %v3849_v1 = vld [vmem:[%s4354_s6 + $0x1e0] ss:$16 sps:$4 sm:$0xff]   ;;  %v3850_v2 = vld [vmem:[%s4354_s6 + $0x1e8] ss:$16 sps:$4 sm:$0xff]   ;;  %v4444_v3 = vld [vmem:[%s4359_s11 + $0x4] ss:$16 sps:$4 sm:$0xff]  }
  0x2e   : > { %826 = vmatpush1.bf16.msra.mxu0 %v3789_v24  ;;  %939 = vmatpush1.bf16.msra.mxu1 %v3790_v25  ;;  %v4447_v4 = vld [vmem:[%s4359_s11 + $0xc] ss:$16 sps:$4 sm:$0xff]   ;;  %v3851_v5 = vld [vmem:[%s4369_s27] ss:$8 sps:$4 sm:$0xff]   ;;  %v4456_v8 = vld [vmem:[%s4359_s11 + $0x24] ss:$16 sps:$4 sm:$0xff]  }
  0x2f   : > { %827 = vmatprep.subr.bf16.mxu0 %v3791_v26  ;;  %940 = vmatprep.subr.bf16.mxu1 %v3793_v27  ;;  %v4451_v6 = vld [vmem:[%s4359_s11] ss:$16 sps:$4 sm:$0xff]   ;;  %v3857_v7 = vld [vmem:[%s4369_s27 + $0x14] ss:$8 sps:$4 sm:$0xff]   ;;  %v4460_v9 = vld [vmem:[%s4359_s11 + $0x8] ss:$16 sps:$4 sm:$0xff]  }
  0x30   : > { %v4463_v10 = vld [vmem:[%s4359_s11 + $0x2c] ss:$16 sps:$4 sm:$0xff]   ;;  %v4467_v11 = vld [vmem:[%s4359_s11 + $0x20] ss:$16 sps:$4 sm:$0xff]   ;;  %v4471_v12 = vld [vmem:[%s4359_s11 + $0x44] ss:$16 sps:$4 sm:$0xff]  }
  0x31   : > { %v4475_v13 = vld [vmem:[%s4359_s11 + $0x28] ss:$16 sps:$4 sm:$0xff]   ;;  %v3863_v15 = vld [vmem:[%s4369_s27 + $0x24] ss:$8 sps:$4 sm:$0xff]   ;;  %v4482_v16 = vld [vmem:[%s4359_s11 + $0x40] ss:$16 sps:$4 sm:$0xff]  }
  0x32   : > { %828 = vmatpush1.bf16.msra.mxu0 %v3795_v28  ;;  %941 = vmatpush1.bf16.msra.mxu1 %v3796_v29  ;;  %v3859_v14 = vld [vmem:[%s4369_s27 + $0x10] ss:$8 sps:$4 sm:$0xff]   ;;  %v4486_v17 = vld [vmem:[%s4359_s11 + $0x4c] ss:$16 sps:$4 sm:$0xff]   ;;  %v4489_v18 = vld [vmem:[%s4359_s11 + $0x64] ss:$16 sps:$4 sm:$0xff]  }
  0x33   : > { %829 = vmatprep.subr.bf16.mxu0 %v3797_v30  ;;  %942 = vmatprep.subr.bf16.mxu1 %v3799_v31  ;;  %v4493_v19 = vld [vmem:[%s4359_s11 + $0x48] ss:$16 sps:$4 sm:$0xff]   ;;  %v4496_v20 = vld [vmem:[%s4359_s11 + $0x6c] ss:$16 sps:$4 sm:$0xff]   ;;  %v4500_v21 = vld [vmem:[%s4359_s11 + $0x60] ss:$16 sps:$4 sm:$0xff]  }
  0x34   : > { %v4505_v22 = vld [vmem:[%s4359_s11 + $0x84] ss:$16 sps:$4 sm:$0xff]   ;;  %v4509_v23 = vld [vmem:[%s4359_s11 + $0x68] ss:$16 sps:$4 sm:$0xff]   ;;  %v4516_v26 = vld [vmem:[%s4359_s11 + $0x80] ss:$16 sps:$4 sm:$0xff]  }
  0x35   : > { %v3865_v24 = vld [vmem:[%s4369_s27 + $0x20] ss:$8 sps:$4 sm:$0xff]   ;;  %v3872_v25 = vld [vmem:[%s4369_s27 + $0x34] ss:$8 sps:$4 sm:$0xff]   ;;  %v4285_v50 = vmov 0   ;;  %s3710_s15 = smul.u32 480, %s4269_s16 }
  0x36   : > { %830 = vmatpush1.bf16.msra.mxu0 %v3801_v32  ;;  %943 = vmatpush1.bf16.msra.mxu1 %v3802_v33  ;;  %v4519_v27 = vld [vmem:[%s4359_s11 + $0x8c] ss:$16 sps:$4 sm:$0xff]   ;;  %v4523_v28 = vld [vmem:[%s4359_s11 + $0xa4] ss:$16 sps:$4 sm:$0xff]   ;;  %v4527_v29 = vld [vmem:[%s4359_s11 + $0x88] ss:$16 sps:$4 sm:$0xff]  }
  0x37   : > { %831 = vmatprep.subr.bf16.mxu0 %v3803_v34  ;;  %944 = vmatprep.subr.bf16.mxu1 %v3805_v35  ;;  %v4530_v30 = vld [vmem:[%s4359_s11 + $0xac] ss:$16 sps:$4 sm:$0xff]   ;;  %v4534_v31 = vld [vmem:[%s4359_s11 + $0xa0] ss:$16 sps:$4 sm:$0xff]   ;;  %v4539_v32 = vld [vmem:[%s4359_s11 + $0xc4] ss:$16 sps:$4 sm:$0xff]  }
  0x38   : > { %v4543_v33 = vld [vmem:[%s4359_s11 + $0xa8] ss:$16 sps:$4 sm:$0xff]   ;;  %v3881_v35 = vld [vmem:[%s4369_s27 + $0x44] ss:$8 sps:$4 sm:$0xff]   ;;  %s1140_s26 = scalar_lea.vmem [#allocation2], %s3710_s15  ;;  %s3588_s28 = smul.u32 416, %s4269_s16 }
  0x39   : > { %v3874_v34 = vld [vmem:[%s4369_s27 + $0x30] ss:$8 sps:$4 sm:$0xff]   ;;  %s3596_s7 = smul.u32 352, %s4269_s16  ;;  %s3636_s25 = sshll.u32 %s4269_s16, 5 }
  0x3a   : > { %832 = vmatpush1.bf16.msra.mxu0 %v3807_v36  ;;  %945 = vmatpush1.bf16.msra.mxu1 %v3808_v37  ;;  %v4550_v36 = vld [vmem:[%s4359_s11 + $0xc0] ss:$16 sps:$4 sm:$0xff]   ;;  %v4553_v37 = vld [vmem:[%s4359_s11 + $0xcc] ss:$16 sps:$4 sm:$0xff]   ;;  %s3348_s6 = scalar_lea.vmem [#allocation2], %s3588_s28  ;;  %s3604_s9 = smul.u32 288, %s4269_s16 }
  0x3b   : > { %833 = vmatprep.subr.bf16.mxu0 %v3809_v38  ;;  %946 = vmatprep.subr.bf16.mxu1 %v3811_v39  ;;  %v4558_v38 = vld [vmem:[%s4359_s11 + $0xe4] ss:$16 sps:$4 sm:$0xff]   ;;  %v4561_v39 = vld [vmem:[%s4359_s11 + $0xc8] ss:$16 sps:$4 sm:$0xff]   ;;  %s3352_s8 = scalar_lea.vmem [#allocation2], %s3596_s7  ;;  %s3612_s12 = smul.u32 224, %s4269_s16 }
  0x3c   : > { %s3356_s10 = scalar_lea.vmem [#allocation2], %s3604_s9  ;;  %s3628_s23 = smul.u32 96, %s4269_s16 }
  0x3d   : > { %s3360_s13 = scalar_lea.vmem [#allocation2], %s3612_s12  ;;  %s2295_s29 = ssub.s32 8, %s4269_s16 }
  0x3e   : > { %834 = vmatpush1.bf16.msra.mxu0 %v3813_v40  ;;  %947 = vmatpush1.bf16.msra.mxu1 %v3814_v41  ;;  %v4564_v40 = vld [vmem:[%s4359_s11 + $0xec] ss:$16 sps:$4 sm:$0xff]   ;;  %v4568_v41 = vld [vmem:[%s4359_s11 + $0xe0] ss:$16 sps:$4 sm:$0xff]   ;;  %s3368_s24 = scalar_lea.vmem [#allocation2], %s3628_s23  ;;  %s3711_s30 = sshll.u32 %s2295_s29, 5 }
  0x3f   : > { %835 = vmatprep.subr.bf16.mxu0 %v3815_v42  ;;  %948 = vmatprep.subr.bf16.mxu1 %v3817_v43  ;;  %v4574_v42 = vld [vmem:[%s4359_s11 + $0xe8] ss:$16 sps:$4 sm:$0xff]   ;;  %s2298_s15 = scalar_lea.vmem [#allocation2], %s3711_s30  ;;  %s3673_s9 = smul.u32 4294967008, %s4269_s16 }
  0x40   : > { %v3883_v43 = vld [vmem:[%s4369_s27 + $0x40] ss:$8 sps:$4 sm:$0xff]   ;;  %s3681_s12 = smul.u32 4294966944, %s4269_s16 }
  0x41   : > { %s3697_s23 = smul.u32 4294966816, %s4269_s16 }
  0x42   : > { %836 = vmatpush1.bf16.msra.mxu0 %v3819_v44  ;;  %949 = vmatpush1.bf16.msra.mxu1 %v3820_v45  ;;  %v3890_v44 = vld [vmem:[%s4369_s27 + $0x54] ss:$8 sps:$4 sm:$0xff]   ;;  %v3892_v45 = vld [vmem:[%s4369_s27 + $0x50] ss:$8 sps:$4 sm:$0xff]  }
  0x43   : > { %837 = vmatprep.subr.bf16.mxu0 %v3821_v46  ;;  %950 = vmatprep.subr.bf16.mxu1 %v3823_v47  ;;  %v3899_v46 = vld [vmem:[%s4369_s27 + $0x64] ss:$8 sps:$4 sm:$0xff]   ;;  %v3901_v47 = vld [vmem:[%s4369_s27 + $0x60] ss:$8 sps:$4 sm:$0xff]  }
  0x46   : > { %838 = vmatpush1.bf16.msra.mxu0 %v3825_v48  ;;  %951 = vmatpush1.bf16.msra.mxu1 %v3826_v49  ;;  %v3908_v48 = vld [vmem:[%s4369_s27 + $0x74] ss:$8 sps:$4 sm:$0xff]   ;;  %v3910_v49 = vld [vmem:[%s4369_s27 + $0x70] ss:$8 sps:$4 sm:$0xff]   ;;  %s3371_s27 = scalar_lea.vmem [#allocation2], %s3636_s25 }
  0x47   : > { %839 = vmatprep.subr.bf16.mxu0 %v3827_v51  ;;  %952 = vmatprep.subr.bf16.mxu1 %v3829_v52  ;;  %v1145_v51 = vld [vmem:[#allocation3] sm:$0xf]  ;;  %v395_v52 = vlaneseq }
  0x4a   : > { %840 = vmatpush1.bf16.msra.mxu0 %v3831_v53  ;;  %953 = vmatpush1.bf16.msra.mxu1 %v3832_v54  ;;  %v396_v53 = vshrl.u32 %v395_v52, 7 }
  0x4b   : > { %841 = vmatprep.subr.bf16.mxu0 %v3833_v55  ;;  %954 = vmatprep.subr.bf16.mxu1 %v3835_v56  ;;  %v393_v56 = vld [vmem:[%s4364_s14] sm:$0xf]  ;;  %s3620_s14 = smul.u32 160, %s4269_s16 }
  0x4c   : > { %v397_v54 = vsub.s32 0, %v396_v53  ;;  %v405_v55 = vsub.s32 2, %v396_v53 }
  0x4d   : > { %s3364_s22 = scalar_lea.vmem [#allocation2], %s3620_s14  ;;  %s3689_s14 = smul.u32 4294966880, %s4269_s16 }
  0x4e   : > { %842 = vmatpush1.bf16.msra.mxu0 %v3837_v57  ;;  %955 = vmatpush1.bf16.msra.mxu1 %v3838_v58  ;;  %v401_v57 = vsub.s32 1, %v396_v53  ;;  %v409_v58 = vsub.s32 3, %v396_v53 }
  0x4f   : > { %843 = vmatprep.subr.bf16.mxu0 %v3839_v59  ;;  %956 = vmatprep.subr.bf16.mxu1 %v3841_v60  ;;  %v4625_v59 = vrot.slane %v393_v56, %v397_v54  ;;  %v4627_v60 = vrot.slane %v393_v56, %v405_v55 }
  0x52   : > { %844 = vmatpush1.bf16.msra.mxu0 %v3843_v61  ;;  %957 = vmatpush1.bf16.msra.mxu1 %v3844_v62  ;;  %v4629_v61 = vrot.slane %v393_v56, %v401_v57  ;;  %v4631_v62 = vrot.slane %v393_v56, %v409_v58 }
  0x53   : > { %845 = vmatprep.subr.bf16.mxu0 %v3845_v63  ;;  %958 = vmatprep.subr.bf16.mxu1 %v3847_v0 }
  0x56   : > { %846 = vmatpush1.bf16.msra.mxu0 %v3849_v1  ;;  %959 = vmatpush1.bf16.msra.mxu1 %v3850_v2 }
  0x57   : > { %1306 = vmatprep.subr.bf16.mxu0 %v4444_v3  ;;  %1347 = vmatprep.subr.bf16.mxu1 %v4447_v4 }
  0x59   : > { %848 = vmatmul.mubr.bf16.vlgmr.msra.gmra.mrb[0].mxu0 %v3851_v5  ;;  %961 = vmatmul.mubr.bf16.vlgmr.msra.gmra.mrb[0].mxu1 %v3851_v5 }
  0x5a   : > { %1307 = vmatpush1.bf16.msra.mxu0 %v4451_v6  ;;  %857 = vmatprep.mubr.bf16.mxu0 %v3857_v7 }
  0x5b   : > { %970 = vmatprep.mubr.bf16.mxu1 %v3857_v7  ;;  %1308 = vmatprep.subr.bf16.mxu0 %v4456_v8 }
  0x5c   : > { %1348 = vmatpush1.bf16.msra.mxu1 %v4460_v9 }
  0x5d   : > { %1349 = vmatprep.subr.bf16.mxu1 %v4463_v10 }
  0x5e   : > { %1309 = vmatpush1.bf16.msra.mxu0 %v4467_v11 }
  0x5f   : > { %1310 = vmatprep.subr.bf16.mxu0 %v4471_v12 }
  0x60   : > { %1350 = vmatpush1.bf16.msra.mxu1 %v4475_v13 }
  0x61   : > { %858 = vmatmul.mubr.bf16.gmra.mrb[4].mxu0 %v3859_v14  ;;  %971 = vmatmul.mubr.bf16.gmra.mrb[4].mxu1 %v3859_v14 }
  0x62   : > { %867 = vmatprep.mubr.bf16.mxu0 %v3863_v15  ;;  %980 = vmatprep.mubr.bf16.mxu1 %v3863_v15 }
  0x63   : > { %1311 = vmatpush1.bf16.msra.mxu0 %v4482_v16  ;;  %1351 = vmatprep.subr.bf16.mxu1 %v4486_v17 }
  0x64   : > { %1312 = vmatprep.subr.bf16.mxu0 %v4489_v18  ;;  %1352 = vmatpush1.bf16.msra.mxu1 %v4493_v19 }
  0x65   : > { %1353 = vmatprep.subr.bf16.mxu1 %v4496_v20 }
  0x67   : > { %1313 = vmatpush1.bf16.msra.mxu0 %v4500_v21 }
  0x68   : > { %1314 = vmatprep.subr.bf16.mxu0 %v4505_v22  ;;  %1354 = vmatpush1.bf16.msra.mxu1 %v4509_v23 }
  0x69   : > { %868 = vmatmul.mubr.bf16.gmra.mrb[8].mxu0 %v3865_v24  ;;  %981 = vmatmul.mubr.bf16.gmra.mrb[8].mxu1 %v3865_v24 }
  0x6a   : > { %877 = vmatprep.mubr.bf16.mxu0 %v3872_v25  ;;  %990 = vmatprep.mubr.bf16.mxu1 %v3872_v25 }
  0x6b   : > { %1315 = vmatpush1.bf16.msra.mxu0 %v4516_v26  ;;  %1355 = vmatprep.subr.bf16.mxu1 %v4519_v27 }
  0x6c   : > { %1316 = vmatprep.subr.bf16.mxu0 %v4523_v28  ;;  %1356 = vmatpush1.bf16.msra.mxu1 %v4527_v29 }
  0x6d   : > { %1357 = vmatprep.subr.bf16.mxu1 %v4530_v30 }
  0x6f   : > { %1317 = vmatpush1.bf16.msra.mxu0 %v4534_v31 }
  0x70   : > { %1318 = vmatprep.subr.bf16.mxu0 %v4539_v32  ;;  %1358 = vmatpush1.bf16.msra.mxu1 %v4543_v33 }
  0x71   : > { %878 = vmatmul.mubr.bf16.gmra.mrb[12].mxu0 %v3874_v34  ;;  %991 = vmatmul.mubr.bf16.gmra.mrb[12].mxu1 %v3874_v34 }
  0x72   : > { %887 = vmatprep.mubr.bf16.mxu0 %v3881_v35  ;;  %1000 = vmatprep.mubr.bf16.mxu1 %v3881_v35 }
  0x73   : > { %1319 = vmatpush1.bf16.msra.mxu0 %v4550_v36  ;;  %1359 = vmatprep.subr.bf16.mxu1 %v4553_v37 }
  0x74   : > { %1320 = vmatprep.subr.bf16.mxu0 %v4558_v38  ;;  %1360 = vmatpush1.bf16.msra.mxu1 %v4561_v39 }
  0x75   : > { %1361 = vmatprep.subr.bf16.mxu1 %v4564_v40 }
  0x77   : > { %1321 = vmatpush1.bf16.msra.mxu0 %v4568_v41 }
  0x78   : > { %1362 = vmatpush1.bf16.msra.mxu1 %v4574_v42  ;;  %1431 = vmatprep.subr.bf16.mxu0 %v4444_v3 }
  0x79   : > { %888 = vmatmul.mubr.bf16.gmra.mrb[16].mxu0 %v3883_v43  ;;  %1001 = vmatmul.mubr.bf16.gmra.mrb[16].mxu1 %v3883_v43 }
  0x7a   : > { %897 = vmatprep.mubr.bf16.mxu0 %v3890_v44  ;;  %1010 = vmatprep.mubr.bf16.mxu1 %v3890_v44 }
  0x7b   : > { %1472 = vmatprep.subr.bf16.mxu1 %v4447_v4 }
  0x81   : > { %898 = vmatmul.mubr.bf16.gmra.mrb[20].mxu0 %v3892_v45  ;;  %1011 = vmatmul.mubr.bf16.gmra.mrb[20].mxu1 %v3892_v45 }
  0x82   : > { %907 = vmatprep.mubr.bf16.mxu0 %v3899_v46  ;;  %1020 = vmatprep.mubr.bf16.mxu1 %v3899_v46 }
  0x89   : > { %908 = vmatmul.mubr.bf16.gmra.mrb[24].mxu0 %v3901_v47  ;;  %1021 = vmatmul.mubr.bf16.gmra.mrb[24].mxu1 %v3901_v47 }
  0x8a   : > { %917 = vmatprep.mubr.bf16.mxu0 %v3908_v48  ;;  %1030 = vmatprep.mubr.bf16.mxu1 %v3908_v48 }
  0x91   : > { %918 = vmatmul.mubr.bf16.gmra.mrb[28].mxu0 %v3910_v49  ;;  %1031 = vmatmul.mubr.bf16.gmra.mrb[28].mxu1 %v3910_v49 }
  0x92   : > { %1338 = vmatprep.mubr.bf16.mxu0 %v4285_v50  ;;  %1379 = vmatprep.mubr.bf16.mxu1 %v4285_v50 }
  0x99   : > { %1339 = vmatmul.mubr.bf16.vlgmr.msra.gmra.mrb[32].mxu0 %v1145_v51  ;;  %1380 = vmatmul.mubr.bf16.vlgmr.msra.gmra.mrb[32].mxu1 %v1145_v51 }
  0x9a   : > { %1432 = vmatpush1.bf16.msra.mxu0 %v4451_v6  ;;  %1473 = vmatpush1.bf16.msra.mxu1 %v4460_v9 }
  0x9b   : > { %1433 = vmatprep.subr.bf16.mxu0 %v4456_v8  ;;  %1474 = vmatprep.subr.bf16.mxu1 %v4463_v10 }
  0x9c   : > { %1463 = vmatprep.mubr.bf16.mxu0 %v4285_v50  ;;  %1504 = vmatprep.mubr.bf16.mxu1 %v4285_v50 }
  0x9e   : > { %1434 = vmatpush1.bf16.msra.mxu0 %v4467_v11  ;;  %1475 = vmatpush1.bf16.msra.mxu1 %v4475_v13 }
  0x9f   : > { %1435 = vmatprep.subr.bf16.mxu0 %v4471_v12  ;;  %1476 = vmatprep.subr.bf16.mxu1 %v4486_v17 }
  0xa2   : > { %1436 = vmatpush1.bf16.msra.mxu0 %v4482_v16  ;;  %1477 = vmatpush1.bf16.msra.mxu1 %v4493_v19 }
  0xa3   : > { %1437 = vmatprep.subr.bf16.mxu0 %v4489_v18  ;;  %1478 = vmatprep.subr.bf16.mxu1 %v4496_v20 }
  0xa6   : > { %1438 = vmatpush1.bf16.msra.mxu0 %v4500_v21  ;;  %1479 = vmatpush1.bf16.msra.mxu1 %v4509_v23 }
  0xa7   : > { %1439 = vmatprep.subr.bf16.mxu0 %v4505_v22  ;;  %1480 = vmatprep.subr.bf16.mxu1 %v4519_v27 }
  0xaa   : > { %1440 = vmatpush1.bf16.msra.mxu0 %v4516_v26  ;;  %1481 = vmatpush1.bf16.msra.mxu1 %v4527_v29 }
  0xab   : > { %1441 = vmatprep.subr.bf16.mxu0 %v4523_v28  ;;  %1482 = vmatprep.subr.bf16.mxu1 %v4530_v30 }
  0xae   : > { %1442 = vmatpush1.bf16.msra.mxu0 %v4534_v31  ;;  %1483 = vmatpush1.bf16.msra.mxu1 %v4543_v33 }
  0xaf   : > { %1443 = vmatprep.subr.bf16.mxu0 %v4539_v32  ;;  %1484 = vmatprep.subr.bf16.mxu1 %v4553_v37 }
  0xb2   : > { %1444 = vmatpush1.bf16.msra.mxu0 %v4550_v36  ;;  %1485 = vmatpush1.bf16.msra.mxu1 %v4561_v39 }
  0xb3   : > { %1445 = vmatprep.subr.bf16.mxu0 %v4558_v38  ;;  %1486 = vmatprep.subr.bf16.mxu1 %v4564_v40 }
  0xb6   : > { %1446 = vmatpush1.bf16.msra.mxu0 %v4568_v41  ;;  %1487 = vmatpush1.bf16.msra.mxu1 %v4574_v42 }
  0xb7   : > { %1556 = vmatprep.subr.bf16.mxu0 %v4444_v3  ;;  %1597 = vmatprep.subr.bf16.mxu1 %v4447_v4 }
 0x12c   : > { %v849_v63 = vpop.f32.mrb[0].mxu0  ;;  %v962_v0 = vpop.f32.mrb[0].mxu1 }
 0x12d   : > { %v850_v1 = vadd.f32 %v849_v63, %v4625_v59  ;;  %v963_v2 = vadd.f32 %v962_v0, %v4627_v60  ;;  %v851_v5 = vpop.f32.mrb[1].mxu0  ;;  %v964_v7 = vpop.f32.mrb[1].mxu1 }
 0x12e   : > { %v852_v14 = vadd.f32 %v851_v5, %v4629_v61  ;;  %v965_v15 = vadd.f32 %v964_v7, %v4631_v62  ;;  %v853_v24 = vpop.f32.mrb[2].mxu0  ;;  %v966_v25 = vpop.f32.mrb[2].mxu1 }
 0x12f   : > { %1041 = vst [vmem:[#allocation2] sm:$0xff] %v850_v1  ;;  %1043 = vst [vmem:[#allocation2 + $0x10] sm:$0xff] %v963_v2  ;;  %v854_v34 = vadd.f32 %v853_v24, %v4625_v59  ;;  %v967_v35 = vadd.f32 %v966_v25, %v4627_v60  ;;  %v855_v43 = vpop.f32.mrb[3].mxu0  ;;  %v968_v44 = vpop.f32.mrb[3].mxu1 }
 0x130   : > { %1042 = vst [vmem:[#allocation2 + $0x8] sm:$0xff] %v852_v14  ;;  %1044 = vst [vmem:[#allocation2 + $0x18] sm:$0xff] %v965_v15  ;;  %v856_v45 = vadd.f32 %v855_v43, %v4629_v61  ;;  %v969_v46 = vadd.f32 %v968_v44, %v4631_v62 }
 0x131   : > { %1045 = vst [vmem:[#allocation2 + $0x20] sm:$0xff] %v854_v34  ;;  %1047 = vst [vmem:[#allocation2 + $0x30] sm:$0xff] %v967_v35 }
 0x132   : > { %1046 = vst [vmem:[#allocation2 + $0x28] sm:$0xff] %v856_v45  ;;  %1048 = vst [vmem:[#allocation2 + $0x38] sm:$0xff] %v969_v46 }
 0x134   : > { %v859_v47 = vpop.f32.mrb[4].mxu0  ;;  %v972_v48 = vpop.f32.mrb[4].mxu1 }
 0x135   : > { %v860_v49 = vadd.f32 %v859_v47, %v4625_v59  ;;  %v973_v51 = vadd.f32 %v972_v48, %v4627_v60  ;;  %v861_v52 = vpop.f32.mrb[5].mxu0  ;;  %v974_v53 = vpop.f32.mrb[5].mxu1 }
 0x136   : > { %v862_v54 = vadd.f32 %v861_v52, %v4629_v61  ;;  %v975_v55 = vadd.f32 %v974_v53, %v4631_v62  ;;  %v863_v56 = vpop.f32.mrb[6].mxu0  ;;  %v976_v57 = vpop.f32.mrb[6].mxu1 }
 0x137   : > { %1049 = vst [vmem:[#allocation2 + $0x40] sm:$0xff] %v860_v49  ;;  %1051 = vst [vmem:[#allocation2 + $0x50] sm:$0xff] %v973_v51  ;;  %v864_v58 = vadd.f32 %v863_v56, %v4625_v59  ;;  %v977_v63 = vadd.f32 %v976_v57, %v4627_v60  ;;  %v865_v0 = vpop.f32.mrb[7].mxu0  ;;  %v978_v1 = vpop.f32.mrb[7].mxu1 }
 0x138   : > { %1050 = vst [vmem:[#allocation2 + $0x48] sm:$0xff] %v862_v54  ;;  %1052 = vst [vmem:[#allocation2 + $0x58] sm:$0xff] %v975_v55  ;;  %v866_v2 = vadd.f32 %v865_v0, %v4629_v61  ;;  %v979_v5 = vadd.f32 %v978_v1, %v4631_v62 }
 0x139   : > { %1053 = vst [vmem:[#allocation2 + $0x60] sm:$0xff] %v864_v58  ;;  %1055 = vst [vmem:[#allocation2 + $0x70] sm:$0xff] %v977_v63 }
 0x13a   : > { %1054 = vst [vmem:[#allocation2 + $0x68] sm:$0xff] %v866_v2  ;;  %1056 = vst [vmem:[#allocation2 + $0x78] sm:$0xff] %v979_v5 }
 0x13c   : > { %v869_v7 = vpop.f32.mrb[8].mxu0  ;;  %v982_v14 = vpop.f32.mrb[8].mxu1 }
 0x13d   : > { %v870_v15 = vadd.f32 %v869_v7, %v4625_v59  ;;  %v983_v24 = vadd.f32 %v982_v14, %v4627_v60  ;;  %v871_v25 = vpop.f32.mrb[9].mxu0  ;;  %v984_v34 = vpop.f32.mrb[9].mxu1 }
 0x13e   : > { %v872_v35 = vadd.f32 %v871_v25, %v4629_v61  ;;  %v985_v43 = vadd.f32 %v984_v34, %v4631_v62  ;;  %v873_v44 = vpop.f32.mrb[10].mxu0  ;;  %v986_v45 = vpop.f32.mrb[10].mxu1 }
 0x13f   : > { %1057 = vst [vmem:[#allocation2 + $0x80] sm:$0xff] %v870_v15  ;;  %1059 = vst [vmem:[#allocation2 + $0x90] sm:$0xff] %v983_v24  ;;  %v874_v46 = vadd.f32 %v873_v44, %v4625_v59  ;;  %v987_v47 = vadd.f32 %v986_v45, %v4627_v60  ;;  %v875_v48 = vpop.f32.mrb[11].mxu0  ;;  %v988_v49 = vpop.f32.mrb[11].mxu1 }
 0x140   : > { %1058 = vst [vmem:[#allocation2 + $0x88] sm:$0xff] %v872_v35  ;;  %1060 = vst [vmem:[#allocation2 + $0x98] sm:$0xff] %v985_v43  ;;  %v876_v51 = vadd.f32 %v875_v48, %v4629_v61  ;;  %v989_v52 = vadd.f32 %v988_v49, %v4631_v62 }
 0x141   : > { %1061 = vst [vmem:[#allocation2 + $0xa0] sm:$0xff] %v874_v46  ;;  %1063 = vst [vmem:[#allocation2 + $0xb0] sm:$0xff] %v987_v47 }
 0x142   : > { %1062 = vst [vmem:[#allocation2 + $0xa8] sm:$0xff] %v876_v51  ;;  %1064 = vst [vmem:[#allocation2 + $0xb8] sm:$0xff] %v989_v52 }
 0x144   : > { %v879_v53 = vpop.f32.mrb[12].mxu0  ;;  %v992_v54 = vpop.f32.mrb[12].mxu1 }
 0x145   : > { %v880_v55 = vadd.f32 %v879_v53, %v4625_v59  ;;  %v993_v56 = vadd.f32 %v992_v54, %v4627_v60  ;;  %v881_v57 = vpop.f32.mrb[13].mxu0  ;;  %v994_v58 = vpop.f32.mrb[13].mxu1 }
 0x146   : > { %v882_v63 = vadd.f32 %v881_v57, %v4629_v61  ;;  %v995_v0 = vadd.f32 %v994_v58, %v4631_v62  ;;  %v883_v1 = vpop.f32.mrb[14].mxu0  ;;  %v996_v2 = vpop.f32.mrb[14].mxu1 }
 0x147   : > { %1065 = vst [vmem:[#allocation2 + $0xc0] sm:$0xff] %v880_v55  ;;  %1067 = vst [vmem:[#allocation2 + $0xd0] sm:$0xff] %v993_v56  ;;  %v884_v5 = vadd.f32 %v883_v1, %v4625_v59  ;;  %v997_v7 = vadd.f32 %v996_v2, %v4627_v60  ;;  %v885_v14 = vpop.f32.mrb[15].mxu0  ;;  %v998_v15 = vpop.f32.mrb[15].mxu1 }
 0x148   : > { %1066 = vst [vmem:[#allocation2 + $0xc8] sm:$0xff] %v882_v63  ;;  %1068 = vst [vmem:[#allocation2 + $0xd8] sm:$0xff] %v995_v0  ;;  %v886_v24 = vadd.f32 %v885_v14, %v4629_v61  ;;  %v999_v25 = vadd.f32 %v998_v15, %v4631_v62 }
 0x149   : > { %1069 = vst [vmem:[#allocation2 + $0xe0] sm:$0xff] %v884_v5  ;;  %1071 = vst [vmem:[#allocation2 + $0xf0] sm:$0xff] %v997_v7 }
 0x14a   : > { %1070 = vst [vmem:[#allocation2 + $0xe8] sm:$0xff] %v886_v24  ;;  %1072 = vst [vmem:[#allocation2 + $0xf8] sm:$0xff] %v999_v25 }
 0x14c   : > { %v889_v34 = vpop.f32.mrb[16].mxu0  ;;  %v1002_v35 = vpop.f32.mrb[16].mxu1 }
 0x14d   : > { %v890_v43 = vadd.f32 %v889_v34, %v4625_v59  ;;  %v1003_v44 = vadd.f32 %v1002_v35, %v4627_v60  ;;  %v891_v45 = vpop.f32.mrb[17].mxu0  ;;  %v1004_v46 = vpop.f32.mrb[17].mxu1 }
 0x14e   : > { %v892_v47 = vadd.f32 %v891_v45, %v4629_v61  ;;  %v1005_v48 = vadd.f32 %v1004_v46, %v4631_v62  ;;  %v893_v49 = vpop.f32.mrb[18].mxu0  ;;  %v1006_v51 = vpop.f32.mrb[18].mxu1 }
 0x14f   : > { %1073 = vst [vmem:[#allocation2 + $0x100] sm:$0xff] %v890_v43  ;;  %1075 = vst [vmem:[#allocation2 + $0x110] sm:$0xff] %v1003_v44  ;;  %v894_v52 = vadd.f32 %v893_v49, %v4625_v59  ;;  %v1007_v53 = vadd.f32 %v1006_v51, %v4627_v60  ;;  %v895_v54 = vpop.f32.mrb[19].mxu0  ;;  %v1008_v55 = vpop.f32.mrb[19].mxu1 }
 0x150   : > { %1074 = vst [vmem:[#allocation2 + $0x108] sm:$0xff] %v892_v47  ;;  %1076 = vst [vmem:[#allocation2 + $0x118] sm:$0xff] %v1005_v48  ;;  %v896_v56 = vadd.f32 %v895_v54, %v4629_v61  ;;  %v1009_v57 = vadd.f32 %v1008_v55, %v4631_v62 }
 0x151   : > { %1077 = vst [vmem:[#allocation2 + $0x120] sm:$0xff] %v894_v52  ;;  %1079 = vst [vmem:[#allocation2 + $0x130] sm:$0xff] %v1007_v53 }
 0x152   : > { %1078 = vst [vmem:[#allocation2 + $0x128] sm:$0xff] %v896_v56  ;;  %1080 = vst [vmem:[#allocation2 + $0x138] sm:$0xff] %v1009_v57 }
 0x154   : > { %v899_v58 = vpop.f32.mrb[20].mxu0  ;;  %v1012_v63 = vpop.f32.mrb[20].mxu1 }
 0x155   : > { %v900_v0 = vadd.f32 %v899_v58, %v4625_v59  ;;  %v1013_v1 = vadd.f32 %v1012_v63, %v4627_v60  ;;  %v901_v2 = vpop.f32.mrb[21].mxu0  ;;  %v1014_v5 = vpop.f32.mrb[21].mxu1 }
 0x156   : > { %v902_v7 = vadd.f32 %v901_v2, %v4629_v61  ;;  %v1015_v14 = vadd.f32 %v1014_v5, %v4631_v62  ;;  %v903_v15 = vpop.f32.mrb[22].mxu0  ;;  %v1016_v24 = vpop.f32.mrb[22].mxu1 }
 0x157   : > { %1081 = vst [vmem:[#allocation2 + $0x140] sm:$0xff] %v900_v0  ;;  %1083 = vst [vmem:[#allocation2 + $0x150] sm:$0xff] %v1013_v1  ;;  %v904_v25 = vadd.f32 %v903_v15, %v4625_v59  ;;  %v1017_v34 = vadd.f32 %v1016_v24, %v4627_v60  ;;  %v905_v35 = vpop.f32.mrb[23].mxu0  ;;  %v1018_v43 = vpop.f32.mrb[23].mxu1 }
 0x158   : > { %1082 = vst [vmem:[#allocation2 + $0x148] sm:$0xff] %v902_v7  ;;  %1084 = vst [vmem:[#allocation2 + $0x158] sm:$0xff] %v1015_v14  ;;  %v906_v44 = vadd.f32 %v905_v35, %v4629_v61  ;;  %v1019_v45 = vadd.f32 %v1018_v43, %v4631_v62 }
 0x159   : > { %1085 = vst [vmem:[#allocation2 + $0x160] sm:$0xff] %v904_v25  ;;  %1087 = vst [vmem:[#allocation2 + $0x170] sm:$0xff] %v1017_v34 }
 0x15a   : > { %1086 = vst [vmem:[#allocation2 + $0x168] sm:$0xff] %v906_v44  ;;  %1088 = vst [vmem:[#allocation2 + $0x178] sm:$0xff] %v1019_v45 }
 0x15c   : > { %v909_v46 = vpop.f32.mrb[24].mxu0  ;;  %v1022_v47 = vpop.f32.mrb[24].mxu1 }
 0x15d   : > { %v910_v48 = vadd.f32 %v909_v46, %v4625_v59  ;;  %v1023_v49 = vadd.f32 %v1022_v47, %v4627_v60  ;;  %v911_v51 = vpop.f32.mrb[25].mxu0  ;;  %v1024_v52 = vpop.f32.mrb[25].mxu1 }
 0x15e   : > { %v912_v53 = vadd.f32 %v911_v51, %v4629_v61  ;;  %v1025_v54 = vadd.f32 %v1024_v52, %v4631_v62  ;;  %v913_v55 = vpop.f32.mrb[26].mxu0  ;;  %v1026_v56 = vpop.f32.mrb[26].mxu1 }
 0x15f   : > { %1089 = vst [vmem:[#allocation2 + $0x180] sm:$0xff] %v910_v48  ;;  %1091 = vst [vmem:[#allocation2 + $0x190] sm:$0xff] %v1023_v49  ;;  %v914_v57 = vadd.f32 %v913_v55, %v4625_v59  ;;  %v1027_v58 = vadd.f32 %v1026_v56, %v4627_v60  ;;  %v915_v63 = vpop.f32.mrb[27].mxu0  ;;  %v1028_v0 = vpop.f32.mrb[27].mxu1 }
 0x160   : > { %1090 = vst [vmem:[#allocation2 + $0x188] sm:$0xff] %v912_v53  ;;  %1092 = vst [vmem:[#allocation2 + $0x198] sm:$0xff] %v1025_v54  ;;  %v916_v1 = vadd.f32 %v915_v63, %v4629_v61  ;;  %v1029_v2 = vadd.f32 %v1028_v0, %v4631_v62 }
 0x161   : > { %1093 = vst [vmem:[#allocation2 + $0x1a0] sm:$0xff] %v914_v57  ;;  %1095 = vst [vmem:[#allocation2 + $0x1b0] sm:$0xff] %v1027_v58 }
 0x162   : > { %1094 = vst [vmem:[#allocation2 + $0x1a8] sm:$0xff] %v916_v1  ;;  %1096 = vst [vmem:[#allocation2 + $0x1b8] sm:$0xff] %v1029_v2 }
 0x164   : > { %v919_v5 = vpop.f32.mrb[28].mxu0  ;;  %v1032_v7 = vpop.f32.mrb[28].mxu1 }
 0x165   : > { %v920_v14 = vadd.f32 %v919_v5, %v4625_v59  ;;  %v1033_v15 = vadd.f32 %v1032_v7, %v4627_v60  ;;  %v921_v24 = vpop.f32.mrb[29].mxu0  ;;  %v1034_v25 = vpop.f32.mrb[29].mxu1 }
 0x166   : > { %v922_v34 = vadd.f32 %v921_v24, %v4629_v61  ;;  %v1035_v35 = vadd.f32 %v1034_v25, %v4631_v62  ;;  %v923_v43 = vpop.f32.mrb[30].mxu0  ;;  %v1036_v44 = vpop.f32.mrb[30].mxu1 }
 0x167   : > { %1097 = vst [vmem:[#allocation2 + $0x1c0] sm:$0xff] %v920_v14  ;;  %1099 = vst [vmem:[#allocation2 + $0x1d0] sm:$0xff] %v1033_v15  ;;  %v924_v45 = vadd.f32 %v923_v43, %v4625_v59  ;;  %v1037_v46 = vadd.f32 %v1036_v44, %v4627_v60  ;;  %v925_v47 = vpop.f32.mrb[31].mxu0  ;;  %v1038_v48 = vpop.f32.mrb[31].mxu1 }
 0x168   : > { %1098 = vst [vmem:[#allocation2 + $0x1c8] sm:$0xff] %v922_v34  ;;  %1100 = vst [vmem:[#allocation2 + $0x1d8] sm:$0xff] %v1035_v35  ;;  %v926_v49 = vadd.f32 %v925_v47, %v4629_v61  ;;  %v1039_v51 = vadd.f32 %v1038_v48, %v4631_v62 }
 0x169   : > { %1101 = vst [vmem:[#allocation2 + $0x1e0] sm:$0xff] %v924_v45  ;;  %1103 = vst [vmem:[#allocation2 + $0x1f0] sm:$0xff] %v1037_v46  ;;  %v1392_v45 = vld [vmem:[#allocation4] sm:$0xff] }
 0x16a   : > { %1102 = vst [vmem:[#allocation2 + $0x1e8] sm:$0xff] %v926_v49  ;;  %1104 = vst [vmem:[#allocation2 + $0x1f8] sm:$0xff] %v1039_v51 }
 0x16c   : > { %v1340_v52 = vpop.f32.mrb[32].mxu0  ;;  %v1381_v53 = vpop.f32.mrb[32].mxu1 }
 0x16d   : > { %v1342_v54 = vpop.f32.mrb[33].mxu0  ;;  %v1383_v55 = vpop.f32.mrb[33].mxu1 }
 0x16e   : > { %v1344_v59 = vpop.f32.mrb[34].mxu0  ;;  %v1385_v56 = vpop.f32.mrb[34].mxu1 }
 0x16f   : > { %v1345_v60 = vpop.f32.mrb[35].mxu0  ;;  %v1386_v57 = vpop.f32.mrb[35].mxu1 }
 0x171   : > { %v1141_v58 = vld [vmem:[%s1140_s26] sm:$0xff]  ;;  %v1142_v63 = vld [vmem:[%s1140_s26 + $0x8] sm:$0xff]  ;;  %v1144_v2 = vld [vmem:[%s1140_s26 + $0x18] sm:$0xff] }
 0x172   : > { %v1388_v0 = vadd.f32 %v1340_v52, %v1141_v58  ;;  %v1389_v61 = vadd.f32 %v1342_v54, %v1142_v63  ;;  %v1391_v5 = vadd.f32 %v1383_v55, %v1144_v2  ;;  %v1143_v7 = vld [vmem:[%s1140_s26 + $0x10] sm:$0xff]  ;;  %v3589_v60 = vld [vmem:[%s3348_s6 + $0x20] sm:$0xff]  ;;  %s3649_s26 = smul.u32 4294967200, %s4269_s16 }
 0x173   : > { %v1390_v15 = vadd.f32 %v1381_v53, %v1143_v7 }
 0x174   : > { %v3585_v1 = vmul.f32 -1.442695, %v1388_v0  ;;  %v3586_v62 = vmul.f32 -1.442695, %v1389_v61  ;;  %v3587_v14 = vmul.f32 -1.442695, %v1391_v5 }
 0x175   : > { %v3590_v0 = vld [vmem:[%s3348_s6 + $0x28] sm:$0xff]  ;;  %s3377_s28 = scalar_lea.vmem [#allocation2], %s3649_s26 }
 0x176   : > { %3923 = vpow2.f32 %v3585_v1 }
 0x177   : > { %3925 = vpow2.f32 %v3586_v62 }
 0x178   : > { %3927 = vpow2.f32 %v3587_v14 }
 0x179   : > { %3929 = vtanh.f32 %v1390_v15 }
 0x180   : > { %v3924_v24 = vpop.eup %3923 }
 0x181   : > { %v3926_v25 = vpop.eup %3925  ;;  %v1396_v34 = vadd.f32 1.0, %v3924_v24 }
 0x182   : > { %v1402_v35 = vadd.f32 1.0, %v3926_v25  ;;  %v3928_v43 = vpop.eup %3927  ;;  %v3591_v25 = vld [vmem:[%s3348_s6 + $0x30] sm:$0xff] }
 0x183   : > { %3931 = vrcp.f32 %v1396_v34  ;;  %v3930_v44 = vpop.eup %3929  ;;  %v1409_v49 = vadd.f32 1.0, %v3928_v43 }
 0x184   : > { %3933 = vrcp.f32 %v1402_v35 }
 0x185   : > { %3935 = vrcp.f32 %v1409_v49 }
 0x18d   : > { %v3932_v46 = vpop.eup %3931 }
 0x18e   : > { %v3934_v47 = vpop.eup %3933  ;;  %v1413_v48 = vmul.f32 %v3932_v46, %v3930_v44 }
 0x18f   : > { %v1412_v51 = vmul.f32 %v3934_v47, %v1392_v45  ;;  %v3936_v53 = vpop.eup %3935 }
 0x191   : > { %v4698_v52 = vadd.f32 %v1413_v48, %v1412_v51 }
 0x193   : > { %3937 = vtanh.f32 %v4698_v52 }
 0x19d   : > { %v3938_v54 = vpop.eup %3937 }
 0x19e   : > { %v4701_v55 = vmul.f32 %v3938_v54, %v3936_v53 }
 0x1a0   : > { %v1417_v59 = vpack.c.bf16 %v4701_v55, %v4701_v55 }
 0x1a2   : > { %1418 = vst [vmem:[#allocation3] sm:$0xf] %v1417_v59 }
 0x1a9   : > { %v1430_v56 = vld [vmem:[#allocation3] sm:$0xf] }
 0x1aa   : > { %1464 = vmatmul.mubr.bf16.vlgmr.msra.gmra.mrb[36].mxu0 %v1430_v56  ;;  %1505 = vmatmul.mubr.bf16.vlgmr.msra.gmra.mrb[36].mxu1 %v1430_v56 }
 0x1ab   : > { %1557 = vmatpush1.bf16.msra.mxu0 %v4451_v6  ;;  %1598 = vmatpush1.bf16.msra.mxu1 %v4460_v9 }
 0x1ac   : > { %1558 = vmatprep.subr.bf16.mxu0 %v4456_v8  ;;  %1599 = vmatprep.subr.bf16.mxu1 %v4463_v10 }
 0x1ad   : > { %1588 = vmatprep.mubr.bf16.mxu0 %v4285_v50  ;;  %1629 = vmatprep.mubr.bf16.mxu1 %v4285_v50 }
 0x1af   : > { %1559 = vmatpush1.bf16.msra.mxu0 %v4467_v11  ;;  %1600 = vmatpush1.bf16.msra.mxu1 %v4475_v13 }
 0x1b0   : > { %1560 = vmatprep.subr.bf16.mxu0 %v4471_v12  ;;  %1601 = vmatprep.subr.bf16.mxu1 %v4486_v17 }
 0x1b3   : > { %1561 = vmatpush1.bf16.msra.mxu0 %v4482_v16  ;;  %1602 = vmatpush1.bf16.msra.mxu1 %v4493_v19 }
 0x1b4   : > { %1562 = vmatprep.subr.bf16.mxu0 %v4489_v18  ;;  %1603 = vmatprep.subr.bf16.mxu1 %v4496_v20 }
 0x1b7   : > { %1563 = vmatpush1.bf16.msra.mxu0 %v4500_v21  ;;  %1604 = vmatpush1.bf16.msra.mxu1 %v4509_v23 }
 0x1b8   : > { %1564 = vmatprep.subr.bf16.mxu0 %v4505_v22  ;;  %1605 = vmatprep.subr.bf16.mxu1 %v4519_v27 }
 0x1bb   : > { %1565 = vmatpush1.bf16.msra.mxu0 %v4516_v26  ;;  %1606 = vmatpush1.bf16.msra.mxu1 %v4527_v29 }
 0x1bc   : > { %1566 = vmatprep.subr.bf16.mxu0 %v4523_v28  ;;  %1607 = vmatprep.subr.bf16.mxu1 %v4530_v30 }
 0x1bf   : > { %1567 = vmatpush1.bf16.msra.mxu0 %v4534_v31  ;;  %1608 = vmatpush1.bf16.msra.mxu1 %v4543_v33 }
 0x1c0   : > { %1568 = vmatprep.subr.bf16.mxu0 %v4539_v32  ;;  %1609 = vmatprep.subr.bf16.mxu1 %v4553_v37 }
 0x1c3   : > { %1569 = vmatpush1.bf16.msra.mxu0 %v4550_v36  ;;  %1610 = vmatpush1.bf16.msra.mxu1 %v4561_v39 }
 0x1c4   : > { %1570 = vmatprep.subr.bf16.mxu0 %v4558_v38  ;;  %1611 = vmatprep.subr.bf16.mxu1 %v4564_v40 }
 0x1c7   : > { %1571 = vmatpush1.bf16.msra.mxu0 %v4568_v41  ;;  %1612 = vmatpush1.bf16.msra.mxu1 %v4574_v42 }
 0x1c8   : > { %1681 = vmatprep.subr.bf16.mxu0 %v4444_v3  ;;  %1722 = vmatprep.subr.bf16.mxu1 %v4447_v4  ;;  %v3592_v3 = vld [vmem:[%s3348_s6 + $0x38] sm:$0xff]  ;;  %s3657_s6 = smul.u32 4294967136, %s4269_s16 }
 0x1ca   : > { %s3381_s7 = scalar_lea.vmem [#allocation2], %s3657_s6 }
 0x27d   : > { %v1465_v57 = vpop.f32.mrb[36].mxu0  ;;  %v1506_v58 = vpop.f32.mrb[36].mxu1 }
 0x27e   : > { %v1513_v63 = vadd.f32 %v3589_v60, %v1465_v57  ;;  %v1467_v61 = vpop.f32.mrb[37].mxu0  ;;  %v1508_v1 = vpop.f32.mrb[37].mxu1  ;;  %v1515_v35 = vadd.f32 %v3591_v25, %v1506_v58  ;;  %v4810_v25 = vld [vmem:[%s4359_s11 + $0x2c] ss:$16 sps:$4 sm:$0xff]  }
 0x27f   : > { %v1514_v62 = vadd.f32 %v3590_v0, %v1467_v61  ;;  %v1469_v2 = vpop.f32.mrb[38].mxu0  ;;  %v1510_v5 = vpop.f32.mrb[38].mxu1  ;;  %v1516_v4 = vadd.f32 %v3592_v3, %v1508_v1  ;;  %v4798_v3 = vld [vmem:[%s4359_s11] ss:$16 sps:$4 sm:$0xff]  }
 0x280   : > { %v3593_v7 = vmul.f32 -1.442695, %v1513_v63  ;;  %v1470_v14 = vpop.f32.mrb[39].mxu0  ;;  %v1511_v15 = vpop.f32.mrb[39].mxu1 }
 0x281   : > { %v3594_v24 = vmul.f32 -1.442695, %v1514_v62  ;;  %v3595_v34 = vmul.f32 -1.442695, %v1516_v4  ;;  %v4802_v4 = vld [vmem:[%s4359_s11 + $0x8] ss:$16 sps:$4 sm:$0xff]  }
 0x282   : > { %3939 = vpow2.f32 %v3593_v7 }
 0x283   : > { %3941 = vpow2.f32 %v3594_v24 }
 0x284   : > { %3943 = vpow2.f32 %v3595_v34  ;;  %v4816_v34 = vld [vmem:[%s4359_s11 + $0x20] ss:$16 sps:$4 sm:$0xff]  }
 0x285   : > { %3945 = vtanh.f32 %v1515_v35  ;;  %v4820_v35 = vld [vmem:[%s4359_s11 + $0x28] ss:$16 sps:$4 sm:$0xff]  }
 0x28c   : > { %v3940_v43 = vpop.eup %3939 }
 0x28d   : > { %v3942_v44 = vpop.eup %3941  ;;  %v1521_v45 = vadd.f32 1.0, %v3940_v43  ;;  %v4824_v43 = vld [vmem:[%s4359_s11 + $0x44] ss:$16 sps:$4 sm:$0xff]  }
 0x28e   : > { %v1527_v46 = vadd.f32 1.0, %v3942_v44  ;;  %v3944_v47 = vpop.eup %3943  ;;  %v4828_v44 = vld [vmem:[%s4359_s11 + $0x4c] ss:$16 sps:$4 sm:$0xff]  }
 0x28f   : > { %3947 = vrcp.f32 %v1521_v45  ;;  %v3946_v48 = vpop.eup %3945  ;;  %v1534_v54 = vadd.f32 1.0, %v3944_v47  ;;  %v4832_v45 = vld [vmem:[%s4359_s11 + $0x40] ss:$16 sps:$4 sm:$0xff]   ;;  %v4840_v47 = vld [vmem:[%s4359_s11 + $0x64] ss:$16 sps:$4 sm:$0xff]  }
 0x290   : > { %3949 = vrcp.f32 %v1527_v46  ;;  %v4836_v46 = vld [vmem:[%s4359_s11 + $0x48] ss:$16 sps:$4 sm:$0xff]  }
 0x291   : > { %3951 = vrcp.f32 %v1534_v54  ;;  %v4860_v54 = vld [vmem:[%s4359_s11 + $0x8c] ss:$16 sps:$4 sm:$0xff]  }
 0x299   : > { %v3948_v49 = vpop.eup %3947 }
 0x29a   : > { %v3950_v51 = vpop.eup %3949  ;;  %v1538_v53 = vmul.f32 %v3948_v49, %v3946_v48  ;;  %v4844_v48 = vld [vmem:[%s4359_s11 + $0x6c] ss:$16 sps:$4 sm:$0xff]   ;;  %v4848_v49 = vld [vmem:[%s4359_s11 + $0x60] ss:$16 sps:$4 sm:$0xff]  }
 0x29b   : > { %v1537_v59 = vmul.f32 %v3950_v51, %v4698_v52  ;;  %v3952_v60 = vpop.eup %3951  ;;  %v4852_v51 = vld [vmem:[%s4359_s11 + $0x68] ss:$16 sps:$4 sm:$0xff]  }
 0x29d   : > { %v4741_v56 = vadd.f32 %v1538_v53, %v1537_v59  ;;  %v4856_v53 = vld [vmem:[%s4359_s11 + $0x84] ss:$16 sps:$4 sm:$0xff]   ;;  %v4864_v59 = vld [vmem:[%s4359_s11 + $0x80] ss:$16 sps:$4 sm:$0xff]  }
 0x29f   : > { %3953 = vtanh.f32 %v4741_v56 }
 0x2a9   : > { %v3954_v57 = vpop.eup %3953 }
 0x2aa   : > { %v4744_v58 = vmul.f32 %v3954_v57, %v3952_v60  ;;  %v4872_v60 = vld [vmem:[%s4359_s11 + $0xa4] ss:$16 sps:$4 sm:$0xff]   ;;  %v4876_v57 = vld [vmem:[%s4359_s11 + $0xac] ss:$16 sps:$4 sm:$0xff]  }
 0x2ac   : > { %v1542_v63 = vpack.c.bf16 %v4744_v58, %v4744_v58  ;;  %v1545_v5 = vadd.f32 %v4744_v58, %v4701_v55  ;;  %v4806_v55 = vld [vmem:[%s4359_s11 + $0x24] ss:$16 sps:$4 sm:$0xff]   ;;  %v4880_v58 = vld [vmem:[%s4359_s11 + $0xa0] ss:$16 sps:$4 sm:$0xff]  }
 0x2ae   : > { %1543 = vst [vmem:[#allocation3] sm:$0xf] %v1542_v63  ;;  %v4884_v63 = vld [vmem:[%s4359_s11 + $0xa8] ss:$16 sps:$4 sm:$0xff]  }
 0x2b5   : > { %v1555_v0 = vld [vmem:[#allocation3] sm:$0xf] }
 0x2b6   : > { %1589 = vmatmul.mubr.bf16.vlgmr.msra.gmra.mrb[40].mxu0 %v1555_v0  ;;  %1630 = vmatmul.mubr.bf16.vlgmr.msra.gmra.mrb[40].mxu1 %v1555_v0  ;;  %v4888_v0 = vld [vmem:[%s4359_s11 + $0xc4] ss:$16 sps:$4 sm:$0xff]  }
 0x2b7   : > { %1682 = vmatpush1.bf16.msra.mxu0 %v4451_v6  ;;  %1723 = vmatpush1.bf16.msra.mxu1 %v4460_v9  ;;  %v4781_v6 = vld [vmem:[%s4359_s11 + $0x4] ss:$16 sps:$4 sm:$0xff]  }
 0x2b8   : > { %1683 = vmatprep.subr.bf16.mxu0 %v4456_v8  ;;  %1724 = vmatprep.subr.bf16.mxu1 %v4463_v10  ;;  %v4785_v8 = vld [vmem:[%s4359_s11 + $0xc] ss:$16 sps:$4 sm:$0xff]   ;;  %v3597_v9 = vld [vmem:[%s3352_s8 + $0x40] sm:$0xff] }
 0x2b9   : > { %1713 = vmatprep.mubr.bf16.mxu0 %v4285_v50  ;;  %1754 = vmatprep.mubr.bf16.mxu1 %v4285_v50 }
 0x2bb   : > { %1684 = vmatpush1.bf16.msra.mxu0 %v4467_v11  ;;  %1725 = vmatpush1.bf16.msra.mxu1 %v4475_v13  ;;  %v3598_v13 = vld [vmem:[%s3352_s8 + $0x48] sm:$0xff] }
 0x2bc   : > { %1685 = vmatprep.subr.bf16.mxu0 %v4471_v12  ;;  %1726 = vmatprep.subr.bf16.mxu1 %v4486_v17 }
 0x2bf   : > { %1686 = vmatpush1.bf16.msra.mxu0 %v4482_v16  ;;  %1727 = vmatpush1.bf16.msra.mxu1 %v4493_v19 }
 0x2c0   : > { %1687 = vmatprep.subr.bf16.mxu0 %v4489_v18  ;;  %1728 = vmatprep.subr.bf16.mxu1 %v4496_v20 }
 0x2c3   : > { %1688 = vmatpush1.bf16.msra.mxu0 %v4500_v21  ;;  %1729 = vmatpush1.bf16.msra.mxu1 %v4509_v23 }
 0x2c4   : > { %1689 = vmatprep.subr.bf16.mxu0 %v4505_v22  ;;  %1730 = vmatprep.subr.bf16.mxu1 %v4519_v27  ;;  %v3600_v27 = vld [vmem:[%s3352_s8 + $0x58] sm:$0xff] }
 0x2c7   : > { %1690 = vmatpush1.bf16.msra.mxu0 %v4516_v26  ;;  %1731 = vmatpush1.bf16.msra.mxu1 %v4527_v29  ;;  %v3599_v29 = vld [vmem:[%s3352_s8 + $0x50] sm:$0xff] }
 0x2c8   : > { %1691 = vmatprep.subr.bf16.mxu0 %v4523_v28  ;;  %1732 = vmatprep.subr.bf16.mxu1 %v4530_v30 }
 0x2cb   : > { %1692 = vmatpush1.bf16.msra.mxu0 %v4534_v31  ;;  %1733 = vmatpush1.bf16.msra.mxu1 %v4543_v33 }
 0x2cc   : > { %1693 = vmatprep.subr.bf16.mxu0 %v4539_v32  ;;  %1734 = vmatprep.subr.bf16.mxu1 %v4553_v37 }
 0x2cf   : > { %1694 = vmatpush1.bf16.msra.mxu0 %v4550_v36  ;;  %1735 = vmatpush1.bf16.msra.mxu1 %v4561_v39 }
 0x2d0   : > { %1695 = vmatprep.subr.bf16.mxu0 %v4558_v38  ;;  %1736 = vmatprep.subr.bf16.mxu1 %v4564_v40 }
 0x2d3   : > { %1696 = vmatpush1.bf16.msra.mxu0 %v4568_v41  ;;  %1737 = vmatpush1.bf16.msra.mxu1 %v4574_v42 }
 0x2d4   : > { %1806 = vmatprep.subr.bf16.mxu0 %v4781_v6  ;;  %1847 = vmatprep.subr.bf16.mxu1 %v4785_v8 }
 0x389   : > { %v1590_v10 = vpop.f32.mrb[40].mxu0  ;;  %v1631_v11 = vpop.f32.mrb[40].mxu1 }
 0x38a   : > { %v1638_v12 = vadd.f32 %v3597_v9, %v1590_v10  ;;  %v1592_v16 = vpop.f32.mrb[41].mxu0  ;;  %v1633_v17 = vpop.f32.mrb[41].mxu1  ;;  %v1640_v31 = vadd.f32 %v3599_v29, %v1631_v11  ;;  %v4892_v9 = vld [vmem:[%s4359_s11 + $0xcc] ss:$16 sps:$4 sm:$0xff]   ;;  %v4896_v10 = vld [vmem:[%s4359_s11 + $0xc0] ss:$16 sps:$4 sm:$0xff]  }
 0x38b   : > { %v1639_v18 = vadd.f32 %v3598_v13, %v1592_v16  ;;  %v1594_v19 = vpop.f32.mrb[42].mxu0  ;;  %v1635_v20 = vpop.f32.mrb[42].mxu1  ;;  %v1641_v28 = vadd.f32 %v3600_v27, %v1633_v17  ;;  %v4900_v11 = vld [vmem:[%s4359_s11 + $0xc8] ss:$16 sps:$4 sm:$0xff]   ;;  %v4908_v13 = vld [vmem:[%s4359_s11 + $0xec] ss:$16 sps:$4 sm:$0xff]  }
 0x38c   : > { %v3601_v21 = vmul.f32 -1.442695, %v1638_v12  ;;  %v1595_v22 = vpop.f32.mrb[43].mxu0  ;;  %v1636_v23 = vpop.f32.mrb[43].mxu1  ;;  %v4904_v12 = vld [vmem:[%s4359_s11 + $0xe4] ss:$16 sps:$4 sm:$0xff]  }
 0x38d   : > { %v3602_v26 = vmul.f32 -1.442695, %v1639_v18  ;;  %v3603_v30 = vmul.f32 -1.442695, %v1641_v28  ;;  %v4912_v16 = vld [vmem:[%s4359_s11 + $0xe0] ss:$16 sps:$4 sm:$0xff]  }
 0x38e   : > { %3955 = vpow2.f32 %v3601_v21  ;;  %v4916_v17 = vld [vmem:[%s4359_s11 + $0xe8] ss:$16 sps:$4 sm:$0xff]   ;;  %v3605_v18 = vld [vmem:[%s3356_s10 + $0x60] sm:$0xff] }
 0x38f   : > { %3957 = vpow2.f32 %v3602_v26  ;;  %v3606_v22 = vld [vmem:[%s3356_s10 + $0x68] sm:$0xff] }
 0x390   : > { %3959 = vpow2.f32 %v3603_v30 }
 0x391   : > { %3961 = vtanh.f32 %v1640_v31 }
 0x398   : > { %v3956_v32 = vpop.eup %3955 }
 0x399   : > { %v3958_v33 = vpop.eup %3957  ;;  %v1646_v36 = vadd.f32 1.0, %v3956_v32 }
 0x39a   : > { %v1652_v37 = vadd.f32 1.0, %v3958_v33  ;;  %v3960_v38 = vpop.eup %3959 }
 0x39b   : > { %3963 = vrcp.f32 %v1646_v36  ;;  %v3962_v39 = vpop.eup %3961  ;;  %v1659_v52 = vadd.f32 1.0, %v3960_v38  ;;  %v3608_v36 = vld [vmem:[%s3356_s10 + $0x78] sm:$0xff]  ;;  %v3607_v38 = vld [vmem:[%s3356_s10 + $0x70] sm:$0xff]  ;;  %s3389_s10 = scalar_lea.vmem [#allocation2], %s3673_s9 }
 0x39c   : > { %3965 = vrcp.f32 %v1652_v37 }
 0x39d   : > { %3967 = vrcp.f32 %v1659_v52 }
 0x3a5   : > { %v3964_v40 = vpop.eup %3963 }
 0x3a6   : > { %v3966_v41 = vpop.eup %3965  ;;  %v1663_v42 = vmul.f32 %v3964_v40, %v3962_v39 }
 0x3a7   : > { %v1662_v61 = vmul.f32 %v3966_v41, %v4741_v56  ;;  %v3968_v62 = vpop.eup %3967  ;;  %v4868_v56 = vld [vmem:[%s4359_s11 + $0x88] ss:$16 sps:$4 sm:$0xff]  }
 0x3a9   : > { %v4790_v1 = vadd.f32 %v1663_v42, %v1662_v61 }
 0x3ab   : > { %3969 = vtanh.f32 %v4790_v1 }
 0x3b5   : > { %v3970_v2 = vpop.eup %3969 }
 0x3b6   : > { %v1666_v7 = vmul.f32 %v3970_v2, %v3968_v62 }
 0x3b8   : > { %v1667_v14 = vpack.c.bf16 %v1666_v7, %v1666_v7  ;;  %v4795_v15 = vadd.f32 %v1666_v7, %v1545_v5 }
 0x3ba   : > { %1668 = vst [vmem:[#allocation3] sm:$0xf] %v1667_v14 }
 0x3c1   : > { %v1680_v24 = vld [vmem:[#allocation3] sm:$0xf] }
 0x3c2   : > { %1714 = vmatmul.mubr.bf16.vlgmr.msra.gmra.mrb[44].mxu0 %v1680_v24  ;;  %1755 = vmatmul.mubr.bf16.vlgmr.msra.gmra.mrb[44].mxu1 %v1680_v24 }
 0x3c3   : > { %1807 = vmatpush1.bf16.msra.mxu0 %v4798_v3  ;;  %1848 = vmatpush1.bf16.msra.mxu1 %v4802_v4 }
 0x3c4   : > { %1808 = vmatprep.subr.bf16.mxu0 %v4806_v55  ;;  %1849 = vmatprep.subr.bf16.mxu1 %v4810_v25 }
 0x3c5   : > { %1838 = vmatprep.mubr.bf16.mxu0 %v4285_v50  ;;  %1879 = vmatprep.mubr.bf16.mxu1 %v4285_v50 }
 0x3c7   : > { %1809 = vmatpush1.bf16.msra.mxu0 %v4816_v34  ;;  %1850 = vmatpush1.bf16.msra.mxu1 %v4820_v35 }
 0x3c8   : > { %1810 = vmatprep.subr.bf16.mxu0 %v4824_v43  ;;  %1851 = vmatprep.subr.bf16.mxu1 %v4828_v44 }
 0x3cb   : > { %1811 = vmatpush1.bf16.msra.mxu0 %v4832_v45  ;;  %1852 = vmatpush1.bf16.msra.mxu1 %v4836_v46 }
 0x3cc   : > { %1812 = vmatprep.subr.bf16.mxu0 %v4840_v47  ;;  %1853 = vmatprep.subr.bf16.mxu1 %v4844_v48 }
 0x3cf   : > { %1813 = vmatpush1.bf16.msra.mxu0 %v4848_v49  ;;  %1854 = vmatpush1.bf16.msra.mxu1 %v4852_v51 }
 0x3d0   : > { %1814 = vmatprep.subr.bf16.mxu0 %v4856_v53  ;;  %1855 = vmatprep.subr.bf16.mxu1 %v4860_v54 }
 0x3d3   : > { %1815 = vmatpush1.bf16.msra.mxu0 %v4864_v59  ;;  %1856 = vmatpush1.bf16.msra.mxu1 %v4868_v56 }
 0x3d4   : > { %1816 = vmatprep.subr.bf16.mxu0 %v4872_v60  ;;  %1857 = vmatprep.subr.bf16.mxu1 %v4876_v57 }
 0x3d7   : > { %1817 = vmatpush1.bf16.msra.mxu0 %v4880_v58  ;;  %1858 = vmatpush1.bf16.msra.mxu1 %v4884_v63 }
 0x3d8   : > { %1818 = vmatprep.subr.bf16.mxu0 %v4888_v0  ;;  %1859 = vmatprep.subr.bf16.mxu1 %v4892_v9 }
 0x3db   : > { %1819 = vmatpush1.bf16.msra.mxu0 %v4896_v10  ;;  %1860 = vmatpush1.bf16.msra.mxu1 %v4900_v11 }
 0x3dc   : > { %1820 = vmatprep.subr.bf16.mxu0 %v4904_v12  ;;  %1861 = vmatprep.subr.bf16.mxu1 %v4908_v13 }
 0x3df   : > { %1821 = vmatpush1.bf16.msra.mxu0 %v4912_v16  ;;  %1862 = vmatpush1.bf16.msra.mxu1 %v4916_v17 }
 0x3e0   : > { %1931 = vmatprep.subr.bf16.mxu0 %v4781_v6  ;;  %1972 = vmatprep.subr.bf16.mxu1 %v4785_v8 }
 0x495   : > { %v1715_v19 = vpop.f32.mrb[44].mxu0  ;;  %v1756_v20 = vpop.f32.mrb[44].mxu1 }
 0x496   : > { %v1763_v21 = vadd.f32 %v3605_v18, %v1715_v19  ;;  %v1717_v23 = vpop.f32.mrb[45].mxu0  ;;  %v1758_v26 = vpop.f32.mrb[45].mxu1  ;;  %v1765_v40 = vadd.f32 %v3607_v38, %v1756_v20 }
 0x497   : > { %v1764_v27 = vadd.f32 %v3606_v22, %v1717_v23  ;;  %v1719_v28 = vpop.f32.mrb[46].mxu0  ;;  %v1760_v29 = vpop.f32.mrb[46].mxu1  ;;  %v1766_v37 = vadd.f32 %v3608_v36, %v1758_v26 }
 0x498   : > { %v3609_v30 = vmul.f32 -1.442695, %v1763_v21  ;;  %v1720_v31 = vpop.f32.mrb[47].mxu0  ;;  %v1761_v32 = vpop.f32.mrb[47].mxu1 }
 0x499   : > { %v3610_v33 = vmul.f32 -1.442695, %v1764_v27  ;;  %v3611_v39 = vmul.f32 -1.442695, %v1766_v37 }
 0x49a   : > { %3971 = vpow2.f32 %v3609_v30  ;;  %v3614_v30 = vld [vmem:[%s3360_s13 + $0x88] sm:$0xff] }
 0x49b   : > { %3973 = vpow2.f32 %v3610_v33 }
 0x49c   : > { %3975 = vpow2.f32 %v3611_v39 }
 0x49d   : > { %3977 = vtanh.f32 %v1765_v40 }
 0x4a4   : > { %v3972_v41 = vpop.eup %3971 }
 0x4a5   : > { %v3974_v42 = vpop.eup %3973  ;;  %v1771_v52 = vadd.f32 1.0, %v3972_v41 }
 0x4a6   : > { %v1777_v61 = vadd.f32 1.0, %v3974_v42  ;;  %v3976_v62 = vpop.eup %3975  ;;  %v3616_v42 = vld [vmem:[%s3360_s13 + $0x98] sm:$0xff] }
 0x4a7   : > { %3979 = vrcp.f32 %v1771_v52  ;;  %v3978_v2 = vpop.eup %3977  ;;  %v1784_v24 = vadd.f32 1.0, %v3976_v62 }
 0x4a8   : > { %3981 = vrcp.f32 %v1777_v61  ;;  %v3615_v61 = vld [vmem:[%s3360_s13 + $0x90] sm:$0xff] }
 0x4a9   : > { %3983 = vrcp.f32 %v1784_v24 }
 0x4b1   : > { %v3980_v5 = vpop.eup %3979 }
 0x4b2   : > { %v3982_v7 = vpop.eup %3981  ;;  %v1788_v14 = vmul.f32 %v3980_v5, %v3978_v2 }
 0x4b3   : > { %v1787_v18 = vmul.f32 %v3982_v7, %v4790_v1  ;;  %v3984_v20 = vpop.eup %3983  ;;  %v3613_v1 = vld [vmem:[%s3360_s13 + $0x80] sm:$0xff]  ;;  %s3393_s13 = scalar_lea.vmem [#allocation2], %s3681_s12 }
 0x4b5   : > { %v4923_v19 = vadd.f32 %v1788_v14, %v1787_v18 }
 0x4b7   : > { %3985 = vtanh.f32 %v4923_v19 }
 0x4c1   : > { %v3986_v21 = vpop.eup %3985 }
 0x4c2   : > { %v1791_v22 = vmul.f32 %v3986_v21, %v3984_v20 }
 0x4c4   : > { %v1792_v23 = vpack.c.bf16 %v1791_v22, %v1791_v22  ;;  %v4927_v26 = vadd.f32 %v1791_v22, %v4795_v15 }
 0x4c6   : > { %1793 = vst [vmem:[#allocation3] sm:$0xf] %v1792_v23 }
 0x4cd   : > { %v1805_v27 = vld [vmem:[#allocation3] sm:$0xf] }
 0x4ce   : > { %1839 = vmatmul.mubr.bf16.vlgmr.msra.gmra.mrb[48].mxu0 %v1805_v27  ;;  %1880 = vmatmul.mubr.bf16.vlgmr.msra.gmra.mrb[48].mxu1 %v1805_v27 }
 0x4cf   : > { %1932 = vmatpush1.bf16.msra.mxu0 %v4798_v3  ;;  %1973 = vmatpush1.bf16.msra.mxu1 %v4802_v4 }
 0x4d0   : > { %1933 = vmatprep.subr.bf16.mxu0 %v4806_v55  ;;  %1974 = vmatprep.subr.bf16.mxu1 %v4810_v25 }
 0x4d1   : > { %1963 = vmatprep.mubr.bf16.mxu0 %v4285_v50  ;;  %2004 = vmatprep.mubr.bf16.mxu1 %v4285_v50 }
 0x4d3   : > { %1934 = vmatpush1.bf16.msra.mxu0 %v4816_v34  ;;  %1975 = vmatpush1.bf16.msra.mxu1 %v4820_v35 }
 0x4d4   : > { %1935 = vmatprep.subr.bf16.mxu0 %v4824_v43  ;;  %1976 = vmatprep.subr.bf16.mxu1 %v4828_v44 }
 0x4d7   : > { %1936 = vmatpush1.bf16.msra.mxu0 %v4832_v45  ;;  %1977 = vmatpush1.bf16.msra.mxu1 %v4836_v46 }
 0x4d8   : > { %1937 = vmatprep.subr.bf16.mxu0 %v4840_v47  ;;  %1978 = vmatprep.subr.bf16.mxu1 %v4844_v48 }
 0x4db   : > { %1938 = vmatpush1.bf16.msra.mxu0 %v4848_v49  ;;  %1979 = vmatpush1.bf16.msra.mxu1 %v4852_v51 }
 0x4dc   : > { %1939 = vmatprep.subr.bf16.mxu0 %v4856_v53  ;;  %1980 = vmatprep.subr.bf16.mxu1 %v4860_v54 }
 0x4df   : > { %1940 = vmatpush1.bf16.msra.mxu0 %v4864_v59  ;;  %1981 = vmatpush1.bf16.msra.mxu1 %v4868_v56 }
 0x4e0   : > { %1941 = vmatprep.subr.bf16.mxu0 %v4872_v60  ;;  %1982 = vmatprep.subr.bf16.mxu1 %v4876_v57 }
 0x4e3   : > { %1942 = vmatpush1.bf16.msra.mxu0 %v4880_v58  ;;  %1983 = vmatpush1.bf16.msra.mxu1 %v4884_v63 }
 0x4e4   : > { %1943 = vmatprep.subr.bf16.mxu0 %v4888_v0  ;;  %1984 = vmatprep.subr.bf16.mxu1 %v4892_v9 }
 0x4e7   : > { %1944 = vmatpush1.bf16.msra.mxu0 %v4896_v10  ;;  %1985 = vmatpush1.bf16.msra.mxu1 %v4900_v11 }
 0x4e8   : > { %1945 = vmatprep.subr.bf16.mxu0 %v4904_v12  ;;  %1986 = vmatprep.subr.bf16.mxu1 %v4908_v13 }
 0x4eb   : > { %1946 = vmatpush1.bf16.msra.mxu0 %v4912_v16  ;;  %1987 = vmatpush1.bf16.msra.mxu1 %v4916_v17 }
 0x4ec   : > { %2056 = vmatprep.subr.bf16.mxu0 %v4781_v6  ;;  %2097 = vmatprep.subr.bf16.mxu1 %v4785_v8 }
 0x5a1   : > { %v1840_v15 = vpop.f32.mrb[48].mxu0  ;;  %v1881_v28 = vpop.f32.mrb[48].mxu1 }
 0x5a2   : > { %v1888_v29 = vadd.f32 %v3613_v1, %v1840_v15  ;;  %v1842_v31 = vpop.f32.mrb[49].mxu0  ;;  %v1883_v32 = vpop.f32.mrb[49].mxu1  ;;  %v1890_v2 = vadd.f32 %v3615_v61, %v1881_v28 }
 0x5a3   : > { %v1889_v33 = vadd.f32 %v3614_v30, %v1842_v31  ;;  %v1844_v36 = vpop.f32.mrb[50].mxu0  ;;  %v1885_v37 = vpop.f32.mrb[50].mxu1  ;;  %v1891_v52 = vadd.f32 %v3616_v42, %v1883_v32 }
 0x5a4   : > { %v3617_v38 = vmul.f32 -1.442695, %v1888_v29  ;;  %v1845_v39 = vpop.f32.mrb[51].mxu0  ;;  %v1886_v40 = vpop.f32.mrb[51].mxu1 }
 0x5a5   : > { %v3618_v41 = vmul.f32 -1.442695, %v1889_v33  ;;  %v3619_v62 = vmul.f32 -1.442695, %v1891_v52 }
 0x5a6   : > { %3987 = vpow2.f32 %v3617_v38  ;;  %v3622_v38 = vld [vmem:[%s3364_s22 + $0xa8] sm:$0xff] }
 0x5a7   : > { %3989 = vpow2.f32 %v3618_v41 }
 0x5a8   : > { %3991 = vpow2.f32 %v3619_v62 }
 0x5a9   : > { %3993 = vtanh.f32 %v1890_v2 }
 0x5b0   : > { %v3988_v5 = vpop.eup %3987 }
 0x5b1   : > { %v3990_v7 = vpop.eup %3989  ;;  %v1896_v14 = vadd.f32 1.0, %v3988_v5 }
 0x5b2   : > { %v1902_v24 = vadd.f32 1.0, %v3990_v7  ;;  %v3992_v18 = vpop.eup %3991  ;;  %v3624_v7 = vld [vmem:[%s3364_s22 + $0xb8] sm:$0xff] }
 0x5b3   : > { %3995 = vrcp.f32 %v1896_v14  ;;  %v3994_v20 = vpop.eup %3993  ;;  %v1909_v27 = vadd.f32 1.0, %v3992_v18 }
 0x5b4   : > { %3997 = vrcp.f32 %v1902_v24  ;;  %v3623_v24 = vld [vmem:[%s3364_s22 + $0xb0] sm:$0xff] }
 0x5b5   : > { %3999 = vrcp.f32 %v1909_v27 }
 0x5bd   : > { %v3996_v21 = vpop.eup %3995 }
 0x5be   : > { %v3998_v22 = vpop.eup %3997  ;;  %v1913_v23 = vmul.f32 %v3996_v21, %v3994_v20 }
 0x5bf   : > { %v1912_v1 = vmul.f32 %v3998_v22, %v4923_v19  ;;  %v4000_v28 = vpop.eup %3999  ;;  %v3621_v19 = vld [vmem:[%s3364_s22 + $0xa0] sm:$0xff]  ;;  %s3397_s22 = scalar_lea.vmem [#allocation2], %s3689_s14 }
 0x5c1   : > { %v4965_v15 = vadd.f32 %v1913_v23, %v1912_v1 }
 0x5c3   : > { %4001 = vtanh.f32 %v4965_v15 }
 0x5cd   : > { %v4002_v29 = vpop.eup %4001 }
 0x5ce   : > { %v1916_v30 = vmul.f32 %v4002_v29, %v4000_v28 }
 0x5d0   : > { %v1917_v31 = vpack.c.bf16 %v1916_v30, %v1916_v30  ;;  %v4969_v32 = vadd.f32 %v1916_v30, %v4927_v26 }
 0x5d2   : > { %1918 = vst [vmem:[#allocation3] sm:$0xf] %v1917_v31 }
 0x5d9   : > { %v1930_v33 = vld [vmem:[#allocation3] sm:$0xf] }
 0x5da   : > { %1964 = vmatmul.mubr.bf16.vlgmr.msra.gmra.mrb[52].mxu0 %v1930_v33  ;;  %2005 = vmatmul.mubr.bf16.vlgmr.msra.gmra.mrb[52].mxu1 %v1930_v33 }
 0x5db   : > { %2057 = vmatpush1.bf16.msra.mxu0 %v4798_v3  ;;  %2098 = vmatpush1.bf16.msra.mxu1 %v4802_v4 }
 0x5dc   : > { %2058 = vmatprep.subr.bf16.mxu0 %v4806_v55  ;;  %2099 = vmatprep.subr.bf16.mxu1 %v4810_v25 }
 0x5dd   : > { %2088 = vmatprep.mubr.bf16.mxu0 %v4285_v50  ;;  %2129 = vmatprep.mubr.bf16.mxu1 %v4285_v50 }
 0x5df   : > { %2059 = vmatpush1.bf16.msra.mxu0 %v4816_v34  ;;  %2100 = vmatpush1.bf16.msra.mxu1 %v4820_v35 }
 0x5e0   : > { %2060 = vmatprep.subr.bf16.mxu0 %v4824_v43  ;;  %2101 = vmatprep.subr.bf16.mxu1 %v4828_v44 }
 0x5e3   : > { %2061 = vmatpush1.bf16.msra.mxu0 %v4832_v45  ;;  %2102 = vmatpush1.bf16.msra.mxu1 %v4836_v46 }
 0x5e4   : > { %2062 = vmatprep.subr.bf16.mxu0 %v4840_v47  ;;  %2103 = vmatprep.subr.bf16.mxu1 %v4844_v48 }
 0x5e7   : > { %2063 = vmatpush1.bf16.msra.mxu0 %v4848_v49  ;;  %2104 = vmatpush1.bf16.msra.mxu1 %v4852_v51 }
 0x5e8   : > { %2064 = vmatprep.subr.bf16.mxu0 %v4856_v53  ;;  %2105 = vmatprep.subr.bf16.mxu1 %v4860_v54 }
 0x5eb   : > { %2065 = vmatpush1.bf16.msra.mxu0 %v4864_v59  ;;  %2106 = vmatpush1.bf16.msra.mxu1 %v4868_v56 }
 0x5ec   : > { %2066 = vmatprep.subr.bf16.mxu0 %v4872_v60  ;;  %2107 = vmatprep.subr.bf16.mxu1 %v4876_v57 }
 0x5ef   : > { %2067 = vmatpush1.bf16.msra.mxu0 %v4880_v58  ;;  %2108 = vmatpush1.bf16.msra.mxu1 %v4884_v63 }
 0x5f0   : > { %2068 = vmatprep.subr.bf16.mxu0 %v4888_v0  ;;  %2109 = vmatprep.subr.bf16.mxu1 %v4892_v9 }
 0x5f3   : > { %2069 = vmatpush1.bf16.msra.mxu0 %v4896_v10  ;;  %2110 = vmatpush1.bf16.msra.mxu1 %v4900_v11 }
 0x5f4   : > { %2070 = vmatprep.subr.bf16.mxu0 %v4904_v12  ;;  %2111 = vmatprep.subr.bf16.mxu1 %v4908_v13 }
 0x5f7   : > { %2071 = vmatpush1.bf16.msra.mxu0 %v4912_v16  ;;  %2112 = vmatpush1.bf16.msra.mxu1 %v4916_v17 }
 0x5f8   : > { %2180 = vmatprep.subr.bf16.mxu0 %v4781_v6  ;;  %2221 = vmatprep.subr.bf16.mxu1 %v4785_v8 }
 0x6ad   : > { %v1965_v26 = vpop.f32.mrb[52].mxu0  ;;  %v2006_v36 = vpop.f32.mrb[52].mxu1 }
 0x6ae   : > { %v2013_v37 = vadd.f32 %v3621_v19, %v1965_v26  ;;  %v1967_v39 = vpop.f32.mrb[53].mxu0  ;;  %v2008_v40 = vpop.f32.mrb[53].mxu1  ;;  %v2015_v20 = vadd.f32 %v3623_v24, %v2006_v36 }
 0x6af   : > { %v2014_v41 = vadd.f32 %v3622_v38, %v1967_v39  ;;  %v1969_v42 = vpop.f32.mrb[54].mxu0  ;;  %v2010_v52 = vpop.f32.mrb[54].mxu1  ;;  %v2016_v14 = vadd.f32 %v3624_v7, %v2008_v40 }
 0x6b0   : > { %v3625_v61 = vmul.f32 -1.442695, %v2013_v37  ;;  %v1970_v62 = vpop.f32.mrb[55].mxu0  ;;  %v2011_v2 = vpop.f32.mrb[55].mxu1 }
 0x6b1   : > { %v3626_v5 = vmul.f32 -1.442695, %v2014_v41  ;;  %v3627_v18 = vmul.f32 -1.442695, %v2016_v14 }
 0x6b2   : > { %4003 = vpow2.f32 %v3625_v61  ;;  %v3630_v61 = vld [vmem:[%s3368_s24 + $0xc8] sm:$0xff] }
 0x6b3   : > { %4005 = vpow2.f32 %v3626_v5 }
 0x6b4   : > { %4007 = vpow2.f32 %v3627_v18 }
 0x6b5   : > { %4009 = vtanh.f32 %v2015_v20 }
 0x6bc   : > { %v4004_v21 = vpop.eup %4003 }
 0x6bd   : > { %v4006_v22 = vpop.eup %4005  ;;  %v2021_v23 = vadd.f32 1.0, %v4004_v21 }
 0x6be   : > { %v2027_v27 = vadd.f32 1.0, %v4006_v22  ;;  %v4008_v1 = vpop.eup %4007  ;;  %v3632_v22 = vld [vmem:[%s3368_s24 + $0xd8] sm:$0xff] }
 0x6bf   : > { %4011 = vrcp.f32 %v2021_v23  ;;  %v4010_v28 = vpop.eup %4009  ;;  %v2034_v33 = vadd.f32 1.0, %v4008_v1 }
 0x6c0   : > { %4013 = vrcp.f32 %v2027_v27  ;;  %v3631_v27 = vld [vmem:[%s3368_s24 + $0xd0] sm:$0xff] }
 0x6c1   : > { %4015 = vrcp.f32 %v2034_v33 }
 0x6c9   : > { %v4012_v29 = vpop.eup %4011 }
 0x6ca   : > { %v4014_v30 = vpop.eup %4013  ;;  %v2038_v31 = vmul.f32 %v4012_v29, %v4010_v28 }
 0x6cb   : > { %v2037_v19 = vmul.f32 %v4014_v30, %v4965_v15  ;;  %v4016_v36 = vpop.eup %4015  ;;  %v3629_v15 = vld [vmem:[%s3368_s24 + $0xc0] sm:$0xff]  ;;  %s3401_s24 = scalar_lea.vmem [#allocation2], %s3697_s23 }
 0x6cd   : > { %v5007_v26 = vadd.f32 %v2038_v31, %v2037_v19 }
 0x6cf   : > { %4017 = vtanh.f32 %v5007_v26 }
 0x6d9   : > { %v4018_v37 = vpop.eup %4017 }
 0x6da   : > { %v2041_v38 = vmul.f32 %v4018_v37, %v4016_v36 }
 0x6dc   : > { %v2042_v39 = vpack.c.bf16 %v2041_v38, %v2041_v38  ;;  %v5011_v40 = vadd.f32 %v2041_v38, %v4969_v32 }
 0x6de   : > { %2043 = vst [vmem:[#allocation3] sm:$0xf] %v2042_v39 }
 0x6e5   : > { %v2055_v41 = vld [vmem:[#allocation3] sm:$0xf] }
 0x6e6   : > { %2089 = vmatmul.mubr.bf16.vlgmr.msra.gmra.mrb[56].mxu0 %v2055_v41  ;;  %2130 = vmatmul.mubr.bf16.vlgmr.msra.gmra.mrb[56].mxu1 %v2055_v41 }
 0x6e7   : > { %2181 = vmatpush1.bf16.msra.mxu0 %v4798_v3  ;;  %2222 = vmatpush1.bf16.msra.mxu1 %v4802_v4 }
 0x6e8   : > { %2182 = vmatprep.subr.bf16.mxu0 %v4806_v55  ;;  %2223 = vmatprep.subr.bf16.mxu1 %v4810_v25 }
 0x6e9   : > { %2212 = vmatprep.mubr.bf16.mxu0 %v4285_v50  ;;  %2253 = vmatprep.mubr.bf16.mxu1 %v4285_v50 }
 0x6eb   : > { %2183 = vmatpush1.bf16.msra.mxu0 %v4816_v34  ;;  %2224 = vmatpush1.bf16.msra.mxu1 %v4820_v35 }
 0x6ec   : > { %2184 = vmatprep.subr.bf16.mxu0 %v4824_v43  ;;  %2225 = vmatprep.subr.bf16.mxu1 %v4828_v44 }
 0x6ef   : > { %2185 = vmatpush1.bf16.msra.mxu0 %v4832_v45  ;;  %2226 = vmatpush1.bf16.msra.mxu1 %v4836_v46 }
 0x6f0   : > { %2186 = vmatprep.subr.bf16.mxu0 %v4840_v47  ;;  %2227 = vmatprep.subr.bf16.mxu1 %v4844_v48 }
 0x6f3   : > { %2187 = vmatpush1.bf16.msra.mxu0 %v4848_v49  ;;  %2228 = vmatpush1.bf16.msra.mxu1 %v4852_v51 }
 0x6f4   : > { %2188 = vmatprep.subr.bf16.mxu0 %v4856_v53  ;;  %2229 = vmatprep.subr.bf16.mxu1 %v4860_v54 }
 0x6f7   : > { %2189 = vmatpush1.bf16.msra.mxu0 %v4864_v59  ;;  %2230 = vmatpush1.bf16.msra.mxu1 %v4868_v56 }
 0x6f8   : > { %2190 = vmatprep.subr.bf16.mxu0 %v4872_v60  ;;  %2231 = vmatprep.subr.bf16.mxu1 %v4876_v57 }
 0x6fb   : > { %2191 = vmatpush1.bf16.msra.mxu0 %v4880_v58  ;;  %2232 = vmatpush1.bf16.msra.mxu1 %v4884_v63 }
 0x6fc   : > { %2192 = vmatprep.subr.bf16.mxu0 %v4888_v0  ;;  %2233 = vmatprep.subr.bf16.mxu1 %v4892_v9 }
 0x6ff   : > { %2193 = vmatpush1.bf16.msra.mxu0 %v4896_v10  ;;  %2234 = vmatpush1.bf16.msra.mxu1 %v4900_v11 }
 0x700   : > { %2194 = vmatprep.subr.bf16.mxu0 %v4904_v12  ;;  %2235 = vmatprep.subr.bf16.mxu1 %v4908_v13 }
 0x703   : > { %2195 = vmatpush1.bf16.msra.mxu0 %v4912_v16  ;;  %2236 = vmatpush1.bf16.msra.mxu1 %v4916_v17 }
 0x704   : > { %2304 = vmatprep.subr.bf16.mxu0 %v4781_v6  ;;  %2345 = vmatprep.subr.bf16.mxu1 %v4785_v8 }
 0x7b9   : > { %v2090_v32 = vpop.f32.mrb[56].mxu0  ;;  %v2131_v42 = vpop.f32.mrb[56].mxu1 }
 0x7ba   : > { %v2138_v52 = vadd.f32 %v3629_v15, %v2090_v32  ;;  %v2092_v62 = vpop.f32.mrb[57].mxu0  ;;  %v2133_v2 = vpop.f32.mrb[57].mxu1  ;;  %v2140_v28 = vadd.f32 %v3631_v27, %v2131_v42 }
 0x7bb   : > { %v2139_v5 = vadd.f32 %v3630_v61, %v2092_v62  ;;  %v2094_v7 = vpop.f32.mrb[58].mxu0  ;;  %v2135_v14 = vpop.f32.mrb[58].mxu1  ;;  %v2141_v23 = vadd.f32 %v3632_v22, %v2133_v2 }
 0x7bc   : > { %v3633_v24 = vmul.f32 -1.442695, %v2138_v52  ;;  %v2095_v18 = vpop.f32.mrb[59].mxu0  ;;  %v2136_v20 = vpop.f32.mrb[59].mxu1 }
 0x7bd   : > { %v3634_v21 = vmul.f32 -1.442695, %v2139_v5  ;;  %v3635_v1 = vmul.f32 -1.442695, %v2141_v23 }
 0x7be   : > { %4019 = vpow2.f32 %v3633_v24  ;;  %v3638_v24 = vld [vmem:[%s3371_s27 + $0xe8] sm:$0xff] }
 0x7bf   : > { %4021 = vpow2.f32 %v3634_v21 }
 0x7c0   : > { %4023 = vpow2.f32 %v3635_v1 }
 0x7c1   : > { %4025 = vtanh.f32 %v2140_v28 }
 0x7c8   : > { %v4020_v29 = vpop.eup %4019 }
 0x7c9   : > { %v4022_v30 = vpop.eup %4021  ;;  %v2146_v31 = vadd.f32 1.0, %v4020_v29 }
 0x7ca   : > { %v2152_v33 = vadd.f32 1.0, %v4022_v30  ;;  %v4024_v19 = vpop.eup %4023  ;;  %v3640_v30 = vld [vmem:[%s3371_s27 + $0xf8] sm:$0xff] }
 0x7cb   : > { %4027 = vrcp.f32 %v2146_v31  ;;  %v4026_v36 = vpop.eup %4025  ;;  %v2159_v41 = vadd.f32 1.0, %v4024_v19 }
 0x7cc   : > { %4029 = vrcp.f32 %v2152_v33  ;;  %v3639_v33 = vld [vmem:[%s3371_s27 + $0xf0] sm:$0xff] }
 0x7cd   : > { %4031 = vrcp.f32 %v2159_v41 }
 0x7d5   : > { %v4028_v37 = vpop.eup %4027 }
 0x7d6   : > { %v4030_v38 = vpop.eup %4029  ;;  %v2163_v39 = vmul.f32 %v4028_v37, %v4026_v36 }
 0x7d7   : > { %v2162_v15 = vmul.f32 %v4030_v38, %v5007_v26  ;;  %v4032_v42 = vpop.eup %4031  ;;  %v3637_v26 = vld [vmem:[%s3371_s27 + $0xe0] sm:$0xff] }
 0x7d9   : > { %v5049_v32 = vadd.f32 %v2163_v39, %v2162_v15 }
 0x7db   : > { %4033 = vtanh.f32 %v5049_v32 }
 0x7e5   : > { %v4034_v52 = vpop.eup %4033 }
 0x7e6   : > { %v2166_v61 = vmul.f32 %v4034_v52, %v4032_v42 }
 0x7e8   : > { %v2167_v62 = vpack.c.bf16 %v2166_v61, %v2166_v61  ;;  %v5053_v2 = vadd.f32 %v2166_v61, %v5011_v40 }
 0x7ea   : > { %2168 = vst [vmem:[#allocation3] sm:$0xf] %v2167_v62 }
 0x7f1   : > { %v2179_v5 = vld [vmem:[#allocation3] sm:$0xf] }
 0x7f2   : > { %2213 = vmatmul.mubr.bf16.vlgmr.msra.gmra.mrb[60].mxu0 %v2179_v5  ;;  %2254 = vmatmul.mubr.bf16.vlgmr.msra.gmra.mrb[60].mxu1 %v2179_v5 }
 0x7f3   : > { %2305 = vmatpush1.bf16.msra.mxu0 %v4798_v3  ;;  %2346 = vmatpush1.bf16.msra.mxu1 %v4802_v4 }
 0x7f4   : > { %2306 = vmatprep.subr.bf16.mxu0 %v4806_v55  ;;  %2347 = vmatprep.subr.bf16.mxu1 %v4810_v25 }
 0x7f5   : > { %2336 = vmatprep.mubr.bf16.mxu0 %v4285_v50  ;;  %2377 = vmatprep.mubr.bf16.mxu1 %v4285_v50 }
 0x7f7   : > { %2307 = vmatpush1.bf16.msra.mxu0 %v4816_v34  ;;  %2348 = vmatpush1.bf16.msra.mxu1 %v4820_v35 }
 0x7f8   : > { %2308 = vmatprep.subr.bf16.mxu0 %v4824_v43  ;;  %2349 = vmatprep.subr.bf16.mxu1 %v4828_v44 }
 0x7fb   : > { %2309 = vmatpush1.bf16.msra.mxu0 %v4832_v45  ;;  %2350 = vmatpush1.bf16.msra.mxu1 %v4836_v46 }
 0x7fc   : > { %2310 = vmatprep.subr.bf16.mxu0 %v4840_v47  ;;  %2351 = vmatprep.subr.bf16.mxu1 %v4844_v48 }
 0x7ff   : > { %2311 = vmatpush1.bf16.msra.mxu0 %v4848_v49  ;;  %2352 = vmatpush1.bf16.msra.mxu1 %v4852_v51 }
 0x800   : > { %2312 = vmatprep.subr.bf16.mxu0 %v4856_v53  ;;  %2353 = vmatprep.subr.bf16.mxu1 %v4860_v54 }
 0x803   : > { %2313 = vmatpush1.bf16.msra.mxu0 %v4864_v59  ;;  %2354 = vmatpush1.bf16.msra.mxu1 %v4868_v56 }
 0x804   : > { %2314 = vmatprep.subr.bf16.mxu0 %v4872_v60  ;;  %2355 = vmatprep.subr.bf16.mxu1 %v4876_v57 }
 0x807   : > { %2315 = vmatpush1.bf16.msra.mxu0 %v4880_v58  ;;  %2356 = vmatpush1.bf16.msra.mxu1 %v4884_v63 }
 0x808   : > { %2316 = vmatprep.subr.bf16.mxu0 %v4888_v0  ;;  %2357 = vmatprep.subr.bf16.mxu1 %v4892_v9 }
 0x80b   : > { %2317 = vmatpush1.bf16.msra.mxu0 %v4896_v10  ;;  %2358 = vmatpush1.bf16.msra.mxu1 %v4900_v11 }
 0x80c   : > { %2318 = vmatprep.subr.bf16.mxu0 %v4904_v12  ;;  %2359 = vmatprep.subr.bf16.mxu1 %v4908_v13 }
 0x80f   : > { %2319 = vmatpush1.bf16.msra.mxu0 %v4912_v16  ;;  %2360 = vmatpush1.bf16.msra.mxu1 %v4916_v17 }
 0x810   : > { %2429 = vmatprep.subr.bf16.mxu0 %v4781_v6  ;;  %2470 = vmatprep.subr.bf16.mxu1 %v4785_v8 }
 0x8c5   : > { %v2214_v40 = vpop.f32.mrb[60].mxu0  ;;  %v2255_v7 = vpop.f32.mrb[60].mxu1 }
 0x8c6   : > { %v2262_v14 = vadd.f32 %v3637_v26, %v2214_v40  ;;  %v2216_v18 = vpop.f32.mrb[61].mxu0  ;;  %v2257_v20 = vpop.f32.mrb[61].mxu1  ;;  %v2264_v36 = vadd.f32 %v3639_v33, %v2255_v7 }
 0x8c7   : > { %v2263_v21 = vadd.f32 %v3638_v24, %v2216_v18  ;;  %v2218_v22 = vpop.f32.mrb[62].mxu0  ;;  %v2259_v23 = vpop.f32.mrb[62].mxu1  ;;  %v2265_v31 = vadd.f32 %v3640_v30, %v2257_v20 }
 0x8c8   : > { %v3641_v27 = vmul.f32 -1.442695, %v2262_v14  ;;  %v2219_v1 = vpop.f32.mrb[63].mxu0  ;;  %v2260_v28 = vpop.f32.mrb[63].mxu1 }
 0x8c9   : > { %v3642_v29 = vmul.f32 -1.442695, %v2263_v21  ;;  %v3643_v19 = vmul.f32 -1.442695, %v2265_v31 }
 0x8ca   : > { %4035 = vpow2.f32 %v3641_v27  ;;  %v2300_v27 = vld [vmem:[%s2298_s15 + $0x8] sm:$0xff] }
 0x8cb   : > { %4037 = vpow2.f32 %v3642_v29 }
 0x8cc   : > { %4039 = vpow2.f32 %v3643_v19 }
 0x8cd   : > { %4041 = vtanh.f32 %v2264_v36 }
 0x8d4   : > { %v4036_v37 = vpop.eup %4035 }
 0x8d5   : > { %v4038_v38 = vpop.eup %4037  ;;  %v2270_v39 = vadd.f32 1.0, %v4036_v37 }
 0x8d6   : > { %v2276_v41 = vadd.f32 1.0, %v4038_v38  ;;  %v4040_v15 = vpop.eup %4039  ;;  %v2301_v38 = vld [vmem:[%s2298_s15 + $0x10] sm:$0xff] }
 0x8d7   : > { %4043 = vrcp.f32 %v2270_v39  ;;  %v4042_v42 = vpop.eup %4041  ;;  %v2283_v5 = vadd.f32 1.0, %v4040_v15 }
 0x8d8   : > { %4045 = vrcp.f32 %v2276_v41 }
 0x8d9   : > { %4047 = vrcp.f32 %v2283_v5 }
 0x8e1   : > { %v4044_v52 = vpop.eup %4043 }
 0x8e2   : > { %v4046_v61 = vpop.eup %4045  ;;  %v2287_v62 = vmul.f32 %v4044_v52, %v4042_v42 }
 0x8e3   : > { %v2286_v26 = vmul.f32 %v4046_v61, %v5049_v32  ;;  %v4048_v7 = vpop.eup %4047  ;;  %v2299_v32 = vld [vmem:[%s2298_s15] sm:$0xff] }
 0x8e5   : > { %v5091_v40 = vadd.f32 %v2287_v62, %v2286_v26 }
 0x8e7   : > { %4049 = vtanh.f32 %v5091_v40 }
 0x8f1   : > { %v4050_v14 = vpop.eup %4049 }
 0x8f2   : > { %v2290_v24 = vmul.f32 %v4050_v14, %v4048_v7 }
 0x8f4   : > { %v2291_v18 = vpack.c.bf16 %v2290_v24, %v2290_v24  ;;  %v5095_v20 = vadd.f32 %v2290_v24, %v5053_v2 }
 0x8f6   : > { %2292 = vst [vmem:[#allocation3] sm:$0xf] %v2291_v18 }
 0x8fd   : > { %v2303_v21 = vld [vmem:[#allocation3] sm:$0xf] }
 0x8fe   : > { %2337 = vmatmul.mubr.bf16.vlgmr.msra.gmra.mrb[64].mxu0 %v2303_v21  ;;  %2378 = vmatmul.mubr.bf16.vlgmr.msra.gmra.mrb[64].mxu1 %v2303_v21 }
 0x8ff   : > { %2430 = vmatpush1.bf16.msra.mxu0 %v4798_v3  ;;  %2471 = vmatpush1.bf16.msra.mxu1 %v4802_v4 }
 0x900   : > { %2431 = vmatprep.subr.bf16.mxu0 %v4806_v55  ;;  %2472 = vmatprep.subr.bf16.mxu1 %v4810_v25 }
 0x901   : > { %2461 = vmatprep.mubr.bf16.mxu0 %v4285_v50  ;;  %2502 = vmatprep.mubr.bf16.mxu1 %v4285_v50 }
 0x903   : > { %2432 = vmatpush1.bf16.msra.mxu0 %v4816_v34  ;;  %2473 = vmatpush1.bf16.msra.mxu1 %v4820_v35 }
 0x904   : > { %2433 = vmatprep.subr.bf16.mxu0 %v4824_v43  ;;  %2474 = vmatprep.subr.bf16.mxu1 %v4828_v44 }
 0x907   : > { %2434 = vmatpush1.bf16.msra.mxu0 %v4832_v45  ;;  %2475 = vmatpush1.bf16.msra.mxu1 %v4836_v46 }
 0x908   : > { %2435 = vmatprep.subr.bf16.mxu0 %v4840_v47  ;;  %2476 = vmatprep.subr.bf16.mxu1 %v4844_v48 }
 0x90b   : > { %2436 = vmatpush1.bf16.msra.mxu0 %v4848_v49  ;;  %2477 = vmatpush1.bf16.msra.mxu1 %v4852_v51 }
 0x90c   : > { %2437 = vmatprep.subr.bf16.mxu0 %v4856_v53  ;;  %2478 = vmatprep.subr.bf16.mxu1 %v4860_v54 }
 0x90f   : > { %2438 = vmatpush1.bf16.msra.mxu0 %v4864_v59  ;;  %2479 = vmatpush1.bf16.msra.mxu1 %v4868_v56 }
 0x910   : > { %2439 = vmatprep.subr.bf16.mxu0 %v4872_v60  ;;  %2480 = vmatprep.subr.bf16.mxu1 %v4876_v57 }
 0x913   : > { %2440 = vmatpush1.bf16.msra.mxu0 %v4880_v58  ;;  %2481 = vmatpush1.bf16.msra.mxu1 %v4884_v63 }
 0x914   : > { %2441 = vmatprep.subr.bf16.mxu0 %v4888_v0  ;;  %2482 = vmatprep.subr.bf16.mxu1 %v4892_v9 }
 0x917   : > { %2442 = vmatpush1.bf16.msra.mxu0 %v4896_v10  ;;  %2483 = vmatpush1.bf16.msra.mxu1 %v4900_v11 }
 0x918   : > { %2443 = vmatprep.subr.bf16.mxu0 %v4904_v12  ;;  %2484 = vmatprep.subr.bf16.mxu1 %v4908_v13 }
 0x91b   : > { %2444 = vmatpush1.bf16.msra.mxu0 %v4912_v16  ;;  %2485 = vmatpush1.bf16.msra.mxu1 %v4916_v17 }
 0x91c   : > { %2554 = vmatprep.subr.bf16.mxu0 %v4781_v6  ;;  %2595 = vmatprep.subr.bf16.mxu1 %v4785_v8  ;;  %v2302_v6 = vld [vmem:[%s2298_s15 + $0x18] sm:$0xff] }
 0x9d1   : > { %v2338_v2 = vpop.f32.mrb[64].mxu0  ;;  %v2379_v22 = vpop.f32.mrb[64].mxu1 }
 0x9d2   : > { %v2386_v23 = vadd.f32 %v2338_v2, %v2299_v32  ;;  %v2340_v1 = vpop.f32.mrb[65].mxu0  ;;  %v2381_v28 = vpop.f32.mrb[65].mxu1  ;;  %v2388_v41 = vadd.f32 %v2379_v22, %v2301_v38  ;;  %v5200_v38 = vld [vmem:[%s4359_s11 + $0x2c] ss:$16 sps:$4 sm:$0xff]  }
 0x9d3   : > { %v2387_v29 = vadd.f32 %v2340_v1, %v2300_v27  ;;  %v2342_v30 = vpop.f32.mrb[66].mxu0  ;;  %v2383_v31 = vpop.f32.mrb[66].mxu1  ;;  %v2389_v8 = vadd.f32 %v2381_v28, %v2302_v6  ;;  %v5192_v6 = vld [vmem:[%s4359_s11 + $0x8] ss:$16 sps:$4 sm:$0xff]  }
 0x9d4   : > { %v3646_v33 = vmul.f32 -1.442695, %v2386_v23  ;;  %v2343_v19 = vpop.f32.mrb[67].mxu0  ;;  %v2384_v36 = vpop.f32.mrb[67].mxu1 }
 0x9d5   : > { %v3647_v37 = vmul.f32 -1.442695, %v2387_v29  ;;  %v3648_v39 = vmul.f32 -1.442695, %v2389_v8  ;;  %v5196_v8 = vld [vmem:[%s4359_s11 + $0x24] ss:$16 sps:$4 sm:$0xff]  }
 0x9d6   : > { %4051 = vpow2.f32 %v3646_v33 }
 0x9d7   : > { %4053 = vpow2.f32 %v3647_v37  ;;  %v5188_v37 = vld [vmem:[%s4359_s11] ss:$16 sps:$4 sm:$0xff]  }
 0x9d8   : > { %4055 = vpow2.f32 %v3648_v39  ;;  %v5206_v39 = vld [vmem:[%s4359_s11 + $0x20] ss:$16 sps:$4 sm:$0xff]  }
 0x9d9   : > { %4057 = vtanh.f32 %v2388_v41  ;;  %v5210_v41 = vld [vmem:[%s4359_s11 + $0x28] ss:$16 sps:$4 sm:$0xff]  }
 0x9e0   : > { %v4052_v15 = vpop.eup %4051 }
 0x9e1   : > { %v4054_v42 = vpop.eup %4053  ;;  %v2394_v52 = vadd.f32 1.0, %v4052_v15  ;;  %v5214_v15 = vld [vmem:[%s4359_s11 + $0x44] ss:$16 sps:$4 sm:$0xff]  }
 0x9e2   : > { %v2400_v61 = vadd.f32 1.0, %v4054_v42  ;;  %v4056_v62 = vpop.eup %4055  ;;  %v5218_v42 = vld [vmem:[%s4359_s11 + $0x4c] ss:$16 sps:$4 sm:$0xff]  }
 0x9e3   : > { %4059 = vrcp.f32 %v2394_v52  ;;  %v4058_v5 = vpop.eup %4057  ;;  %v2407_v24 = vadd.f32 1.0, %v4056_v62  ;;  %v5222_v52 = vld [vmem:[%s4359_s11 + $0x40] ss:$16 sps:$4 sm:$0xff]   ;;  %v5230_v62 = vld [vmem:[%s4359_s11 + $0x64] ss:$16 sps:$4 sm:$0xff]  }
 0x9e4   : > { %4061 = vrcp.f32 %v2400_v61  ;;  %v5226_v61 = vld [vmem:[%s4359_s11 + $0x48] ss:$16 sps:$4 sm:$0xff]  }
 0x9e5   : > { %4063 = vrcp.f32 %v2407_v24  ;;  %v5250_v24 = vld [vmem:[%s4359_s11 + $0x8c] ss:$16 sps:$4 sm:$0xff]  }
 0x9ed   : > { %v4060_v26 = vpop.eup %4059 }
 0x9ee   : > { %v4062_v7 = vpop.eup %4061  ;;  %v2411_v14 = vmul.f32 %v4060_v26, %v4058_v5  ;;  %v5234_v5 = vld [vmem:[%s4359_s11 + $0x6c] ss:$16 sps:$4 sm:$0xff]   ;;  %v5238_v26 = vld [vmem:[%s4359_s11 + $0x60] ss:$16 sps:$4 sm:$0xff]  }
 0x9ef   : > { %v2410_v18 = vmul.f32 %v4062_v7, %v5091_v40  ;;  %v4064_v32 = vpop.eup %4063  ;;  %v5242_v7 = vld [vmem:[%s4359_s11 + $0x68] ss:$16 sps:$4 sm:$0xff]  }
 0x9f1   : > { %v5133_v21 = vadd.f32 %v2411_v14, %v2410_v18  ;;  %v5246_v14 = vld [vmem:[%s4359_s11 + $0x84] ss:$16 sps:$4 sm:$0xff]   ;;  %v5254_v18 = vld [vmem:[%s4359_s11 + $0x80] ss:$16 sps:$4 sm:$0xff]  }
 0x9f3   : > { %4065 = vtanh.f32 %v5133_v21 }
 0x9fd   : > { %v4066_v2 = vpop.eup %4065 }
 0x9fe   : > { %v2414_v22 = vmul.f32 %v4066_v2, %v4064_v32  ;;  %v5262_v32 = vld [vmem:[%s4359_s11 + $0xa4] ss:$16 sps:$4 sm:$0xff]   ;;  %v5266_v2 = vld [vmem:[%s4359_s11 + $0xac] ss:$16 sps:$4 sm:$0xff]  }
 0xa00   : > { %v2415_v23 = vpack.c.bf16 %v2414_v22, %v2414_v22  ;;  %v5137_v27 = vadd.f32 %v2414_v22, %v5095_v20  ;;  %v5270_v22 = vld [vmem:[%s4359_s11 + $0xa0] ss:$16 sps:$4 sm:$0xff]  }
 0xa02   : > { %2416 = vst [vmem:[#allocation3] sm:$0xf] %v2415_v23  ;;  %v5274_v23 = vld [vmem:[%s4359_s11 + $0xa8] ss:$16 sps:$4 sm:$0xff]  }
 0xa09   : > { %v2428_v1 = vld [vmem:[#allocation3] sm:$0xf] }
 0xa0a   : > { %2462 = vmatmul.mubr.bf16.vlgmr.msra.gmra.mrb[68].mxu0 %v2428_v1  ;;  %2503 = vmatmul.mubr.bf16.vlgmr.msra.gmra.mrb[68].mxu1 %v2428_v1  ;;  %v5282_v1 = vld [vmem:[%s4359_s11 + $0xcc] ss:$16 sps:$4 sm:$0xff]  }
 0xa0b   : > { %2555 = vmatpush1.bf16.msra.mxu0 %v4798_v3  ;;  %2596 = vmatpush1.bf16.msra.mxu1 %v4802_v4  ;;  %v5172_v3 = vld [vmem:[%s4359_s11 + $0x4] ss:$16 sps:$4 sm:$0xff]   ;;  %v5176_v4 = vld [vmem:[%s4359_s11 + $0xc] ss:$16 sps:$4 sm:$0xff]  }
 0xa0c   : > { %2556 = vmatprep.subr.bf16.mxu0 %v4806_v55  ;;  %2597 = vmatprep.subr.bf16.mxu1 %v4810_v25  ;;  %v3650_v55 = vld [vmem:[%s3377_s28 + $0x120] sm:$0xff] }
 0xa0d   : > { %2586 = vmatprep.mubr.bf16.mxu0 %v4285_v50  ;;  %2627 = vmatprep.mubr.bf16.mxu1 %v4285_v50 }
 0xa0f   : > { %2557 = vmatpush1.bf16.msra.mxu0 %v4816_v34  ;;  %2598 = vmatpush1.bf16.msra.mxu1 %v4820_v35 }
 0xa10   : > { %2558 = vmatprep.subr.bf16.mxu0 %v4824_v43  ;;  %2599 = vmatprep.subr.bf16.mxu1 %v4828_v44  ;;  %v3651_v43 = vld [vmem:[%s3377_s28 + $0x128] sm:$0xff] }
 0xa13   : > { %2559 = vmatpush1.bf16.msra.mxu0 %v4832_v45  ;;  %2600 = vmatpush1.bf16.msra.mxu1 %v4836_v46 }
 0xa14   : > { %2560 = vmatprep.subr.bf16.mxu0 %v4840_v47  ;;  %2601 = vmatprep.subr.bf16.mxu1 %v4844_v48 }
 0xa17   : > { %2561 = vmatpush1.bf16.msra.mxu0 %v4848_v49  ;;  %2602 = vmatpush1.bf16.msra.mxu1 %v4852_v51 }
 0xa18   : > { %2562 = vmatprep.subr.bf16.mxu0 %v4856_v53  ;;  %2603 = vmatprep.subr.bf16.mxu1 %v4860_v54 }
 0xa1b   : > { %2563 = vmatpush1.bf16.msra.mxu0 %v4864_v59  ;;  %2604 = vmatpush1.bf16.msra.mxu1 %v4868_v56  ;;  %v3653_v59 = vld [vmem:[%s3377_s28 + $0x138] sm:$0xff] }
 0xa1c   : > { %2564 = vmatprep.subr.bf16.mxu0 %v4872_v60  ;;  %2605 = vmatprep.subr.bf16.mxu1 %v4876_v57  ;;  %v3652_v60 = vld [vmem:[%s3377_s28 + $0x130] sm:$0xff] }
 0xa1f   : > { %2565 = vmatpush1.bf16.msra.mxu0 %v4880_v58  ;;  %2606 = vmatpush1.bf16.msra.mxu1 %v4884_v63 }
 0xa20   : > { %2566 = vmatprep.subr.bf16.mxu0 %v4888_v0  ;;  %2607 = vmatprep.subr.bf16.mxu1 %v4892_v9 }
 0xa23   : > { %2567 = vmatpush1.bf16.msra.mxu0 %v4896_v10  ;;  %2608 = vmatpush1.bf16.msra.mxu1 %v4900_v11 }
 0xa24   : > { %2568 = vmatprep.subr.bf16.mxu0 %v4904_v12  ;;  %2609 = vmatprep.subr.bf16.mxu1 %v4908_v13 }
 0xa27   : > { %2569 = vmatpush1.bf16.msra.mxu0 %v4912_v16  ;;  %2610 = vmatpush1.bf16.msra.mxu1 %v4916_v17 }
 0xa28   : > { %2679 = vmatprep.subr.bf16.mxu0 %v5172_v3  ;;  %2720 = vmatprep.subr.bf16.mxu1 %v5176_v4 }
 0xadd   : > { %v2463_v25 = vpop.f32.mrb[68].mxu0  ;;  %v2504_v34 = vpop.f32.mrb[68].mxu1 }
 0xade   : > { %v2511_v35 = vadd.f32 %v3650_v55, %v2463_v25  ;;  %v2465_v44 = vpop.f32.mrb[69].mxu0  ;;  %v2506_v45 = vpop.f32.mrb[69].mxu1  ;;  %v2513_v58 = vadd.f32 %v3652_v60, %v2504_v34  ;;  %v5286_v55 = vld [vmem:[%s4359_s11 + $0xc0] ss:$16 sps:$4 sm:$0xff]   ;;  %v5290_v25 = vld [vmem:[%s4359_s11 + $0xc8] ss:$16 sps:$4 sm:$0xff]  }
 0xadf   : > { %v2512_v46 = vadd.f32 %v3651_v43, %v2465_v44  ;;  %v2467_v47 = vpop.f32.mrb[70].mxu0  ;;  %v2508_v48 = vpop.f32.mrb[70].mxu1  ;;  %v2514_v56 = vadd.f32 %v3653_v59, %v2506_v45  ;;  %v5294_v34 = vld [vmem:[%s4359_s11 + $0xe4] ss:$16 sps:$4 sm:$0xff]   ;;  %v5302_v43 = vld [vmem:[%s4359_s11 + $0xe0] ss:$16 sps:$4 sm:$0xff]  }
 0xae0   : > { %v3654_v49 = vmul.f32 -1.442695, %v2511_v35  ;;  %v2468_v51 = vpop.f32.mrb[71].mxu0  ;;  %v2509_v53 = vpop.f32.mrb[71].mxu1  ;;  %v5298_v35 = vld [vmem:[%s4359_s11 + $0xec] ss:$16 sps:$4 sm:$0xff]  }
 0xae1   : > { %v3655_v54 = vmul.f32 -1.442695, %v2512_v46  ;;  %v3656_v57 = vmul.f32 -1.442695, %v2514_v56  ;;  %v5306_v44 = vld [vmem:[%s4359_s11 + $0xe8] ss:$16 sps:$4 sm:$0xff]  }
 0xae2   : > { %4067 = vpow2.f32 %v3654_v49  ;;  %v3658_v45 = vld [vmem:[%s3381_s7 + $0x140] sm:$0xff]  ;;  %v3659_v49 = vld [vmem:[%s3381_s7 + $0x148] sm:$0xff] }
 0xae3   : > { %4069 = vpow2.f32 %v3655_v54 }
 0xae4   : > { %4071 = vpow2.f32 %v3656_v57 }
 0xae5   : > { %4073 = vtanh.f32 %v2513_v58 }
 0xaec   : > { %v4068_v63 = vpop.eup %4067 }
 0xaed   : > { %v4070_v0 = vpop.eup %4069  ;;  %v2519_v9 = vadd.f32 1.0, %v4068_v63 }
 0xaee   : > { %v2525_v10 = vadd.f32 1.0, %v4070_v0  ;;  %v4072_v11 = vpop.eup %4071  ;;  %v3661_v0 = vld [vmem:[%s3381_s7 + $0x158] sm:$0xff] }
 0xaef   : > { %4075 = vrcp.f32 %v2519_v9  ;;  %v4074_v12 = vpop.eup %4073  ;;  %v2532_v40 = vadd.f32 1.0, %v4072_v11 }
 0xaf0   : > { %4077 = vrcp.f32 %v2525_v10  ;;  %v3660_v10 = vld [vmem:[%s3381_s7 + $0x150] sm:$0xff] }
 0xaf1   : > { %4079 = vrcp.f32 %v2532_v40 }
 0xaf9   : > { %v4076_v13 = vpop.eup %4075 }
 0xafa   : > { %v4078_v16 = vpop.eup %4077  ;;  %v2536_v17 = vmul.f32 %v4076_v13, %v4074_v12 }
 0xafb   : > { %v2535_v20 = vmul.f32 %v4078_v16, %v5133_v21  ;;  %v4080_v29 = vpop.eup %4079  ;;  %v5258_v21 = vld [vmem:[%s4359_s11 + $0x88] ss:$16 sps:$4 sm:$0xff]  }
 0xafd   : > { %v5181_v28 = vadd.f32 %v2536_v17, %v2535_v20 }
 0xaff   : > { %4081 = vtanh.f32 %v5181_v28 }
 0xb09   : > { %v4082_v30 = vpop.eup %4081 }
 0xb0a   : > { %v2539_v31 = vmul.f32 %v4082_v30, %v4080_v29 }
 0xb0c   : > { %v2540_v33 = vpack.c.bf16 %v2539_v31, %v2539_v31  ;;  %v5185_v19 = vadd.f32 %v2539_v31, %v5137_v27  ;;  %v5278_v27 = vld [vmem:[%s4359_s11 + $0xc4] ss:$16 sps:$4 sm:$0xff]   ;;  %s3665_s11 = smul.u32 4294967072, %s4269_s16 }
 0xb0e   : > { %2541 = vst [vmem:[#allocation3] sm:$0xf] %v2540_v33  ;;  %s3385_s8 = scalar_lea.vmem [#allocation2], %s3665_s11 }
 0xb15   : > { %v2553_v36 = vld [vmem:[#allocation3] sm:$0xf] }
 0xb16   : > { %2587 = vmatmul.mubr.bf16.vlgmr.msra.gmra.mrb[72].mxu0 %v2553_v36  ;;  %2628 = vmatmul.mubr.bf16.vlgmr.msra.gmra.mrb[72].mxu1 %v2553_v36 }
 0xb17   : > { %2680 = vmatpush1.bf16.msra.mxu0 %v5188_v37  ;;  %2721 = vmatpush1.bf16.msra.mxu1 %v5192_v6 }
 0xb18   : > { %2681 = vmatprep.subr.bf16.mxu0 %v5196_v8  ;;  %2722 = vmatprep.subr.bf16.mxu1 %v5200_v38 }
 0xb19   : > { %2711 = vmatprep.mubr.bf16.mxu0 %v4285_v50  ;;  %2752 = vmatprep.mubr.bf16.mxu1 %v4285_v50 }
 0xb1b   : > { %2682 = vmatpush1.bf16.msra.mxu0 %v5206_v39  ;;  %2723 = vmatpush1.bf16.msra.mxu1 %v5210_v41 }
 0xb1c   : > { %2683 = vmatprep.subr.bf16.mxu0 %v5214_v15  ;;  %2724 = vmatprep.subr.bf16.mxu1 %v5218_v42 }
 0xb1f   : > { %2684 = vmatpush1.bf16.msra.mxu0 %v5222_v52  ;;  %2725 = vmatpush1.bf16.msra.mxu1 %v5226_v61 }
 0xb20   : > { %2685 = vmatprep.subr.bf16.mxu0 %v5230_v62  ;;  %2726 = vmatprep.subr.bf16.mxu1 %v5234_v5 }
 0xb23   : > { %2686 = vmatpush1.bf16.msra.mxu0 %v5238_v26  ;;  %2727 = vmatpush1.bf16.msra.mxu1 %v5242_v7 }
 0xb24   : > { %2687 = vmatprep.subr.bf16.mxu0 %v5246_v14  ;;  %2728 = vmatprep.subr.bf16.mxu1 %v5250_v24 }
 0xb27   : > { %2688 = vmatpush1.bf16.msra.mxu0 %v5254_v18  ;;  %2729 = vmatpush1.bf16.msra.mxu1 %v5258_v21 }
 0xb28   : > { %2689 = vmatprep.subr.bf16.mxu0 %v5262_v32  ;;  %2730 = vmatprep.subr.bf16.mxu1 %v5266_v2 }
 0xb2b   : > { %2690 = vmatpush1.bf16.msra.mxu0 %v5270_v22  ;;  %2731 = vmatpush1.bf16.msra.mxu1 %v5274_v23 }
 0xb2c   : > { %2691 = vmatprep.subr.bf16.mxu0 %v5278_v27  ;;  %2732 = vmatprep.subr.bf16.mxu1 %v5282_v1 }
 0xb2f   : > { %2692 = vmatpush1.bf16.msra.mxu0 %v5286_v55  ;;  %2733 = vmatpush1.bf16.msra.mxu1 %v5290_v25 }
 0xb30   : > { %2693 = vmatprep.subr.bf16.mxu0 %v5294_v34  ;;  %2734 = vmatprep.subr.bf16.mxu1 %v5298_v35 }
 0xb33   : > { %2694 = vmatpush1.bf16.msra.mxu0 %v5302_v43  ;;  %2735 = vmatpush1.bf16.msra.mxu1 %v5306_v44 }
 0xb34   : > { %2804 = vmatprep.subr.bf16.mxu0 %v5172_v3  ;;  %2845 = vmatprep.subr.bf16.mxu1 %v5176_v4 }
 0xbe9   : > { %v2588_v46 = vpop.f32.mrb[72].mxu0  ;;  %v2629_v47 = vpop.f32.mrb[72].mxu1 }
 0xbea   : > { %v2636_v48 = vadd.f32 %v3658_v45, %v2588_v46  ;;  %v2590_v51 = vpop.f32.mrb[73].mxu0  ;;  %v2631_v53 = vpop.f32.mrb[73].mxu1  ;;  %v2638_v12 = vadd.f32 %v3660_v10, %v2629_v47 }
 0xbeb   : > { %v2637_v54 = vadd.f32 %v3659_v49, %v2590_v51  ;;  %v2592_v59 = vpop.f32.mrb[74].mxu0  ;;  %v2633_v56 = vpop.f32.mrb[74].mxu1  ;;  %v2639_v9 = vadd.f32 %v3661_v0, %v2631_v53 }
 0xbec   : > { %v3662_v60 = vmul.f32 -1.442695, %v2636_v48  ;;  %v2593_v57 = vpop.f32.mrb[75].mxu0  ;;  %v2634_v58 = vpop.f32.mrb[75].mxu1 }
 0xbed   : > { %v3663_v63 = vmul.f32 -1.442695, %v2637_v54  ;;  %v3664_v11 = vmul.f32 -1.442695, %v2639_v9 }
 0xbee   : > { %4083 = vpow2.f32 %v3662_v60  ;;  %v3667_v60 = vld [vmem:[%s3385_s8 + $0x168] sm:$0xff] }
 0xbef   : > { %4085 = vpow2.f32 %v3663_v63 }
 0xbf0   : > { %4087 = vpow2.f32 %v3664_v11 }
 0xbf1   : > { %4089 = vtanh.f32 %v2638_v12 }
 0xbf8   : > { %v4084_v13 = vpop.eup %4083 }
 0xbf9   : > { %v4086_v16 = vpop.eup %4085  ;;  %v2644_v17 = vadd.f32 1.0, %v4084_v13 }
 0xbfa   : > { %v2650_v40 = vadd.f32 1.0, %v4086_v16  ;;  %v4088_v20 = vpop.eup %4087  ;;  %v3669_v16 = vld [vmem:[%s3385_s8 + $0x178] sm:$0xff] }
 0xbfb   : > { %4091 = vrcp.f32 %v2644_v17  ;;  %v4090_v29 = vpop.eup %4089  ;;  %v2657_v36 = vadd.f32 1.0, %v4088_v20 }
 0xbfc   : > { %4093 = vrcp.f32 %v2650_v40  ;;  %v3668_v40 = vld [vmem:[%s3385_s8 + $0x170] sm:$0xff] }
 0xbfd   : > { %4095 = vrcp.f32 %v2657_v36 }
 0xc05   : > { %v4092_v30 = vpop.eup %4091 }
 0xc06   : > { %v4094_v31 = vpop.eup %4093  ;;  %v2661_v33 = vmul.f32 %v4092_v30, %v4090_v29 }
 0xc07   : > { %v2660_v45 = vmul.f32 %v4094_v31, %v5181_v28  ;;  %v4096_v47 = vpop.eup %4095  ;;  %v3666_v28 = vld [vmem:[%s3385_s8 + $0x160] sm:$0xff] }
 0xc09   : > { %v5313_v46 = vadd.f32 %v2661_v33, %v2660_v45 }
 0xc0b   : > { %4097 = vtanh.f32 %v5313_v46 }
 0xc15   : > { %v4098_v48 = vpop.eup %4097 }
 0xc16   : > { %v2664_v49 = vmul.f32 %v4098_v48, %v4096_v47 }
 0xc18   : > { %v2665_v51 = vpack.c.bf16 %v2664_v49, %v2664_v49  ;;  %v5317_v53 = vadd.f32 %v2664_v49, %v5185_v19 }
 0xc1a   : > { %2666 = vst [vmem:[#allocation3] sm:$0xf] %v2665_v51 }
 0xc21   : > { %v2678_v54 = vld [vmem:[#allocation3] sm:$0xf] }
 0xc22   : > { %2712 = vmatmul.mubr.bf16.vlgmr.msra.gmra.mrb[76].mxu0 %v2678_v54  ;;  %2753 = vmatmul.mubr.bf16.vlgmr.msra.gmra.mrb[76].mxu1 %v2678_v54 }
 0xc23   : > { %2805 = vmatpush1.bf16.msra.mxu0 %v5188_v37  ;;  %2846 = vmatpush1.bf16.msra.mxu1 %v5192_v6 }
 0xc24   : > { %2806 = vmatprep.subr.bf16.mxu0 %v5196_v8  ;;  %2847 = vmatprep.subr.bf16.mxu1 %v5200_v38 }
 0xc25   : > { %2836 = vmatprep.mubr.bf16.mxu0 %v4285_v50  ;;  %2877 = vmatprep.mubr.bf16.mxu1 %v4285_v50 }
 0xc27   : > { %2807 = vmatpush1.bf16.msra.mxu0 %v5206_v39  ;;  %2848 = vmatpush1.bf16.msra.mxu1 %v5210_v41 }
 0xc28   : > { %2808 = vmatprep.subr.bf16.mxu0 %v5214_v15  ;;  %2849 = vmatprep.subr.bf16.mxu1 %v5218_v42 }
 0xc2b   : > { %2809 = vmatpush1.bf16.msra.mxu0 %v5222_v52  ;;  %2850 = vmatpush1.bf16.msra.mxu1 %v5226_v61 }
 0xc2c   : > { %2810 = vmatprep.subr.bf16.mxu0 %v5230_v62  ;;  %2851 = vmatprep.subr.bf16.mxu1 %v5234_v5 }
 0xc2f   : > { %2811 = vmatpush1.bf16.msra.mxu0 %v5238_v26  ;;  %2852 = vmatpush1.bf16.msra.mxu1 %v5242_v7 }
 0xc30   : > { %2812 = vmatprep.subr.bf16.mxu0 %v5246_v14  ;;  %2853 = vmatprep.subr.bf16.mxu1 %v5250_v24 }
 0xc33   : > { %2813 = vmatpush1.bf16.msra.mxu0 %v5254_v18  ;;  %2854 = vmatpush1.bf16.msra.mxu1 %v5258_v21 }
 0xc34   : > { %2814 = vmatprep.subr.bf16.mxu0 %v5262_v32  ;;  %2855 = vmatprep.subr.bf16.mxu1 %v5266_v2 }
 0xc37   : > { %2815 = vmatpush1.bf16.msra.mxu0 %v5270_v22  ;;  %2856 = vmatpush1.bf16.msra.mxu1 %v5274_v23 }
 0xc38   : > { %2816 = vmatprep.subr.bf16.mxu0 %v5278_v27  ;;  %2857 = vmatprep.subr.bf16.mxu1 %v5282_v1 }
 0xc3b   : > { %2817 = vmatpush1.bf16.msra.mxu0 %v5286_v55  ;;  %2858 = vmatpush1.bf16.msra.mxu1 %v5290_v25 }
 0xc3c   : > { %2818 = vmatprep.subr.bf16.mxu0 %v5294_v34  ;;  %2859 = vmatprep.subr.bf16.mxu1 %v5298_v35 }
 0xc3f   : > { %2819 = vmatpush1.bf16.msra.mxu0 %v5302_v43  ;;  %2860 = vmatpush1.bf16.msra.mxu1 %v5306_v44 }
 0xc40   : > { %2929 = vmatprep.subr.bf16.mxu0 %v5172_v3  ;;  %2970 = vmatprep.subr.bf16.mxu1 %v5176_v4 }
 0xcf5   : > { %v2713_v19 = vpop.f32.mrb[76].mxu0  ;;  %v2754_v59 = vpop.f32.mrb[76].mxu1 }
 0xcf6   : > { %v2761_v56 = vadd.f32 %v3666_v28, %v2713_v19  ;;  %v2715_v57 = vpop.f32.mrb[77].mxu0  ;;  %v2756_v58 = vpop.f32.mrb[77].mxu1  ;;  %v2763_v29 = vadd.f32 %v3668_v40, %v2754_v59 }
 0xcf7   : > { %v2762_v63 = vadd.f32 %v3667_v60, %v2715_v57  ;;  %v2717_v0 = vpop.f32.mrb[78].mxu0  ;;  %v2758_v9 = vpop.f32.mrb[78].mxu1  ;;  %v2764_v17 = vadd.f32 %v3669_v16, %v2756_v58 }
 0xcf8   : > { %v3670_v10 = vmul.f32 -1.442695, %v2761_v56  ;;  %v2718_v11 = vpop.f32.mrb[79].mxu0  ;;  %v2759_v12 = vpop.f32.mrb[79].mxu1 }
 0xcf9   : > { %v3671_v13 = vmul.f32 -1.442695, %v2762_v63  ;;  %v3672_v20 = vmul.f32 -1.442695, %v2764_v17 }
 0xcfa   : > { %4099 = vpow2.f32 %v3670_v10  ;;  %v3675_v10 = vld [vmem:[%s3389_s10 + $0x188] sm:$0xff] }
 0xcfb   : > { %4101 = vpow2.f32 %v3671_v13 }
 0xcfc   : > { %4103 = vpow2.f32 %v3672_v20 }
 0xcfd   : > { %4105 = vtanh.f32 %v2763_v29 }
 0xd04   : > { %v4100_v30 = vpop.eup %4099 }
 0xd05   : > { %v4102_v31 = vpop.eup %4101  ;;  %v2769_v33 = vadd.f32 1.0, %v4100_v30 }
 0xd06   : > { %v2775_v36 = vadd.f32 1.0, %v4102_v31  ;;  %v4104_v45 = vpop.eup %4103  ;;  %v3677_v31 = vld [vmem:[%s3389_s10 + $0x198] sm:$0xff] }
 0xd07   : > { %4107 = vrcp.f32 %v2769_v33  ;;  %v4106_v47 = vpop.eup %4105  ;;  %v2782_v54 = vadd.f32 1.0, %v4104_v45 }
 0xd08   : > { %4109 = vrcp.f32 %v2775_v36  ;;  %v3676_v36 = vld [vmem:[%s3389_s10 + $0x190] sm:$0xff] }
 0xd09   : > { %4111 = vrcp.f32 %v2782_v54 }
 0xd11   : > { %v4108_v48 = vpop.eup %4107 }
 0xd12   : > { %v4110_v49 = vpop.eup %4109  ;;  %v2786_v51 = vmul.f32 %v4108_v48, %v4106_v47 }
 0xd13   : > { %v2785_v28 = vmul.f32 %v4110_v49, %v5313_v46  ;;  %v4112_v59 = vpop.eup %4111  ;;  %v3674_v46 = vld [vmem:[%s3389_s10 + $0x180] sm:$0xff] }
 0xd15   : > { %v5355_v19 = vadd.f32 %v2786_v51, %v2785_v28 }
 0xd17   : > { %4113 = vtanh.f32 %v5355_v19 }
 0xd21   : > { %v4114_v56 = vpop.eup %4113 }
 0xd22   : > { %v2789_v60 = vmul.f32 %v4114_v56, %v4112_v59 }
 0xd24   : > { %v2790_v57 = vpack.c.bf16 %v2789_v60, %v2789_v60  ;;  %v5359_v58 = vadd.f32 %v2789_v60, %v5317_v53 }
 0xd26   : > { %2791 = vst [vmem:[#allocation3] sm:$0xf] %v2790_v57 }
 0xd2d   : > { %v2803_v63 = vld [vmem:[#allocation3] sm:$0xf] }
 0xd2e   : > { %2837 = vmatmul.mubr.bf16.vlgmr.msra.gmra.mrb[80].mxu0 %v2803_v63  ;;  %2878 = vmatmul.mubr.bf16.vlgmr.msra.gmra.mrb[80].mxu1 %v2803_v63 }
 0xd2f   : > { %2930 = vmatpush1.bf16.msra.mxu0 %v5188_v37  ;;  %2971 = vmatpush1.bf16.msra.mxu1 %v5192_v6 }
 0xd30   : > { %2931 = vmatprep.subr.bf16.mxu0 %v5196_v8  ;;  %2972 = vmatprep.subr.bf16.mxu1 %v5200_v38 }
 0xd31   : > { %2961 = vmatprep.mubr.bf16.mxu0 %v4285_v50  ;;  %3002 = vmatprep.mubr.bf16.mxu1 %v4285_v50 }
 0xd33   : > { %2932 = vmatpush1.bf16.msra.mxu0 %v5206_v39  ;;  %2973 = vmatpush1.bf16.msra.mxu1 %v5210_v41 }
 0xd34   : > { %2933 = vmatprep.subr.bf16.mxu0 %v5214_v15  ;;  %2974 = vmatprep.subr.bf16.mxu1 %v5218_v42 }
 0xd37   : > { %2934 = vmatpush1.bf16.msra.mxu0 %v5222_v52  ;;  %2975 = vmatpush1.bf16.msra.mxu1 %v5226_v61 }
 0xd38   : > { %2935 = vmatprep.subr.bf16.mxu0 %v5230_v62  ;;  %2976 = vmatprep.subr.bf16.mxu1 %v5234_v5 }
 0xd3b   : > { %2936 = vmatpush1.bf16.msra.mxu0 %v5238_v26  ;;  %2977 = vmatpush1.bf16.msra.mxu1 %v5242_v7 }
 0xd3c   : > { %2937 = vmatprep.subr.bf16.mxu0 %v5246_v14  ;;  %2978 = vmatprep.subr.bf16.mxu1 %v5250_v24 }
 0xd3f   : > { %2938 = vmatpush1.bf16.msra.mxu0 %v5254_v18  ;;  %2979 = vmatpush1.bf16.msra.mxu1 %v5258_v21 }
 0xd40   : > { %2939 = vmatprep.subr.bf16.mxu0 %v5262_v32  ;;  %2980 = vmatprep.subr.bf16.mxu1 %v5266_v2 }
 0xd43   : > { %2940 = vmatpush1.bf16.msra.mxu0 %v5270_v22  ;;  %2981 = vmatpush1.bf16.msra.mxu1 %v5274_v23 }
 0xd44   : > { %2941 = vmatprep.subr.bf16.mxu0 %v5278_v27  ;;  %2982 = vmatprep.subr.bf16.mxu1 %v5282_v1 }
 0xd47   : > { %2942 = vmatpush1.bf16.msra.mxu0 %v5286_v55  ;;  %2983 = vmatpush1.bf16.msra.mxu1 %v5290_v25 }
 0xd48   : > { %2943 = vmatprep.subr.bf16.mxu0 %v5294_v34  ;;  %2984 = vmatprep.subr.bf16.mxu1 %v5298_v35 }
 0xd4b   : > { %2944 = vmatpush1.bf16.msra.mxu0 %v5302_v43  ;;  %2985 = vmatpush1.bf16.msra.mxu1 %v5306_v44 }
 0xd4c   : > { %3054 = vmatprep.subr.bf16.mxu0 %v5172_v3  ;;  %3095 = vmatprep.subr.bf16.mxu1 %v5176_v4 }
 0xe01   : > { %v2838_v53 = vpop.f32.mrb[80].mxu0  ;;  %v2879_v0 = vpop.f32.mrb[80].mxu1 }
 0xe02   : > { %v2886_v9 = vadd.f32 %v3674_v46, %v2838_v53  ;;  %v2840_v11 = vpop.f32.mrb[81].mxu0  ;;  %v2881_v12 = vpop.f32.mrb[81].mxu1  ;;  %v2888_v47 = vadd.f32 %v3676_v36, %v2879_v0 }
 0xe03   : > { %v2887_v13 = vadd.f32 %v3675_v10, %v2840_v11  ;;  %v2842_v16 = vpop.f32.mrb[82].mxu0  ;;  %v2883_v17 = vpop.f32.mrb[82].mxu1  ;;  %v2889_v33 = vadd.f32 %v3677_v31, %v2881_v12 }
 0xe04   : > { %v3678_v40 = vmul.f32 -1.442695, %v2886_v9  ;;  %v2843_v20 = vpop.f32.mrb[83].mxu0  ;;  %v2884_v29 = vpop.f32.mrb[83].mxu1 }
 0xe05   : > { %v3679_v30 = vmul.f32 -1.442695, %v2887_v13  ;;  %v3680_v45 = vmul.f32 -1.442695, %v2889_v33 }
 0xe06   : > { %4115 = vpow2.f32 %v3678_v40  ;;  %v3683_v40 = vld [vmem:[%s3393_s13 + $0x1a8] sm:$0xff] }
 0xe07   : > { %4117 = vpow2.f32 %v3679_v30 }
 0xe08   : > { %4119 = vpow2.f32 %v3680_v45 }
 0xe09   : > { %4121 = vtanh.f32 %v2888_v47 }
 0xe10   : > { %v4116_v48 = vpop.eup %4115 }
 0xe11   : > { %v4118_v49 = vpop.eup %4117  ;;  %v2894_v51 = vadd.f32 1.0, %v4116_v48 }
 0xe12   : > { %v2900_v54 = vadd.f32 1.0, %v4118_v49  ;;  %v4120_v28 = vpop.eup %4119  ;;  %v3684_v49 = vld [vmem:[%s3393_s13 + $0x1b0] sm:$0xff] }
 0xe13   : > { %4123 = vrcp.f32 %v2894_v51  ;;  %v4122_v59 = vpop.eup %4121  ;;  %v2907_v63 = vadd.f32 1.0, %v4120_v28 }
 0xe14   : > { %4125 = vrcp.f32 %v2900_v54 }
 0xe15   : > { %4127 = vrcp.f32 %v2907_v63 }
 0xe1d   : > { %v4124_v56 = vpop.eup %4123 }
 0xe1e   : > { %v4126_v60 = vpop.eup %4125  ;;  %v2911_v57 = vmul.f32 %v4124_v56, %v4122_v59 }
 0xe1f   : > { %v2910_v46 = vmul.f32 %v4126_v60, %v5355_v19  ;;  %v4128_v0 = vpop.eup %4127  ;;  %v3682_v19 = vld [vmem:[%s3393_s13 + $0x1a0] sm:$0xff] }
 0xe21   : > { %v5397_v53 = vadd.f32 %v2911_v57, %v2910_v46 }
 0xe23   : > { %4129 = vtanh.f32 %v5397_v53 }
 0xe2d   : > { %v4130_v9 = vpop.eup %4129 }
 0xe2e   : > { %v2914_v10 = vmul.f32 %v4130_v9, %v4128_v0 }
 0xe30   : > { %v2915_v11 = vpack.c.bf16 %v2914_v10, %v2914_v10  ;;  %v5401_v12 = vadd.f32 %v2914_v10, %v5359_v58 }
 0xe32   : > { %2916 = vst [vmem:[#allocation3] sm:$0xf] %v2915_v11 }
 0xe39   : > { %v2928_v13 = vld [vmem:[#allocation3] sm:$0xf] }
 0xe3a   : > { %2962 = vmatmul.mubr.bf16.vlgmr.msra.gmra.mrb[84].mxu0 %v2928_v13  ;;  %3003 = vmatmul.mubr.bf16.vlgmr.msra.gmra.mrb[84].mxu1 %v2928_v13 }
 0xe3b   : > { %3055 = vmatpush1.bf16.msra.mxu0 %v5188_v37  ;;  %3096 = vmatpush1.bf16.msra.mxu1 %v5192_v6 }
 0xe3c   : > { %3056 = vmatprep.subr.bf16.mxu0 %v5196_v8  ;;  %3097 = vmatprep.subr.bf16.mxu1 %v5200_v38 }
 0xe3d   : > { %3086 = vmatprep.mubr.bf16.mxu0 %v4285_v50  ;;  %3127 = vmatprep.mubr.bf16.mxu1 %v4285_v50 }
 0xe3f   : > { %3057 = vmatpush1.bf16.msra.mxu0 %v5206_v39  ;;  %3098 = vmatpush1.bf16.msra.mxu1 %v5210_v41 }
 0xe40   : > { %3058 = vmatprep.subr.bf16.mxu0 %v5214_v15  ;;  %3099 = vmatprep.subr.bf16.mxu1 %v5218_v42 }
 0xe43   : > { %3059 = vmatpush1.bf16.msra.mxu0 %v5222_v52  ;;  %3100 = vmatpush1.bf16.msra.mxu1 %v5226_v61 }
 0xe44   : > { %3060 = vmatprep.subr.bf16.mxu0 %v5230_v62  ;;  %3101 = vmatprep.subr.bf16.mxu1 %v5234_v5 }
 0xe47   : > { %3061 = vmatpush1.bf16.msra.mxu0 %v5238_v26  ;;  %3102 = vmatpush1.bf16.msra.mxu1 %v5242_v7 }
 0xe48   : > { %3062 = vmatprep.subr.bf16.mxu0 %v5246_v14  ;;  %3103 = vmatprep.subr.bf16.mxu1 %v5250_v24 }
 0xe4b   : > { %3063 = vmatpush1.bf16.msra.mxu0 %v5254_v18  ;;  %3104 = vmatpush1.bf16.msra.mxu1 %v5258_v21 }
 0xe4c   : > { %3064 = vmatprep.subr.bf16.mxu0 %v5262_v32  ;;  %3105 = vmatprep.subr.bf16.mxu1 %v5266_v2 }
 0xe4f   : > { %3065 = vmatpush1.bf16.msra.mxu0 %v5270_v22  ;;  %3106 = vmatpush1.bf16.msra.mxu1 %v5274_v23 }
 0xe50   : > { %3066 = vmatprep.subr.bf16.mxu0 %v5278_v27  ;;  %3107 = vmatprep.subr.bf16.mxu1 %v5282_v1 }
 0xe53   : > { %3067 = vmatpush1.bf16.msra.mxu0 %v5286_v55  ;;  %3108 = vmatpush1.bf16.msra.mxu1 %v5290_v25 }
 0xe54   : > { %3068 = vmatprep.subr.bf16.mxu0 %v5294_v34  ;;  %3109 = vmatprep.subr.bf16.mxu1 %v5298_v35 }
 0xe57   : > { %3069 = vmatpush1.bf16.msra.mxu0 %v5302_v43  ;;  %3110 = vmatpush1.bf16.msra.mxu1 %v5306_v44 }
 0xe58   : > { %3179 = vmatprep.subr.bf16.mxu0 %v5172_v3  ;;  %3220 = vmatprep.subr.bf16.mxu1 %v5176_v4  ;;  %v3685_v3 = vld [vmem:[%s3393_s13 + $0x1b8] sm:$0xff] }
 0xf0d   : > { %v2963_v58 = vpop.f32.mrb[84].mxu0  ;;  %v3004_v16 = vpop.f32.mrb[84].mxu1 }
 0xf0e   : > { %v3011_v17 = vadd.f32 %v3682_v19, %v2963_v58  ;;  %v2965_v20 = vpop.f32.mrb[85].mxu0  ;;  %v3006_v29 = vpop.f32.mrb[85].mxu1  ;;  %v3013_v54 = vadd.f32 %v3684_v49, %v3004_v16 }
 0xf0f   : > { %v3012_v30 = vadd.f32 %v3683_v40, %v2965_v20  ;;  %v2967_v31 = vpop.f32.mrb[86].mxu0  ;;  %v3008_v33 = vpop.f32.mrb[86].mxu1  ;;  %v3014_v4 = vadd.f32 %v3685_v3, %v3006_v29  ;;  %v3699_v3 = vld [vmem:[%s3401_s24 + $0x1e8] sm:$0xff] }
 0xf10   : > { %v3686_v36 = vmul.f32 -1.442695, %v3011_v17  ;;  %v2968_v45 = vpop.f32.mrb[87].mxu0  ;;  %v3009_v47 = vpop.f32.mrb[87].mxu1 }
 0xf11   : > { %v3687_v48 = vmul.f32 -1.442695, %v3012_v30  ;;  %v3688_v51 = vmul.f32 -1.442695, %v3014_v4 }
 0xf12   : > { %4131 = vpow2.f32 %v3686_v36  ;;  %v3698_v36 = vld [vmem:[%s3401_s24 + $0x1e0] sm:$0xff] }
 0xf13   : > { %4133 = vpow2.f32 %v3687_v48 }
 0xf14   : > { %4135 = vpow2.f32 %v3688_v51 }
 0xf15   : > { %4137 = vtanh.f32 %v3013_v54 }
 0xf1c   : > { %v4132_v28 = vpop.eup %4131 }
 0xf1d   : > { %v4134_v59 = vpop.eup %4133  ;;  %v3019_v56 = vadd.f32 1.0, %v4132_v28 }
 0xf1e   : > { %v3025_v60 = vadd.f32 1.0, %v4134_v59  ;;  %v4136_v57 = vpop.eup %4135 }
 0xf1f   : > { %4139 = vrcp.f32 %v3019_v56  ;;  %v4138_v63 = vpop.eup %4137  ;;  %v3032_v10 = vadd.f32 1.0, %v4136_v57 }
 0xf20   : > { %4141 = vrcp.f32 %v3025_v60 }
 0xf21   : > { %4143 = vrcp.f32 %v3032_v10 }
 0xf29   : > { %v4140_v46 = vpop.eup %4139 }
 0xf2a   : > { %v4142_v0 = vpop.eup %4141  ;;  %v3036_v9 = vmul.f32 %v4140_v46, %v4138_v63  ;;  %v3701_v63 = vld [vmem:[%s3401_s24 + $0x1f8] sm:$0xff] }
 0xf2b   : > { %v3035_v11 = vmul.f32 %v4142_v0, %v5397_v53  ;;  %v4144_v19 = vpop.eup %4143  ;;  %v3700_v0 = vld [vmem:[%s3401_s24 + $0x1f0] sm:$0xff] }
 0xf2d   : > { %v5439_v13 = vadd.f32 %v3036_v9, %v3035_v11 }
 0xf2f   : > { %4145 = vtanh.f32 %v5439_v13 }
 0xf39   : > { %v4146_v58 = vpop.eup %4145 }
 0xf3a   : > { %v3039_v16 = vmul.f32 %v4146_v58, %v4144_v19 }
 0xf3c   : > { %v3040_v17 = vpack.c.bf16 %v3039_v16, %v3039_v16  ;;  %v5443_v40 = vadd.f32 %v3039_v16, %v5401_v12 }
 0xf3e   : > { %3041 = vst [vmem:[#allocation3] sm:$0xf] %v3040_v17 }
 0xf45   : > { %v3053_v20 = vld [vmem:[#allocation3] sm:$0xf] }
 0xf46   : > { %3087 = vmatmul.mubr.bf16.vlgmr.msra.gmra.mrb[88].mxu0 %v3053_v20  ;;  %3128 = vmatmul.mubr.bf16.vlgmr.msra.gmra.mrb[88].mxu1 %v3053_v20 }
 0xf47   : > { %3180 = vmatpush1.bf16.msra.mxu0 %v5188_v37  ;;  %3221 = vmatpush1.bf16.msra.mxu1 %v5192_v6 }
 0xf48   : > { %3181 = vmatprep.subr.bf16.mxu0 %v5196_v8  ;;  %3222 = vmatprep.subr.bf16.mxu1 %v5200_v38  ;;  %v3691_v38 = vld [vmem:[%s3397_s22 + $0x1c8] sm:$0xff] }
 0xf49   : > { %3211 = vmatprep.mubr.bf16.mxu0 %v4285_v50  ;;  %3252 = vmatprep.mubr.bf16.mxu1 %v4285_v50  ;;  %v3690_v50 = vld [vmem:[%s3397_s22 + $0x1c0] sm:$0xff] }
 0xf4b   : > { %3182 = vmatpush1.bf16.msra.mxu0 %v5206_v39  ;;  %3223 = vmatpush1.bf16.msra.mxu1 %v5210_v41 }
 0xf4c   : > { %3183 = vmatprep.subr.bf16.mxu0 %v5214_v15  ;;  %3224 = vmatprep.subr.bf16.mxu1 %v5218_v42 }
 0xf4f   : > { %3184 = vmatpush1.bf16.msra.mxu0 %v5222_v52  ;;  %3225 = vmatpush1.bf16.msra.mxu1 %v5226_v61 }
 0xf50   : > { %3185 = vmatprep.subr.bf16.mxu0 %v5230_v62  ;;  %3226 = vmatprep.subr.bf16.mxu1 %v5234_v5 }
 0xf53   : > { %3186 = vmatpush1.bf16.msra.mxu0 %v5238_v26  ;;  %3227 = vmatpush1.bf16.msra.mxu1 %v5242_v7  ;;  %v3693_v7 = vld [vmem:[%s3397_s22 + $0x1d8] sm:$0xff] }
 0xf54   : > { %3187 = vmatprep.subr.bf16.mxu0 %v5246_v14  ;;  %3228 = vmatprep.subr.bf16.mxu1 %v5250_v24  ;;  %v3692_v24 = vld [vmem:[%s3397_s22 + $0x1d0] sm:$0xff] }
 0xf57   : > { %3188 = vmatpush1.bf16.msra.mxu0 %v5254_v18  ;;  %3229 = vmatpush1.bf16.msra.mxu1 %v5258_v21 }
 0xf58   : > { %3189 = vmatprep.subr.bf16.mxu0 %v5262_v32  ;;  %3230 = vmatprep.subr.bf16.mxu1 %v5266_v2 }
 0xf5b   : > { %3190 = vmatpush1.bf16.msra.mxu0 %v5270_v22  ;;  %3231 = vmatpush1.bf16.msra.mxu1 %v5274_v23 }
 0xf5c   : > { %3191 = vmatprep.subr.bf16.mxu0 %v5278_v27  ;;  %3232 = vmatprep.subr.bf16.mxu1 %v5282_v1 }
 0xf5f   : > { %3192 = vmatpush1.bf16.msra.mxu0 %v5286_v55  ;;  %3233 = vmatpush1.bf16.msra.mxu1 %v5290_v25 }
 0xf60   : > { %3193 = vmatprep.subr.bf16.mxu0 %v5294_v34  ;;  %3234 = vmatprep.subr.bf16.mxu1 %v5298_v35 }
 0xf63   : > { %3194 = vmatpush1.bf16.msra.mxu0 %v5302_v43  ;;  %3235 = vmatpush1.bf16.msra.mxu1 %v5306_v44 }
0x1019   : > { %v3088_v37 = vpop.f32.mrb[88].mxu0  ;;  %v3129_v6 = vpop.f32.mrb[88].mxu1 }
0x101a   : > { %v3136_v8 = vadd.f32 %v3690_v50, %v3088_v37  ;;  %v3090_v39 = vpop.f32.mrb[89].mxu0  ;;  %v3131_v41 = vpop.f32.mrb[89].mxu1  ;;  %v3138_v21 = vadd.f32 %v3692_v24, %v3129_v6 }
0x101b   : > { %v3137_v15 = vadd.f32 %v3691_v38, %v3090_v39  ;;  %v3092_v42 = vpop.f32.mrb[90].mxu0  ;;  %v3133_v52 = vpop.f32.mrb[90].mxu1  ;;  %v3139_v14 = vadd.f32 %v3693_v7, %v3131_v41 }
0x101c   : > { %v3694_v61 = vmul.f32 -1.442695, %v3136_v8  ;;  %v3093_v62 = vpop.f32.mrb[91].mxu0  ;;  %v3134_v5 = vpop.f32.mrb[91].mxu1 }
0x101d   : > { %v3695_v26 = vmul.f32 -1.442695, %v3137_v15  ;;  %v3696_v18 = vmul.f32 -1.442695, %v3139_v14  ;;  %v3294_v15 = vld [vmem:[%s4374_s5] sm:$0xff] }
0x101e   : > { %4147 = vpow2.f32 %v3694_v61 }
0x101f   : > { %4149 = vpow2.f32 %v3695_v26 }
0x1020   : > { %4151 = vpow2.f32 %v3696_v18 }
0x1021   : > { %4153 = vtanh.f32 %v3138_v21 }
0x1028   : > { %v4148_v32 = vpop.eup %4147 }
0x1029   : > { %v4150_v2 = vpop.eup %4149  ;;  %v3144_v22 = vadd.f32 1.0, %v4148_v32 }
0x102a   : > { %v3150_v23 = vadd.f32 1.0, %v4150_v2  ;;  %v4152_v27 = vpop.eup %4151 }
0x102b   : > { %4155 = vrcp.f32 %v3144_v22  ;;  %v4154_v1 = vpop.eup %4153  ;;  %v3157_v35 = vadd.f32 1.0, %v4152_v27 }
0x102c   : > { %4157 = vrcp.f32 %v3150_v23 }
0x102d   : > { %4159 = vrcp.f32 %v3157_v35 }
0x1035   : > { %v4156_v55 = vpop.eup %4155 }
0x1036   : > { %v4158_v25 = vpop.eup %4157  ;;  %v3161_v34 = vmul.f32 %v4156_v55, %v4154_v1 }
0x1037   : > { %v3160_v43 = vmul.f32 %v4158_v25, %v5439_v13  ;;  %v4160_v53 = vpop.eup %4159 }
0x1039   : > { %v3162_v44 = vadd.f32 %v3161_v34, %v3160_v43 }
0x103b   : > { %4161 = vtanh.f32 %v3162_v44 }
0x1045   : > { %v4162_v12 = vpop.eup %4161 }
0x1046   : > { %v3164_v29 = vmul.f32 %v4162_v12, %v4160_v53 }
0x1048   : > { %v3165_v30 = vpack.c.bf16 %v3164_v29, %v3164_v29  ;;  %v3168_v31 = vadd.f32 %v3164_v29, %v5443_v40 }
0x104a   : > { %3166 = vst [vmem:[#allocation3] sm:$0xf] %v3165_v30 }
0x1051   : > { %v3178_v33 = vld [vmem:[#allocation3] sm:$0xf] }
0x1052   : > { %3212 = vmatmul.mubr.bf16.vlgmr.msra.gmra.mrb[92].mxu0 %v3178_v33  ;;  %3253 = vmatmul.mubr.bf16.vlgmr.msra.gmra.mrb[92].mxu1 %v3178_v33 }
0x1125   : > { %v3213_v45 = vpop.f32.mrb[92].mxu0  ;;  %v3254_v47 = vpop.f32.mrb[92].mxu1 }
0x1126   : > { %v3261_v48 = vadd.f32 %v3698_v36, %v3213_v45  ;;  %v3215_v4 = vpop.f32.mrb[93].mxu0  ;;  %v3256_v49 = vpop.f32.mrb[93].mxu1  ;;  %v3263_v10 = vadd.f32 %v3700_v0, %v3254_v47 }
0x1127   : > { %v3262_v51 = vadd.f32 %v3699_v3, %v3215_v4  ;;  %v3217_v54 = vpop.f32.mrb[94].mxu0  ;;  %v3258_v28 = vpop.f32.mrb[94].mxu1  ;;  %v3264_v46 = vadd.f32 %v3701_v63, %v3256_v49 }
0x1128   : > { %v3702_v59 = vmul.f32 -1.442695, %v3261_v48  ;;  %v3218_v56 = vpop.f32.mrb[95].mxu0  ;;  %v3259_v60 = vpop.f32.mrb[95].mxu1 }
0x1129   : > { %v3703_v57 = vmul.f32 -1.442695, %v3262_v51  ;;  %v3704_v9 = vmul.f32 -1.442695, %v3264_v46 }
0x112a   : > { %4163 = vpow2.f32 %v3702_v59 }
0x112b   : > { %4165 = vpow2.f32 %v3703_v57 }
0x112c   : > { %4167 = vpow2.f32 %v3704_v9 }
0x112d   : > { %4169 = vtanh.f32 %v3263_v10 }
0x1134   : > { %v4164_v11 = vpop.eup %4163 }
0x1135   : > { %v4166_v13 = vpop.eup %4165  ;;  %v3269_v19 = vadd.f32 1.0, %v4164_v11 }
0x1136   : > { %v3275_v58 = vadd.f32 1.0, %v4166_v13  ;;  %v4168_v16 = vpop.eup %4167 }
0x1137   : > { %4171 = vrcp.f32 %v3269_v19  ;;  %v4170_v17 = vpop.eup %4169  ;;  %v3282_v37 = vadd.f32 1.0, %v4168_v16 }
0x1138   : > { %4173 = vrcp.f32 %v3275_v58 }
0x1139   : > { %4175 = vrcp.f32 %v3282_v37 }
0x1141   : > { %v4172_v40 = vpop.eup %4171 }
0x1142   : > { %v4174_v20 = vpop.eup %4173  ;;  %v3286_v50 = vmul.f32 %v4172_v40, %v4170_v17 }
0x1143   : > { %v3285_v6 = vmul.f32 %v4174_v20, %v3162_v44  ;;  %v4176_v38 = vpop.eup %4175 }
0x1145   : > { %v3287_v8 = vadd.f32 %v3286_v50, %v3285_v6 }
0x1147   : > { %4177 = vtanh.f32 %v3287_v8  ;;  %3292 = vst [vmem:[#allocation4] sm:$0xff] %v3287_v8 }
0x1151   : > { %v4178_v39 = vpop.eup %4177 }
0x1152   : > { %v3289_v41 = vmul.f32 %v4178_v39, %v4176_v38 }
0x1154   : > { %v3290_v42 = vpack.c.bf16 %v3289_v41, %v3289_v41  ;;  %v3293_v52 = vadd.f32 %v3289_v41, %v3168_v31 }
0x1156   : > { %3291 = vst [vmem:[#allocation3] sm:$0xf] %v3290_v42  ;;  %v3295_v61 = vadd.f32 %v3294_v15, %v3293_v52 }
0x1158   : > { %3296 = vst [vmem:[%s4374_s5] sm:$0xff] %v3295_v61 }
0x1159 PF: > { %s14_s19 = sadd.s32 1, %s4281_s19   ;;  %s5503_s15 = smov %s4273_s17 }
0x115a   : > { %p11_p8 = scmp.ge.s32.totalorder %s14_s19, 6   ;;  %s5504_s16 = smov %s4277_s18 }
0x115b   : > { %s5505_s17 = smov %s5508_s20  ;;  %s5506_s18 = smov %s5512_s21 }
0x115c   :  { %13 = sbr.rel (!%p11_p8) target bundleno = 3 (0x3), region = 95 }

// kernel: plm_lstm_regressor_forward.3
= control target key start
LH: loop header
LB: loop body
LE: loop exit
PB: predicated region body
PF: predicated region fallthrough
CT: control target
= control target key end

     0   :  { %s4264_s15 = smov 0   ;;  %s4266_s16 = smov 0   ;;  %s5474_s0 = inlined_call_operand.vmem [shape: bf16[32,8,128], index: 0, kind: input, shape index: {}]   ;;  %s5475_s1 = inlined_call_operand.vmem [shape: bf16[2,128,512], index: 1, kind: input, shape index: {}]   ;;  %s5476_s2 = inlined_call_operand.vmem [shape: bf16[2,128,512], index: 2, kind: input, shape index: {}]   ;;  %s5477_s3 = inlined_call_operand.vmem [shape: f32[2,1,512], index: 3, kind: input, shape index: {}]   ;;  %s5478_s4 = inlined_call_operand.vmem [shape: bf16[32,8,256], index: 4, kind: output, shape index: {}]  }
   0x1   :  { %s4268_s17 = smov 0   ;;  %s4270_s18 = smov 0  }
   0x2   :  { %s4272_s19 = smov 0   ;;  %s4274_s20 = smov 0  }
   0x3   :  { %s4276_s21 = smov 0  }
   0x4 LB: > { %s23_s22 = sadd.s32 1, %s4226_s19  ;;  %s26_s23 = sadd.s32 1, %s4230_s20  ;;  %s4234_s21 = sphi %s4276_s21, %s14_s21   ;;  %s4230_s20 = sphi %s4274_s20, %s5491_s20   ;;  %s4226_s19 = sphi %s4272_s19, %s5490_s19   ;;  %s4222_s18 = sphi %s4270_s18, %s5489_s18   ;;  %s4218_s17 = sphi %s4268_s17, %s5488_s17   ;;  %s4214_s16 = sphi %s4266_s16, %s5487_s16   ;;  %s4210_s15 = sphi %s4264_s15, %s5486_s15  }
   0x5   : > { %p24_p0 = scmp.ge.s32.totalorder %s23_s22, 2  ;;  %s144_s24 = ssub.s32 1, %s4230_s20 }
   0x6   : > { %s146_s25 = ssub.s32 1, %s4226_s19  ;;  %s3447_s26 = sadd.s32 4294967295, %s4234_s21  }
   0x7   : > { %s5493_s22 = smov (%p24_p0, %s23_s22), 0  ;;  %s5495_s23 = smov (!%p24_p0, %s26_s23), %s4230_s20 }
   0x8   : > { %5481 = sst [smem:[#allocation6_spill]] %s5493_s22  ;;  %s145_s27 = smul.u32 %s4226_s19, %s144_s24 }
   0x9   : > { %p28_p1 = scmp.ge.s32.totalorder %s5495_s23, 2  ;;  %s147_s28 = smul.u32 %s4230_s20, %s146_s25 }
   0xa   : > { %s151_s29 = ssub.s32 1, %s5493_s22  ;;  %p169_p2 = scmp.ne.s32.totalorder %s4214_s16, %s4210_s15 }
   0xb   : > { %s5497_s23 = smov (%p28_p1, %s5495_s23), 0  ;;  %s148_s30 = sadd.s32 %s147_s28, %s145_s27 }
   0xc   : > { %5482 = sst [smem:[#allocation7_spill]] %s5497_s23  ;;  %p170_p3 = scmp.eq.s32.totalorder %s3447_s26, 3 }
   0xd   : > { %s149_s5 = ssub.s32 1, %s5497_s23  ;;  %s152_s6 = smul.u32 %s151_s29, %s5497_s23 }
   0xe   : > { %s150_s7 = smul.u32 %s149_s5, %s5493_s22  ;;  %s155_s8 = ssub.s32 %s4230_s20, %s5497_s23 }
   0xf   : > { %p4319_p4 = por %p170_p3, %p169_p2  ;;  %p3451_p5 = scmp.ge.s32.totalorder %s4234_s21, 1 }
  0x10   : > { %s153_s10 = sadd.s32 %s152_s6, %s150_s7  ;;  %p236_p6 = scmp.lt.s32.totalorder %s4234_s21, 5 }
  0x11   : > { %s154_s11 = ssub.s32 %s148_s30, %s153_s10  ;;  %s159_s12 = sadd.s32 1, %s4214_s16 }
  0x12   : > { %s156_s13 = sor.u32 %s155_s8, %s154_s11  ;;  %p237_p7 = pnand %p3451_p5, %p236_p6 }
  0x13   : > { %p157_p8 = scmp.eq.s32.totalorder %s156_s13, 0  ;;  %s277_s24 = sand.u32 (!%p237_p7), 1, %s4210_s15  }
  0x14   : > { %240 = sbr.rel (%p237_p7) target bundleno = 4436 (0x1154), region = 36  ;;  %s280_s25 = ssub.s32 (!%p237_p7), 1, %s4222_s18 }
  0x15   : > { %s4327_s14 = scalar_select %p157_p8, %s4214_s16, %s159_s12  }
  0x16   : > { %s3452_s26 = sshll.u32 (!%p237_p7), %s277_s24, 6  ;;  %s281_s27 = smul.u32 (!%p237_p7), %s4218_s17, %s280_s25 }
  0x17   : > { %s282_s28 = ssub.s32 (!%p237_p7), 1, %s4218_s17  ;;  %p296_p9 = scmp.lt.s32.totalorder (!%p237_p7), %s4222_s18, 1 }
  0x18   : > { %s283_s29 = smul.u32 (!%p237_p7), %s4222_s18, %s282_s28  ;;  %p3460_p11 = scmp.ne.s32.totalorder (!%p237_p7), %s4218_s17, 0 }
  0x1a   : > { %s4335_s30 = sadd.s32 (!%p237_p7), %s283_s29, %s281_s27 }
  0x1b   : > { %s3453_s5 = sshll.u32 %s4335_s30, 4  ;;  %v4236_v0 = vmov (!%p3460_p11), 0   ;;  %v4237_v1 = vmov (!%p3460_p11), 0.0  }
  0x1c   : > { %p286_p10 = scmp.lt.s32.totalorder %s3453_s5, 31  ;;  %320 = sbr.rel (%p3460_p11) target bundleno = 35 (0x23), region = 40  ;;  %321 = vst [vmem:[#allocation3] sm:$0xf] (!%p3460_p11), %v4236_v0  ;;  %322 = vst [vmem:[#allocation4] sm:$0xff] (!%p3460_p11), %v4237_v1 }
  0x1d   : > { %s297_s6 = scalar_select %p296_p9, %s4222_s18, 1 }
  0x1e   : > { %s5499_s5 = smov (!%p286_p10, %s3453_s5), 31 }
  0x1f   : > { %s3691_s7 = sshll.u32 %s297_s6, 8  ;;  %s3459_s8 = sshll.u32 %s297_s6, 2 }
  0x20   : > { %s3454_s10 = sshll.u32 %s5499_s5, 2  ;;  %s4342_s15 = scalar_lea.vmem %s5475_s1, %s3691_s7 }
  0x21   : > { %s4347_s25 = scalar_lea.vmem %s5474_s0, %s3454_s10  ;;  %s4352_s29 = scalar_lea.vmem %s5476_s2, %s3691_s7 }
  0x22   : > { %s4357_s6 = scalar_lea.vmem %s5477_s3, %s3459_s8  ;;  %s4359_s5 = scalar_lea.vmem [#allocation5], %s3452_s26 }
  0x23 PF: > { %v3756_v2 = vld [vmem:[%s4342_s15 + $0x4] ss:$16 sps:$4 sm:$0xff]   ;;  %v3758_v3 = vld [vmem:[%s4342_s15 + $0xc] ss:$16 sps:$4 sm:$0xff]   ;;  %v4238_v4 = vmov 0   ;;  %s3693_s17 = smul.u32 480, %s4222_s18 }
  0x24   : > { %633 = vmatprep.mubr.bf16.mxu0 %v4238_v4  ;;  %746 = vmatprep.mubr.bf16.mxu1 %v4238_v4  ;;  %v3760_v5 = vld [vmem:[%s4342_s15] ss:$16 sps:$4 sm:$0xff]   ;;  %v3761_v6 = vld [vmem:[%s4342_s15 + $0x8] ss:$16 sps:$4 sm:$0xff]   ;;  %v3762_v7 = vld [vmem:[%s4342_s15 + $0x24] ss:$16 sps:$4 sm:$0xff]  }
  0x25   : > { %601 = vmatprep.subr.bf16.mxu0 %v3756_v2  ;;  %714 = vmatprep.subr.bf16.mxu1 %v3758_v3  ;;  %v3764_v8 = vld [vmem:[%s4342_s15 + $0x2c] ss:$16 sps:$4 sm:$0xff]   ;;  %v3766_v9 = vld [vmem:[%s4342_s15 + $0x20] ss:$16 sps:$4 sm:$0xff]   ;;  %v3767_v10 = vld [vmem:[%s4342_s15 + $0x28] ss:$16 sps:$4 sm:$0xff]  }
  0x26   : > { %602 = vmatpush1.bf16.msra.mxu0 %v3760_v5  ;;  %715 = vmatpush1.bf16.msra.mxu1 %v3761_v6  ;;  %v3768_v11 = vld [vmem:[%s4342_s15 + $0x44] ss:$16 sps:$4 sm:$0xff]   ;;  %v3770_v12 = vld [vmem:[%s4342_s15 + $0x4c] ss:$16 sps:$4 sm:$0xff]   ;;  %v3772_v13 = vld [vmem:[%s4342_s15 + $0x40] ss:$16 sps:$4 sm:$0xff]  }
  0x27   : > { %603 = vmatprep.subr.bf16.mxu0 %v3762_v7  ;;  %716 = vmatprep.subr.bf16.mxu1 %v3764_v8  ;;  %v3773_v14 = vld [vmem:[%s4342_s15 + $0x48] ss:$16 sps:$4 sm:$0xff]   ;;  %v3774_v15 = vld [vmem:[%s4342_s15 + $0x64] ss:$16 sps:$4 sm:$0xff]   ;;  %v3776_v16 = vld [vmem:[%s4342_s15 + $0x6c] ss:$16 sps:$4 sm:$0xff]  }
  0x28   : > { %v3778_v17 = vld [vmem:[%s4342_s15 + $0x60] ss:$16 sps:$4 sm:$0xff]   ;;  %v3779_v18 = vld [vmem:[%s4342_s15 + $0x68] ss:$16 sps:$4 sm:$0xff]   ;;  %v3780_v19 = vld [vmem:[%s4342_s15 + $0x84] ss:$16 sps:$4 sm:$0xff]  }
  0x29   : > { %v3782_v20 = vld [vmem:[%s4342_s15 + $0x8c] ss:$16 sps:$4 sm:$0xff]   ;;  %v3784_v21 = vld [vmem:[%s4342_s15 + $0x80] ss:$16 sps:$4 sm:$0xff]   ;;  %v3785_v22 = vld [vmem:[%s4342_s15 + $0x88] ss:$16 sps:$4 sm:$0xff]  }
  0x2a   : > { %604 = vmatpush1.bf16.msra.mxu0 %v3766_v9  ;;  %717 = vmatpush1.bf16.msra.mxu1 %v3767_v10  ;;  %v3786_v23 = vld [vmem:[%s4342_s15 + $0xa4] ss:$16 sps:$4 sm:$0xff]   ;;  %v3788_v24 = vld [vmem:[%s4342_s15 + $0xac] ss:$16 sps:$4 sm:$0xff]   ;;  %v3790_v25 = vld [vmem:[%s4342_s15 + $0xa0] ss:$16 sps:$4 sm:$0xff]  }
  0x2b   : > { %605 = vmatprep.subr.bf16.mxu0 %v3768_v11  ;;  %718 = vmatprep.subr.bf16.mxu1 %v3770_v12  ;;  %v3791_v26 = vld [vmem:[%s4342_s15 + $0xa8] ss:$16 sps:$4 sm:$0xff]   ;;  %v3792_v27 = vld [vmem:[%s4342_s15 + $0xc4] ss:$16 sps:$4 sm:$0xff]   ;;  %v3794_v28 = vld [vmem:[%s4342_s15 + $0xcc] ss:$16 sps:$4 sm:$0xff]  }
  0x2c   : > { %v3796_v29 = vld [vmem:[%s4342_s15 + $0xc0] ss:$16 sps:$4 sm:$0xff]   ;;  %v3797_v30 = vld [vmem:[%s4342_s15 + $0xc8] ss:$16 sps:$4 sm:$0xff]   ;;  %v3798_v31 = vld [vmem:[%s4342_s15 + $0xe4] ss:$16 sps:$4 sm:$0xff]  }
  0x2d   : > { %v3800_v32 = vld [vmem:[%s4342_s15 + $0xec] ss:$16 sps:$4 sm:$0xff]   ;;  %v3802_v33 = vld [vmem:[%s4342_s15 + $0xe0] ss:$16 sps:$4 sm:$0xff]   ;;  %v3803_v34 = vld [vmem:[%s4342_s15 + $0xe8] ss:$16 sps:$4 sm:$0xff]  }
  0x2e   : > { %606 = vmatpush1.bf16.msra.mxu0 %v3772_v13  ;;  %719 = vmatpush1.bf16.msra.mxu1 %v3773_v14  ;;  %v4397_v35 = vld [vmem:[%s4352_s29 + $0x4] ss:$16 sps:$4 sm:$0xff]   ;;  %v4400_v36 = vld [vmem:[%s4352_s29 + $0xc] ss:$16 sps:$4 sm:$0xff]   ;;  %v4404_v38 = vld [vmem:[%s4352_s29] ss:$16 sps:$4 sm:$0xff]   ;;  %v373_v13 = vlaneseq }
  0x2f   : > { %607 = vmatprep.subr.bf16.mxu0 %v3774_v15  ;;  %720 = vmatprep.subr.bf16.mxu1 %v3776_v16  ;;  %v3804_v37 = vld [vmem:[%s4347_s25] sm:$0xff]   ;;  %v4412_v40 = vld [vmem:[%s4352_s29 + $0x8] ss:$16 sps:$4 sm:$0xff]   ;;  %v4415_v41 = vld [vmem:[%s4352_s29 + $0x2c] ss:$16 sps:$4 sm:$0xff]   ;;  %s926_s22 = scalar_lea.vmem [#allocation2], %s3693_s17 }
  0x30   : > { %v4408_v39 = vld [vmem:[%s4352_s29 + $0x24] ss:$16 sps:$4 sm:$0xff]   ;;  %v4420_v42 = vld [vmem:[%s4352_s29 + $0x20] ss:$16 sps:$4 sm:$0xff]   ;;  %v4429_v44 = vld [vmem:[%s4352_s29 + $0x28] ss:$16 sps:$4 sm:$0xff]  }
  0x31   : > { %v4425_v43 = vld [vmem:[%s4352_s29 + $0x44] ss:$16 sps:$4 sm:$0xff]   ;;  %v3808_v45 = vld [vmem:[%s4347_s25 + $0x8] sm:$0xff]   ;;  %v4435_v46 = vld [vmem:[%s4352_s29 + $0x40] ss:$16 sps:$4 sm:$0xff]   ;;  %v374_v14 = vshrl.u32 %v373_v13, 7 }
  0x32   : > { %608 = vmatpush1.bf16.msra.mxu0 %v3778_v17  ;;  %721 = vmatpush1.bf16.msra.mxu1 %v3779_v18  ;;  %v4438_v47 = vld [vmem:[%s4352_s29 + $0x64] ss:$16 sps:$4 sm:$0xff]   ;;  %v4442_v48 = vld [vmem:[%s4352_s29 + $0x4c] ss:$16 sps:$4 sm:$0xff]   ;;  %v4446_v49 = vld [vmem:[%s4352_s29 + $0x48] ss:$16 sps:$4 sm:$0xff]  }
  0x33   : > { %609 = vmatprep.subr.bf16.mxu0 %v3780_v19  ;;  %722 = vmatprep.subr.bf16.mxu1 %v3782_v20  ;;  %v4449_v50 = vld [vmem:[%s4352_s29 + $0x6c] ss:$16 sps:$4 sm:$0xff]   ;;  %v4455_v51 = vld [vmem:[%s4352_s29 + $0x60] ss:$16 sps:$4 sm:$0xff]   ;;  %v4460_v52 = vld [vmem:[%s4352_s29 + $0x84] ss:$16 sps:$4 sm:$0xff]  }
  0x34   : > { %v4464_v53 = vld [vmem:[%s4352_s29 + $0x68] ss:$16 sps:$4 sm:$0xff]   ;;  %v3812_v54 = vld [vmem:[%s4347_s25 + $0x10] sm:$0xff]   ;;  %v4473_v56 = vld [vmem:[%s4352_s29 + $0x8c] ss:$16 sps:$4 sm:$0xff]   ;;  %v375_v15 = vsub.s32 0, %v374_v14 }
  0x35   : > { %v4469_v55 = vld [vmem:[%s4352_s29 + $0x80] ss:$16 sps:$4 sm:$0xff]   ;;  %v4477_v57 = vld [vmem:[%s4352_s29 + $0xa4] ss:$16 sps:$4 sm:$0xff]   ;;  %v4481_v58 = vld [vmem:[%s4352_s29 + $0x88] ss:$16 sps:$4 sm:$0xff]  }
  0x36   : > { %610 = vmatpush1.bf16.msra.mxu0 %v3784_v21  ;;  %723 = vmatpush1.bf16.msra.mxu1 %v3785_v22  ;;  %v4484_v59 = vld [vmem:[%s4352_s29 + $0xac] ss:$16 sps:$4 sm:$0xff]   ;;  %v4490_v60 = vld [vmem:[%s4352_s29 + $0xa0] ss:$16 sps:$4 sm:$0xff]   ;;  %v4495_v61 = vld [vmem:[%s4352_s29 + $0xc4] ss:$16 sps:$4 sm:$0xff]  }
  0x37   : > { %611 = vmatprep.subr.bf16.mxu0 %v3786_v23  ;;  %724 = vmatprep.subr.bf16.mxu1 %v3788_v24  ;;  %v4499_v62 = vld [vmem:[%s4352_s29 + $0xa8] ss:$16 sps:$4 sm:$0xff]   ;;  %v4505_v0 = vld [vmem:[%s4352_s29 + $0xc0] ss:$16 sps:$4 sm:$0xff]   ;;  %v4508_v1 = vld [vmem:[%s4352_s29 + $0xcc] ss:$16 sps:$4 sm:$0xff]  }
  0x38   : > { %v3819_v63 = vld [vmem:[%s4347_s25 + $0x18] sm:$0xff]   ;;  %v4513_v2 = vld [vmem:[%s4352_s29 + $0xe4] ss:$16 sps:$4 sm:$0xff]   ;;  %v4525_v6 = vld [vmem:[%s4352_s29 + $0xe0] ss:$16 sps:$4 sm:$0xff]   ;;  %v383_v16 = vsub.s32 2, %v374_v14 }
  0x39   : > { %v4516_v3 = vld [vmem:[%s4352_s29 + $0xc8] ss:$16 sps:$4 sm:$0xff]   ;;  %v4519_v5 = vld [vmem:[%s4352_s29 + $0xec] ss:$16 sps:$4 sm:$0xff]   ;;  %v3826_v8 = vld [vmem:[%s4347_s25 + $0x20] sm:$0xff]   ;;  %v379_v18 = vsub.s32 1, %v374_v14 }
  0x3a   : > { %612 = vmatpush1.bf16.msra.mxu0 %v3790_v25  ;;  %725 = vmatpush1.bf16.msra.mxu1 %v3791_v26  ;;  %v4531_v7 = vld [vmem:[%s4352_s29 + $0xe8] ss:$16 sps:$4 sm:$0xff]   ;;  %v3840_v10 = vld [vmem:[%s4347_s25 + $0x30] sm:$0xff]   ;;  %v931_v12 = vld [vmem:[#allocation3] sm:$0xf]  ;;  %v387_v19 = vsub.s32 3, %v374_v14 }
  0x3b   : > { %613 = vmatprep.subr.bf16.mxu0 %v3792_v27  ;;  %726 = vmatprep.subr.bf16.mxu1 %v3794_v28  ;;  %v3833_v9 = vld [vmem:[%s4347_s25 + $0x28] sm:$0xff]   ;;  %v3847_v11 = vld [vmem:[%s4347_s25 + $0x38] sm:$0xff]   ;;  %v371_v17 = vld [vmem:[%s4357_s6] sm:$0xf]  ;;  %s3694_s23 = smul.u32 60, %s4222_s18 }
  0x3c   : > { %v4585_v20 = vrot.slane %v371_v17, %v375_v15  ;;  %v4587_v21 = vrot.slane %v371_v17, %v383_v16  ;;  %v4589_v22 = vrot.slane %v371_v17, %v379_v18  ;;  %v4591_v23 = vrot.slane %v371_v17, %v387_v19  ;;  %s3539_s7 = smul.u32 416, %s4222_s18 }
  0x3d   : > { %s1207_s26 = scalar_lea.vmem %s4359_s5, %s3694_s23 [#allocation5]  ;;  %s3547_s10 = smul.u32 52, %s4222_s18 }
  0x3e   : > { %614 = vmatpush1.bf16.msra.mxu0 %v3796_v29  ;;  %727 = vmatpush1.bf16.msra.mxu1 %v3797_v30  ;;  %s3272_s8 = scalar_lea.vmem [#allocation2], %s3539_s7  ;;  %s3549_s12 = smul.u32 352, %s4222_s18 }
  0x3f   : > { %615 = vmatprep.subr.bf16.mxu0 %v3798_v31  ;;  %728 = vmatprep.subr.bf16.mxu1 %v3800_v32  ;;  %s3276_s11 = scalar_lea.vmem %s4359_s5, %s3547_s10 [#allocation5]  ;;  %s3557_s13 = smul.u32 44, %s4222_s18 }
  0x40   : > { %s3280_s15 = scalar_lea.vmem [#allocation2], %s3549_s12  ;;  %s3559_s25 = smul.u32 288, %s4222_s18 }
  0x41   : > { %s3284_s24 = scalar_lea.vmem %s4359_s5, %s3557_s13 [#allocation5]  ;;  %s3567_s28 = smul.u32 36, %s4222_s18 }
  0x42   : > { %616 = vmatpush1.bf16.msra.mxu0 %v3802_v33  ;;  %729 = vmatpush1.bf16.msra.mxu1 %v3803_v34  ;;  %s3288_s27 = scalar_lea.vmem [#allocation2], %s3559_s25  ;;  %s3569_s17 = smul.u32 224, %s4222_s18 }
  0x43   : > { %1092 = vmatprep.subr.bf16.mxu0 %v4397_v35  ;;  %1133 = vmatprep.subr.bf16.mxu1 %v4400_v36  ;;  %s3292_s6 = scalar_lea.vmem %s4359_s5, %s3567_s28 [#allocation5]  ;;  %s3577_s23 = smul.u32 28, %s4222_s18 }
  0x44   : > { %s3579_s7 = smul.u32 160, %s4222_s18  ;;  %s3599_s25 = sshll.u32 %s4222_s18, 5 }
  0x45   : > { %634 = vmatmul.mubr.bf16.vlgmr.msra.gmra.mrb[0].mxu0 %v3804_v37  ;;  %747 = vmatmul.mubr.bf16.vlgmr.msra.gmra.mrb[0].mxu1 %v3804_v37  ;;  %s3587_s10 = smul.u32 20, %s4222_s18  ;;  %s3607_s28 = sshll.u32 %s4222_s18, 2 }
  0x46   : > { %1093 = vmatpush1.bf16.msra.mxu0 %v4404_v38  ;;  %643 = vmatprep.mubr.bf16.mxu0 %v4238_v4  ;;  %s3589_s12 = smul.u32 96, %s4222_s18 }
  0x47   : > { %756 = vmatprep.mubr.bf16.mxu1 %v4238_v4  ;;  %1094 = vmatprep.subr.bf16.mxu0 %v4408_v39  ;;  %s3597_s13 = smul.u32 12, %s4222_s18 }
  0x48   : > { %1134 = vmatpush1.bf16.msra.mxu1 %v4412_v40 }
  0x49   : > { %1135 = vmatprep.subr.bf16.mxu1 %v4415_v41 }
  0x4a   : > { %1095 = vmatpush1.bf16.msra.mxu0 %v4420_v42 }
  0x4b   : > { %1096 = vmatprep.subr.bf16.mxu0 %v4425_v43 }
  0x4c   : > { %1136 = vmatpush1.bf16.msra.mxu1 %v4429_v44 }
  0x4d   : > { %644 = vmatmul.mubr.bf16.gmra.mrb[4].mxu0 %v3808_v45  ;;  %757 = vmatmul.mubr.bf16.gmra.mrb[4].mxu1 %v3808_v45 }
  0x4e   : > { %653 = vmatprep.mubr.bf16.mxu0 %v4238_v4  ;;  %766 = vmatprep.mubr.bf16.mxu1 %v4238_v4 }
  0x4f   : > { %1097 = vmatpush1.bf16.msra.mxu0 %v4435_v46  ;;  %1137 = vmatprep.subr.bf16.mxu1 %v4442_v48 }
  0x50   : > { %1098 = vmatprep.subr.bf16.mxu0 %v4438_v47  ;;  %1138 = vmatpush1.bf16.msra.mxu1 %v4446_v49 }
  0x51   : > { %1139 = vmatprep.subr.bf16.mxu1 %v4449_v50 }
  0x53   : > { %1099 = vmatpush1.bf16.msra.mxu0 %v4455_v51 }
  0x54   : > { %1100 = vmatprep.subr.bf16.mxu0 %v4460_v52  ;;  %1140 = vmatpush1.bf16.msra.mxu1 %v4464_v53 }
  0x55   : > { %654 = vmatmul.mubr.bf16.gmra.mrb[8].mxu0 %v3812_v54  ;;  %767 = vmatmul.mubr.bf16.gmra.mrb[8].mxu1 %v3812_v54 }
  0x56   : > { %663 = vmatprep.mubr.bf16.mxu0 %v4238_v4  ;;  %776 = vmatprep.mubr.bf16.mxu1 %v4238_v4 }
  0x57   : > { %1101 = vmatpush1.bf16.msra.mxu0 %v4469_v55  ;;  %1141 = vmatprep.subr.bf16.mxu1 %v4473_v56 }
  0x58   : > { %1102 = vmatprep.subr.bf16.mxu0 %v4477_v57  ;;  %1142 = vmatpush1.bf16.msra.mxu1 %v4481_v58 }
  0x59   : > { %1143 = vmatprep.subr.bf16.mxu1 %v4484_v59 }
  0x5b   : > { %1103 = vmatpush1.bf16.msra.mxu0 %v4490_v60 }
  0x5c   : > { %1104 = vmatprep.subr.bf16.mxu0 %v4495_v61  ;;  %1144 = vmatpush1.bf16.msra.mxu1 %v4499_v62 }
  0x5d   : > { %664 = vmatmul.mubr.bf16.gmra.mrb[12].mxu0 %v3819_v63  ;;  %777 = vmatmul.mubr.bf16.gmra.mrb[12].mxu1 %v3819_v63 }
  0x5e   : > { %673 = vmatprep.mubr.bf16.mxu0 %v4238_v4  ;;  %786 = vmatprep.mubr.bf16.mxu1 %v4238_v4 }
  0x5f   : > { %1105 = vmatpush1.bf16.msra.mxu0 %v4505_v0  ;;  %1145 = vmatprep.subr.bf16.mxu1 %v4508_v1 }
  0x60   : > { %1106 = vmatprep.subr.bf16.mxu0 %v4513_v2  ;;  %1146 = vmatpush1.bf16.msra.mxu1 %v4516_v3 }
  0x61   : > { %1147 = vmatprep.subr.bf16.mxu1 %v4519_v5 }
  0x63   : > { %1107 = vmatpush1.bf16.msra.mxu0 %v4525_v6 }
  0x64   : > { %1148 = vmatpush1.bf16.msra.mxu1 %v4531_v7  ;;  %1219 = vmatprep.subr.bf16.mxu0 %v4397_v35 }
  0x65   : > { %674 = vmatmul.mubr.bf16.gmra.mrb[16].mxu0 %v3826_v8  ;;  %787 = vmatmul.mubr.bf16.gmra.mrb[16].mxu1 %v3826_v8 }
  0x66   : > { %683 = vmatprep.mubr.bf16.mxu0 %v4238_v4  ;;  %796 = vmatprep.mubr.bf16.mxu1 %v4238_v4 }
  0x67   : > { %1260 = vmatprep.subr.bf16.mxu1 %v4400_v36 }
  0x6d   : > { %684 = vmatmul.mubr.bf16.gmra.mrb[20].mxu0 %v3833_v9  ;;  %797 = vmatmul.mubr.bf16.gmra.mrb[20].mxu1 %v3833_v9 }
  0x6e   : > { %693 = vmatprep.mubr.bf16.mxu0 %v4238_v4  ;;  %806 = vmatprep.mubr.bf16.mxu1 %v4238_v4 }
  0x75   : > { %694 = vmatmul.mubr.bf16.gmra.mrb[24].mxu0 %v3840_v10  ;;  %807 = vmatmul.mubr.bf16.gmra.mrb[24].mxu1 %v3840_v10 }
  0x76   : > { %703 = vmatprep.mubr.bf16.mxu0 %v4238_v4  ;;  %816 = vmatprep.mubr.bf16.mxu1 %v4238_v4 }
  0x7d   : > { %704 = vmatmul.mubr.bf16.gmra.mrb[28].mxu0 %v3847_v11  ;;  %817 = vmatmul.mubr.bf16.gmra.mrb[28].mxu1 %v3847_v11 }
  0x7e   : > { %1124 = vmatprep.mubr.bf16.mxu0 %v4238_v4  ;;  %1165 = vmatprep.mubr.bf16.mxu1 %v4238_v4 }
  0x85   : > { %1125 = vmatmul.mubr.bf16.vlgmr.msra.gmra.mrb[32].mxu0 %v931_v12  ;;  %1166 = vmatmul.mubr.bf16.vlgmr.msra.gmra.mrb[32].mxu1 %v931_v12 }
  0x86   : > { %1220 = vmatpush1.bf16.msra.mxu0 %v4404_v38  ;;  %1261 = vmatpush1.bf16.msra.mxu1 %v4412_v40 }
  0x87   : > { %1221 = vmatprep.subr.bf16.mxu0 %v4408_v39  ;;  %1262 = vmatprep.subr.bf16.mxu1 %v4415_v41 }
  0x88   : > { %1251 = vmatprep.mubr.bf16.mxu0 %v4238_v4  ;;  %1292 = vmatprep.mubr.bf16.mxu1 %v4238_v4 }
  0x8a   : > { %1222 = vmatpush1.bf16.msra.mxu0 %v4420_v42  ;;  %1263 = vmatpush1.bf16.msra.mxu1 %v4429_v44 }
  0x8b   : > { %1223 = vmatprep.subr.bf16.mxu0 %v4425_v43  ;;  %1264 = vmatprep.subr.bf16.mxu1 %v4442_v48 }
  0x8e   : > { %1224 = vmatpush1.bf16.msra.mxu0 %v4435_v46  ;;  %1265 = vmatpush1.bf16.msra.mxu1 %v4446_v49 }
  0x8f   : > { %1225 = vmatprep.subr.bf16.mxu0 %v4438_v47  ;;  %1266 = vmatprep.subr.bf16.mxu1 %v4449_v50 }
  0x92   : > { %1226 = vmatpush1.bf16.msra.mxu0 %v4455_v51  ;;  %1267 = vmatpush1.bf16.msra.mxu1 %v4464_v53 }
  0x93   : > { %1227 = vmatprep.subr.bf16.mxu0 %v4460_v52  ;;  %1268 = vmatprep.subr.bf16.mxu1 %v4473_v56 }
  0x96   : > { %1228 = vmatpush1.bf16.msra.mxu0 %v4469_v55  ;;  %1269 = vmatpush1.bf16.msra.mxu1 %v4481_v58 }
  0x97   : > { %1229 = vmatprep.subr.bf16.mxu0 %v4477_v57  ;;  %1270 = vmatprep.subr.bf16.mxu1 %v4484_v59 }
  0x9a   : > { %1230 = vmatpush1.bf16.msra.mxu0 %v4490_v60  ;;  %1271 = vmatpush1.bf16.msra.mxu1 %v4499_v62 }
  0x9b   : > { %1231 = vmatprep.subr.bf16.mxu0 %v4495_v61  ;;  %1272 = vmatprep.subr.bf16.mxu1 %v4508_v1 }
  0x9e   : > { %1232 = vmatpush1.bf16.msra.mxu0 %v4505_v0  ;;  %1273 = vmatpush1.bf16.msra.mxu1 %v4516_v3 }
  0x9f   : > { %1233 = vmatprep.subr.bf16.mxu0 %v4513_v2  ;;  %1274 = vmatprep.subr.bf16.mxu1 %v4519_v5 }
  0xa2   : > { %1234 = vmatpush1.bf16.msra.mxu0 %v4525_v6  ;;  %1275 = vmatpush1.bf16.msra.mxu1 %v4531_v7 }
  0xa3   : > { %1346 = vmatprep.subr.bf16.mxu0 %v4397_v35  ;;  %1387 = vmatprep.subr.bf16.mxu1 %v4400_v36 }
 0x118   : > { %v635_v24 = vpop.f32.mrb[0].mxu0  ;;  %v748_v25 = vpop.f32.mrb[0].mxu1 }
 0x119   : > { %v636_v26 = vadd.f32 %v635_v24, %v4585_v20  ;;  %v749_v27 = vadd.f32 %v748_v25, %v4587_v21  ;;  %v637_v28 = vpop.f32.mrb[1].mxu0  ;;  %v750_v29 = vpop.f32.mrb[1].mxu1 }
 0x11a   : > { %v638_v30 = vadd.f32 %v637_v28, %v4589_v22  ;;  %v751_v31 = vadd.f32 %v750_v29, %v4591_v23  ;;  %v639_v32 = vpop.f32.mrb[2].mxu0  ;;  %v752_v33 = vpop.f32.mrb[2].mxu1 }
 0x11b   : > { %827 = vst [vmem:[#allocation2] sm:$0xff] %v636_v26  ;;  %829 = vst [vmem:[#allocation2 + $0x10] sm:$0xff] %v749_v27  ;;  %v640_v34 = vadd.f32 %v639_v32, %v4585_v20  ;;  %v753_v37 = vadd.f32 %v752_v33, %v4587_v21  ;;  %v641_v45 = vpop.f32.mrb[3].mxu0  ;;  %v754_v54 = vpop.f32.mrb[3].mxu1 }
 0x11c   : > { %828 = vst [vmem:[#allocation2 + $0x8] sm:$0xff] %v638_v30  ;;  %830 = vst [vmem:[#allocation2 + $0x18] sm:$0xff] %v751_v31  ;;  %v642_v63 = vadd.f32 %v641_v45, %v4589_v22  ;;  %v755_v8 = vadd.f32 %v754_v54, %v4591_v23 }
 0x11d   : > { %831 = vst [vmem:[#allocation2 + $0x20] sm:$0xff] %v640_v34  ;;  %833 = vst [vmem:[#allocation2 + $0x30] sm:$0xff] %v753_v37 }
 0x11e   : > { %832 = vst [vmem:[#allocation2 + $0x28] sm:$0xff] %v642_v63  ;;  %834 = vst [vmem:[#allocation2 + $0x38] sm:$0xff] %v755_v8 }
 0x120   : > { %v645_v9 = vpop.f32.mrb[4].mxu0  ;;  %v758_v10 = vpop.f32.mrb[4].mxu1 }
 0x121   : > { %v646_v11 = vadd.f32 %v645_v9, %v4585_v20  ;;  %v759_v12 = vadd.f32 %v758_v10, %v4587_v21  ;;  %v647_v13 = vpop.f32.mrb[5].mxu0  ;;  %v760_v14 = vpop.f32.mrb[5].mxu1 }
 0x122   : > { %v648_v15 = vadd.f32 %v647_v13, %v4589_v22  ;;  %v761_v16 = vadd.f32 %v760_v14, %v4591_v23  ;;  %v649_v17 = vpop.f32.mrb[6].mxu0  ;;  %v762_v18 = vpop.f32.mrb[6].mxu1 }
 0x123   : > { %835 = vst [vmem:[#allocation2 + $0x40] sm:$0xff] %v646_v11  ;;  %837 = vst [vmem:[#allocation2 + $0x50] sm:$0xff] %v759_v12  ;;  %v650_v19 = vadd.f32 %v649_v17, %v4585_v20  ;;  %v763_v24 = vadd.f32 %v762_v18, %v4587_v21  ;;  %v651_v25 = vpop.f32.mrb[7].mxu0  ;;  %v764_v26 = vpop.f32.mrb[7].mxu1 }
 0x124   : > { %836 = vst [vmem:[#allocation2 + $0x48] sm:$0xff] %v648_v15  ;;  %838 = vst [vmem:[#allocation2 + $0x58] sm:$0xff] %v761_v16  ;;  %v652_v27 = vadd.f32 %v651_v25, %v4589_v22  ;;  %v765_v28 = vadd.f32 %v764_v26, %v4591_v23 }
 0x125   : > { %839 = vst [vmem:[#allocation2 + $0x60] sm:$0xff] %v650_v19  ;;  %841 = vst [vmem:[#allocation2 + $0x70] sm:$0xff] %v763_v24 }
 0x126   : > { %840 = vst [vmem:[#allocation2 + $0x68] sm:$0xff] %v652_v27  ;;  %842 = vst [vmem:[#allocation2 + $0x78] sm:$0xff] %v765_v28 }
 0x128   : > { %v655_v29 = vpop.f32.mrb[8].mxu0  ;;  %v768_v30 = vpop.f32.mrb[8].mxu1 }
 0x129   : > { %v656_v31 = vadd.f32 %v655_v29, %v4585_v20  ;;  %v769_v32 = vadd.f32 %v768_v30, %v4587_v21  ;;  %v657_v33 = vpop.f32.mrb[9].mxu0  ;;  %v770_v34 = vpop.f32.mrb[9].mxu1 }
 0x12a   : > { %v658_v37 = vadd.f32 %v657_v33, %v4589_v22  ;;  %v771_v45 = vadd.f32 %v770_v34, %v4591_v23  ;;  %v659_v54 = vpop.f32.mrb[10].mxu0  ;;  %v772_v63 = vpop.f32.mrb[10].mxu1 }
 0x12b   : > { %843 = vst [vmem:[#allocation2 + $0x80] sm:$0xff] %v656_v31  ;;  %845 = vst [vmem:[#allocation2 + $0x90] sm:$0xff] %v769_v32  ;;  %v660_v8 = vadd.f32 %v659_v54, %v4585_v20  ;;  %v773_v9 = vadd.f32 %v772_v63, %v4587_v21  ;;  %v661_v10 = vpop.f32.mrb[11].mxu0  ;;  %v774_v11 = vpop.f32.mrb[11].mxu1 }
 0x12c   : > { %844 = vst [vmem:[#allocation2 + $0x88] sm:$0xff] %v658_v37  ;;  %846 = vst [vmem:[#allocation2 + $0x98] sm:$0xff] %v771_v45  ;;  %v662_v12 = vadd.f32 %v661_v10, %v4589_v22  ;;  %v775_v13 = vadd.f32 %v774_v11, %v4591_v23 }
 0x12d   : > { %847 = vst [vmem:[#allocation2 + $0xa0] sm:$0xff] %v660_v8  ;;  %849 = vst [vmem:[#allocation2 + $0xb0] sm:$0xff] %v773_v9 }
 0x12e   : > { %848 = vst [vmem:[#allocation2 + $0xa8] sm:$0xff] %v662_v12  ;;  %850 = vst [vmem:[#allocation2 + $0xb8] sm:$0xff] %v775_v13 }
 0x130   : > { %v665_v14 = vpop.f32.mrb[12].mxu0  ;;  %v778_v15 = vpop.f32.mrb[12].mxu1 }
 0x131   : > { %v666_v16 = vadd.f32 %v665_v14, %v4585_v20  ;;  %v779_v17 = vadd.f32 %v778_v15, %v4587_v21  ;;  %v667_v18 = vpop.f32.mrb[13].mxu0  ;;  %v780_v19 = vpop.f32.mrb[13].mxu1 }
 0x132   : > { %v668_v24 = vadd.f32 %v667_v18, %v4589_v22  ;;  %v781_v25 = vadd.f32 %v780_v19, %v4591_v23  ;;  %v669_v26 = vpop.f32.mrb[14].mxu0  ;;  %v782_v27 = vpop.f32.mrb[14].mxu1 }
 0x133   : > { %851 = vst [vmem:[#allocation2 + $0xc0] sm:$0xff] %v666_v16  ;;  %853 = vst [vmem:[#allocation2 + $0xd0] sm:$0xff] %v779_v17  ;;  %v670_v28 = vadd.f32 %v669_v26, %v4585_v20  ;;  %v783_v29 = vadd.f32 %v782_v27, %v4587_v21  ;;  %v671_v30 = vpop.f32.mrb[15].mxu0  ;;  %v784_v31 = vpop.f32.mrb[15].mxu1 }
 0x134   : > { %852 = vst [vmem:[#allocation2 + $0xc8] sm:$0xff] %v668_v24  ;;  %854 = vst [vmem:[#allocation2 + $0xd8] sm:$0xff] %v781_v25  ;;  %v672_v32 = vadd.f32 %v671_v30, %v4589_v22  ;;  %v785_v33 = vadd.f32 %v784_v31, %v4591_v23 }
 0x135   : > { %855 = vst [vmem:[#allocation2 + $0xe0] sm:$0xff] %v670_v28  ;;  %857 = vst [vmem:[#allocation2 + $0xf0] sm:$0xff] %v783_v29 }
 0x136   : > { %856 = vst [vmem:[#allocation2 + $0xe8] sm:$0xff] %v672_v32  ;;  %858 = vst [vmem:[#allocation2 + $0xf8] sm:$0xff] %v785_v33 }
 0x138   : > { %v675_v34 = vpop.f32.mrb[16].mxu0  ;;  %v788_v37 = vpop.f32.mrb[16].mxu1 }
 0x139   : > { %v676_v45 = vadd.f32 %v675_v34, %v4585_v20  ;;  %v789_v54 = vadd.f32 %v788_v37, %v4587_v21  ;;  %v677_v63 = vpop.f32.mrb[17].mxu0  ;;  %v790_v8 = vpop.f32.mrb[17].mxu1 }
 0x13a   : > { %v678_v9 = vadd.f32 %v677_v63, %v4589_v22  ;;  %v791_v10 = vadd.f32 %v790_v8, %v4591_v23  ;;  %v679_v11 = vpop.f32.mrb[18].mxu0  ;;  %v792_v12 = vpop.f32.mrb[18].mxu1 }
 0x13b   : > { %859 = vst [vmem:[#allocation2 + $0x100] sm:$0xff] %v676_v45  ;;  %861 = vst [vmem:[#allocation2 + $0x110] sm:$0xff] %v789_v54  ;;  %v680_v13 = vadd.f32 %v679_v11, %v4585_v20  ;;  %v793_v14 = vadd.f32 %v792_v12, %v4587_v21  ;;  %v681_v15 = vpop.f32.mrb[19].mxu0  ;;  %v794_v16 = vpop.f32.mrb[19].mxu1 }
 0x13c   : > { %860 = vst [vmem:[#allocation2 + $0x108] sm:$0xff] %v678_v9  ;;  %862 = vst [vmem:[#allocation2 + $0x118] sm:$0xff] %v791_v10  ;;  %v682_v17 = vadd.f32 %v681_v15, %v4589_v22  ;;  %v795_v18 = vadd.f32 %v794_v16, %v4591_v23 }
 0x13d   : > { %863 = vst [vmem:[#allocation2 + $0x120] sm:$0xff] %v680_v13  ;;  %865 = vst [vmem:[#allocation2 + $0x130] sm:$0xff] %v793_v14 }
 0x13e   : > { %864 = vst [vmem:[#allocation2 + $0x128] sm:$0xff] %v682_v17  ;;  %866 = vst [vmem:[#allocation2 + $0x138] sm:$0xff] %v795_v18 }
 0x140   : > { %v685_v19 = vpop.f32.mrb[20].mxu0  ;;  %v798_v24 = vpop.f32.mrb[20].mxu1 }
 0x141   : > { %v686_v25 = vadd.f32 %v685_v19, %v4585_v20  ;;  %v799_v26 = vadd.f32 %v798_v24, %v4587_v21  ;;  %v687_v27 = vpop.f32.mrb[21].mxu0  ;;  %v800_v28 = vpop.f32.mrb[21].mxu1 }
 0x142   : > { %v688_v29 = vadd.f32 %v687_v27, %v4589_v22  ;;  %v801_v30 = vadd.f32 %v800_v28, %v4591_v23  ;;  %v689_v31 = vpop.f32.mrb[22].mxu0  ;;  %v802_v32 = vpop.f32.mrb[22].mxu1 }
 0x143   : > { %867 = vst [vmem:[#allocation2 + $0x140] sm:$0xff] %v686_v25  ;;  %869 = vst [vmem:[#allocation2 + $0x150] sm:$0xff] %v799_v26  ;;  %v690_v33 = vadd.f32 %v689_v31, %v4585_v20  ;;  %v803_v34 = vadd.f32 %v802_v32, %v4587_v21  ;;  %v691_v37 = vpop.f32.mrb[23].mxu0  ;;  %v804_v45 = vpop.f32.mrb[23].mxu1 }
 0x144   : > { %868 = vst [vmem:[#allocation2 + $0x148] sm:$0xff] %v688_v29  ;;  %870 = vst [vmem:[#allocation2 + $0x158] sm:$0xff] %v801_v30  ;;  %v692_v54 = vadd.f32 %v691_v37, %v4589_v22  ;;  %v805_v63 = vadd.f32 %v804_v45, %v4591_v23 }
 0x145   : > { %871 = vst [vmem:[#allocation2 + $0x160] sm:$0xff] %v690_v33  ;;  %873 = vst [vmem:[#allocation2 + $0x170] sm:$0xff] %v803_v34 }
 0x146   : > { %872 = vst [vmem:[#allocation2 + $0x168] sm:$0xff] %v692_v54  ;;  %874 = vst [vmem:[#allocation2 + $0x178] sm:$0xff] %v805_v63 }
 0x148   : > { %v695_v8 = vpop.f32.mrb[24].mxu0  ;;  %v808_v9 = vpop.f32.mrb[24].mxu1 }
 0x149   : > { %v696_v10 = vadd.f32 %v695_v8, %v4585_v20  ;;  %v809_v11 = vadd.f32 %v808_v9, %v4587_v21  ;;  %v697_v12 = vpop.f32.mrb[25].mxu0  ;;  %v810_v13 = vpop.f32.mrb[25].mxu1 }
 0x14a   : > { %v698_v14 = vadd.f32 %v697_v12, %v4589_v22  ;;  %v811_v15 = vadd.f32 %v810_v13, %v4591_v23  ;;  %v699_v16 = vpop.f32.mrb[26].mxu0  ;;  %v812_v17 = vpop.f32.mrb[26].mxu1 }
 0x14b   : > { %875 = vst [vmem:[#allocation2 + $0x180] sm:$0xff] %v696_v10  ;;  %877 = vst [vmem:[#allocation2 + $0x190] sm:$0xff] %v809_v11  ;;  %v700_v18 = vadd.f32 %v699_v16, %v4585_v20  ;;  %v813_v19 = vadd.f32 %v812_v17, %v4587_v21  ;;  %v701_v24 = vpop.f32.mrb[27].mxu0  ;;  %v814_v25 = vpop.f32.mrb[27].mxu1 }
 0x14c   : > { %876 = vst [vmem:[#allocation2 + $0x188] sm:$0xff] %v698_v14  ;;  %878 = vst [vmem:[#allocation2 + $0x198] sm:$0xff] %v811_v15  ;;  %v702_v26 = vadd.f32 %v701_v24, %v4589_v22  ;;  %v815_v27 = vadd.f32 %v814_v25, %v4591_v23 }
 0x14d   : > { %879 = vst [vmem:[#allocation2 + $0x1a0] sm:$0xff] %v700_v18  ;;  %881 = vst [vmem:[#allocation2 + $0x1b0] sm:$0xff] %v813_v19 }
 0x14e   : > { %880 = vst [vmem:[#allocation2 + $0x1a8] sm:$0xff] %v702_v26  ;;  %882 = vst [vmem:[#allocation2 + $0x1b8] sm:$0xff] %v815_v27 }
 0x150   : > { %v705_v28 = vpop.f32.mrb[28].mxu0  ;;  %v818_v29 = vpop.f32.mrb[28].mxu1 }
 0x151   : > { %v706_v30 = vadd.f32 %v705_v28, %v4585_v20  ;;  %v819_v31 = vadd.f32 %v818_v29, %v4587_v21  ;;  %v707_v32 = vpop.f32.mrb[29].mxu0  ;;  %v820_v33 = vpop.f32.mrb[29].mxu1 }
 0x152   : > { %v708_v34 = vadd.f32 %v707_v32, %v4589_v22  ;;  %v821_v37 = vadd.f32 %v820_v33, %v4591_v23  ;;  %v709_v45 = vpop.f32.mrb[30].mxu0  ;;  %v822_v54 = vpop.f32.mrb[30].mxu1 }
 0x153   : > { %883 = vst [vmem:[#allocation2 + $0x1c0] sm:$0xff] %v706_v30  ;;  %885 = vst [vmem:[#allocation2 + $0x1d0] sm:$0xff] %v819_v31  ;;  %v710_v63 = vadd.f32 %v709_v45, %v4585_v20  ;;  %v823_v8 = vadd.f32 %v822_v54, %v4587_v21  ;;  %v711_v9 = vpop.f32.mrb[31].mxu0  ;;  %v824_v10 = vpop.f32.mrb[31].mxu1 }
 0x154   : > { %884 = vst [vmem:[#allocation2 + $0x1c8] sm:$0xff] %v708_v34  ;;  %886 = vst [vmem:[#allocation2 + $0x1d8] sm:$0xff] %v821_v37  ;;  %v712_v11 = vadd.f32 %v711_v9, %v4589_v22  ;;  %v825_v12 = vadd.f32 %v824_v10, %v4591_v23 }
 0x155   : > { %887 = vst [vmem:[#allocation2 + $0x1e0] sm:$0xff] %v710_v63  ;;  %889 = vst [vmem:[#allocation2 + $0x1f0] sm:$0xff] %v823_v8  ;;  %v1178_v63 = vld [vmem:[#allocation4] sm:$0xff] }
 0x156   : > { %888 = vst [vmem:[#allocation2 + $0x1e8] sm:$0xff] %v712_v11  ;;  %890 = vst [vmem:[#allocation2 + $0x1f8] sm:$0xff] %v825_v12 }
 0x158   : > { %v1126_v13 = vpop.f32.mrb[32].mxu0  ;;  %v1167_v14 = vpop.f32.mrb[32].mxu1 }
 0x159   : > { %v1128_v15 = vpop.f32.mrb[33].mxu0  ;;  %v1169_v16 = vpop.f32.mrb[33].mxu1 }
 0x15a   : > { %v1130_v20 = vpop.f32.mrb[34].mxu0  ;;  %v1171_v17 = vpop.f32.mrb[34].mxu1 }
 0x15b   : > { %v1131_v21 = vpop.f32.mrb[35].mxu0  ;;  %v1172_v18 = vpop.f32.mrb[35].mxu1 }
 0x15d   : > { %v927_v19 = vld [vmem:[%s926_s22] sm:$0xff]  ;;  %v928_v24 = vld [vmem:[%s926_s22 + $0x8] sm:$0xff]  ;;  %v930_v27 = vld [vmem:[%s926_s22 + $0x18] sm:$0xff] }
 0x15e   : > { %v1174_v25 = vadd.f32 %v1126_v13, %v927_v19  ;;  %v1175_v22 = vadd.f32 %v1128_v15, %v928_v24  ;;  %v1177_v28 = vadd.f32 %v1169_v16, %v930_v27  ;;  %v929_v29 = vld [vmem:[%s926_s22 + $0x10] sm:$0xff]  ;;  %v3540_v21 = vld [vmem:[%s3272_s8 + $0x20] sm:$0xff]  ;;  %s3296_s22 = scalar_lea.vmem [#allocation2], %s3569_s17  ;;  %s2097_s17 = ssub.s32 8, %s4222_s18 }
 0x15f   : > { %v1176_v31 = vadd.f32 %v1167_v14, %v929_v29 }
 0x160   : > { %v3535_v26 = vmul.f32 -1.442695, %v1174_v25  ;;  %v3536_v23 = vmul.f32 -1.442695, %v1175_v22  ;;  %v3537_v30 = vmul.f32 -1.442695, %v1177_v28 }
 0x161   : > { %v3541_v25 = vld [vmem:[%s3272_s8 + $0x28] sm:$0xff] }
 0x162   : > { %3860 = vpow2.f32 %v3535_v26 }
 0x163   : > { %3862 = vpow2.f32 %v3536_v23 }
 0x164   : > { %3864 = vpow2.f32 %v3537_v30 }
 0x165   : > { %3866 = vtanh.f32 %v1176_v31 }
 0x16c   : > { %v3861_v32 = vpop.eup %3860 }
 0x16d   : > { %v3863_v33 = vpop.eup %3862  ;;  %v1182_v34 = vadd.f32 1.0, %v3861_v32 }
 0x16e   : > { %v1188_v37 = vadd.f32 1.0, %v3863_v33  ;;  %v3865_v45 = vpop.eup %3864  ;;  %v3542_v33 = vld [vmem:[%s3272_s8 + $0x30] sm:$0xff] }
 0x16f   : > { %3868 = vrcp.f32 %v1182_v34  ;;  %v3867_v54 = vpop.eup %3866  ;;  %v1195_v11 = vadd.f32 1.0, %v3865_v45 }
 0x170   : > { %3870 = vrcp.f32 %v1188_v37 }
 0x171   : > { %3872 = vrcp.f32 %v1195_v11 }
 0x179   : > { %v3869_v8 = vpop.eup %3868 }
 0x17a   : > { %v3871_v9 = vpop.eup %3870  ;;  %v1199_v10 = vmul.f32 %v3869_v8, %v3867_v54 }
 0x17b   : > { %v1198_v12 = vmul.f32 %v3871_v9, %v1178_v63  ;;  %v3873_v14 = vpop.eup %3872 }
 0x17d   : > { %v4658_v13 = vadd.f32 %v1199_v10, %v1198_v12 }
 0x17f   : > { %3874 = vtanh.f32 %v4658_v13 }
 0x189   : > { %v3875_v15 = vpop.eup %3874 }
 0x18a   : > { %v1202_v16 = vmul.f32 %v3875_v15, %v3873_v14 }
 0x18c   : > { %v1203_v20 = vpack.c.bf16 %v1202_v16, %v1202_v16 }
 0x18e   : > { %1204 = vst [vmem:[#allocation3] sm:$0xf] %v1203_v20  ;;  %1208 = vst [vmem:[%s1207_s26] sm:$0xf] %v1203_v20  ;;  %s3300_s26 = scalar_lea.vmem %s4359_s5, %s3577_s23 [#allocation5] }
 0x195   : > { %v1218_v17 = vld [vmem:[#allocation3] sm:$0xf] }
 0x196   : > { %1252 = vmatmul.mubr.bf16.vlgmr.msra.gmra.mrb[36].mxu0 %v1218_v17  ;;  %1293 = vmatmul.mubr.bf16.vlgmr.msra.gmra.mrb[36].mxu1 %v1218_v17 }
 0x197   : > { %1347 = vmatpush1.bf16.msra.mxu0 %v4404_v38  ;;  %1388 = vmatpush1.bf16.msra.mxu1 %v4412_v40 }
 0x198   : > { %1348 = vmatprep.subr.bf16.mxu0 %v4408_v39  ;;  %1389 = vmatprep.subr.bf16.mxu1 %v4415_v41 }
 0x199   : > { %1378 = vmatprep.mubr.bf16.mxu0 %v4238_v4  ;;  %1419 = vmatprep.mubr.bf16.mxu1 %v4238_v4 }
 0x19b   : > { %1349 = vmatpush1.bf16.msra.mxu0 %v4420_v42  ;;  %1390 = vmatpush1.bf16.msra.mxu1 %v4429_v44 }
 0x19c   : > { %1350 = vmatprep.subr.bf16.mxu0 %v4425_v43  ;;  %1391 = vmatprep.subr.bf16.mxu1 %v4442_v48 }
 0x19f   : > { %1351 = vmatpush1.bf16.msra.mxu0 %v4435_v46  ;;  %1392 = vmatpush1.bf16.msra.mxu1 %v4446_v49 }
 0x1a0   : > { %1352 = vmatprep.subr.bf16.mxu0 %v4438_v47  ;;  %1393 = vmatprep.subr.bf16.mxu1 %v4449_v50 }
 0x1a3   : > { %1353 = vmatpush1.bf16.msra.mxu0 %v4455_v51  ;;  %1394 = vmatpush1.bf16.msra.mxu1 %v4464_v53 }
 0x1a4   : > { %1354 = vmatprep.subr.bf16.mxu0 %v4460_v52  ;;  %1395 = vmatprep.subr.bf16.mxu1 %v4473_v56 }
 0x1a7   : > { %1355 = vmatpush1.bf16.msra.mxu0 %v4469_v55  ;;  %1396 = vmatpush1.bf16.msra.mxu1 %v4481_v58 }
 0x1a8   : > { %1356 = vmatprep.subr.bf16.mxu0 %v4477_v57  ;;  %1397 = vmatprep.subr.bf16.mxu1 %v4484_v59 }
 0x1ab   : > { %1357 = vmatpush1.bf16.msra.mxu0 %v4490_v60  ;;  %1398 = vmatpush1.bf16.msra.mxu1 %v4499_v62 }
 0x1ac   : > { %1358 = vmatprep.subr.bf16.mxu0 %v4495_v61  ;;  %1399 = vmatprep.subr.bf16.mxu1 %v4508_v1 }
 0x1af   : > { %1359 = vmatpush1.bf16.msra.mxu0 %v4505_v0  ;;  %1400 = vmatpush1.bf16.msra.mxu1 %v4516_v3 }
 0x1b0   : > { %1360 = vmatprep.subr.bf16.mxu0 %v4513_v2  ;;  %1401 = vmatprep.subr.bf16.mxu1 %v4519_v5 }
 0x1b3   : > { %1361 = vmatpush1.bf16.msra.mxu0 %v4525_v6  ;;  %1402 = vmatpush1.bf16.msra.mxu1 %v4531_v7 }
 0x1b4   : > { %1473 = vmatprep.subr.bf16.mxu0 %v4397_v35  ;;  %1514 = vmatprep.subr.bf16.mxu1 %v4400_v36  ;;  %v3543_v35 = vld [vmem:[%s3272_s8 + $0x38] sm:$0xff]  ;;  %s3304_s8 = scalar_lea.vmem [#allocation2], %s3579_s7 }
 0x269   : > { %v1253_v18 = vpop.f32.mrb[36].mxu0  ;;  %v1294_v19 = vpop.f32.mrb[36].mxu1 }
 0x26a   : > { %v1301_v24 = vadd.f32 %v3540_v21, %v1253_v18  ;;  %v1255_v22 = vpop.f32.mrb[37].mxu0  ;;  %v1296_v26 = vpop.f32.mrb[37].mxu1  ;;  %v1303_v37 = vadd.f32 %v3542_v33, %v1294_v19  ;;  %v4774_v33 = vld [vmem:[%s4352_s29 + $0x28] ss:$16 sps:$4 sm:$0xff]  }
 0x26b   : > { %v1302_v23 = vadd.f32 %v3541_v25, %v1255_v22  ;;  %v1257_v27 = vpop.f32.mrb[38].mxu0  ;;  %v1298_v28 = vpop.f32.mrb[38].mxu1  ;;  %v1304_v36 = vadd.f32 %v3543_v35, %v1296_v26  ;;  %v4764_v35 = vld [vmem:[%s4352_s29 + $0x2c] ss:$16 sps:$4 sm:$0xff]  }
 0x26c   : > { %v3544_v29 = vmul.f32 -1.442695, %v1301_v24  ;;  %v1258_v30 = vpop.f32.mrb[39].mxu0  ;;  %v1299_v31 = vpop.f32.mrb[39].mxu1 }
 0x26d   : > { %v3545_v32 = vmul.f32 -1.442695, %v1302_v23  ;;  %v3546_v34 = vmul.f32 -1.442695, %v1304_v36  ;;  %v4752_v30 = vld [vmem:[%s4352_s29] ss:$16 sps:$4 sm:$0xff]  }
 0x26e   : > { %3876 = vpow2.f32 %v3544_v29  ;;  %v4756_v31 = vld [vmem:[%s4352_s29 + $0x8] ss:$16 sps:$4 sm:$0xff]   ;;  %v4770_v36 = vld [vmem:[%s4352_s29 + $0x20] ss:$16 sps:$4 sm:$0xff]  }
 0x26f   : > { %3878 = vpow2.f32 %v3545_v32  ;;  %v4760_v32 = vld [vmem:[%s4352_s29 + $0x24] ss:$16 sps:$4 sm:$0xff]  }
 0x270   : > { %3880 = vpow2.f32 %v3546_v34  ;;  %v4778_v34 = vld [vmem:[%s4352_s29 + $0x44] ss:$16 sps:$4 sm:$0xff]  }
 0x271   : > { %3882 = vtanh.f32 %v1303_v37  ;;  %v4782_v37 = vld [vmem:[%s4352_s29 + $0x4c] ss:$16 sps:$4 sm:$0xff]  }
 0x278   : > { %v3877_v45 = vpop.eup %3876 }
 0x279   : > { %v3879_v54 = vpop.eup %3878  ;;  %v1309_v63 = vadd.f32 1.0, %v3877_v45  ;;  %v4786_v45 = vld [vmem:[%s4352_s29 + $0x40] ss:$16 sps:$4 sm:$0xff]  }
 0x27a   : > { %v1315_v8 = vadd.f32 1.0, %v3879_v54  ;;  %v3881_v9 = vpop.eup %3880  ;;  %v4790_v54 = vld [vmem:[%s4352_s29 + $0x48] ss:$16 sps:$4 sm:$0xff]  }
 0x27b   : > { %3884 = vrcp.f32 %v1309_v63  ;;  %v3883_v10 = vpop.eup %3882  ;;  %v1322_v15 = vadd.f32 1.0, %v3881_v9  ;;  %v4794_v63 = vld [vmem:[%s4352_s29 + $0x64] ss:$16 sps:$4 sm:$0xff]   ;;  %v4802_v9 = vld [vmem:[%s4352_s29 + $0x60] ss:$16 sps:$4 sm:$0xff]  }
 0x27c   : > { %3886 = vrcp.f32 %v1315_v8  ;;  %v4798_v8 = vld [vmem:[%s4352_s29 + $0x6c] ss:$16 sps:$4 sm:$0xff]  }
 0x27d   : > { %3888 = vrcp.f32 %v1322_v15  ;;  %v4822_v15 = vld [vmem:[%s4352_s29 + $0x88] ss:$16 sps:$4 sm:$0xff]  }
 0x285   : > { %v3885_v11 = vpop.eup %3884 }
 0x286   : > { %v3887_v12 = vpop.eup %3886  ;;  %v1326_v14 = vmul.f32 %v3885_v11, %v3883_v10  ;;  %v4806_v10 = vld [vmem:[%s4352_s29 + $0x68] ss:$16 sps:$4 sm:$0xff]   ;;  %v4810_v11 = vld [vmem:[%s4352_s29 + $0x84] ss:$16 sps:$4 sm:$0xff]  }
 0x287   : > { %v1325_v16 = vmul.f32 %v3887_v12, %v4658_v13  ;;  %v3889_v17 = vpop.eup %3888  ;;  %v4814_v12 = vld [vmem:[%s4352_s29 + $0x8c] ss:$16 sps:$4 sm:$0xff]  }
 0x289   : > { %v4699_v20 = vadd.f32 %v1326_v14, %v1325_v16  ;;  %v4818_v14 = vld [vmem:[%s4352_s29 + $0x80] ss:$16 sps:$4 sm:$0xff]   ;;  %v4826_v16 = vld [vmem:[%s4352_s29 + $0xa4] ss:$16 sps:$4 sm:$0xff]  }
 0x28b   : > { %3890 = vtanh.f32 %v4699_v20 }
 0x295   : > { %v3891_v21 = vpop.eup %3890 }
 0x296   : > { %v1329_v18 = vmul.f32 %v3891_v21, %v3889_v17  ;;  %v4834_v17 = vld [vmem:[%s4352_s29 + $0xa0] ss:$16 sps:$4 sm:$0xff]   ;;  %v4838_v21 = vld [vmem:[%s4352_s29 + $0xa8] ss:$16 sps:$4 sm:$0xff]  }
 0x298   : > { %v1330_v19 = vpack.c.bf16 %v1329_v18, %v1329_v18  ;;  %v4842_v18 = vld [vmem:[%s4352_s29 + $0xc4] ss:$16 sps:$4 sm:$0xff]  }
 0x29a   : > { %1331 = vst [vmem:[#allocation3] sm:$0xf] %v1330_v19  ;;  %3548 = vst [vmem:[%s3276_s11 + $0x4] sm:$0xf] %v1330_v19  ;;  %v4846_v19 = vld [vmem:[%s4352_s29 + $0xcc] ss:$16 sps:$4 sm:$0xff]   ;;  %s3308_s11 = scalar_lea.vmem %s4359_s5, %s3587_s10 [#allocation5] }
 0x2a1   : > { %v1345_v24 = vld [vmem:[#allocation3] sm:$0xf] }
 0x2a2   : > { %1379 = vmatmul.mubr.bf16.vlgmr.msra.gmra.mrb[40].mxu0 %v1345_v24  ;;  %1420 = vmatmul.mubr.bf16.vlgmr.msra.gmra.mrb[40].mxu1 %v1345_v24  ;;  %v4850_v24 = vld [vmem:[%s4352_s29 + $0xc0] ss:$16 sps:$4 sm:$0xff]  }
 0x2a3   : > { %1474 = vmatpush1.bf16.msra.mxu0 %v4404_v38  ;;  %1515 = vmatpush1.bf16.msra.mxu1 %v4412_v40  ;;  %v4737_v38 = vld [vmem:[%s4352_s29 + $0x4] ss:$16 sps:$4 sm:$0xff]  }
 0x2a4   : > { %1475 = vmatprep.subr.bf16.mxu0 %v4408_v39  ;;  %1516 = vmatprep.subr.bf16.mxu1 %v4415_v41  ;;  %v4741_v39 = vld [vmem:[%s4352_s29 + $0xc] ss:$16 sps:$4 sm:$0xff]   ;;  %v3550_v40 = vld [vmem:[%s3280_s15 + $0x40] sm:$0xff] }
 0x2a5   : > { %1505 = vmatprep.mubr.bf16.mxu0 %v4238_v4  ;;  %1546 = vmatprep.mubr.bf16.mxu1 %v4238_v4 }
 0x2a7   : > { %1476 = vmatpush1.bf16.msra.mxu0 %v4420_v42  ;;  %1517 = vmatpush1.bf16.msra.mxu1 %v4429_v44  ;;  %v3551_v44 = vld [vmem:[%s3280_s15 + $0x48] sm:$0xff] }
 0x2a8   : > { %1477 = vmatprep.subr.bf16.mxu0 %v4425_v43  ;;  %1518 = vmatprep.subr.bf16.mxu1 %v4442_v48 }
 0x2ab   : > { %1478 = vmatpush1.bf16.msra.mxu0 %v4435_v46  ;;  %1519 = vmatpush1.bf16.msra.mxu1 %v4446_v49 }
 0x2ac   : > { %1479 = vmatprep.subr.bf16.mxu0 %v4438_v47  ;;  %1520 = vmatprep.subr.bf16.mxu1 %v4449_v50 }
 0x2af   : > { %1480 = vmatpush1.bf16.msra.mxu0 %v4455_v51  ;;  %1521 = vmatpush1.bf16.msra.mxu1 %v4464_v53 }
 0x2b0   : > { %1481 = vmatprep.subr.bf16.mxu0 %v4460_v52  ;;  %1522 = vmatprep.subr.bf16.mxu1 %v4473_v56  ;;  %v3553_v56 = vld [vmem:[%s3280_s15 + $0x58] sm:$0xff] }
 0x2b3   : > { %1482 = vmatpush1.bf16.msra.mxu0 %v4469_v55  ;;  %1523 = vmatpush1.bf16.msra.mxu1 %v4481_v58  ;;  %v3552_v58 = vld [vmem:[%s3280_s15 + $0x50] sm:$0xff]  ;;  %s3312_s15 = scalar_lea.vmem [#allocation2], %s3589_s12  ;;  %s3625_s12 = smul.u32 4294967136, %s4222_s18 }
 0x2b4   : > { %1483 = vmatprep.subr.bf16.mxu0 %v4477_v57  ;;  %1524 = vmatprep.subr.bf16.mxu1 %v4484_v59 }
 0x2b7   : > { %1484 = vmatpush1.bf16.msra.mxu0 %v4490_v60  ;;  %1525 = vmatpush1.bf16.msra.mxu1 %v4499_v62 }
 0x2b8   : > { %1485 = vmatprep.subr.bf16.mxu0 %v4495_v61  ;;  %1526 = vmatprep.subr.bf16.mxu1 %v4508_v1 }
 0x2bb   : > { %1486 = vmatpush1.bf16.msra.mxu0 %v4505_v0  ;;  %1527 = vmatpush1.bf16.msra.mxu1 %v4516_v3 }
 0x2bc   : > { %1487 = vmatprep.subr.bf16.mxu0 %v4513_v2  ;;  %1528 = vmatprep.subr.bf16.mxu1 %v4519_v5 }
 0x2bf   : > { %1488 = vmatpush1.bf16.msra.mxu0 %v4525_v6  ;;  %1529 = vmatpush1.bf16.msra.mxu1 %v4531_v7 }
 0x2c0   : > { %1600 = vmatprep.subr.bf16.mxu0 %v4737_v38  ;;  %1641 = vmatprep.subr.bf16.mxu1 %v4741_v39 }
 0x375   : > { %v1380_v41 = vpop.f32.mrb[40].mxu0  ;;  %v1421_v42 = vpop.f32.mrb[40].mxu1 }
 0x376   : > { %v1428_v43 = vadd.f32 %v3550_v40, %v1380_v41  ;;  %v1382_v46 = vpop.f32.mrb[41].mxu0  ;;  %v1423_v47 = vpop.f32.mrb[41].mxu1  ;;  %v1430_v60 = vadd.f32 %v3552_v58, %v1421_v42  ;;  %v4854_v40 = vld [vmem:[%s4352_s29 + $0xc8] ss:$16 sps:$4 sm:$0xff]   ;;  %v4858_v41 = vld [vmem:[%s4352_s29 + $0xe4] ss:$16 sps:$4 sm:$0xff]  }
 0x377   : > { %v1429_v48 = vadd.f32 %v3551_v44, %v1382_v46  ;;  %v1384_v49 = vpop.f32.mrb[42].mxu0  ;;  %v1425_v50 = vpop.f32.mrb[42].mxu1  ;;  %v1431_v57 = vadd.f32 %v3553_v56, %v1423_v47  ;;  %v4862_v42 = vld [vmem:[%s4352_s29 + $0xec] ss:$16 sps:$4 sm:$0xff]   ;;  %v4870_v44 = vld [vmem:[%s4352_s29 + $0xe8] ss:$16 sps:$4 sm:$0xff]  }
 0x378   : > { %v3554_v51 = vmul.f32 -1.442695, %v1428_v43  ;;  %v1385_v52 = vpop.f32.mrb[43].mxu0  ;;  %v1426_v53 = vpop.f32.mrb[43].mxu1  ;;  %v4866_v43 = vld [vmem:[%s4352_s29 + $0xe0] ss:$16 sps:$4 sm:$0xff]  }
 0x379   : > { %v3555_v55 = vmul.f32 -1.442695, %v1429_v48  ;;  %v3556_v59 = vmul.f32 -1.442695, %v1431_v57  ;;  %v3560_v46 = vld [vmem:[%s3288_s27 + $0x60] sm:$0xff]  ;;  %v3561_v50 = vld [vmem:[%s3288_s27 + $0x68] sm:$0xff] }
 0x37a   : > { %3892 = vpow2.f32 %v3554_v51 }
 0x37b   : > { %3894 = vpow2.f32 %v3555_v55 }
 0x37c   : > { %3896 = vpow2.f32 %v3556_v59 }
 0x37d   : > { %3898 = vtanh.f32 %v1430_v60 }
 0x384   : > { %v3893_v61 = vpop.eup %3892 }
 0x385   : > { %v3895_v62 = vpop.eup %3894  ;;  %v1436_v0 = vadd.f32 1.0, %v3893_v61  ;;  %v3563_v61 = vld [vmem:[%s3288_s27 + $0x78] sm:$0xff] }
 0x386   : > { %v1442_v1 = vadd.f32 1.0, %v3895_v62  ;;  %v3897_v2 = vpop.eup %3896 }
 0x387   : > { %3900 = vrcp.f32 %v1436_v0  ;;  %v3899_v3 = vpop.eup %3898  ;;  %v1449_v13 = vadd.f32 1.0, %v3897_v2  ;;  %v3562_v0 = vld [vmem:[%s3288_s27 + $0x70] sm:$0xff]  ;;  %s3319_s27 = scalar_lea.vmem [#allocation2], %s3599_s25  ;;  %s3635_s25 = smul.u32 4294967072, %s4222_s18 }
 0x388   : > { %3902 = vrcp.f32 %v1442_v1 }
 0x389   : > { %3904 = vrcp.f32 %v1449_v13 }
 0x391   : > { %v3901_v5 = vpop.eup %3900 }
 0x392   : > { %v3903_v6 = vpop.eup %3902  ;;  %v1453_v7 = vmul.f32 %v3901_v5, %v3899_v3 }
 0x393   : > { %v1452_v25 = vmul.f32 %v3903_v6, %v4699_v20  ;;  %v3905_v26 = vpop.eup %3904  ;;  %v4830_v20 = vld [vmem:[%s4352_s29 + $0xac] ss:$16 sps:$4 sm:$0xff]  }
 0x395   : > { %v4746_v22 = vadd.f32 %v1453_v7, %v1452_v25 }
 0x397   : > { %3906 = vtanh.f32 %v4746_v22 }
 0x3a1   : > { %v3907_v23 = vpop.eup %3906 }
 0x3a2   : > { %v1456_v27 = vmul.f32 %v3907_v23, %v3905_v26 }
 0x3a4   : > { %v1457_v28 = vpack.c.bf16 %v1456_v27, %v1456_v27 }
 0x3a6   : > { %1458 = vst [vmem:[#allocation3] sm:$0xf] %v1457_v28  ;;  %3558 = vst [vmem:[%s3284_s24 + $0x8] sm:$0xf] %v1457_v28  ;;  %s3316_s24 = scalar_lea.vmem %s4359_s5, %s3597_s13 [#allocation5]  ;;  %s3633_s13 = smul.u32 4294967276, %s4222_s18 }
 0x3ad   : > { %v1472_v29 = vld [vmem:[#allocation3] sm:$0xf] }
 0x3ae   : > { %1506 = vmatmul.mubr.bf16.vlgmr.msra.gmra.mrb[44].mxu0 %v1472_v29  ;;  %1547 = vmatmul.mubr.bf16.vlgmr.msra.gmra.mrb[44].mxu1 %v1472_v29 }
 0x3af   : > { %1601 = vmatpush1.bf16.msra.mxu0 %v4752_v30  ;;  %1642 = vmatpush1.bf16.msra.mxu1 %v4756_v31 }
 0x3b0   : > { %1602 = vmatprep.subr.bf16.mxu0 %v4760_v32  ;;  %1643 = vmatprep.subr.bf16.mxu1 %v4764_v35 }
 0x3b1   : > { %1632 = vmatprep.mubr.bf16.mxu0 %v4238_v4  ;;  %1673 = vmatprep.mubr.bf16.mxu1 %v4238_v4 }
 0x3b3   : > { %1603 = vmatpush1.bf16.msra.mxu0 %v4770_v36  ;;  %1644 = vmatpush1.bf16.msra.mxu1 %v4774_v33 }
 0x3b4   : > { %1604 = vmatprep.subr.bf16.mxu0 %v4778_v34  ;;  %1645 = vmatprep.subr.bf16.mxu1 %v4782_v37 }
 0x3b7   : > { %1605 = vmatpush1.bf16.msra.mxu0 %v4786_v45  ;;  %1646 = vmatpush1.bf16.msra.mxu1 %v4790_v54 }
 0x3b8   : > { %1606 = vmatprep.subr.bf16.mxu0 %v4794_v63  ;;  %1647 = vmatprep.subr.bf16.mxu1 %v4798_v8 }
 0x3bb   : > { %1607 = vmatpush1.bf16.msra.mxu0 %v4802_v9  ;;  %1648 = vmatpush1.bf16.msra.mxu1 %v4806_v10 }
 0x3bc   : > { %1608 = vmatprep.subr.bf16.mxu0 %v4810_v11  ;;  %1649 = vmatprep.subr.bf16.mxu1 %v4814_v12 }
 0x3bf   : > { %1609 = vmatpush1.bf16.msra.mxu0 %v4818_v14  ;;  %1650 = vmatpush1.bf16.msra.mxu1 %v4822_v15 }
 0x3c0   : > { %1610 = vmatprep.subr.bf16.mxu0 %v4826_v16  ;;  %1651 = vmatprep.subr.bf16.mxu1 %v4830_v20 }
 0x3c3   : > { %1611 = vmatpush1.bf16.msra.mxu0 %v4834_v17  ;;  %1652 = vmatpush1.bf16.msra.mxu1 %v4838_v21 }
 0x3c4   : > { %1612 = vmatprep.subr.bf16.mxu0 %v4842_v18  ;;  %1653 = vmatprep.subr.bf16.mxu1 %v4846_v19 }
 0x3c7   : > { %1613 = vmatpush1.bf16.msra.mxu0 %v4850_v24  ;;  %1654 = vmatpush1.bf16.msra.mxu1 %v4854_v40 }
 0x3c8   : > { %1614 = vmatprep.subr.bf16.mxu0 %v4858_v41  ;;  %1655 = vmatprep.subr.bf16.mxu1 %v4862_v42 }
 0x3cb   : > { %1615 = vmatpush1.bf16.msra.mxu0 %v4866_v43  ;;  %1656 = vmatpush1.bf16.msra.mxu1 %v4870_v44 }
 0x3cc   : > { %1727 = vmatprep.subr.bf16.mxu0 %v4737_v38  ;;  %1768 = vmatprep.subr.bf16.mxu1 %v4741_v39 }
 0x481   : > { %v1507_v47 = vpop.f32.mrb[44].mxu0  ;;  %v1548_v48 = vpop.f32.mrb[44].mxu1 }
 0x482   : > { %v1555_v49 = vadd.f32 %v3560_v46, %v1507_v47  ;;  %v1509_v51 = vpop.f32.mrb[45].mxu0  ;;  %v1550_v52 = vpop.f32.mrb[45].mxu1  ;;  %v1557_v2 = vadd.f32 %v3562_v0, %v1548_v48 }
 0x483   : > { %v1556_v53 = vadd.f32 %v3561_v50, %v1509_v51  ;;  %v1511_v55 = vpop.f32.mrb[46].mxu0  ;;  %v1552_v56 = vpop.f32.mrb[46].mxu1  ;;  %v1558_v62 = vadd.f32 %v3563_v61, %v1550_v52 }
 0x484   : > { %v3564_v57 = vmul.f32 -1.442695, %v1555_v49  ;;  %v1512_v58 = vpop.f32.mrb[47].mxu0  ;;  %v1553_v59 = vpop.f32.mrb[47].mxu1  ;;  %v3571_v56 = vld [vmem:[%s3296_s22 + $0x88] sm:$0xff] }
 0x485   : > { %v3565_v60 = vmul.f32 -1.442695, %v1556_v53  ;;  %v3566_v1 = vmul.f32 -1.442695, %v1558_v62 }
 0x486   : > { %3908 = vpow2.f32 %v3564_v57 }
 0x487   : > { %3910 = vpow2.f32 %v3565_v60 }
 0x488   : > { %3912 = vpow2.f32 %v3566_v1 }
 0x489   : > { %3914 = vtanh.f32 %v1557_v2 }
 0x490   : > { %v3909_v3 = vpop.eup %3908 }
 0x491   : > { %v3911_v5 = vpop.eup %3910  ;;  %v1563_v6 = vadd.f32 1.0, %v3909_v3  ;;  %v3573_v3 = vld [vmem:[%s3296_s22 + $0x98] sm:$0xff] }
 0x492   : > { %v1569_v7 = vadd.f32 1.0, %v3911_v5  ;;  %v3913_v13 = vpop.eup %3912 }
 0x493   : > { %3916 = vrcp.f32 %v1563_v6  ;;  %v3915_v25 = vpop.eup %3914  ;;  %v1576_v28 = vadd.f32 1.0, %v3913_v13  ;;  %v3572_v6 = vld [vmem:[%s3296_s22 + $0x90] sm:$0xff] }
 0x494   : > { %3918 = vrcp.f32 %v1569_v7 }
 0x495   : > { %3920 = vrcp.f32 %v1576_v28 }
 0x49d   : > { %v3917_v26 = vpop.eup %3916 }
 0x49e   : > { %v3919_v23 = vpop.eup %3918  ;;  %v1580_v27 = vmul.f32 %v3917_v26, %v3915_v25 }
 0x49f   : > { %v1579_v29 = vmul.f32 %v3919_v23, %v4746_v22  ;;  %v3921_v47 = vpop.eup %3920  ;;  %v3570_v22 = vld [vmem:[%s3296_s22 + $0x80] sm:$0xff]  ;;  %s3695_s22 = sshll.u32 %s2097_s17, 5 }
 0x4a0   : > { %s2100_s23 = scalar_lea.vmem [#allocation2], %s3695_s22 }
 0x4a1   : > { %v4877_v46 = vadd.f32 %v1580_v27, %v1579_v29 }
 0x4a3   : > { %3922 = vtanh.f32 %v4877_v46 }
 0x4ad   : > { %v3923_v48 = vpop.eup %3922 }
 0x4ae   : > { %v1583_v49 = vmul.f32 %v3923_v48, %v3921_v47 }
 0x4b0   : > { %v1584_v50 = vpack.c.bf16 %v1583_v49, %v1583_v49 }
 0x4b2   : > { %1585 = vst [vmem:[#allocation3] sm:$0xf] %v1584_v50  ;;  %3568 = vst [vmem:[%s3292_s6 + $0xc] sm:$0xf] %v1584_v50  ;;  %s3322_s6 = scalar_lea.vmem %s4359_s5, %s3607_s28 [#allocation5]  ;;  %s3643_s28 = smul.u32 4294967268, %s4222_s18 }
 0x4b9   : > { %v1599_v51 = vld [vmem:[#allocation3] sm:$0xf] }
 0x4ba   : > { %1633 = vmatmul.mubr.bf16.vlgmr.msra.gmra.mrb[48].mxu0 %v1599_v51  ;;  %1674 = vmatmul.mubr.bf16.vlgmr.msra.gmra.mrb[48].mxu1 %v1599_v51 }
 0x4bb   : > { %1728 = vmatpush1.bf16.msra.mxu0 %v4752_v30  ;;  %1769 = vmatpush1.bf16.msra.mxu1 %v4756_v31 }
 0x4bc   : > { %1729 = vmatprep.subr.bf16.mxu0 %v4760_v32  ;;  %1770 = vmatprep.subr.bf16.mxu1 %v4764_v35 }
 0x4bd   : > { %1759 = vmatprep.mubr.bf16.mxu0 %v4238_v4  ;;  %1800 = vmatprep.mubr.bf16.mxu1 %v4238_v4 }
 0x4bf   : > { %1730 = vmatpush1.bf16.msra.mxu0 %v4770_v36  ;;  %1771 = vmatpush1.bf16.msra.mxu1 %v4774_v33 }
 0x4c0   : > { %1731 = vmatprep.subr.bf16.mxu0 %v4778_v34  ;;  %1772 = vmatprep.subr.bf16.mxu1 %v4782_v37 }
 0x4c3   : > { %1732 = vmatpush1.bf16.msra.mxu0 %v4786_v45  ;;  %1773 = vmatpush1.bf16.msra.mxu1 %v4790_v54 }
 0x4c4   : > { %1733 = vmatprep.subr.bf16.mxu0 %v4794_v63  ;;  %1774 = vmatprep.subr.bf16.mxu1 %v4798_v8 }
 0x4c7   : > { %1734 = vmatpush1.bf16.msra.mxu0 %v4802_v9  ;;  %1775 = vmatpush1.bf16.msra.mxu1 %v4806_v10 }
 0x4c8   : > { %1735 = vmatprep.subr.bf16.mxu0 %v4810_v11  ;;  %1776 = vmatprep.subr.bf16.mxu1 %v4814_v12 }
 0x4cb   : > { %1736 = vmatpush1.bf16.msra.mxu0 %v4818_v14  ;;  %1777 = vmatpush1.bf16.msra.mxu1 %v4822_v15 }
 0x4cc   : > { %1737 = vmatprep.subr.bf16.mxu0 %v4826_v16  ;;  %1778 = vmatprep.subr.bf16.mxu1 %v4830_v20 }
 0x4cf   : > { %1738 = vmatpush1.bf16.msra.mxu0 %v4834_v17  ;;  %1779 = vmatpush1.bf16.msra.mxu1 %v4838_v21 }
 0x4d0   : > { %1739 = vmatprep.subr.bf16.mxu0 %v4842_v18  ;;  %1780 = vmatprep.subr.bf16.mxu1 %v4846_v19 }
 0x4d3   : > { %1740 = vmatpush1.bf16.msra.mxu0 %v4850_v24  ;;  %1781 = vmatpush1.bf16.msra.mxu1 %v4854_v40 }
 0x4d4   : > { %1741 = vmatprep.subr.bf16.mxu0 %v4858_v41  ;;  %1782 = vmatprep.subr.bf16.mxu1 %v4862_v42 }
 0x4d7   : > { %1742 = vmatpush1.bf16.msra.mxu0 %v4866_v43  ;;  %1783 = vmatpush1.bf16.msra.mxu1 %v4870_v44 }
 0x4d8   : > { %1854 = vmatprep.subr.bf16.mxu0 %v4737_v38  ;;  %1895 = vmatprep.subr.bf16.mxu1 %v4741_v39 }
 0x58d   : > { %v1634_v52 = vpop.f32.mrb[48].mxu0  ;;  %v1675_v53 = vpop.f32.mrb[48].mxu1 }
 0x58e   : > { %v1682_v55 = vadd.f32 %v3570_v22, %v1634_v52  ;;  %v1636_v57 = vpop.f32.mrb[49].mxu0  ;;  %v1677_v58 = vpop.f32.mrb[49].mxu1  ;;  %v1684_v13 = vadd.f32 %v3572_v6, %v1675_v53 }
 0x58f   : > { %v1683_v59 = vadd.f32 %v3571_v56, %v1636_v57  ;;  %v1638_v60 = vpop.f32.mrb[50].mxu0  ;;  %v1679_v61 = vpop.f32.mrb[50].mxu1  ;;  %v1685_v5 = vadd.f32 %v3573_v3, %v1677_v58 }
 0x590   : > { %v3574_v62 = vmul.f32 -1.442695, %v1682_v55  ;;  %v1639_v0 = vpop.f32.mrb[51].mxu0  ;;  %v1680_v1 = vpop.f32.mrb[51].mxu1  ;;  %v3581_v61 = vld [vmem:[%s3304_s8 + $0xa8] sm:$0xff] }
 0x591   : > { %v3575_v2 = vmul.f32 -1.442695, %v1683_v59  ;;  %v3576_v7 = vmul.f32 -1.442695, %v1685_v5 }
 0x592   : > { %3924 = vpow2.f32 %v3574_v62 }
 0x593   : > { %3926 = vpow2.f32 %v3575_v2 }
 0x594   : > { %3928 = vpow2.f32 %v3576_v7 }
 0x595   : > { %3930 = vtanh.f32 %v1684_v13 }
 0x59c   : > { %v3925_v25 = vpop.eup %3924 }
 0x59d   : > { %v3927_v26 = vpop.eup %3926  ;;  %v1690_v23 = vadd.f32 1.0, %v3925_v25  ;;  %v3583_v25 = vld [vmem:[%s3304_s8 + $0xb8] sm:$0xff] }
 0x59e   : > { %v1696_v27 = vadd.f32 1.0, %v3927_v26  ;;  %v3929_v28 = vpop.eup %3928 }
 0x59f   : > { %3932 = vrcp.f32 %v1690_v23  ;;  %v3931_v29 = vpop.eup %3930  ;;  %v1703_v50 = vadd.f32 1.0, %v3929_v28  ;;  %v3582_v23 = vld [vmem:[%s3304_s8 + $0xb0] sm:$0xff] }
 0x5a0   : > { %3934 = vrcp.f32 %v1696_v27 }
 0x5a1   : > { %3936 = vrcp.f32 %v1703_v50 }
 0x5a9   : > { %v3933_v47 = vpop.eup %3932 }
 0x5aa   : > { %v3935_v48 = vpop.eup %3934  ;;  %v1707_v49 = vmul.f32 %v3933_v47, %v3931_v29 }
 0x5ab   : > { %v1706_v51 = vmul.f32 %v3935_v48, %v4877_v46  ;;  %v3937_v52 = vpop.eup %3936  ;;  %v3580_v46 = vld [vmem:[%s3304_s8 + $0xa0] sm:$0xff]  ;;  %s3615_s8 = smul.u32 4294967200, %s4222_s18 }
 0x5ad   : > { %v4918_v22 = vadd.f32 %v1707_v49, %v1706_v51  ;;  %s3330_s10 = scalar_lea.vmem [#allocation2], %s3615_s8 }
 0x5af   : > { %3938 = vtanh.f32 %v4918_v22 }
 0x5b9   : > { %v3939_v53 = vpop.eup %3938 }
 0x5ba   : > { %v1710_v55 = vmul.f32 %v3939_v53, %v3937_v52 }
 0x5bc   : > { %v1711_v56 = vpack.c.bf16 %v1710_v55, %v1710_v55 }
 0x5be   : > { %1712 = vst [vmem:[#allocation3] sm:$0xf] %v1711_v56  ;;  %3578 = vst [vmem:[%s3300_s26 + $0x10] sm:$0xf] %v1711_v56  ;;  %s3614_s26 = sshll.u32 %s2097_s17, 2  ;;  %s3645_s17 = smul.u32 4294967008, %s4222_s18 }
 0x5bf   : > { %s2221_s7 = scalar_lea.vmem %s4359_s5, %s3614_s26 [#allocation5] }
 0x5c0   : > { %s3354_s22 = scalar_lea.vmem [#allocation2], %s3645_s17 }
 0x5c5   : > { %v1726_v57 = vld [vmem:[#allocation3] sm:$0xf] }
 0x5c6   : > { %1760 = vmatmul.mubr.bf16.vlgmr.msra.gmra.mrb[52].mxu0 %v1726_v57  ;;  %1801 = vmatmul.mubr.bf16.vlgmr.msra.gmra.mrb[52].mxu1 %v1726_v57 }
 0x5c7   : > { %1855 = vmatpush1.bf16.msra.mxu0 %v4752_v30  ;;  %1896 = vmatpush1.bf16.msra.mxu1 %v4756_v31 }
 0x5c8   : > { %1856 = vmatprep.subr.bf16.mxu0 %v4760_v32  ;;  %1897 = vmatprep.subr.bf16.mxu1 %v4764_v35 }
 0x5c9   : > { %1886 = vmatprep.mubr.bf16.mxu0 %v4238_v4  ;;  %1927 = vmatprep.mubr.bf16.mxu1 %v4238_v4 }
 0x5cb   : > { %1857 = vmatpush1.bf16.msra.mxu0 %v4770_v36  ;;  %1898 = vmatpush1.bf16.msra.mxu1 %v4774_v33 }
 0x5cc   : > { %1858 = vmatprep.subr.bf16.mxu0 %v4778_v34  ;;  %1899 = vmatprep.subr.bf16.mxu1 %v4782_v37 }
 0x5cf   : > { %1859 = vmatpush1.bf16.msra.mxu0 %v4786_v45  ;;  %1900 = vmatpush1.bf16.msra.mxu1 %v4790_v54 }
 0x5d0   : > { %1860 = vmatprep.subr.bf16.mxu0 %v4794_v63  ;;  %1901 = vmatprep.subr.bf16.mxu1 %v4798_v8 }
 0x5d3   : > { %1861 = vmatpush1.bf16.msra.mxu0 %v4802_v9  ;;  %1902 = vmatpush1.bf16.msra.mxu1 %v4806_v10 }
 0x5d4   : > { %1862 = vmatprep.subr.bf16.mxu0 %v4810_v11  ;;  %1903 = vmatprep.subr.bf16.mxu1 %v4814_v12 }
 0x5d7   : > { %1863 = vmatpush1.bf16.msra.mxu0 %v4818_v14  ;;  %1904 = vmatpush1.bf16.msra.mxu1 %v4822_v15 }
 0x5d8   : > { %1864 = vmatprep.subr.bf16.mxu0 %v4826_v16  ;;  %1905 = vmatprep.subr.bf16.mxu1 %v4830_v20 }
 0x5db   : > { %1865 = vmatpush1.bf16.msra.mxu0 %v4834_v17  ;;  %1906 = vmatpush1.bf16.msra.mxu1 %v4838_v21 }
 0x5dc   : > { %1866 = vmatprep.subr.bf16.mxu0 %v4842_v18  ;;  %1907 = vmatprep.subr.bf16.mxu1 %v4846_v19 }
 0x5df   : > { %1867 = vmatpush1.bf16.msra.mxu0 %v4850_v24  ;;  %1908 = vmatpush1.bf16.msra.mxu1 %v4854_v40 }
 0x5e0   : > { %1868 = vmatprep.subr.bf16.mxu0 %v4858_v41  ;;  %1909 = vmatprep.subr.bf16.mxu1 %v4862_v42 }
 0x5e3   : > { %1869 = vmatpush1.bf16.msra.mxu0 %v4866_v43  ;;  %1910 = vmatpush1.bf16.msra.mxu1 %v4870_v44 }
 0x5e4   : > { %1980 = vmatprep.subr.bf16.mxu0 %v4737_v38  ;;  %2021 = vmatprep.subr.bf16.mxu1 %v4741_v39 }
 0x699   : > { %v1761_v58 = vpop.f32.mrb[52].mxu0  ;;  %v1802_v59 = vpop.f32.mrb[52].mxu1 }
 0x69a   : > { %v1809_v60 = vadd.f32 %v3580_v46, %v1761_v58  ;;  %v1763_v62 = vpop.f32.mrb[53].mxu0  ;;  %v1804_v0 = vpop.f32.mrb[53].mxu1  ;;  %v1811_v28 = vadd.f32 %v3582_v23, %v1802_v59 }
 0x69b   : > { %v1810_v1 = vadd.f32 %v3581_v61, %v1763_v62  ;;  %v1765_v2 = vpop.f32.mrb[54].mxu0  ;;  %v1806_v3 = vpop.f32.mrb[54].mxu1  ;;  %v1812_v26 = vadd.f32 %v3583_v25, %v1804_v0 }
 0x69c   : > { %v3584_v5 = vmul.f32 -1.442695, %v1809_v60  ;;  %v1766_v6 = vpop.f32.mrb[55].mxu0  ;;  %v1807_v7 = vpop.f32.mrb[55].mxu1  ;;  %v3591_v3 = vld [vmem:[%s3312_s15 + $0xc8] sm:$0xff] }
 0x69d   : > { %v3585_v13 = vmul.f32 -1.442695, %v1810_v1  ;;  %v3586_v27 = vmul.f32 -1.442695, %v1812_v26 }
 0x69e   : > { %3940 = vpow2.f32 %v3584_v5 }
 0x69f   : > { %3942 = vpow2.f32 %v3585_v13 }
 0x6a0   : > { %3944 = vpow2.f32 %v3586_v27 }
 0x6a1   : > { %3946 = vtanh.f32 %v1811_v28 }
 0x6a8   : > { %v3941_v29 = vpop.eup %3940 }
 0x6a9   : > { %v3943_v47 = vpop.eup %3942  ;;  %v1817_v48 = vadd.f32 1.0, %v3941_v29  ;;  %v3593_v29 = vld [vmem:[%s3312_s15 + $0xd8] sm:$0xff] }
 0x6aa   : > { %v1823_v49 = vadd.f32 1.0, %v3943_v47  ;;  %v3945_v50 = vpop.eup %3944 }
 0x6ab   : > { %3948 = vrcp.f32 %v1817_v48  ;;  %v3947_v51 = vpop.eup %3946  ;;  %v1830_v56 = vadd.f32 1.0, %v3945_v50  ;;  %v3592_v48 = vld [vmem:[%s3312_s15 + $0xd0] sm:$0xff] }
 0x6ac   : > { %3950 = vrcp.f32 %v1823_v49 }
 0x6ad   : > { %3952 = vrcp.f32 %v1830_v56 }
 0x6b5   : > { %v3949_v52 = vpop.eup %3948 }
 0x6b6   : > { %v3951_v53 = vpop.eup %3950  ;;  %v1834_v55 = vmul.f32 %v3949_v52, %v3947_v51 }
 0x6b7   : > { %v1833_v57 = vmul.f32 %v3951_v53, %v4918_v22  ;;  %v3953_v58 = vpop.eup %3952  ;;  %v3590_v22 = vld [vmem:[%s3312_s15 + $0xc0] sm:$0xff]  ;;  %s3338_s15 = scalar_lea.vmem [#allocation2], %s3625_s12 }
 0x6b9   : > { %v4959_v46 = vadd.f32 %v1834_v55, %v1833_v57 }
 0x6bb   : > { %3954 = vtanh.f32 %v4959_v46 }
 0x6c5   : > { %v3955_v59 = vpop.eup %3954 }
 0x6c6   : > { %v1837_v60 = vmul.f32 %v3955_v59, %v3953_v58 }
 0x6c8   : > { %v1838_v61 = vpack.c.bf16 %v1837_v60, %v1837_v60 }
 0x6ca   : > { %1839 = vst [vmem:[#allocation3] sm:$0xf] %v1838_v61  ;;  %3588 = vst [vmem:[%s3308_s11 + $0x14] sm:$0xf] %v1838_v61 }
 0x6d1   : > { %v1853_v62 = vld [vmem:[#allocation3] sm:$0xf] }
 0x6d2   : > { %1887 = vmatmul.mubr.bf16.vlgmr.msra.gmra.mrb[56].mxu0 %v1853_v62  ;;  %1928 = vmatmul.mubr.bf16.vlgmr.msra.gmra.mrb[56].mxu1 %v1853_v62 }
 0x6d3   : > { %1981 = vmatpush1.bf16.msra.mxu0 %v4752_v30  ;;  %2022 = vmatpush1.bf16.msra.mxu1 %v4756_v31 }
 0x6d4   : > { %1982 = vmatprep.subr.bf16.mxu0 %v4760_v32  ;;  %2023 = vmatprep.subr.bf16.mxu1 %v4764_v35 }
 0x6d5   : > { %2012 = vmatprep.mubr.bf16.mxu0 %v4238_v4  ;;  %2053 = vmatprep.mubr.bf16.mxu1 %v4238_v4 }
 0x6d7   : > { %1983 = vmatpush1.bf16.msra.mxu0 %v4770_v36  ;;  %2024 = vmatpush1.bf16.msra.mxu1 %v4774_v33 }
 0x6d8   : > { %1984 = vmatprep.subr.bf16.mxu0 %v4778_v34  ;;  %2025 = vmatprep.subr.bf16.mxu1 %v4782_v37 }
 0x6db   : > { %1985 = vmatpush1.bf16.msra.mxu0 %v4786_v45  ;;  %2026 = vmatpush1.bf16.msra.mxu1 %v4790_v54 }
 0x6dc   : > { %1986 = vmatprep.subr.bf16.mxu0 %v4794_v63  ;;  %2027 = vmatprep.subr.bf16.mxu1 %v4798_v8 }
 0x6df   : > { %1987 = vmatpush1.bf16.msra.mxu0 %v4802_v9  ;;  %2028 = vmatpush1.bf16.msra.mxu1 %v4806_v10 }
 0x6e0   : > { %1988 = vmatprep.subr.bf16.mxu0 %v4810_v11  ;;  %2029 = vmatprep.subr.bf16.mxu1 %v4814_v12 }
 0x6e3   : > { %1989 = vmatpush1.bf16.msra.mxu0 %v4818_v14  ;;  %2030 = vmatpush1.bf16.msra.mxu1 %v4822_v15 }
 0x6e4   : > { %1990 = vmatprep.subr.bf16.mxu0 %v4826_v16  ;;  %2031 = vmatprep.subr.bf16.mxu1 %v4830_v20 }
 0x6e7   : > { %1991 = vmatpush1.bf16.msra.mxu0 %v4834_v17  ;;  %2032 = vmatpush1.bf16.msra.mxu1 %v4838_v21 }
 0x6e8   : > { %1992 = vmatprep.subr.bf16.mxu0 %v4842_v18  ;;  %2033 = vmatprep.subr.bf16.mxu1 %v4846_v19 }
 0x6eb   : > { %1993 = vmatpush1.bf16.msra.mxu0 %v4850_v24  ;;  %2034 = vmatpush1.bf16.msra.mxu1 %v4854_v40 }
 0x6ec   : > { %1994 = vmatprep.subr.bf16.mxu0 %v4858_v41  ;;  %2035 = vmatprep.subr.bf16.mxu1 %v4862_v42 }
 0x6ef   : > { %1995 = vmatpush1.bf16.msra.mxu0 %v4866_v43  ;;  %2036 = vmatpush1.bf16.msra.mxu1 %v4870_v44 }
 0x6f0   : > { %2106 = vmatprep.subr.bf16.mxu0 %v4737_v38  ;;  %2147 = vmatprep.subr.bf16.mxu1 %v4741_v39 }
 0x7a5   : > { %v1888_v0 = vpop.f32.mrb[56].mxu0  ;;  %v1929_v1 = vpop.f32.mrb[56].mxu1 }
 0x7a6   : > { %v1936_v2 = vadd.f32 %v3590_v22, %v1888_v0  ;;  %v1890_v5 = vpop.f32.mrb[57].mxu0  ;;  %v1931_v6 = vpop.f32.mrb[57].mxu1  ;;  %v1938_v50 = vadd.f32 %v3592_v48, %v1929_v1 }
 0x7a7   : > { %v1937_v7 = vadd.f32 %v3591_v3, %v1890_v5  ;;  %v1892_v13 = vpop.f32.mrb[58].mxu0  ;;  %v1933_v25 = vpop.f32.mrb[58].mxu1  ;;  %v1939_v47 = vadd.f32 %v3593_v29, %v1931_v6 }
 0x7a8   : > { %v3594_v26 = vmul.f32 -1.442695, %v1936_v2  ;;  %v1893_v23 = vpop.f32.mrb[59].mxu0  ;;  %v1934_v27 = vpop.f32.mrb[59].mxu1  ;;  %v3601_v25 = vld [vmem:[%s3319_s27 + $0xe8] sm:$0xff] }
 0x7a9   : > { %v3595_v28 = vmul.f32 -1.442695, %v1937_v7  ;;  %v3596_v49 = vmul.f32 -1.442695, %v1939_v47 }
 0x7aa   : > { %3956 = vpow2.f32 %v3594_v26 }
 0x7ab   : > { %3958 = vpow2.f32 %v3595_v28 }
 0x7ac   : > { %3960 = vpow2.f32 %v3596_v49 }
 0x7ad   : > { %3962 = vtanh.f32 %v1938_v50 }
 0x7b4   : > { %v3957_v51 = vpop.eup %3956 }
 0x7b5   : > { %v3959_v52 = vpop.eup %3958  ;;  %v1944_v53 = vadd.f32 1.0, %v3957_v51  ;;  %v3602_v51 = vld [vmem:[%s3319_s27 + $0xf0] sm:$0xff] }
 0x7b6   : > { %v1950_v55 = vadd.f32 1.0, %v3959_v52  ;;  %v3961_v56 = vpop.eup %3960 }
 0x7b7   : > { %3964 = vrcp.f32 %v1944_v53  ;;  %v3963_v57 = vpop.eup %3962  ;;  %v1957_v61 = vadd.f32 1.0, %v3961_v56 }
 0x7b8   : > { %3966 = vrcp.f32 %v1950_v55 }
 0x7b9   : > { %3968 = vrcp.f32 %v1957_v61 }
 0x7c1   : > { %v3965_v58 = vpop.eup %3964 }
 0x7c2   : > { %v3967_v59 = vpop.eup %3966  ;;  %v1961_v60 = vmul.f32 %v3965_v58, %v3963_v57 }
 0x7c3   : > { %v1960_v62 = vmul.f32 %v3967_v59, %v4959_v46  ;;  %v3969_v0 = vpop.eup %3968  ;;  %v3600_v46 = vld [vmem:[%s3319_s27 + $0xe0] sm:$0xff] }
 0x7c5   : > { %v5000_v22 = vadd.f32 %v1961_v60, %v1960_v62 }
 0x7c7   : > { %3970 = vtanh.f32 %v5000_v22 }
 0x7d1   : > { %v3971_v1 = vpop.eup %3970 }
 0x7d2   : > { %v1964_v2 = vmul.f32 %v3971_v1, %v3969_v0 }
 0x7d4   : > { %v1965_v3 = vpack.c.bf16 %v1964_v2, %v1964_v2 }
 0x7d6   : > { %1966 = vst [vmem:[#allocation3] sm:$0xf] %v1965_v3  ;;  %3598 = vst [vmem:[%s3316_s24 + $0x18] sm:$0xf] %v1965_v3  ;;  %s3342_s24 = scalar_lea.vmem %s4359_s5, %s3633_s13 [#allocation5] }
 0x7dd   : > { %v1979_v5 = vld [vmem:[#allocation3] sm:$0xf] }
 0x7de   : > { %2013 = vmatmul.mubr.bf16.vlgmr.msra.gmra.mrb[60].mxu0 %v1979_v5  ;;  %2054 = vmatmul.mubr.bf16.vlgmr.msra.gmra.mrb[60].mxu1 %v1979_v5 }
 0x7df   : > { %2107 = vmatpush1.bf16.msra.mxu0 %v4752_v30  ;;  %2148 = vmatpush1.bf16.msra.mxu1 %v4756_v31 }
 0x7e0   : > { %2108 = vmatprep.subr.bf16.mxu0 %v4760_v32  ;;  %2149 = vmatprep.subr.bf16.mxu1 %v4764_v35 }
 0x7e1   : > { %2138 = vmatprep.mubr.bf16.mxu0 %v4238_v4  ;;  %2179 = vmatprep.mubr.bf16.mxu1 %v4238_v4 }
 0x7e3   : > { %2109 = vmatpush1.bf16.msra.mxu0 %v4770_v36  ;;  %2150 = vmatpush1.bf16.msra.mxu1 %v4774_v33 }
 0x7e4   : > { %2110 = vmatprep.subr.bf16.mxu0 %v4778_v34  ;;  %2151 = vmatprep.subr.bf16.mxu1 %v4782_v37 }
 0x7e7   : > { %2111 = vmatpush1.bf16.msra.mxu0 %v4786_v45  ;;  %2152 = vmatpush1.bf16.msra.mxu1 %v4790_v54 }
 0x7e8   : > { %2112 = vmatprep.subr.bf16.mxu0 %v4794_v63  ;;  %2153 = vmatprep.subr.bf16.mxu1 %v4798_v8 }
 0x7eb   : > { %2113 = vmatpush1.bf16.msra.mxu0 %v4802_v9  ;;  %2154 = vmatpush1.bf16.msra.mxu1 %v4806_v10 }
 0x7ec   : > { %2114 = vmatprep.subr.bf16.mxu0 %v4810_v11  ;;  %2155 = vmatprep.subr.bf16.mxu1 %v4814_v12 }
 0x7ef   : > { %2115 = vmatpush1.bf16.msra.mxu0 %v4818_v14  ;;  %2156 = vmatpush1.bf16.msra.mxu1 %v4822_v15 }
 0x7f0   : > { %2116 = vmatprep.subr.bf16.mxu0 %v4826_v16  ;;  %2157 = vmatprep.subr.bf16.mxu1 %v4830_v20 }
 0x7f3   : > { %2117 = vmatpush1.bf16.msra.mxu0 %v4834_v17  ;;  %2158 = vmatpush1.bf16.msra.mxu1 %v4838_v21 }
 0x7f4   : > { %2118 = vmatprep.subr.bf16.mxu0 %v4842_v18  ;;  %2159 = vmatprep.subr.bf16.mxu1 %v4846_v19 }
 0x7f7   : > { %2119 = vmatpush1.bf16.msra.mxu0 %v4850_v24  ;;  %2160 = vmatpush1.bf16.msra.mxu1 %v4854_v40 }
 0x7f8   : > { %2120 = vmatprep.subr.bf16.mxu0 %v4858_v41  ;;  %2161 = vmatprep.subr.bf16.mxu1 %v4862_v42 }
 0x7fb   : > { %2121 = vmatpush1.bf16.msra.mxu0 %v4866_v43  ;;  %2162 = vmatpush1.bf16.msra.mxu1 %v4870_v44 }
 0x7fc   : > { %2233 = vmatprep.subr.bf16.mxu0 %v4737_v38  ;;  %2274 = vmatprep.subr.bf16.mxu1 %v4741_v39  ;;  %v3603_v38 = vld [vmem:[%s3319_s27 + $0xf8] sm:$0xff]  ;;  %s3346_s27 = scalar_lea.vmem [#allocation2], %s3635_s25 }
 0x8b1   : > { %v2014_v6 = vpop.f32.mrb[60].mxu0  ;;  %v2055_v7 = vpop.f32.mrb[60].mxu1 }
 0x8b2   : > { %v2062_v13 = vadd.f32 %v3600_v46, %v2014_v6  ;;  %v2016_v26 = vpop.f32.mrb[61].mxu0  ;;  %v2057_v23 = vpop.f32.mrb[61].mxu1  ;;  %v2064_v53 = vadd.f32 %v3602_v51, %v2055_v7  ;;  %v5119_v51 = vld [vmem:[%s4352_s29 + $0x28] ss:$16 sps:$4 sm:$0xff]  }
 0x8b3   : > { %v2063_v27 = vadd.f32 %v3601_v25, %v2016_v26  ;;  %v2018_v28 = vpop.f32.mrb[62].mxu0  ;;  %v2059_v29 = vpop.f32.mrb[62].mxu1  ;;  %v2065_v39 = vadd.f32 %v3603_v38, %v2057_v23  ;;  %v5109_v38 = vld [vmem:[%s4352_s29 + $0x2c] ss:$16 sps:$4 sm:$0xff]  }
 0x8b4   : > { %v3604_v47 = vmul.f32 -1.442695, %v2062_v13  ;;  %v2019_v48 = vpop.f32.mrb[63].mxu0  ;;  %v2060_v49 = vpop.f32.mrb[63].mxu1 }
 0x8b5   : > { %v3605_v50 = vmul.f32 -1.442695, %v2063_v27  ;;  %v3606_v52 = vmul.f32 -1.442695, %v2065_v39  ;;  %v5097_v48 = vld [vmem:[%s4352_s29] ss:$16 sps:$4 sm:$0xff]  }
 0x8b6   : > { %3972 = vpow2.f32 %v3604_v47  ;;  %v5101_v49 = vld [vmem:[%s4352_s29 + $0x8] ss:$16 sps:$4 sm:$0xff]   ;;  %v5115_v39 = vld [vmem:[%s4352_s29 + $0x20] ss:$16 sps:$4 sm:$0xff]  }
 0x8b7   : > { %3974 = vpow2.f32 %v3605_v50  ;;  %v5105_v50 = vld [vmem:[%s4352_s29 + $0x24] ss:$16 sps:$4 sm:$0xff]  }
 0x8b8   : > { %3976 = vpow2.f32 %v3606_v52  ;;  %v5123_v52 = vld [vmem:[%s4352_s29 + $0x44] ss:$16 sps:$4 sm:$0xff]  }
 0x8b9   : > { %3978 = vtanh.f32 %v2064_v53  ;;  %v5127_v53 = vld [vmem:[%s4352_s29 + $0x4c] ss:$16 sps:$4 sm:$0xff]  }
 0x8c0   : > { %v3973_v55 = vpop.eup %3972 }
 0x8c1   : > { %v3975_v56 = vpop.eup %3974  ;;  %v2070_v57 = vadd.f32 1.0, %v3973_v55  ;;  %v5131_v55 = vld [vmem:[%s4352_s29 + $0x40] ss:$16 sps:$4 sm:$0xff]  }
 0x8c2   : > { %v2076_v58 = vadd.f32 1.0, %v3975_v56  ;;  %v3977_v59 = vpop.eup %3976  ;;  %v5135_v56 = vld [vmem:[%s4352_s29 + $0x48] ss:$16 sps:$4 sm:$0xff]  }
 0x8c3   : > { %3980 = vrcp.f32 %v2070_v57  ;;  %v3979_v60 = vpop.eup %3978  ;;  %v2083_v1 = vadd.f32 1.0, %v3977_v59  ;;  %v5139_v57 = vld [vmem:[%s4352_s29 + $0x64] ss:$16 sps:$4 sm:$0xff]   ;;  %v5147_v59 = vld [vmem:[%s4352_s29 + $0x60] ss:$16 sps:$4 sm:$0xff]  }
 0x8c4   : > { %3982 = vrcp.f32 %v2076_v58  ;;  %v5143_v58 = vld [vmem:[%s4352_s29 + $0x6c] ss:$16 sps:$4 sm:$0xff]  }
 0x8c5   : > { %3984 = vrcp.f32 %v2083_v1  ;;  %v5167_v1 = vld [vmem:[%s4352_s29 + $0x88] ss:$16 sps:$4 sm:$0xff]  }
 0x8cd   : > { %v3981_v61 = vpop.eup %3980 }
 0x8ce   : > { %v3983_v62 = vpop.eup %3982  ;;  %v2087_v0 = vmul.f32 %v3981_v61, %v3979_v60  ;;  %v5151_v60 = vld [vmem:[%s4352_s29 + $0x68] ss:$16 sps:$4 sm:$0xff]   ;;  %v5155_v61 = vld [vmem:[%s4352_s29 + $0x84] ss:$16 sps:$4 sm:$0xff]  }
 0x8cf   : > { %v2086_v2 = vmul.f32 %v3983_v62, %v5000_v22  ;;  %v3985_v5 = vpop.eup %3984  ;;  %v5159_v62 = vld [vmem:[%s4352_s29 + $0x8c] ss:$16 sps:$4 sm:$0xff]  }
 0x8d1   : > { %v5041_v3 = vadd.f32 %v2087_v0, %v2086_v2  ;;  %v5163_v0 = vld [vmem:[%s4352_s29 + $0x80] ss:$16 sps:$4 sm:$0xff]   ;;  %v5171_v2 = vld [vmem:[%s4352_s29 + $0xa4] ss:$16 sps:$4 sm:$0xff]  }
 0x8d3   : > { %3986 = vtanh.f32 %v5041_v3 }
 0x8dd   : > { %v3987_v46 = vpop.eup %3986 }
 0x8de   : > { %v2090_v6 = vmul.f32 %v3987_v46, %v3985_v5  ;;  %v5179_v5 = vld [vmem:[%s4352_s29 + $0xa0] ss:$16 sps:$4 sm:$0xff]   ;;  %v5183_v46 = vld [vmem:[%s4352_s29 + $0xa8] ss:$16 sps:$4 sm:$0xff]  }
 0x8e0   : > { %v2091_v7 = vpack.c.bf16 %v2090_v6, %v2090_v6  ;;  %v5187_v6 = vld [vmem:[%s4352_s29 + $0xc4] ss:$16 sps:$4 sm:$0xff]  }
 0x8e2   : > { %3608 = vst [vmem:[%s3322_s6 + $0x1c] sm:$0xf] %v2091_v7  ;;  %2092 = vst [vmem:[#allocation3] sm:$0xf] %v2091_v7  ;;  %v5191_v7 = vld [vmem:[%s4352_s29 + $0xcc] ss:$16 sps:$4 sm:$0xff]   ;;  %s3350_s6 = scalar_lea.vmem %s4359_s5, %s3643_s28 [#allocation5] }
 0x8e9   : > { %v2105_v13 = vld [vmem:[#allocation3] sm:$0xf] }
 0x8ea   : > { %2139 = vmatmul.mubr.bf16.vlgmr.msra.gmra.mrb[64].mxu0 %v2105_v13  ;;  %2180 = vmatmul.mubr.bf16.vlgmr.msra.gmra.mrb[64].mxu1 %v2105_v13  ;;  %v5195_v13 = vld [vmem:[%s4352_s29 + $0xc0] ss:$16 sps:$4 sm:$0xff]  }
 0x8eb   : > { %2234 = vmatpush1.bf16.msra.mxu0 %v4752_v30  ;;  %2275 = vmatpush1.bf16.msra.mxu1 %v4756_v31  ;;  %v5079_v30 = vld [vmem:[%s4352_s29 + $0x4] ss:$16 sps:$4 sm:$0xff]   ;;  %v5083_v31 = vld [vmem:[%s4352_s29 + $0xc] ss:$16 sps:$4 sm:$0xff]  }
 0x8ec   : > { %2235 = vmatprep.subr.bf16.mxu0 %v4760_v32  ;;  %2276 = vmatprep.subr.bf16.mxu1 %v4764_v35  ;;  %v2101_v32 = vld [vmem:[%s2100_s23] sm:$0xff] }
 0x8ed   : > { %2265 = vmatprep.mubr.bf16.mxu0 %v4238_v4  ;;  %2306 = vmatprep.mubr.bf16.mxu1 %v4238_v4 }
 0x8ef   : > { %2236 = vmatpush1.bf16.msra.mxu0 %v4770_v36  ;;  %2277 = vmatpush1.bf16.msra.mxu1 %v4774_v33 }
 0x8f0   : > { %2237 = vmatprep.subr.bf16.mxu0 %v4778_v34  ;;  %2278 = vmatprep.subr.bf16.mxu1 %v4782_v37  ;;  %v2102_v34 = vld [vmem:[%s2100_s23 + $0x8] sm:$0xff] }
 0x8f3   : > { %2238 = vmatpush1.bf16.msra.mxu0 %v4786_v45  ;;  %2279 = vmatpush1.bf16.msra.mxu1 %v4790_v54 }
 0x8f4   : > { %2239 = vmatprep.subr.bf16.mxu0 %v4794_v63  ;;  %2280 = vmatprep.subr.bf16.mxu1 %v4798_v8 }
 0x8f7   : > { %2240 = vmatpush1.bf16.msra.mxu0 %v4802_v9  ;;  %2281 = vmatpush1.bf16.msra.mxu1 %v4806_v10 }
 0x8f8   : > { %2241 = vmatprep.subr.bf16.mxu0 %v4810_v11  ;;  %2282 = vmatprep.subr.bf16.mxu1 %v4814_v12 }
 0x8fb   : > { %2242 = vmatpush1.bf16.msra.mxu0 %v4818_v14  ;;  %2283 = vmatpush1.bf16.msra.mxu1 %v4822_v15  ;;  %v2104_v14 = vld [vmem:[%s2100_s23 + $0x18] sm:$0xff] }
 0x8fc   : > { %2243 = vmatprep.subr.bf16.mxu0 %v4826_v16  ;;  %2284 = vmatprep.subr.bf16.mxu1 %v4830_v20  ;;  %v2103_v16 = vld [vmem:[%s2100_s23 + $0x10] sm:$0xff]  ;;  %s3653_s23 = smul.u32 4294967260, %s4222_s18 }
 0x8fe   : > { %s3358_s26 = scalar_lea.vmem %s4359_s5, %s3653_s23 [#allocation5] }
 0x8ff   : > { %2244 = vmatpush1.bf16.msra.mxu0 %v4834_v17  ;;  %2285 = vmatpush1.bf16.msra.mxu1 %v4838_v21 }
 0x900   : > { %2245 = vmatprep.subr.bf16.mxu0 %v4842_v18  ;;  %2286 = vmatprep.subr.bf16.mxu1 %v4846_v19 }
 0x903   : > { %2246 = vmatpush1.bf16.msra.mxu0 %v4850_v24  ;;  %2287 = vmatpush1.bf16.msra.mxu1 %v4854_v40 }
 0x904   : > { %2247 = vmatprep.subr.bf16.mxu0 %v4858_v41  ;;  %2288 = vmatprep.subr.bf16.mxu1 %v4862_v42 }
 0x907   : > { %2248 = vmatpush1.bf16.msra.mxu0 %v4866_v43  ;;  %2289 = vmatpush1.bf16.msra.mxu1 %v4870_v44 }
 0x908   : > { %2360 = vmatprep.subr.bf16.mxu0 %v5079_v30  ;;  %2401 = vmatprep.subr.bf16.mxu1 %v5083_v31 }
 0x9bd   : > { %v2140_v35 = vpop.f32.mrb[64].mxu0  ;;  %v2181_v36 = vpop.f32.mrb[64].mxu1 }
 0x9be   : > { %v2188_v33 = vadd.f32 %v2140_v35, %v2101_v32  ;;  %v2142_v37 = vpop.f32.mrb[65].mxu0  ;;  %v2183_v45 = vpop.f32.mrb[65].mxu1  ;;  %v2190_v17 = vadd.f32 %v2181_v36, %v2103_v16  ;;  %v5199_v32 = vld [vmem:[%s4352_s29 + $0xc8] ss:$16 sps:$4 sm:$0xff]   ;;  %v5203_v35 = vld [vmem:[%s4352_s29 + $0xe4] ss:$16 sps:$4 sm:$0xff]  }
 0x9bf   : > { %v2189_v54 = vadd.f32 %v2142_v37, %v2102_v34  ;;  %v2144_v63 = vpop.f32.mrb[66].mxu0  ;;  %v2185_v8 = vpop.f32.mrb[66].mxu1  ;;  %v2191_v15 = vadd.f32 %v2183_v45, %v2104_v14  ;;  %v5207_v36 = vld [vmem:[%s4352_s29 + $0xec] ss:$16 sps:$4 sm:$0xff]   ;;  %v5215_v34 = vld [vmem:[%s4352_s29 + $0xe8] ss:$16 sps:$4 sm:$0xff]  }
 0x9c0   : > { %v3611_v9 = vmul.f32 -1.442695, %v2188_v33  ;;  %v2145_v10 = vpop.f32.mrb[67].mxu0  ;;  %v2186_v11 = vpop.f32.mrb[67].mxu1  ;;  %v5211_v33 = vld [vmem:[%s4352_s29 + $0xe0] ss:$16 sps:$4 sm:$0xff]  }
 0x9c1   : > { %v3612_v12 = vmul.f32 -1.442695, %v2189_v54  ;;  %v3613_v20 = vmul.f32 -1.442695, %v2191_v15  ;;  %v3616_v37 = vld [vmem:[%s3330_s10 + $0x120] sm:$0xff]  ;;  %v3617_v8 = vld [vmem:[%s3330_s10 + $0x128] sm:$0xff] }
 0x9c2   : > { %3988 = vpow2.f32 %v3611_v9 }
 0x9c3   : > { %3990 = vpow2.f32 %v3612_v12 }
 0x9c4   : > { %3992 = vpow2.f32 %v3613_v20 }
 0x9c5   : > { %3994 = vtanh.f32 %v2190_v17 }
 0x9cc   : > { %v3989_v21 = vpop.eup %3988 }
 0x9cd   : > { %v3991_v18 = vpop.eup %3990  ;;  %v2196_v19 = vadd.f32 1.0, %v3989_v21  ;;  %v3619_v21 = vld [vmem:[%s3330_s10 + $0x138] sm:$0xff] }
 0x9ce   : > { %v2202_v24 = vadd.f32 1.0, %v3991_v18  ;;  %v3993_v40 = vpop.eup %3992 }
 0x9cf   : > { %3996 = vrcp.f32 %v2196_v19  ;;  %v3995_v41 = vpop.eup %3994  ;;  %v2209_v22 = vadd.f32 1.0, %v3993_v40  ;;  %v3618_v19 = vld [vmem:[%s3330_s10 + $0x130] sm:$0xff]  ;;  %s3663_s10 = smul.u32 4294967252, %s4222_s18 }
 0x9d0   : > { %3998 = vrcp.f32 %v2202_v24 }
 0x9d1   : > { %4000 = vrcp.f32 %v2209_v22 }
 0x9d9   : > { %v3997_v42 = vpop.eup %3996 }
 0x9da   : > { %v3999_v43 = vpop.eup %3998  ;;  %v2213_v44 = vmul.f32 %v3997_v42, %v3995_v41 }
 0x9db   : > { %v2212_v25 = vmul.f32 %v3999_v43, %v5041_v3  ;;  %v4001_v23 = vpop.eup %4000  ;;  %v5175_v3 = vld [vmem:[%s4352_s29 + $0xac] ss:$16 sps:$4 sm:$0xff]   ;;  %s3623_s29 = smul.u32 4294967284, %s4222_s18 }
 0x9dd   : > { %v5090_v26 = vadd.f32 %v2213_v44, %v2212_v25  ;;  %s3334_s11 = scalar_lea.vmem %s4359_s5, %s3623_s29 [#allocation5]  ;;  %s3366_s29 = scalar_lea.vmem %s4359_s5, %s3663_s10 [#allocation5] }
 0x9df   : > { %4002 = vtanh.f32 %v5090_v26 }
 0x9e9   : > { %v4003_v27 = vpop.eup %4002 }
 0x9ea   : > { %v2216_v28 = vmul.f32 %v4003_v27, %v4001_v23 }
 0x9ec   : > { %v2217_v29 = vpack.c.bf16 %v2216_v28, %v2216_v28 }
 0x9ee   : > { %2222 = vst [vmem:[%s2221_s7] sm:$0xf] %v2217_v29  ;;  %2218 = vst [vmem:[#allocation3] sm:$0xf] %v2217_v29  ;;  %s3655_s7 = smul.u32 4294966944, %s4222_s18 }
 0x9f0   : > { %s3362_s8 = scalar_lea.vmem [#allocation2], %s3655_s7 }
 0x9f5   : > { %v2232_v47 = vld [vmem:[#allocation3] sm:$0xf] }
 0x9f6   : > { %2266 = vmatmul.mubr.bf16.vlgmr.msra.gmra.mrb[68].mxu0 %v2232_v47  ;;  %2307 = vmatmul.mubr.bf16.vlgmr.msra.gmra.mrb[68].mxu1 %v2232_v47 }
 0x9f7   : > { %2361 = vmatpush1.bf16.msra.mxu0 %v5097_v48  ;;  %2402 = vmatpush1.bf16.msra.mxu1 %v5101_v49 }
 0x9f8   : > { %2362 = vmatprep.subr.bf16.mxu0 %v5105_v50  ;;  %2403 = vmatprep.subr.bf16.mxu1 %v5109_v38 }
 0x9f9   : > { %2392 = vmatprep.mubr.bf16.mxu0 %v4238_v4  ;;  %2433 = vmatprep.mubr.bf16.mxu1 %v4238_v4 }
 0x9fb   : > { %2363 = vmatpush1.bf16.msra.mxu0 %v5115_v39  ;;  %2404 = vmatpush1.bf16.msra.mxu1 %v5119_v51 }
 0x9fc   : > { %2364 = vmatprep.subr.bf16.mxu0 %v5123_v52  ;;  %2405 = vmatprep.subr.bf16.mxu1 %v5127_v53 }
 0x9ff   : > { %2365 = vmatpush1.bf16.msra.mxu0 %v5131_v55  ;;  %2406 = vmatpush1.bf16.msra.mxu1 %v5135_v56 }
 0xa00   : > { %2366 = vmatprep.subr.bf16.mxu0 %v5139_v57  ;;  %2407 = vmatprep.subr.bf16.mxu1 %v5143_v58 }
 0xa03   : > { %2367 = vmatpush1.bf16.msra.mxu0 %v5147_v59  ;;  %2408 = vmatpush1.bf16.msra.mxu1 %v5151_v60 }
 0xa04   : > { %2368 = vmatprep.subr.bf16.mxu0 %v5155_v61  ;;  %2409 = vmatprep.subr.bf16.mxu1 %v5159_v62 }
 0xa07   : > { %2369 = vmatpush1.bf16.msra.mxu0 %v5163_v0  ;;  %2410 = vmatpush1.bf16.msra.mxu1 %v5167_v1 }
 0xa08   : > { %2370 = vmatprep.subr.bf16.mxu0 %v5171_v2  ;;  %2411 = vmatprep.subr.bf16.mxu1 %v5175_v3 }
 0xa0b   : > { %2371 = vmatpush1.bf16.msra.mxu0 %v5179_v5  ;;  %2412 = vmatpush1.bf16.msra.mxu1 %v5183_v46 }
 0xa0c   : > { %2372 = vmatprep.subr.bf16.mxu0 %v5187_v6  ;;  %2413 = vmatprep.subr.bf16.mxu1 %v5191_v7 }
 0xa0f   : > { %2373 = vmatpush1.bf16.msra.mxu0 %v5195_v13  ;;  %2414 = vmatpush1.bf16.msra.mxu1 %v5199_v32 }
 0xa10   : > { %2374 = vmatprep.subr.bf16.mxu0 %v5203_v35  ;;  %2415 = vmatprep.subr.bf16.mxu1 %v5207_v36 }
 0xa13   : > { %2375 = vmatpush1.bf16.msra.mxu0 %v5211_v33  ;;  %2416 = vmatpush1.bf16.msra.mxu1 %v5215_v34 }
 0xa14   : > { %2487 = vmatprep.subr.bf16.mxu0 %v5079_v30  ;;  %2528 = vmatprep.subr.bf16.mxu1 %v5083_v31 }
 0xac9   : > { %v2267_v45 = vpop.f32.mrb[68].mxu0  ;;  %v2308_v54 = vpop.f32.mrb[68].mxu1 }
 0xaca   : > { %v2315_v63 = vadd.f32 %v3616_v37, %v2267_v45  ;;  %v2269_v9 = vpop.f32.mrb[69].mxu0  ;;  %v2310_v10 = vpop.f32.mrb[69].mxu1  ;;  %v2317_v40 = vadd.f32 %v3618_v19, %v2308_v54 }
 0xacb   : > { %v2316_v11 = vadd.f32 %v3617_v8, %v2269_v9  ;;  %v2271_v12 = vpop.f32.mrb[70].mxu0  ;;  %v2312_v14 = vpop.f32.mrb[70].mxu1  ;;  %v2318_v18 = vadd.f32 %v3619_v21, %v2310_v10 }
 0xacc   : > { %v3620_v15 = vmul.f32 -1.442695, %v2315_v63  ;;  %v2272_v16 = vpop.f32.mrb[71].mxu0  ;;  %v2313_v20 = vpop.f32.mrb[71].mxu1  ;;  %v3627_v14 = vld [vmem:[%s3338_s15 + $0x148] sm:$0xff] }
 0xacd   : > { %v3621_v17 = vmul.f32 -1.442695, %v2316_v11  ;;  %v3622_v24 = vmul.f32 -1.442695, %v2318_v18 }
 0xace   : > { %4004 = vpow2.f32 %v3620_v15 }
 0xacf   : > { %4006 = vpow2.f32 %v3621_v17 }
 0xad0   : > { %4008 = vpow2.f32 %v3622_v24 }
 0xad1   : > { %4010 = vtanh.f32 %v2317_v40 }
 0xad8   : > { %v4005_v41 = vpop.eup %4004 }
 0xad9   : > { %v4007_v42 = vpop.eup %4006  ;;  %v2323_v43 = vadd.f32 1.0, %v4005_v41  ;;  %v3629_v41 = vld [vmem:[%s3338_s15 + $0x158] sm:$0xff] }
 0xada   : > { %v2329_v44 = vadd.f32 1.0, %v4007_v42  ;;  %v4009_v22 = vpop.eup %4008 }
 0xadb   : > { %4012 = vrcp.f32 %v2323_v43  ;;  %v4011_v25 = vpop.eup %4010  ;;  %v2336_v29 = vadd.f32 1.0, %v4009_v22  ;;  %v3628_v43 = vld [vmem:[%s3338_s15 + $0x150] sm:$0xff] }
 0xadc   : > { %4014 = vrcp.f32 %v2329_v44 }
 0xadd   : > { %4016 = vrcp.f32 %v2336_v29 }
 0xae5   : > { %v4013_v23 = vpop.eup %4012 }
 0xae6   : > { %v4015_v27 = vpop.eup %4014  ;;  %v2340_v28 = vmul.f32 %v4013_v23, %v4011_v25 }
 0xae7   : > { %v2339_v47 = vmul.f32 %v4015_v27, %v5090_v26  ;;  %v4017_v45 = vpop.eup %4016  ;;  %v3626_v26 = vld [vmem:[%s3338_s15 + $0x140] sm:$0xff]  ;;  %s3673_s15 = smul.u32 4294967244, %s4222_s18 }
 0xae9   : > { %v5222_v37 = vadd.f32 %v2340_v28, %v2339_v47  ;;  %s3374_s13 = scalar_lea.vmem %s4359_s5, %s3673_s15 [#allocation5] }
 0xaeb   : > { %4018 = vtanh.f32 %v5222_v37 }
 0xaf5   : > { %v4019_v54 = vpop.eup %4018 }
 0xaf6   : > { %v2343_v63 = vmul.f32 %v4019_v54, %v4017_v45 }
 0xaf8   : > { %v2344_v8 = vpack.c.bf16 %v2343_v63, %v2343_v63 }
 0xafa   : > { %3624 = vst [vmem:[%s3334_s11 + $0x24] sm:$0xf] %v2344_v8  ;;  %2345 = vst [vmem:[#allocation3] sm:$0xf] %v2344_v8  ;;  %s3665_s11 = smul.u32 4294966880, %s4222_s18 }
 0xafc   : > { %s3370_s12 = scalar_lea.vmem [#allocation2], %s3665_s11 }
 0xb01   : > { %v2359_v9 = vld [vmem:[#allocation3] sm:$0xf] }
 0xb02   : > { %2393 = vmatmul.mubr.bf16.vlgmr.msra.gmra.mrb[72].mxu0 %v2359_v9  ;;  %2434 = vmatmul.mubr.bf16.vlgmr.msra.gmra.mrb[72].mxu1 %v2359_v9 }
 0xb03   : > { %2488 = vmatpush1.bf16.msra.mxu0 %v5097_v48  ;;  %2529 = vmatpush1.bf16.msra.mxu1 %v5101_v49 }
 0xb04   : > { %2489 = vmatprep.subr.bf16.mxu0 %v5105_v50  ;;  %2530 = vmatprep.subr.bf16.mxu1 %v5109_v38 }
 0xb05   : > { %2519 = vmatprep.mubr.bf16.mxu0 %v4238_v4  ;;  %2560 = vmatprep.mubr.bf16.mxu1 %v4238_v4 }
 0xb07   : > { %2490 = vmatpush1.bf16.msra.mxu0 %v5115_v39  ;;  %2531 = vmatpush1.bf16.msra.mxu1 %v5119_v51 }
 0xb08   : > { %2491 = vmatprep.subr.bf16.mxu0 %v5123_v52  ;;  %2532 = vmatprep.subr.bf16.mxu1 %v5127_v53 }
 0xb0b   : > { %2492 = vmatpush1.bf16.msra.mxu0 %v5131_v55  ;;  %2533 = vmatpush1.bf16.msra.mxu1 %v5135_v56 }
 0xb0c   : > { %2493 = vmatprep.subr.bf16.mxu0 %v5139_v57  ;;  %2534 = vmatprep.subr.bf16.mxu1 %v5143_v58 }
 0xb0f   : > { %2494 = vmatpush1.bf16.msra.mxu0 %v5147_v59  ;;  %2535 = vmatpush1.bf16.msra.mxu1 %v5151_v60 }
 0xb10   : > { %2495 = vmatprep.subr.bf16.mxu0 %v5155_v61  ;;  %2536 = vmatprep.subr.bf16.mxu1 %v5159_v62 }
 0xb13   : > { %2496 = vmatpush1.bf16.msra.mxu0 %v5163_v0  ;;  %2537 = vmatpush1.bf16.msra.mxu1 %v5167_v1 }
 0xb14   : > { %2497 = vmatprep.subr.bf16.mxu0 %v5171_v2  ;;  %2538 = vmatprep.subr.bf16.mxu1 %v5175_v3 }
 0xb17   : > { %2498 = vmatpush1.bf16.msra.mxu0 %v5179_v5  ;;  %2539 = vmatpush1.bf16.msra.mxu1 %v5183_v46 }
 0xb18   : > { %2499 = vmatprep.subr.bf16.mxu0 %v5187_v6  ;;  %2540 = vmatprep.subr.bf16.mxu1 %v5191_v7 }
 0xb1b   : > { %2500 = vmatpush1.bf16.msra.mxu0 %v5195_v13  ;;  %2541 = vmatpush1.bf16.msra.mxu1 %v5199_v32 }
 0xb1c   : > { %2501 = vmatprep.subr.bf16.mxu0 %v5203_v35  ;;  %2542 = vmatprep.subr.bf16.mxu1 %v5207_v36 }
 0xb1f   : > { %2502 = vmatpush1.bf16.msra.mxu0 %v5211_v33  ;;  %2543 = vmatpush1.bf16.msra.mxu1 %v5215_v34 }
 0xb20   : > { %2614 = vmatprep.subr.bf16.mxu0 %v5079_v30  ;;  %2655 = vmatprep.subr.bf16.mxu1 %v5083_v31 }
 0xbd5   : > { %v2394_v10 = vpop.f32.mrb[72].mxu0  ;;  %v2435_v11 = vpop.f32.mrb[72].mxu1 }
 0xbd6   : > { %v2442_v12 = vadd.f32 %v3626_v26, %v2394_v10  ;;  %v2396_v15 = vpop.f32.mrb[73].mxu0  ;;  %v2437_v16 = vpop.f32.mrb[73].mxu1  ;;  %v2444_v22 = vadd.f32 %v3628_v43, %v2435_v11 }
 0xbd7   : > { %v2443_v20 = vadd.f32 %v3627_v14, %v2396_v15  ;;  %v2398_v17 = vpop.f32.mrb[74].mxu0  ;;  %v2439_v21 = vpop.f32.mrb[74].mxu1  ;;  %v2445_v42 = vadd.f32 %v3629_v41, %v2437_v16 }
 0xbd8   : > { %v3630_v18 = vmul.f32 -1.442695, %v2442_v12  ;;  %v2399_v19 = vpop.f32.mrb[75].mxu0  ;;  %v2440_v24 = vpop.f32.mrb[75].mxu1  ;;  %v3637_v21 = vld [vmem:[%s3346_s27 + $0x168] sm:$0xff] }
 0xbd9   : > { %v3631_v40 = vmul.f32 -1.442695, %v2443_v20  ;;  %v3632_v44 = vmul.f32 -1.442695, %v2445_v42 }
 0xbda   : > { %4020 = vpow2.f32 %v3630_v18 }
 0xbdb   : > { %4022 = vpow2.f32 %v3631_v40 }
 0xbdc   : > { %4024 = vpow2.f32 %v3632_v44 }
 0xbdd   : > { %4026 = vtanh.f32 %v2444_v22 }
 0xbe4   : > { %v4021_v25 = vpop.eup %4020 }
 0xbe5   : > { %v4023_v23 = vpop.eup %4022  ;;  %v2450_v27 = vadd.f32 1.0, %v4021_v25  ;;  %v3639_v25 = vld [vmem:[%s3346_s27 + $0x178] sm:$0xff] }
 0xbe6   : > { %v2456_v28 = vadd.f32 1.0, %v4023_v23  ;;  %v4025_v29 = vpop.eup %4024 }
 0xbe7   : > { %4028 = vrcp.f32 %v2450_v27  ;;  %v4027_v47 = vpop.eup %4026  ;;  %v2463_v8 = vadd.f32 1.0, %v4025_v29  ;;  %v3638_v27 = vld [vmem:[%s3346_s27 + $0x170] sm:$0xff] }
 0xbe8   : > { %4030 = vrcp.f32 %v2456_v28 }
 0xbe9   : > { %4032 = vrcp.f32 %v2463_v8 }
 0xbf1   : > { %v4029_v45 = vpop.eup %4028 }
 0xbf2   : > { %v4031_v54 = vpop.eup %4030  ;;  %v2467_v63 = vmul.f32 %v4029_v45, %v4027_v47 }
 0xbf3   : > { %v2466_v9 = vmul.f32 %v4031_v54, %v5222_v37  ;;  %v4033_v10 = vpop.eup %4032  ;;  %v3636_v37 = vld [vmem:[%s3346_s27 + $0x160] sm:$0xff]  ;;  %s3683_s27 = smul.u32 4294967236, %s4222_s18 }
 0xbf5   : > { %v5263_v26 = vadd.f32 %v2467_v63, %v2466_v9  ;;  %s3382_s28 = scalar_lea.vmem %s4359_s5, %s3683_s27 [#allocation5] }
 0xbf7   : > { %4034 = vtanh.f32 %v5263_v26 }
 0xc01   : > { %v4035_v11 = vpop.eup %4034 }
 0xc02   : > { %v2470_v12 = vmul.f32 %v4035_v11, %v4033_v10 }
 0xc04   : > { %v2471_v14 = vpack.c.bf16 %v2470_v12, %v2470_v12 }
 0xc06   : > { %3634 = vst [vmem:[%s3342_s24 + $0x28] sm:$0xf] %v2471_v14  ;;  %2472 = vst [vmem:[#allocation3] sm:$0xf] %v2471_v14  ;;  %s3675_s24 = smul.u32 4294966816, %s4222_s18 }
 0xc08   : > { %s3378_s25 = scalar_lea.vmem [#allocation2], %s3675_s24 }
 0xc0d   : > { %v2486_v15 = vld [vmem:[#allocation3] sm:$0xf] }
 0xc0e   : > { %2520 = vmatmul.mubr.bf16.vlgmr.msra.gmra.mrb[76].mxu0 %v2486_v15  ;;  %2561 = vmatmul.mubr.bf16.vlgmr.msra.gmra.mrb[76].mxu1 %v2486_v15 }
 0xc0f   : > { %2615 = vmatpush1.bf16.msra.mxu0 %v5097_v48  ;;  %2656 = vmatpush1.bf16.msra.mxu1 %v5101_v49 }
 0xc10   : > { %2616 = vmatprep.subr.bf16.mxu0 %v5105_v50  ;;  %2657 = vmatprep.subr.bf16.mxu1 %v5109_v38 }
 0xc11   : > { %2646 = vmatprep.mubr.bf16.mxu0 %v4238_v4  ;;  %2687 = vmatprep.mubr.bf16.mxu1 %v4238_v4 }
 0xc13   : > { %2617 = vmatpush1.bf16.msra.mxu0 %v5115_v39  ;;  %2658 = vmatpush1.bf16.msra.mxu1 %v5119_v51 }
 0xc14   : > { %2618 = vmatprep.subr.bf16.mxu0 %v5123_v52  ;;  %2659 = vmatprep.subr.bf16.mxu1 %v5127_v53 }
 0xc17   : > { %2619 = vmatpush1.bf16.msra.mxu0 %v5131_v55  ;;  %2660 = vmatpush1.bf16.msra.mxu1 %v5135_v56 }
 0xc18   : > { %2620 = vmatprep.subr.bf16.mxu0 %v5139_v57  ;;  %2661 = vmatprep.subr.bf16.mxu1 %v5143_v58 }
 0xc1b   : > { %2621 = vmatpush1.bf16.msra.mxu0 %v5147_v59  ;;  %2662 = vmatpush1.bf16.msra.mxu1 %v5151_v60 }
 0xc1c   : > { %2622 = vmatprep.subr.bf16.mxu0 %v5155_v61  ;;  %2663 = vmatprep.subr.bf16.mxu1 %v5159_v62 }
 0xc1f   : > { %2623 = vmatpush1.bf16.msra.mxu0 %v5163_v0  ;;  %2664 = vmatpush1.bf16.msra.mxu1 %v5167_v1 }
 0xc20   : > { %2624 = vmatprep.subr.bf16.mxu0 %v5171_v2  ;;  %2665 = vmatprep.subr.bf16.mxu1 %v5175_v3 }
 0xc23   : > { %2625 = vmatpush1.bf16.msra.mxu0 %v5179_v5  ;;  %2666 = vmatpush1.bf16.msra.mxu1 %v5183_v46 }
 0xc24   : > { %2626 = vmatprep.subr.bf16.mxu0 %v5187_v6  ;;  %2667 = vmatprep.subr.bf16.mxu1 %v5191_v7 }
 0xc27   : > { %2627 = vmatpush1.bf16.msra.mxu0 %v5195_v13  ;;  %2668 = vmatpush1.bf16.msra.mxu1 %v5199_v32 }
 0xc28   : > { %2628 = vmatprep.subr.bf16.mxu0 %v5203_v35  ;;  %2669 = vmatprep.subr.bf16.mxu1 %v5207_v36 }
 0xc2b   : > { %2629 = vmatpush1.bf16.msra.mxu0 %v5211_v33  ;;  %2670 = vmatpush1.bf16.msra.mxu1 %v5215_v34 }
 0xc2c   : > { %2741 = vmatprep.subr.bf16.mxu0 %v5079_v30  ;;  %2782 = vmatprep.subr.bf16.mxu1 %v5083_v31 }
 0xce1   : > { %v2521_v16 = vpop.f32.mrb[76].mxu0  ;;  %v2562_v20 = vpop.f32.mrb[76].mxu1 }
 0xce2   : > { %v2569_v17 = vadd.f32 %v3636_v37, %v2521_v16  ;;  %v2523_v18 = vpop.f32.mrb[77].mxu0  ;;  %v2564_v19 = vpop.f32.mrb[77].mxu1  ;;  %v2571_v29 = vadd.f32 %v3638_v27, %v2562_v20 }
 0xce3   : > { %v2570_v24 = vadd.f32 %v3637_v21, %v2523_v18  ;;  %v2525_v40 = vpop.f32.mrb[78].mxu0  ;;  %v2566_v41 = vpop.f32.mrb[78].mxu1  ;;  %v2572_v23 = vadd.f32 %v3639_v25, %v2564_v19 }
 0xce4   : > { %v3640_v42 = vmul.f32 -1.442695, %v2569_v17  ;;  %v2526_v43 = vpop.f32.mrb[79].mxu0  ;;  %v2567_v44 = vpop.f32.mrb[79].mxu1  ;;  %v3647_v41 = vld [vmem:[%s3354_s22 + $0x188] sm:$0xff] }
 0xce5   : > { %v3641_v22 = vmul.f32 -1.442695, %v2570_v24  ;;  %v3642_v28 = vmul.f32 -1.442695, %v2572_v23 }
 0xce6   : > { %4036 = vpow2.f32 %v3640_v42 }
 0xce7   : > { %4038 = vpow2.f32 %v3641_v22 }
 0xce8   : > { %4040 = vpow2.f32 %v3642_v28 }
 0xce9   : > { %4042 = vtanh.f32 %v2571_v29 }
 0xcf0   : > { %v4037_v47 = vpop.eup %4036 }
 0xcf1   : > { %v4039_v45 = vpop.eup %4038  ;;  %v2577_v54 = vadd.f32 1.0, %v4037_v47  ;;  %v3649_v47 = vld [vmem:[%s3354_s22 + $0x198] sm:$0xff] }
 0xcf2   : > { %v2583_v63 = vadd.f32 1.0, %v4039_v45  ;;  %v4041_v8 = vpop.eup %4040 }
 0xcf3   : > { %4044 = vrcp.f32 %v2577_v54  ;;  %v4043_v9 = vpop.eup %4042  ;;  %v2590_v14 = vadd.f32 1.0, %v4041_v8  ;;  %v3648_v54 = vld [vmem:[%s3354_s22 + $0x190] sm:$0xff] }
 0xcf4   : > { %4046 = vrcp.f32 %v2583_v63 }
 0xcf5   : > { %4048 = vrcp.f32 %v2590_v14 }
 0xcfd   : > { %v4045_v10 = vpop.eup %4044 }
 0xcfe   : > { %v4047_v11 = vpop.eup %4046  ;;  %v2594_v12 = vmul.f32 %v4045_v10, %v4043_v9 }
 0xcff   : > { %v2593_v15 = vmul.f32 %v4047_v11, %v5263_v26  ;;  %v4049_v16 = vpop.eup %4048  ;;  %v3646_v26 = vld [vmem:[%s3354_s22 + $0x180] sm:$0xff] }
 0xd01   : > { %v5304_v37 = vadd.f32 %v2594_v12, %v2593_v15 }
 0xd03   : > { %4050 = vtanh.f32 %v5304_v37 }
 0xd0d   : > { %v4051_v20 = vpop.eup %4050 }
 0xd0e   : > { %v2597_v17 = vmul.f32 %v4051_v20, %v4049_v16 }
 0xd10   : > { %v2598_v21 = vpack.c.bf16 %v2597_v17, %v2597_v17 }
 0xd12   : > { %3644 = vst [vmem:[%s3350_s6 + $0x2c] sm:$0xf] %v2598_v21  ;;  %2599 = vst [vmem:[#allocation3] sm:$0xf] %v2598_v21  ;;  %s3696_s6 = sshll.u32 (%p4319_p4), %s4335_s30, 5 }
 0xd13   : > { %s3126_s17 = sadd.s32 (%p4319_p4), %s4222_s18, %s3696_s6 }
 0xd14   : > { %s3688_s9 = sshll.u32 (%p4319_p4), %s3126_s17, 2 }
 0xd19   : > { %v2613_v18 = vld [vmem:[#allocation3] sm:$0xf] }
 0xd1a   : > { %2647 = vmatmul.mubr.bf16.vlgmr.msra.gmra.mrb[80].mxu0 %v2613_v18  ;;  %2688 = vmatmul.mubr.bf16.vlgmr.msra.gmra.mrb[80].mxu1 %v2613_v18 }
 0xd1b   : > { %2742 = vmatpush1.bf16.msra.mxu0 %v5097_v48  ;;  %2783 = vmatpush1.bf16.msra.mxu1 %v5101_v49 }
 0xd1c   : > { %2743 = vmatprep.subr.bf16.mxu0 %v5105_v50  ;;  %2784 = vmatprep.subr.bf16.mxu1 %v5109_v38 }
 0xd1d   : > { %2773 = vmatprep.mubr.bf16.mxu0 %v4238_v4  ;;  %2814 = vmatprep.mubr.bf16.mxu1 %v4238_v4 }
 0xd1f   : > { %2744 = vmatpush1.bf16.msra.mxu0 %v5115_v39  ;;  %2785 = vmatpush1.bf16.msra.mxu1 %v5119_v51 }
 0xd20   : > { %2745 = vmatprep.subr.bf16.mxu0 %v5123_v52  ;;  %2786 = vmatprep.subr.bf16.mxu1 %v5127_v53 }
 0xd23   : > { %2746 = vmatpush1.bf16.msra.mxu0 %v5131_v55  ;;  %2787 = vmatpush1.bf16.msra.mxu1 %v5135_v56 }
 0xd24   : > { %2747 = vmatprep.subr.bf16.mxu0 %v5139_v57  ;;  %2788 = vmatprep.subr.bf16.mxu1 %v5143_v58 }
 0xd27   : > { %2748 = vmatpush1.bf16.msra.mxu0 %v5147_v59  ;;  %2789 = vmatpush1.bf16.msra.mxu1 %v5151_v60 }
 0xd28   : > { %2749 = vmatprep.subr.bf16.mxu0 %v5155_v61  ;;  %2790 = vmatprep.subr.bf16.mxu1 %v5159_v62 }
 0xd2b   : > { %2750 = vmatpush1.bf16.msra.mxu0 %v5163_v0  ;;  %2791 = vmatpush1.bf16.msra.mxu1 %v5167_v1 }
 0xd2c   : > { %2751 = vmatprep.subr.bf16.mxu0 %v5171_v2  ;;  %2792 = vmatprep.subr.bf16.mxu1 %v5175_v3 }
 0xd2f   : > { %2752 = vmatpush1.bf16.msra.mxu0 %v5179_v5  ;;  %2793 = vmatpush1.bf16.msra.mxu1 %v5183_v46 }
 0xd30   : > { %2753 = vmatprep.subr.bf16.mxu0 %v5187_v6  ;;  %2794 = vmatprep.subr.bf16.mxu1 %v5191_v7 }
 0xd33   : > { %2754 = vmatpush1.bf16.msra.mxu0 %v5195_v13  ;;  %2795 = vmatpush1.bf16.msra.mxu1 %v5199_v32 }
 0xd34   : > { %2755 = vmatprep.subr.bf16.mxu0 %v5203_v35  ;;  %2796 = vmatprep.subr.bf16.mxu1 %v5207_v36 }
 0xd37   : > { %2756 = vmatpush1.bf16.msra.mxu0 %v5211_v33  ;;  %2797 = vmatpush1.bf16.msra.mxu1 %v5215_v34 }
 0xd38   : > { %2868 = vmatprep.subr.bf16.mxu0 %v5079_v30  ;;  %2909 = vmatprep.subr.bf16.mxu1 %v5083_v31 }
 0xded   : > { %v2648_v19 = vpop.f32.mrb[80].mxu0  ;;  %v2689_v24 = vpop.f32.mrb[80].mxu1 }
 0xdee   : > { %v2696_v40 = vadd.f32 %v3646_v26, %v2648_v19  ;;  %v2650_v42 = vpop.f32.mrb[81].mxu0  ;;  %v2691_v43 = vpop.f32.mrb[81].mxu1  ;;  %v2698_v8 = vadd.f32 %v3648_v54, %v2689_v24 }
 0xdef   : > { %v2697_v44 = vadd.f32 %v3647_v41, %v2650_v42  ;;  %v2652_v22 = vpop.f32.mrb[82].mxu0  ;;  %v2693_v25 = vpop.f32.mrb[82].mxu1  ;;  %v2699_v45 = vadd.f32 %v3649_v47, %v2691_v43 }
 0xdf0   : > { %v3650_v23 = vmul.f32 -1.442695, %v2696_v40  ;;  %v2653_v27 = vpop.f32.mrb[83].mxu0  ;;  %v2694_v28 = vpop.f32.mrb[83].mxu1  ;;  %v3657_v25 = vld [vmem:[%s3362_s8 + $0x1a8] sm:$0xff] }
 0xdf1   : > { %v3651_v29 = vmul.f32 -1.442695, %v2697_v44  ;;  %v3652_v63 = vmul.f32 -1.442695, %v2699_v45 }
 0xdf2   : > { %4052 = vpow2.f32 %v3650_v23 }
 0xdf3   : > { %4054 = vpow2.f32 %v3651_v29 }
 0xdf4   : > { %4056 = vpow2.f32 %v3652_v63 }
 0xdf5   : > { %4058 = vtanh.f32 %v2698_v8 }
 0xdfc   : > { %v4053_v9 = vpop.eup %4052 }
 0xdfd   : > { %v4055_v10 = vpop.eup %4054  ;;  %v2704_v11 = vadd.f32 1.0, %v4053_v9  ;;  %v3658_v9 = vld [vmem:[%s3362_s8 + $0x1b0] sm:$0xff] }
 0xdfe   : > { %v2710_v12 = vadd.f32 1.0, %v4055_v10  ;;  %v4057_v14 = vpop.eup %4056 }
 0xdff   : > { %4060 = vrcp.f32 %v2704_v11  ;;  %v4059_v15 = vpop.eup %4058  ;;  %v2717_v21 = vadd.f32 1.0, %v4057_v14 }
 0xe00   : > { %4062 = vrcp.f32 %v2710_v12 }
 0xe01   : > { %4064 = vrcp.f32 %v2717_v21 }
 0xe09   : > { %v4061_v16 = vpop.eup %4060 }
 0xe0a   : > { %v4063_v20 = vpop.eup %4062  ;;  %v2721_v17 = vmul.f32 %v4061_v16, %v4059_v15 }
 0xe0b   : > { %v2720_v18 = vmul.f32 %v4063_v20, %v5304_v37  ;;  %v4065_v19 = vpop.eup %4064  ;;  %v3656_v37 = vld [vmem:[%s3362_s8 + $0x1a0] sm:$0xff] }
 0xe0d   : > { %v5345_v26 = vadd.f32 %v2721_v17, %v2720_v18 }
 0xe0f   : > { %4066 = vtanh.f32 %v5345_v26 }
 0xe19   : > { %v4067_v24 = vpop.eup %4066 }
 0xe1a   : > { %v2724_v40 = vmul.f32 %v4067_v24, %v4065_v19 }
 0xe1c   : > { %v2725_v41 = vpack.c.bf16 %v2724_v40, %v2724_v40 }
 0xe1e   : > { %3654 = vst [vmem:[%s3358_s26 + $0x30] sm:$0xf] %v2725_v41  ;;  %2726 = vst [vmem:[#allocation3] sm:$0xf] %v2725_v41  ;;  %s3128_s26 = scalar_lea.vmem (%p4319_p4), %s5478_s4, %s3688_s9 }
 0xe25   : > { %v2740_v42 = vld [vmem:[#allocation3] sm:$0xf] }
 0xe26   : > { %2774 = vmatmul.mubr.bf16.vlgmr.msra.gmra.mrb[84].mxu0 %v2740_v42  ;;  %2815 = vmatmul.mubr.bf16.vlgmr.msra.gmra.mrb[84].mxu1 %v2740_v42 }
 0xe27   : > { %2869 = vmatpush1.bf16.msra.mxu0 %v5097_v48  ;;  %2910 = vmatpush1.bf16.msra.mxu1 %v5101_v49 }
 0xe28   : > { %2870 = vmatprep.subr.bf16.mxu0 %v5105_v50  ;;  %2911 = vmatprep.subr.bf16.mxu1 %v5109_v38 }
 0xe29   : > { %2900 = vmatprep.mubr.bf16.mxu0 %v4238_v4  ;;  %2941 = vmatprep.mubr.bf16.mxu1 %v4238_v4 }
 0xe2b   : > { %2871 = vmatpush1.bf16.msra.mxu0 %v5115_v39  ;;  %2912 = vmatpush1.bf16.msra.mxu1 %v5119_v51 }
 0xe2c   : > { %2872 = vmatprep.subr.bf16.mxu0 %v5123_v52  ;;  %2913 = vmatprep.subr.bf16.mxu1 %v5127_v53 }
 0xe2f   : > { %2873 = vmatpush1.bf16.msra.mxu0 %v5131_v55  ;;  %2914 = vmatpush1.bf16.msra.mxu1 %v5135_v56 }
 0xe30   : > { %2874 = vmatprep.subr.bf16.mxu0 %v5139_v57  ;;  %2915 = vmatprep.subr.bf16.mxu1 %v5143_v58 }
 0xe33   : > { %2875 = vmatpush1.bf16.msra.mxu0 %v5147_v59  ;;  %2916 = vmatpush1.bf16.msra.mxu1 %v5151_v60 }
 0xe34   : > { %2876 = vmatprep.subr.bf16.mxu0 %v5155_v61  ;;  %2917 = vmatprep.subr.bf16.mxu1 %v5159_v62 }
 0xe37   : > { %2877 = vmatpush1.bf16.msra.mxu0 %v5163_v0  ;;  %2918 = vmatpush1.bf16.msra.mxu1 %v5167_v1 }
 0xe38   : > { %2878 = vmatprep.subr.bf16.mxu0 %v5171_v2  ;;  %2919 = vmatprep.subr.bf16.mxu1 %v5175_v3 }
 0xe3b   : > { %2879 = vmatpush1.bf16.msra.mxu0 %v5179_v5  ;;  %2920 = vmatpush1.bf16.msra.mxu1 %v5183_v46 }
 0xe3c   : > { %2880 = vmatprep.subr.bf16.mxu0 %v5187_v6  ;;  %2921 = vmatprep.subr.bf16.mxu1 %v5191_v7 }
 0xe3f   : > { %2881 = vmatpush1.bf16.msra.mxu0 %v5195_v13  ;;  %2922 = vmatpush1.bf16.msra.mxu1 %v5199_v32 }
 0xe40   : > { %2882 = vmatprep.subr.bf16.mxu0 %v5203_v35  ;;  %2923 = vmatprep.subr.bf16.mxu1 %v5207_v36 }
 0xe43   : > { %2883 = vmatpush1.bf16.msra.mxu0 %v5211_v33  ;;  %2924 = vmatpush1.bf16.msra.mxu1 %v5215_v34 }
 0xe44   : > { %2995 = vmatprep.subr.bf16.mxu0 %v5079_v30  ;;  %3036 = vmatprep.subr.bf16.mxu1 %v5083_v31  ;;  %v3659_v30 = vld [vmem:[%s3362_s8 + $0x1b8] sm:$0xff] }
 0xef9   : > { %v2775_v43 = vpop.f32.mrb[84].mxu0  ;;  %v2816_v44 = vpop.f32.mrb[84].mxu1 }
 0xefa   : > { %v2823_v22 = vadd.f32 %v3656_v37, %v2775_v43  ;;  %v2777_v23 = vpop.f32.mrb[85].mxu0  ;;  %v2818_v27 = vpop.f32.mrb[85].mxu1  ;;  %v2825_v11 = vadd.f32 %v3658_v9, %v2816_v44 }
 0xefb   : > { %v2824_v28 = vadd.f32 %v3657_v25, %v2777_v23  ;;  %v2779_v29 = vpop.f32.mrb[86].mxu0  ;;  %v2820_v47 = vpop.f32.mrb[86].mxu1  ;;  %v2826_v31 = vadd.f32 %v3659_v30, %v2818_v27 }
 0xefc   : > { %v3660_v45 = vmul.f32 -1.442695, %v2823_v22  ;;  %v2780_v54 = vpop.f32.mrb[87].mxu0  ;;  %v2821_v63 = vpop.f32.mrb[87].mxu1  ;;  %v3676_v29 = vld [vmem:[%s3378_s25 + $0x1e0] sm:$0xff] }
 0xefd   : > { %v3661_v8 = vmul.f32 -1.442695, %v2824_v28  ;;  %v3662_v10 = vmul.f32 -1.442695, %v2826_v31  ;;  %v3677_v63 = vld [vmem:[%s3378_s25 + $0x1e8] sm:$0xff] }
 0xefe   : > { %4068 = vpow2.f32 %v3660_v45 }
 0xeff   : > { %4070 = vpow2.f32 %v3661_v8 }
 0xf00   : > { %4072 = vpow2.f32 %v3662_v10 }
 0xf01   : > { %4074 = vtanh.f32 %v2825_v11 }
 0xf08   : > { %v4069_v12 = vpop.eup %4068 }
 0xf09   : > { %v4071_v14 = vpop.eup %4070  ;;  %v2831_v15 = vadd.f32 1.0, %v4069_v12 }
 0xf0a   : > { %v2837_v16 = vadd.f32 1.0, %v4071_v14  ;;  %v4073_v20 = vpop.eup %4072 }
 0xf0b   : > { %4076 = vrcp.f32 %v2831_v15  ;;  %v4075_v17 = vpop.eup %4074  ;;  %v2844_v24 = vadd.f32 1.0, %v4073_v20 }
 0xf0c   : > { %4078 = vrcp.f32 %v2837_v16  ;;  %v3679_v16 = vld [vmem:[%s3378_s25 + $0x1f8] sm:$0xff] }
 0xf0d   : > { %4080 = vrcp.f32 %v2844_v24 }
 0xf15   : > { %v4077_v21 = vpop.eup %4076 }
 0xf16   : > { %v4079_v18 = vpop.eup %4078  ;;  %v2848_v19 = vmul.f32 %v4077_v21, %v4075_v17  ;;  %v3678_v17 = vld [vmem:[%s3378_s25 + $0x1f0] sm:$0xff] }
 0xf17   : > { %v2847_v40 = vmul.f32 %v4079_v18, %v5345_v26  ;;  %v4081_v42 = vpop.eup %4080 }
 0xf19   : > { %v5386_v41 = vadd.f32 %v2848_v19, %v2847_v40 }
 0xf1b   : > { %4082 = vtanh.f32 %v5386_v41 }
 0xf25   : > { %v4083_v37 = vpop.eup %4082 }
 0xf26   : > { %v2851_v43 = vmul.f32 %v4083_v37, %v4081_v42 }
 0xf28   : > { %v2852_v44 = vpack.c.bf16 %v2851_v43, %v2851_v43 }
 0xf2a   : > { %3664 = vst [vmem:[%s3366_s29 + $0x34] sm:$0xf] %v2852_v44  ;;  %2853 = vst [vmem:[#allocation3] sm:$0xf] %v2852_v44 }
 0xf31   : > { %v2867_v22 = vld [vmem:[#allocation3] sm:$0xf] }
 0xf32   : > { %2901 = vmatmul.mubr.bf16.vlgmr.msra.gmra.mrb[88].mxu0 %v2867_v22  ;;  %2942 = vmatmul.mubr.bf16.vlgmr.msra.gmra.mrb[88].mxu1 %v2867_v22 }
 0xf33   : > { %2996 = vmatpush1.bf16.msra.mxu0 %v5097_v48  ;;  %3037 = vmatpush1.bf16.msra.mxu1 %v5101_v49 }
 0xf34   : > { %2997 = vmatprep.subr.bf16.mxu0 %v5105_v50  ;;  %3038 = vmatprep.subr.bf16.mxu1 %v5109_v38  ;;  %v3667_v38 = vld [vmem:[%s3370_s12 + $0x1c8] sm:$0xff] }
 0xf35   : > { %3027 = vmatprep.mubr.bf16.mxu0 %v4238_v4  ;;  %3068 = vmatprep.mubr.bf16.mxu1 %v4238_v4  ;;  %v3666_v4 = vld [vmem:[%s3370_s12 + $0x1c0] sm:$0xff] }
 0xf37   : > { %2998 = vmatpush1.bf16.msra.mxu0 %v5115_v39  ;;  %3039 = vmatpush1.bf16.msra.mxu1 %v5119_v51 }
 0xf38   : > { %2999 = vmatprep.subr.bf16.mxu0 %v5123_v52  ;;  %3040 = vmatprep.subr.bf16.mxu1 %v5127_v53 }
 0xf3b   : > { %3000 = vmatpush1.bf16.msra.mxu0 %v5131_v55  ;;  %3041 = vmatpush1.bf16.msra.mxu1 %v5135_v56 }
 0xf3c   : > { %3001 = vmatprep.subr.bf16.mxu0 %v5139_v57  ;;  %3042 = vmatprep.subr.bf16.mxu1 %v5143_v58 }
 0xf3f   : > { %3002 = vmatpush1.bf16.msra.mxu0 %v5147_v59  ;;  %3043 = vmatpush1.bf16.msra.mxu1 %v5151_v60  ;;  %v3669_v60 = vld [vmem:[%s3370_s12 + $0x1d8] sm:$0xff] }
 0xf40   : > { %3003 = vmatprep.subr.bf16.mxu0 %v5155_v61  ;;  %3044 = vmatprep.subr.bf16.mxu1 %v5159_v62  ;;  %v3668_v62 = vld [vmem:[%s3370_s12 + $0x1d0] sm:$0xff] }
 0xf43   : > { %3004 = vmatpush1.bf16.msra.mxu0 %v5163_v0  ;;  %3045 = vmatpush1.bf16.msra.mxu1 %v5167_v1 }
 0xf44   : > { %3005 = vmatprep.subr.bf16.mxu0 %v5171_v2  ;;  %3046 = vmatprep.subr.bf16.mxu1 %v5175_v3 }
 0xf47   : > { %3006 = vmatpush1.bf16.msra.mxu0 %v5179_v5  ;;  %3047 = vmatpush1.bf16.msra.mxu1 %v5183_v46 }
 0xf48   : > { %3007 = vmatprep.subr.bf16.mxu0 %v5187_v6  ;;  %3048 = vmatprep.subr.bf16.mxu1 %v5191_v7 }
 0xf4b   : > { %3008 = vmatpush1.bf16.msra.mxu0 %v5195_v13  ;;  %3049 = vmatpush1.bf16.msra.mxu1 %v5199_v32 }
 0xf4c   : > { %3009 = vmatprep.subr.bf16.mxu0 %v5203_v35  ;;  %3050 = vmatprep.subr.bf16.mxu1 %v5207_v36 }
 0xf4f   : > { %3010 = vmatpush1.bf16.msra.mxu0 %v5211_v33  ;;  %3051 = vmatpush1.bf16.msra.mxu1 %v5215_v34 }
0x1005   : > { %v2902_v48 = vpop.f32.mrb[88].mxu0  ;;  %v2943_v49 = vpop.f32.mrb[88].mxu1 }
0x1006   : > { %v2950_v50 = vadd.f32 %v3666_v4, %v2902_v48  ;;  %v2904_v39 = vpop.f32.mrb[89].mxu0  ;;  %v2945_v51 = vpop.f32.mrb[89].mxu1  ;;  %v2952_v1 = vadd.f32 %v3668_v62, %v2943_v49 }
0x1007   : > { %v2951_v52 = vadd.f32 %v3667_v38, %v2904_v39  ;;  %v2906_v53 = vpop.f32.mrb[90].mxu0  ;;  %v2947_v55 = vpop.f32.mrb[90].mxu1  ;;  %v2953_v61 = vadd.f32 %v3669_v60, %v2945_v51 }
0x1008   : > { %v3670_v56 = vmul.f32 -1.442695, %v2950_v50  ;;  %v2907_v57 = vpop.f32.mrb[91].mxu0  ;;  %v2948_v58 = vpop.f32.mrb[91].mxu1 }
0x1009   : > { %v3671_v59 = vmul.f32 -1.442695, %v2951_v52  ;;  %v3672_v0 = vmul.f32 -1.442695, %v2953_v61 }
0x100a   : > { %4084 = vpow2.f32 %v3670_v56 }
0x100b   : > { %4086 = vpow2.f32 %v3671_v59 }
0x100c   : > { %4088 = vpow2.f32 %v3672_v0 }
0x100d   : > { %4090 = vtanh.f32 %v2952_v1 }
0x1014   : > { %v4085_v2 = vpop.eup %4084 }
0x1015   : > { %v4087_v3 = vpop.eup %4086  ;;  %v2958_v5 = vadd.f32 1.0, %v4085_v2 }
0x1016   : > { %v2964_v46 = vadd.f32 1.0, %v4087_v3  ;;  %v4089_v6 = vpop.eup %4088 }
0x1017   : > { %4092 = vrcp.f32 %v2958_v5  ;;  %v4091_v7 = vpop.eup %4090  ;;  %v2971_v36 = vadd.f32 1.0, %v4089_v6 }
0x1018   : > { %4094 = vrcp.f32 %v2964_v46 }
0x1019   : > { %4096 = vrcp.f32 %v2971_v36 }
0x1021   : > { %v4093_v13 = vpop.eup %4092 }
0x1022   : > { %v4095_v32 = vpop.eup %4094  ;;  %v2975_v35 = vmul.f32 %v4093_v13, %v4091_v7 }
0x1023   : > { %v2974_v33 = vmul.f32 %v4095_v32, %v5386_v41  ;;  %v4097_v26 = vpop.eup %4096 }
0x1025   : > { %v2976_v34 = vadd.f32 %v2975_v35, %v2974_v33 }
0x1027   : > { %4098 = vtanh.f32 %v2976_v34 }
0x1031   : > { %v4099_v25 = vpop.eup %4098 }
0x1032   : > { %v2978_v23 = vmul.f32 %v4099_v25, %v4097_v26 }
0x1034   : > { %v2979_v27 = vpack.c.bf16 %v2978_v23, %v2978_v23 }
0x1036   : > { %3674 = vst [vmem:[%s3374_s13 + $0x38] sm:$0xf] %v2979_v27  ;;  %2980 = vst [vmem:[#allocation3] sm:$0xf] %v2979_v27 }
0x103d   : > { %v2994_v28 = vld [vmem:[#allocation3] sm:$0xf] }
0x103e   : > { %3028 = vmatmul.mubr.bf16.vlgmr.msra.gmra.mrb[92].mxu0 %v2994_v28  ;;  %3069 = vmatmul.mubr.bf16.vlgmr.msra.gmra.mrb[92].mxu1 %v2994_v28 }
0x1111   : > { %v3029_v47 = vpop.f32.mrb[92].mxu0  ;;  %v3070_v45 = vpop.f32.mrb[92].mxu1 }
0x1112   : > { %v3077_v54 = vadd.f32 %v3676_v29, %v3029_v47  ;;  %v3031_v8 = vpop.f32.mrb[93].mxu0  ;;  %v3072_v30 = vpop.f32.mrb[93].mxu1  ;;  %v3079_v18 = vadd.f32 %v3678_v17, %v3070_v45 }
0x1113   : > { %v3078_v31 = vadd.f32 %v3677_v63, %v3031_v8  ;;  %v3033_v9 = vpop.f32.mrb[94].mxu0  ;;  %v3074_v10 = vpop.f32.mrb[94].mxu1  ;;  %v3080_v20 = vadd.f32 %v3679_v16, %v3072_v30 }
0x1114   : > { %v3680_v11 = vmul.f32 -1.442695, %v3077_v54  ;;  %v3034_v12 = vpop.f32.mrb[95].mxu0  ;;  %v3075_v14 = vpop.f32.mrb[95].mxu1 }
0x1115   : > { %v3681_v15 = vmul.f32 -1.442695, %v3078_v31  ;;  %v3682_v21 = vmul.f32 -1.442695, %v3080_v20 }
0x1116   : > { %4100 = vpow2.f32 %v3680_v11 }
0x1117   : > { %4102 = vpow2.f32 %v3681_v15 }
0x1118   : > { %4104 = vpow2.f32 %v3682_v21 }
0x1119   : > { %4106 = vtanh.f32 %v3079_v18 }
0x1120   : > { %v4101_v19 = vpop.eup %4100 }
0x1121   : > { %v4103_v24 = vpop.eup %4102  ;;  %v3085_v40 = vadd.f32 1.0, %v4101_v19 }
0x1122   : > { %v3091_v41 = vadd.f32 1.0, %v4103_v24  ;;  %v4105_v42 = vpop.eup %4104 }
0x1123   : > { %4108 = vrcp.f32 %v3085_v40  ;;  %v4107_v37 = vpop.eup %4106  ;;  %v3098_v4 = vadd.f32 1.0, %v4105_v42 }
0x1124   : > { %4110 = vrcp.f32 %v3091_v41 }
0x1125   : > { %4112 = vrcp.f32 %v3098_v4 }
0x112d   : > { %v4109_v43 = vpop.eup %4108 }
0x112e   : > { %v4111_v44 = vpop.eup %4110  ;;  %v3102_v22 = vmul.f32 %v4109_v43, %v4107_v37 }
0x112f   : > { %v3101_v48 = vmul.f32 %v4111_v44, %v2976_v34  ;;  %v4113_v50 = vpop.eup %4112 }
0x1131   : > { %v3103_v49 = vadd.f32 %v3102_v22, %v3101_v48 }
0x1133   : > { %4114 = vtanh.f32 %v3103_v49  ;;  %3108 = vst [vmem:[#allocation4] sm:$0xff] %v3103_v49 }
0x113c   : > { %3118 = sbr.rel (!%p4319_p4) target bundleno = 4436 (0x1154), region = 44 }
0x113d   : > { %v4115_v38 = vpop.eup %4114 }
0x113e   : > { %v3105_v39 = vmul.f32 %v4115_v38, %v4113_v50 }
0x1140   : > { %v3106_v51 = vpack.c.bf16 %v3105_v39, %v3105_v39 }
0x1142   : > { %3107 = vst [vmem:[#allocation3] sm:$0xf] %v3106_v51  ;;  %3684 = vst [vmem:[%s3382_s28 + $0x3c] sm:$0xf] %v3106_v51 }
0x1149   : > { %v3144_v52 = vld [vmem:[%s4359_s5] sm:$0xf]  ;;  %v3146_v53 = vld [vmem:[%s4359_s5 + $0x4] sm:$0xf]  ;;  %v3148_v55 = vld [vmem:[%s4359_s5 + $0x8] sm:$0xf] }
0x114a   : > { %v3150_v56 = vld [vmem:[%s4359_s5 + $0xc] sm:$0xf]  ;;  %v3152_v57 = vld [vmem:[%s4359_s5 + $0x10] sm:$0xf]  ;;  %v3154_v58 = vld [vmem:[%s4359_s5 + $0x14] sm:$0xf] }
0x114b   : > { %v3156_v59 = vld [vmem:[%s4359_s5 + $0x18] sm:$0xf]  ;;  %v3158_v60 = vld [vmem:[%s4359_s5 + $0x1c] sm:$0xf]  ;;  %v3160_v61 = vld [vmem:[%s4359_s5 + $0x20] sm:$0xf] }
0x114c   : > { %v3162_v62 = vld [vmem:[%s4359_s5 + $0x24] sm:$0xf]  ;;  %3145 = vst [vmem:[%s3128_s26] sm:$0xf] %v3144_v52  ;;  %3147 = vst [vmem:[%s3128_s26 + $0x8] sm:$0xf] %v3146_v53 }
0x114d   : > { %3149 = vst [vmem:[%s3128_s26 + $0x10] sm:$0xf] %v3148_v55  ;;  %3151 = vst [vmem:[%s3128_s26 + $0x18] sm:$0xf] %v3150_v56  ;;  %v3164_v0 = vld [vmem:[%s4359_s5 + $0x28] sm:$0xf] }
0x114e   : > { %3153 = vst [vmem:[%s3128_s26 + $0x20] sm:$0xf] %v3152_v57  ;;  %3155 = vst [vmem:[%s3128_s26 + $0x28] sm:$0xf] %v3154_v58  ;;  %v3166_v1 = vld [vmem:[%s4359_s5 + $0x2c] sm:$0xf] }
0x114f   : > { %3157 = vst [vmem:[%s3128_s26 + $0x30] sm:$0xf] %v3156_v59  ;;  %3159 = vst [vmem:[%s3128_s26 + $0x38] sm:$0xf] %v3158_v60  ;;  %v3168_v2 = vld [vmem:[%s4359_s5 + $0x30] sm:$0xf] }
0x1150   : > { %3161 = vst [vmem:[%s3128_s26 + $0x40] sm:$0xf] %v3160_v61  ;;  %3163 = vst [vmem:[%s3128_s26 + $0x48] sm:$0xf] %v3162_v62  ;;  %v3170_v3 = vld [vmem:[%s4359_s5 + $0x34] sm:$0xf] }
0x1151   : > { %3165 = vst [vmem:[%s3128_s26 + $0x50] sm:$0xf] %v3164_v0  ;;  %3167 = vst [vmem:[%s3128_s26 + $0x58] sm:$0xf] %v3166_v1  ;;  %v3172_v5 = vld [vmem:[%s4359_s5 + $0x38] sm:$0xf] }
0x1152   : > { %3169 = vst [vmem:[%s3128_s26 + $0x60] sm:$0xf] %v3168_v2  ;;  %v3174_v46 = vld [vmem:[%s4359_s5 + $0x3c] sm:$0xf]  ;;  %3171 = vst [vmem:[%s3128_s26 + $0x68] sm:$0xf] %v3170_v3 }
0x1153   : > { %3173 = vst [vmem:[%s3128_s26 + $0x70] sm:$0xf] %v3172_v5  ;;  %3175 = vst [vmem:[%s3128_s26 + $0x78] sm:$0xf] %v3174_v46 }
0x1154 PF: > { %s14_s21 = sadd.s32 1, %s4234_s21   ;;  %s5484_s30 = sld [smem:[#allocation6_spill]] }
0x1155   : > { %p11_p12 = scmp.ge.s32.totalorder %s14_s21, 6   ;;  %s5485_s7 = sld [smem:[#allocation7_spill]] }
0x1156   : > { %s5486_s15 = smov %s4214_s16  ;;  %s5487_s16 = smov %s4327_s14 }
0x1157   : > { %s5488_s17 = smov %s4226_s19  ;;  %s5489_s18 = smov %s4230_s20 }
0x1158   :  { %13 = sbr.rel (!%p11_p12) target bundleno = 4 (0x4), region = 152 }
0x115a   : > { %s5490_s19 = smov %s5484_s30 }
0x115b   : > { %s5491_s20 = smov %s5485_s7 }

</bundles_post_ra>
